<compile_context>
chip_gen: v6e
topology: v6e:2x2x1
jax: 0.10.0
libtpu: 0.0.40
codegen_flags: <defaults>
</compile_context>

<pallas_src>
import jax
import jax.numpy as jnp
from jax.experimental import pallas as pl
from jax.experimental.pallas import tpu as pltpu

# ---- logical dims (from the PyTorch module) ----
P_IN, H1, H2 = 205, 88, 111
SC_IN, SC_H = 2278, 984
N_OUT = 3

# ---- lane-padded dims (multiples of 128) ----
P_IN_P, H1_P, H2_P = 256, 128, 128
SC_IN_P, SC_H_P = 2304, 1024
N_OUT_P = 128


def _round_up(x, m):
    return (x + m - 1) // m * m


# --------------------------------------------------------------------------
# Kernel: two Linear+ReLU branches (BN already folded into the weights) and a
# shared output head, all on one batch tile.  Weights are bf16, activations
# are cast to bf16 right before each MXU dot, accumulation is f32.
# --------------------------------------------------------------------------
def coef_model_2_kernel(
    param_ref, sc_ref,
    w1_ref, b1_ref,          # param path: Linear(256p -> 128p)
    w2_ref, b2_ref,          # param path: Linear(128p -> 128p)  (BN1 folded in)
    w3_ref, b3_ref,          # sc path:    Linear(2304p -> 1024p)
    w4_ref, b4_ref,          # sc path:    Linear(1024p -> 128p) (BN3 folded in)
    w5p_ref, w5s_ref, b5_ref,  # head: Linear(128p -> 128p) x2   (BN2/BN4 folded in)
    out_ref,
):
    f32 = jnp.float32
    bf16 = jnp.bfloat16

    # ---- param branch ----
    x = param_ref[...].astype(bf16)
    h = jnp.dot(x, w1_ref[...], preferred_element_type=f32) + b1_ref[...]
    h = jnp.maximum(h, 0.0)
    h = jnp.dot(h.astype(bf16), w2_ref[...], preferred_element_type=f32) + b2_ref[...]
    h = jnp.maximum(h, 0.0)

    # ---- sc branch ----
    y = sc_ref[...].astype(bf16)
    g = jnp.dot(y, w3_ref[...], preferred_element_type=f32) + b3_ref[...]
    g = jnp.maximum(g, 0.0)
    g = jnp.dot(g.astype(bf16), w4_ref[...], preferred_element_type=f32) + b4_ref[...]
    g = jnp.maximum(g, 0.0)

    # ---- output head: sigmoid((param_emb + sc_emb) @ W5 + b5), BN folded ----
    logits = (jnp.dot(h.astype(bf16), w5p_ref[...], preferred_element_type=f32)
              + jnp.dot(g.astype(bf16), w5s_ref[...], preferred_element_type=f32)
              + b5_ref[...])
    out_ref[...] = jax.nn.sigmoid(logits).astype(out_ref.dtype)


# --------------------------------------------------------------------------
# Parameter construction (PyTorch-style init) + BN folding / padding / bf16.
# --------------------------------------------------------------------------
def _linear_params(key, fan_in, fan_out):
    """PyTorch nn.Linear default init: U(-1/sqrt(fan_in), 1/sqrt(fan_in))."""
    kw, kb = jax.random.split(key)
    bound = 1.0 / jnp.sqrt(jnp.float32(fan_in))
    w = jax.random.uniform(kw, (fan_in, fan_out), jnp.float32, -bound, bound)
    b = jax.random.uniform(kb, (1, fan_out), jnp.float32, -bound, bound)
    return w, b


def _bn_affine(key, dim, eps=1e-5):
    """Eval-mode BatchNorm1d folded to per-feature scale/shift."""
    kg, kb, km, kv = jax.random.split(key, 4)
    gamma = 1.0 + 0.1 * jax.random.normal(kg, (1, dim), jnp.float32)
    beta = 0.1 * jax.random.normal(kb, (1, dim), jnp.float32)
    running_mean = 0.1 * jax.random.normal(km, (1, dim), jnp.float32)
    running_var = jnp.abs(1.0 + 0.1 * jax.random.normal(kv, (1, dim), jnp.float32))
    scale = gamma / jnp.sqrt(running_var + eps)
    shift = beta - running_mean * scale
    return scale, shift


def make_params(seed=0):
    keys = jax.random.split(jax.random.PRNGKey(seed), 9)
    w1, b1 = _linear_params(keys[0], P_IN, H1)
    s1, t1 = _bn_affine(keys[1], H1)
    w2, b2 = _linear_params(keys[2], H1, H2)
    s2, t2 = _bn_affine(keys[3], H2)
    w3, b3 = _linear_params(keys[4], SC_IN, SC_H)
    s3, t3 = _bn_affine(keys[5], SC_H)
    w4, b4 = _linear_params(keys[6], SC_H, H2)
    s4, t4 = _bn_affine(keys[7], H2)
    w5, b5 = _linear_params(keys[8], H2, N_OUT)
    return (w1, b1, s1, t1, w2, b2, s2, t2,
            w3, b3, s3, t3, w4, b4, s4, t4, w5, b5)


def fold_and_pad_params(params):
    """Fold BN affines into the next Linear, pad to lane multiples, cast bf16."""
    (w1, b1, s1, t1, w2, b2, s2, t2,
     w3, b3, s3, t3, w4, b4, s4, t4, w5, b5) = params

    # (x*s + t) @ W + b  ==  x @ (diag(s) W) + (t @ W + b)
    w2f = s1.reshape(-1, 1) * w2
    b2f = t1 @ w2 + b2
    w4f = s3.reshape(-1, 1) * w4
    b4f = t3 @ w4 + b4
    # (h*s2+t2 + g*s4+t4) @ W5 + b5 == h@(diag(s2)W5) + g@(diag(s4)W5) + ((t2+t4)@W5 + b5)
    w5p = s2.reshape(-1, 1) * w5
    w5s = s4.reshape(-1, 1) * w5
    b5f = (t2 + t4) @ w5 + b5

    def padw(w, r, c):
        return jnp.pad(w, ((0, r - w.shape[0]), (0, c - w.shape[1]))).astype(jnp.bfloat16)

    def padb(b, c):
        return jnp.pad(b, ((0, 0), (0, c - b.shape[1]))).astype(jnp.float32)

    return (
        padw(w1, P_IN_P, H1_P), padb(b1, H1_P),
        padw(w2f, H1_P, H2_P), padb(b2f, H2_P),
        padw(w3, SC_IN_P, SC_H_P), padb(b3, SC_H_P),
        padw(w4f, SC_H_P, H2_P), padb(b4f, H2_P),
        padw(w5p, H2_P, N_OUT_P), padw(w5s, H2_P, N_OUT_P), padb(b5f, N_OUT_P),
    )


# --------------------------------------------------------------------------
# Wrapper: batch-tiled grid, weights VMEM-resident via constant index_map.
# --------------------------------------------------------------------------
def coef_model_2_forward(parameter, sc_mat, kparams):
    bs = parameter.shape[0]
    tb = _round_up(bs, 8) if bs <= 512 else 256
    bs_pad = _round_up(bs, tb)
    nb = bs_pad // tb

    p = jnp.pad(parameter.astype(jnp.float32),
                ((0, bs_pad - bs), (0, P_IN_P - parameter.shape[1])))
    s = jnp.pad(sc_mat.astype(jnp.float32),
                ((0, bs_pad - bs), (0, SC_IN_P - sc_mat.shape[1])))

    def batch_spec(cols):
        return pl.BlockSpec((tb, cols), lambda i: (i, 0))

    def const_spec(shape):
        return pl.BlockSpec(shape, lambda i: (0, 0))

    in_specs = ([batch_spec(P_IN_P), batch_spec(SC_IN_P)]
                + [const_spec(k.shape) for k in kparams])

    flops = 2 * bs_pad * (P_IN_P * H1_P + H1_P * H2_P + SC_IN_P * SC_H_P
                          + SC_H_P * H2_P + 2 * H2_P * N_OUT_P)
    bytes_accessed = int(p.nbytes) + int(s.nbytes) \
        + sum(int(k.nbytes) for k in kparams) + bs_pad * N_OUT_P * 4
    cost = pl.CostEstimate(flops=flops,
                           transcendentals=bs_pad * N_OUT_P,
                           bytes_accessed=bytes_accessed)

    out = pl.pallas_call(
        coef_model_2_kernel,
        out_shape=jax.ShapeDtypeStruct((bs_pad, N_OUT_P), jnp.float32),
        grid=(nb,),
        in_specs=in_specs,
        out_specs=pl.BlockSpec((tb, N_OUT_P), lambda i: (i, 0)),
        compiler_params=pltpu.CompilerParams(
            dimension_semantics=("parallel",),
            vmem_limit_bytes=24 << 20,
        ),
        cost_estimate=cost,
    )(p, s, *kparams)
    return out[:bs, :N_OUT]


# --------------------------------------------------------------------------
# References.
# --------------------------------------------------------------------------
def reference_forward_f32(parameter, sc_mat, params):
    """Original (unfolded, full f32) semantics of CoefModel_2 in eval mode."""
    (w1, b1, s1, t1, w2, b2, s2, t2,
     w3, b3, s3, t3, w4, b4, s4, t4, w5, b5) = params
    h = jnp.maximum(parameter @ w1 + b1, 0.0) * s1 + t1
    param_emb = jnp.maximum(h @ w2 + b2, 0.0) * s2 + t2
    g = jnp.maximum(sc_mat @ w3 + b3, 0.0) * s3 + t3
    sc_emb = jnp.maximum(g @ w4 + b4, 0.0) * s4 + t4
    return jax.nn.sigmoid((param_emb + sc_emb) @ w5 + b5)


def reference_forward_matched(parameter, sc_mat, kparams):
    """Same folded/padded bf16 weights as the kernel, f32 accumulation."""
    (w1, b1, w2, b2, w3, b3, w4, b4, w5p, w5s, b5) = kparams

    def bdot(x, w):
        return jnp.dot(x.astype(jnp.bfloat16).astype(jnp.float32),
                       w.astype(jnp.float32),
                       preferred_element_type=jnp.float32)

    p = jnp.pad(parameter, ((0, 0), (0, P_IN_P - parameter.shape[1])))
    s = jnp.pad(sc_mat, ((0, 0), (0, SC_IN_P - sc_mat.shape[1])))
    h = jnp.maximum(bdot(p, w1) + b1, 0.0)
    h = jnp.maximum(bdot(h, w2) + b2, 0.0)
    g = jnp.maximum(bdot(s, w3) + b3, 0.0)
    g = jnp.maximum(bdot(g, w4) + b4, 0.0)
    logits = bdot(h, w5p) + bdot(g, w5s) + b5
    return jax.nn.sigmoid(logits)[:, :N_OUT]


if __name__ == "__main__":
    bs = 8
    key = jax.random.PRNGKey(0)
    k_param, k_sc = jax.random.split(key)
    parameter = jax.random.normal(k_param, (bs, P_IN), jnp.float32)
    sc_mat = jax.random.normal(k_sc, (bs, SC_IN), jnp.float32)

    params = make_params(seed=0)
    kparams = fold_and_pad_params(params)

    out = coef_model_2_forward(parameter, sc_mat, kparams)
    out = jax.block_until_ready(out)
    assert out.shape == (bs, N_OUT)

    # Tight check vs a reference that uses identical bf16 folded weights.
    ref_exact = reference_forward_matched(parameter, sc_mat, kparams)
    assert jnp.allclose(out, ref_exact, atol=2e-3, rtol=2e-3), \
        "mismatch vs bf16-matched reference"

    # Loose check vs the original full-f32 unfolded model (bf16 quantization).
    ref_f32 = reference_forward_f32(parameter, sc_mat, params)
    assert jnp.allclose(out, ref_f32, atol=5e-2, rtol=0.0), \
        "mismatch vs f32 reference"

    print("KERNEL_OK")
</pallas_src>

<mosaic_0001>
module attributes {stable_mosaic.version = 11 : i64} {
  func.func @coef_model_2_kernel(%arg0: i32, %arg1: memref<8x256xf32, #tpu.memory_space<vmem>>, %arg2: memref<8x2304xf32, #tpu.memory_space<vmem>>, %arg3: memref<256x128xbf16, #tpu.memory_space<vmem>>, %arg4: memref<1x128xf32, #tpu.memory_space<vmem>>, %arg5: memref<128x128xbf16, #tpu.memory_space<vmem>>, %arg6: memref<1x128xf32, #tpu.memory_space<vmem>>, %arg7: memref<2304x1024xbf16, #tpu.memory_space<vmem>>, %arg8: memref<1x1024xf32, #tpu.memory_space<vmem>>, %arg9: memref<1024x128xbf16, #tpu.memory_space<vmem>>, %arg10: memref<1x128xf32, #tpu.memory_space<vmem>>, %arg11: memref<128x128xbf16, #tpu.memory_space<vmem>>, %arg12: memref<128x128xbf16, #tpu.memory_space<vmem>>, %arg13: memref<1x128xf32, #tpu.memory_space<vmem>>, %arg14: memref<8x128xf32, #tpu.memory_space<vmem>>) attributes {dimension_semantics = [#tpu.dimension_semantics<parallel>], iteration_bounds = array<i64: 1>, scalar_prefetch = 0 : i64, scratch_operands = 0 : i64, tpu.core_type = #tpu.core_type<tc>, window_params = [{transform_indices = @transform_0, window_bounds = array<i64: 8, 256>}, {transform_indices = @transform_1, window_bounds = array<i64: 8, 2304>}, {pipeline_mode = #tpu.pipeline_mode<synchronous>, transform_indices = @transform_2, window_bounds = array<i64: 256, 128>}, {pipeline_mode = #tpu.pipeline_mode<synchronous>, transform_indices = @transform_3, window_bounds = array<i64: 1, 128>}, {pipeline_mode = #tpu.pipeline_mode<synchronous>, transform_indices = @transform_4, window_bounds = array<i64: 128, 128>}, {pipeline_mode = #tpu.pipeline_mode<synchronous>, transform_indices = @transform_5, window_bounds = array<i64: 1, 128>}, {pipeline_mode = #tpu.pipeline_mode<synchronous>, transform_indices = @transform_6, window_bounds = array<i64: 2304, 1024>}, {pipeline_mode = #tpu.pipeline_mode<synchronous>, transform_indices = @transform_7, window_bounds = array<i64: 1, 1024>}, {pipeline_mode = #tpu.pipeline_mode<synchronous>, transform_indices = @transform_8, window_bounds = array<i64: 1024, 128>}, {pipeline_mode = #tpu.pipeline_mode<synchronous>, transform_indices = @transform_9, window_bounds = array<i64: 1, 128>}, {pipeline_mode = #tpu.pipeline_mode<synchronous>, transform_indices = @transform_10, window_bounds = array<i64: 128, 128>}, {pipeline_mode = #tpu.pipeline_mode<synchronous>, transform_indices = @transform_11, window_bounds = array<i64: 128, 128>}, {pipeline_mode = #tpu.pipeline_mode<synchronous>, transform_indices = @transform_12, window_bounds = array<i64: 1, 128>}, {transform_indices = @transform_13, window_bounds = array<i64: 8, 128>}]} {
    %c0 = arith.constant 0 : index
    %c0_0 = arith.constant 0 : index
    %0 = vector.load %arg1[%c0, %c0_0] : memref<8x256xf32, #tpu.memory_space<vmem>>, vector<8x256xf32>
    %1 = arith.truncf %0 : vector<8x256xf32> to vector<8x256xbf16>
    %c0_1 = arith.constant 0 : index
    %c0_2 = arith.constant 0 : index
    %2 = vector.load %arg3[%c0_1, %c0_2] : memref<256x128xbf16, #tpu.memory_space<vmem>>, vector<256x128xbf16>
    %cst = arith.constant dense<0.000000e+00> : vector<8x128xf32>
    %3 = tpu.matmul %1, %2, %cst {dimension_numbers = #tpu.dot_dimension_numbers<[1], [0], [0], [1], [0, 0, 1, 1], [], []>} : vector<8x256xbf16>, vector<256x128xbf16>, vector<8x128xf32> -> vector<8x128xf32>
    %c0_3 = arith.constant 0 : index
    %c0_4 = arith.constant 0 : index
    %4 = vector.load %arg4[%c0_3, %c0_4] : memref<1x128xf32, #tpu.memory_space<vmem>>, vector<1x128xf32>
    %5 = vector.broadcast %4 : vector<1x128xf32> to vector<8x128xf32>
    %6 = arith.addf %3, %5 : vector<8x128xf32>
    %cst_5 = arith.constant 0.000000e+00 : f32
    %7 = vector.broadcast %cst_5 : f32 to vector<8x128xf32>
    %8 = arith.maximumf %6, %7 : vector<8x128xf32>
    %9 = arith.truncf %8 : vector<8x128xf32> to vector<8x128xbf16>
    %c0_6 = arith.constant 0 : index
    %c0_7 = arith.constant 0 : index
    %10 = vector.load %arg5[%c0_6, %c0_7] : memref<128x128xbf16, #tpu.memory_space<vmem>>, vector<128x128xbf16>
    %cst_8 = arith.constant dense<0.000000e+00> : vector<8x128xf32>
    %11 = tpu.matmul %9, %10, %cst_8 {dimension_numbers = #tpu.dot_dimension_numbers<[1], [0], [0], [1], [0, 0, 1, 1], [], []>} : vector<8x128xbf16>, vector<128x128xbf16>, vector<8x128xf32> -> vector<8x128xf32>
    %c0_9 = arith.constant 0 : index
    %c0_10 = arith.constant 0 : index
    %12 = vector.load %arg6[%c0_9, %c0_10] : memref<1x128xf32, #tpu.memory_space<vmem>>, vector<1x128xf32>
    %13 = vector.broadcast %12 : vector<1x128xf32> to vector<8x128xf32>
    %14 = arith.addf %11, %13 : vector<8x128xf32>
    %cst_11 = arith.constant 0.000000e+00 : f32
    %15 = vector.broadcast %cst_11 : f32 to vector<8x128xf32>
    %16 = arith.maximumf %14, %15 : vector<8x128xf32>
    %c0_12 = arith.constant 0 : index
    %c0_13 = arith.constant 0 : index
    %17 = vector.load %arg2[%c0_12, %c0_13] : memref<8x2304xf32, #tpu.memory_space<vmem>>, vector<8x2304xf32>
    %18 = arith.truncf %17 : vector<8x2304xf32> to vector<8x2304xbf16>
    %c0_14 = arith.constant 0 : index
    %c0_15 = arith.constant 0 : index
    %19 = vector.load %arg7[%c0_14, %c0_15] : memref<2304x1024xbf16, #tpu.memory_space<vmem>>, vector<2304x1024xbf16>
    %cst_16 = arith.constant dense<0.000000e+00> : vector<8x1024xf32>
    %20 = tpu.matmul %18, %19, %cst_16 {dimension_numbers = #tpu.dot_dimension_numbers<[1], [0], [0], [1], [0, 0, 1, 1], [], []>} : vector<8x2304xbf16>, vector<2304x1024xbf16>, vector<8x1024xf32> -> vector<8x1024xf32>
    %c0_17 = arith.constant 0 : index
    %c0_18 = arith.constant 0 : index
    %21 = vector.load %arg8[%c0_17, %c0_18] : memref<1x1024xf32, #tpu.memory_space<vmem>>, vector<1x1024xf32>
    %22 = vector.broadcast %21 : vector<1x1024xf32> to vector<8x1024xf32>
    %23 = arith.addf %20, %22 : vector<8x1024xf32>
    %cst_19 = arith.constant 0.000000e+00 : f32
    %24 = vector.broadcast %cst_19 : f32 to vector<8x1024xf32>
    %25 = arith.maximumf %23, %24 : vector<8x1024xf32>
    %26 = arith.truncf %25 : vector<8x1024xf32> to vector<8x1024xbf16>
    %c0_20 = arith.constant 0 : index
    %c0_21 = arith.constant 0 : index
    %27 = vector.load %arg9[%c0_20, %c0_21] : memref<1024x128xbf16, #tpu.memory_space<vmem>>, vector<1024x128xbf16>
    %cst_22 = arith.constant dense<0.000000e+00> : vector<8x128xf32>
    %28 = tpu.matmul %26, %27, %cst_22 {dimension_numbers = #tpu.dot_dimension_numbers<[1], [0], [0], [1], [0, 0, 1, 1], [], []>} : vector<8x1024xbf16>, vector<1024x128xbf16>, vector<8x128xf32> -> vector<8x128xf32>
    %c0_23 = arith.constant 0 : index
    %c0_24 = arith.constant 0 : index
    %29 = vector.load %arg10[%c0_23, %c0_24] : memref<1x128xf32, #tpu.memory_space<vmem>>, vector<1x128xf32>
    %30 = vector.broadcast %29 : vector<1x128xf32> to vector<8x128xf32>
    %31 = arith.addf %28, %30 : vector<8x128xf32>
    %cst_25 = arith.constant 0.000000e+00 : f32
    %32 = vector.broadcast %cst_25 : f32 to vector<8x128xf32>
    %33 = arith.maximumf %31, %32 : vector<8x128xf32>
    %34 = arith.truncf %16 : vector<8x128xf32> to vector<8x128xbf16>
    %c0_26 = arith.constant 0 : index
    %c0_27 = arith.constant 0 : index
    %35 = vector.load %arg11[%c0_26, %c0_27] : memref<128x128xbf16, #tpu.memory_space<vmem>>, vector<128x128xbf16>
    %cst_28 = arith.constant dense<0.000000e+00> : vector<8x128xf32>
    %36 = tpu.matmul %34, %35, %cst_28 {dimension_numbers = #tpu.dot_dimension_numbers<[1], [0], [0], [1], [0, 0, 1, 1], [], []>} : vector<8x128xbf16>, vector<128x128xbf16>, vector<8x128xf32> -> vector<8x128xf32>
    %37 = arith.truncf %33 : vector<8x128xf32> to vector<8x128xbf16>
    %c0_29 = arith.constant 0 : index
    %c0_30 = arith.constant 0 : index
    %38 = vector.load %arg12[%c0_29, %c0_30] : memref<128x128xbf16, #tpu.memory_space<vmem>>, vector<128x128xbf16>
    %cst_31 = arith.constant dense<0.000000e+00> : vector<8x128xf32>
    %39 = tpu.matmul %37, %38, %cst_31 {dimension_numbers = #tpu.dot_dimension_numbers<[1], [0], [0], [1], [0, 0, 1, 1], [], []>} : vector<8x128xbf16>, vector<128x128xbf16>, vector<8x128xf32> -> vector<8x128xf32>
    %40 = arith.addf %36, %39 : vector<8x128xf32>
    %c0_32 = arith.constant 0 : index
    %c0_33 = arith.constant 0 : index
    %41 = vector.load %arg13[%c0_32, %c0_33] : memref<1x128xf32, #tpu.memory_space<vmem>>, vector<1x128xf32>
    %42 = vector.broadcast %41 : vector<1x128xf32> to vector<8x128xf32>
    %43 = arith.addf %40, %42 : vector<8x128xf32>
    %44 = arith.negf %43 : vector<8x128xf32>
    %45 = math.exp %44 : vector<8x128xf32>
    %cst_34 = arith.constant 1.000000e+00 : f32
    %46 = vector.broadcast %cst_34 : f32 to vector<8x128xf32>
    %47 = arith.addf %46, %45 : vector<8x128xf32>
    %48 = arith.divf %46, %47 : vector<8x128xf32>
    %c0_35 = arith.constant 0 : index
    %c0_36 = arith.constant 0 : index
    %49 = vector.load %arg14[%c0_35, %c0_36] : memref<8x128xf32, #tpu.memory_space<vmem>>, vector<8x128xf32>
    tpu.vector_store %arg14[%c0_35, %c0_36], %48 {strides = array<i32>} : memref<8x128xf32, #tpu.memory_space<vmem>>, vector<8x128xf32>,
    return
  }
  func.func @transform_0(%arg0: i32) -> (i32, i32) {
    %c0_i32 = arith.constant 0 : i32
    %c0_i32_0 = arith.constant 0 : i32
    return %arg0, %c0_i32 : i32, i32
  }
  func.func @transform_1(%arg0: i32) -> (i32, i32) {
    %c0_i32 = arith.constant 0 : i32
    %c0_i32_0 = arith.constant 0 : i32
    return %arg0, %c0_i32 : i32, i32
  }
  func.func @transform_2(%arg0: i32) -> (i32, i32) {
    %c0_i32 = arith.constant 0 : i32
    %c0_i32_0 = arith.constant 0 : i32
    %c0_i32_1 = arith.constant 0 : i32
    return %c0_i32, %c0_i32_0 : i32, i32
  }
  func.func @transform_3(%arg0: i32) -> (i32, i32) {
    %c0_i32 = arith.constant 0 : i32
    %c0_i32_0 = arith.constant 0 : i32
    %c0_i32_1 = arith.constant 0 : i32
    return %c0_i32, %c0_i32_0 : i32, i32
  }
  func.func @transform_4(%arg0: i32) -> (i32, i32) {
    %c0_i32 = arith.constant 0 : i32
    %c0_i32_0 = arith.constant 0 : i32
    %c0_i32_1 = arith.constant 0 : i32
    return %c0_i32, %c0_i32_0 : i32, i32
  }
  func.func @transform_5(%arg0: i32) -> (i32, i32) {
    %c0_i32 = arith.constant 0 : i32
    %c0_i32_0 = arith.constant 0 : i32
    %c0_i32_1 = arith.constant 0 : i32
    return %c0_i32, %c0_i32_0 : i32, i32
  }
  func.func @transform_6(%arg0: i32) -> (i32, i32) {
    %c0_i32 = arith.constant 0 : i32
    %c0_i32_0 = arith.constant 0 : i32
    %c0_i32_1 = arith.constant 0 : i32
    return %c0_i32, %c0_i32_0 : i32, i32
  }
  func.func @transform_7(%arg0: i32) -> (i32, i32) {
    %c0_i32 = arith.constant 0 : i32
    %c0_i32_0 = arith.constant 0 : i32
    %c0_i32_1 = arith.constant 0 : i32
    return %c0_i32, %c0_i32_0 : i32, i32
  }
  func.func @transform_8(%arg0: i32) -> (i32, i32) {
    %c0_i32 = arith.constant 0 : i32
    %c0_i32_0 = arith.constant 0 : i32
    %c0_i32_1 = arith.constant 0 : i32
    return %c0_i32, %c0_i32_0 : i32, i32
  }
  func.func @transform_9(%arg0: i32) -> (i32, i32) {
    %c0_i32 = arith.constant 0 : i32
    %c0_i32_0 = arith.constant 0 : i32
    %c0_i32_1 = arith.constant 0 : i32
    return %c0_i32, %c0_i32_0 : i32, i32
  }
  func.func @transform_10(%arg0: i32) -> (i32, i32) {
    %c0_i32 = arith.constant 0 : i32
    %c0_i32_0 = arith.constant 0 : i32
    %c0_i32_1 = arith.constant 0 : i32
    return %c0_i32, %c0_i32_0 : i32, i32
  }
  func.func @transform_11(%arg0: i32) -> (i32, i32) {
    %c0_i32 = arith.constant 0 : i32
    %c0_i32_0 = arith.constant 0 : i32
    %c0_i32_1 = arith.constant 0 : i32
    return %c0_i32, %c0_i32_0 : i32, i32
  }
  func.func @transform_12(%arg0: i32) -> (i32, i32) {
    %c0_i32 = arith.constant 0 : i32
    %c0_i32_0 = arith.constant 0 : i32
    %c0_i32_1 = arith.constant 0 : i32
    return %c0_i32, %c0_i32_0 : i32, i32
  }
  func.func @transform_13(%arg0: i32) -> (i32, i32) {
    %c0_i32 = arith.constant 0 : i32
    %c0_i32_0 = arith.constant 0 : i32
    return %arg0, %c0_i32 : i32, i32
  }
}

</mosaic_0001>

<bundles_post_ra>
// kernel: tpu_custom_call.1
= control target key start
LH: loop header
LB: loop body
LE: loop exit
PB: predicated region body
PF: predicated region fallthrough
CT: control target
= control target key end

     0   :  { %18 = vsyncpa [#allocation3], 0  ;;  %s12301_s0 = inlined_call_operand.hbm [shape: f32[8,256], index: 0, kind: input, shape index: {}]   ;;  %s12302_s1 = inlined_call_operand.hbm [shape: f32[8,2304], index: 1, kind: input, shape index: {}]   ;;  %s12303_s2 = inlined_call_operand.hbm [shape: bf16[256,128], index: 2, kind: input, shape index: {}]   ;;  %s12304_s3 = inlined_call_operand.hbm [shape: f32[1,128], index: 3, kind: input, shape index: {}]   ;;  %s12305_s4 = inlined_call_operand.hbm [shape: bf16[128,128], index: 4, kind: input, shape index: {}]   ;;  %s12306_s5 = inlined_call_operand.hbm [shape: f32[1,128], index: 5, kind: input, shape index: {}]   ;;  %s12307_s6 = inlined_call_operand.hbm [shape: bf16[2304,1024], index: 6, kind: input, shape index: {}]   ;;  %s12308_s7 = inlined_call_operand.hbm [shape: f32[1,1024], index: 7, kind: input, shape index: {}]   ;;  %s12309_s8 = inlined_call_operand.hbm [shape: bf16[1024,128], index: 8, kind: input, shape index: {}]   ;;  %s12310_s9 = inlined_call_operand.hbm [shape: f32[1,128], index: 9, kind: input, shape index: {}]   ;;  %s12311_s10 = inlined_call_operand.hbm [shape: bf16[128,128], index: 10, kind: input, shape index: {}]   ;;  %s12312_s11 = inlined_call_operand.hbm [shape: bf16[128,128], index: 11, kind: input, shape index: {}]   ;;  %s12313_s12 = inlined_call_operand.hbm [shape: f32[1,128], index: 12, kind: input, shape index: {}]   ;;  %s12314_s13 = inlined_call_operand.hbm [shape: f32[8,128], index: 13, kind: output, shape index: {}]  }
   0x1   :  { %19 = vsyncpa [#allocation6], 0 }
   0x2   :  { %20 = vsyncpa [#allocation9], 0 }
   0x3   :  { %21 = vsyncpa [#allocation12], 0 }
   0x4   :  { %22 = vsyncpa [#allocation15], 0 }
   0x5   :  { %23 = vsyncpa [#allocation18], 0 }
   0x6   :  { %24 = vsyncpa [#allocation21], 0 }
   0x7   :  { %25 = vsyncpa [#allocation4], 0  ;;  %s11794_s25 = smov [#allocation5]   ;;  %s11795_s27 = smov [#allocation8]  }
   0x8   :  { %s42_s26 = sshll.u32 %s11794_s25, 4  ;;  %s64_s28 = sshll.u32 %s11795_s27, 4  ;;  %s43_s26 = int_to_ptr.vmem [resolvable:$true] %s42_s26  ;;  %s65_s28 = int_to_ptr.vmem [resolvable:$true] %s64_s28 }
   0x9   :  { %s11506_s29 = scalar_lea.vmem %s43_s26, 2304  ;;  %p11511_p1 = scmp.lt.s32.totalorder %s43_s26, %s43_s26 }
   0xa   :  { %p11507_p0 = scmp.ne.s32.totalorder %s43_s26, %s11506_s29  ;;  %p11512_p2 = scmp.lt.s32.totalorder %s11506_s29, %s11506_s29 }
   0xc   :  { %p11513_p3 = por %p11512_p2, %p11511_p1 }
   0xe   :  { %p11514_p4 = pnand %p11513_p3, %p11507_p0 }
  0x10   :  { %11517 = shalt.err (!%p11514_p4)
}
  0x11   :  { %45 = dma.hbm_to_vmem [thread:$0]  %s12302_s1, 2304, %s43_s26, [#allocation6]  }
  0x12   :  { %s11526_s15 = scalar_lea.vmem %s65_s28, 16  ;;  %s11530_s16 = scalar_lea.vmem %s65_s28, 32 }
  0x13   :  { %p11527_p5 = scmp.ne.s32.totalorder %s65_s28, %s11526_s15  ;;  %p11531_p6 = scmp.lt.s32.totalorder %s65_s28, %s65_s28 }
  0x14   :  { %p11532_p7 = scmp.lt.s32.totalorder %s11530_s16, %s11526_s15 }
  0x16   :  { %p11533_p8 = por %p11532_p7, %p11531_p6 }
  0x18   :  { %p11534_p9 = pnand %p11533_p8, %p11527_p5 }
  0x1a   :  { %11537 = shalt.err (!%p11534_p9)
}
  0x1b   :  { %67 = dma.hbm_to_vmem [thread:$0]  %s12304_s3, 16, %s65_s28, [#allocation9]  }
  0x1c   :  { %s11796_s19 = smov [#allocation11]   ;;  %s11797_s21 = smov [#allocation14]  }
  0x1d   :  { %s86_s20 = sshll.u32 %s11796_s19, 4  ;;  %s108_s22 = sshll.u32 %s11797_s21, 4  ;;  %s87_s20 = int_to_ptr.vmem [resolvable:$true] %s86_s20  ;;  %s109_s22 = int_to_ptr.vmem [resolvable:$true] %s108_s22 }
  0x1e   :  { %s11546_s23 = scalar_lea.vmem %s87_s20, 16  ;;  %s11550_s1 = scalar_lea.vmem %s87_s20, 32 }
  0x1f   :  { %p11547_p10 = scmp.ne.s32.totalorder %s87_s20, %s11546_s23  ;;  %p11551_p11 = scmp.lt.s32.totalorder %s87_s20, %s87_s20 }
  0x20   :  { %p11552_p12 = scmp.lt.s32.totalorder %s11550_s1, %s11546_s23 }
  0x22   :  { %p11553_p13 = por %p11552_p12, %p11551_p11 }
  0x24   :  { %p11554_p0 = pnand %p11553_p13, %p11547_p10 }
  0x26   :  { %11557 = shalt.err (!%p11554_p0)
}
  0x27   :  { %89 = dma.hbm_to_vmem [thread:$0]  %s12306_s5, 16, %s87_s20, [#allocation12]  }
  0x28   :  { %s11566_s26 = scalar_lea.vmem %s109_s22, 128  ;;  %p11571_p2 = scmp.lt.s32.totalorder %s109_s22, %s109_s22 }
  0x29   :  { %p11567_p1 = scmp.ne.s32.totalorder %s109_s22, %s11566_s26  ;;  %p11572_p3 = scmp.lt.s32.totalorder %s11566_s26, %s11566_s26 }
  0x2b   :  { %p11573_p4 = por %p11572_p3, %p11571_p2 }
  0x2d   :  { %p11574_p5 = pnand %p11573_p4, %p11567_p1 }
  0x2f   :  { %11577 = shalt.err (!%p11574_p5)
}
  0x30   :  { %111 = dma.hbm_to_vmem [thread:$0]  %s12308_s7, 128, %s109_s22, [#allocation15]  }
  0x31   :  { %s11798_s28 = smov [#allocation17]  }
  0x32   :  { %s130_s29 = sshll.u32 %s11798_s28, 4  ;;  %s131_s29 = int_to_ptr.vmem [resolvable:$true] %s130_s29 }
  0x33   :  { %s11586_s30 = scalar_lea.vmem %s131_s29, 16  ;;  %s11590_s14 = scalar_lea.vmem %s131_s29, 32 }
  0x34   :  { %p11587_p6 = scmp.ne.s32.totalorder %s131_s29, %s11586_s30  ;;  %p11591_p7 = scmp.lt.s32.totalorder %s131_s29, %s131_s29 }
  0x35   :  { %p11592_p8 = scmp.lt.s32.totalorder %s11590_s14, %s11586_s30 }
  0x37   :  { %p11593_p9 = por %p11592_p8, %p11591_p7 }
  0x39   :  { %p11594_p10 = pnand %p11593_p9, %p11587_p6 }
  0x3b   :  { %11597 = shalt.err (!%p11594_p10)
}
  0x3c   :  { %133 = dma.hbm_to_vmem [thread:$0]  %s12310_s9, 16, %s131_s29, [#allocation18]  }
  0x3d   :  { %s11799_s16 = smov [#allocation20]   ;;  %s11800_s18 = smov [#allocation2]  }
  0x3e   :  { %s151_s17 = sshll.u32 %s11799_s16, 4  ;;  %s32_s7 = sshll.u32 %s11800_s18, 4  ;;  %s152_s17 = int_to_ptr.vmem [resolvable:$true] %s151_s17  ;;  %s33_s7 = int_to_ptr.vmem [resolvable:$true] %s32_s7 }
  0x3f   :  { %s11606_s19 = scalar_lea.vmem %s152_s17, 1024  ;;  %p11611_p12 = scmp.lt.s32.totalorder %s152_s17, %s152_s17 }
  0x40   :  { %p11607_p11 = scmp.ne.s32.totalorder %s152_s17, %s11606_s19  ;;  %p11612_p13 = scmp.lt.s32.totalorder %s11606_s19, %s11606_s19 }
  0x42   :  { %p11613_p0 = por %p11612_p13, %p11611_p12 }
  0x44   :  { %p11614_p1 = pnand %p11613_p0, %p11607_p11 }
  0x46   :  { %11617 = shalt.err (!%p11614_p1)
}
  0x47   :  { %s11801_s20 = smov 64   ;;  %s11802_s21 = smov 4  }
  0x48   :  { %157 = dma.hbm_to_vmem [thread:$0]  %s12312_s11, 1024, %s152_s17, [#allocation21], %s11801_s20, %s11801_s20, %s11802_s21  }
  0x49   :  { %s11626_s9 = scalar_lea.vmem %s33_s7, 256  ;;  %p11631_p3 = scmp.lt.s32.totalorder %s33_s7, %s33_s7 }
  0x4a   :  { %p11627_p2 = scmp.ne.s32.totalorder %s33_s7, %s11626_s9  ;;  %p11632_p4 = scmp.lt.s32.totalorder %s11626_s9, %s11626_s9 }
  0x4c   :  { %p11633_p5 = por %p11632_p4, %p11631_p3 }
  0x4e   :  { %p11634_p6 = pnand %p11633_p5, %p11627_p2 }
  0x50   :  { %11637 = shalt.err (!%p11634_p6)
}
  0x51   :  { %35 = dma.hbm_to_vmem [thread:$0]  %s12301_s0, 256, %s33_s7, [#allocation3]  }
  0x52   :  { %s11803_s25 = smov [#allocation7]   ;;  %s11804_s3 = smov [#allocation10]  }
  0x53   :  { %s51_s26 = sshll.u32 %s11803_s25, 4  ;;  %s73_s27 = sshll.u32 %s11804_s3, 4  ;;  %s52_s26 = int_to_ptr.vmem [resolvable:$true] %s51_s26  ;;  %s74_s27 = int_to_ptr.vmem [resolvable:$true] %s73_s27 }
  0x54   :  { %s11646_s28 = scalar_lea.vmem %s52_s26, 2048  ;;  %p11651_p8 = scmp.lt.s32.totalorder %s52_s26, %s52_s26 }
  0x55   :  { %p11647_p7 = scmp.ne.s32.totalorder %s52_s26, %s11646_s28  ;;  %p11652_p9 = scmp.lt.s32.totalorder %s11646_s28, %s11646_s28 }
  0x57   :  { %p11653_p10 = por %p11652_p9, %p11651_p8 }
  0x59   :  { %p11654_p11 = pnand %p11653_p10, %p11647_p7 }
  0x5b   :  { %11657 = shalt.err (!%p11654_p11)
}
  0x5c   :  { %57 = dma.hbm_to_vmem [thread:$0]  %s12303_s2, 2048, %s52_s26, [#allocation6], %s11801_s20, %s11801_s20, %s11802_s21  }
  0x5d   :  { %s11666_s0 = scalar_lea.vmem %s74_s27, 1024  ;;  %p11671_p13 = scmp.lt.s32.totalorder %s74_s27, %s74_s27 }
  0x5e   :  { %p11667_p12 = scmp.ne.s32.totalorder %s74_s27, %s11666_s0  ;;  %p11672_p0 = scmp.lt.s32.totalorder %s11666_s0, %s11666_s0 }
  0x60   :  { %p11673_p1 = por %p11672_p0, %p11671_p13 }
  0x62   :  { %p11674_p2 = pnand %p11673_p1, %p11667_p12 }
  0x64   :  { %11677 = shalt.err (!%p11674_p2)
}
  0x65   :  { %79 = dma.hbm_to_vmem [thread:$0]  %s12305_s4, 1024, %s74_s27, [#allocation9], %s11801_s20, %s11801_s20, %s11802_s21  }
  0x66   :  { %s11805_s5 = smov [#allocation13]  }
  0x67   :  { %s95_s15 = sshll.u32 %s11805_s5, 4  ;;  %s96_s15 = int_to_ptr.vmem [resolvable:$true] %s95_s15 }
  0x68   :  { %s11686_s16 = scalar_lea.vmem %s96_s15, 147456  ;;  %p11691_p4 = scmp.lt.s32.totalorder %s96_s15, %s96_s15 }
  0x69   :  { %p11687_p3 = scmp.ne.s32.totalorder %s96_s15, %s11686_s16  ;;  %p11692_p5 = scmp.lt.s32.totalorder %s11686_s16, %s11686_s16 }
  0x6b   :  { %p11693_p6 = por %p11692_p5, %p11691_p4 }
  0x6d   :  { %p11694_p7 = pnand %p11693_p6, %p11687_p3 }
  0x6f   :  { %11697 = shalt.err (!%p11694_p7)
}
  0x70   :  { %s11806_s2 = smov 512   ;;  %s11807_s17 = smov 32  }
  0x71   :  { %101 = dma.hbm_to_vmem [thread:$0]  %s12307_s6, 147456, %s96_s15, [#allocation12], %s11806_s2, %s11806_s2, %s11807_s17  }
  0x72   :  { %s11808_s19 = smov [#allocation16]   ;;  %s11809_s23 = smov [#allocation19]  }
  0x73   :  { %s117_s22 = sshll.u32 %s11808_s19, 4  ;;  %s139_s4 = sshll.u32 %s11809_s23, 4  ;;  %s118_s22 = int_to_ptr.vmem [resolvable:$true] %s117_s22  ;;  %s140_s4 = int_to_ptr.vmem [resolvable:$true] %s139_s4 }
  0x74   :  { %s11706_s9 = scalar_lea.vmem %s118_s22, 8192  ;;  %p11711_p9 = scmp.lt.s32.totalorder %s118_s22, %s118_s22 }
  0x75   :  { %p11707_p8 = scmp.ne.s32.totalorder %s118_s22, %s11706_s9  ;;  %p11712_p10 = scmp.lt.s32.totalorder %s11706_s9, %s11706_s9 }
  0x77   :  { %p11713_p11 = por %p11712_p10, %p11711_p9 }
  0x79   :  { %p11714_p12 = pnand %p11713_p11, %p11707_p8 }
  0x7b   :  { %11717 = shalt.err (!%p11714_p12)
}
  0x7c   :  { %123 = dma.hbm_to_vmem [thread:$0]  %s12309_s8, 8192, %s118_s22, [#allocation15], %s11801_s20, %s11801_s20, %s11802_s21  }
  0x7d   :  { %s11726_s6 = scalar_lea.vmem %s140_s4, 1024  ;;  %p11731_p0 = scmp.lt.s32.totalorder %s140_s4, %s140_s4 }
  0x7e   :  { %p11727_p13 = scmp.ne.s32.totalorder %s140_s4, %s11726_s6  ;;  %p11732_p1 = scmp.lt.s32.totalorder %s11726_s6, %s11726_s6 }
  0x80   :  { %p11733_p2 = por %p11732_p1, %p11731_p0 }
  0x82   :  { %p11734_p3 = pnand %p11733_p2, %p11727_p13 }
  0x84   :  { %11737 = shalt.err (!%p11734_p3)
}
  0x85   :  { %145 = dma.hbm_to_vmem [thread:$0]  %s12311_s10, 1024, %s140_s4, [#allocation18], %s11801_s20, %s11801_s20, %s11802_s21  }
  0x86   :  { %s11810_s3 = smov [#allocation22]  }
  0x87   :  { %s164_s27 = sshll.u32 %s11810_s3, 4  ;;  %s165_s27 = int_to_ptr.vmem [resolvable:$true] %s164_s27 }
  0x88   :  { %s11746_s28 = scalar_lea.vmem %s165_s27, 16  ;;  %s11750_s8 = scalar_lea.vmem %s165_s27, 32 }
  0x89   :  { %p11747_p4 = scmp.ne.s32.totalorder %s165_s27, %s11746_s28  ;;  %p11751_p5 = scmp.lt.s32.totalorder %s165_s27, %s165_s27 }
  0x8a   :  { %p11752_p6 = scmp.lt.s32.totalorder %s11750_s8, %s11746_s28 }
  0x8c   :  { %p11753_p7 = por %p11752_p6, %p11751_p5 }
  0x8e   :  { %p11754_p8 = pnand %p11753_p7, %p11747_p4 }
  0x90   :  { %11757 = shalt.err (!%p11754_p8)
}
  0x91   :  { %167 = dma.hbm_to_vmem [thread:$0]  %s12313_s12, 16, %s165_s27, [#allocation21]  }
  0x92   :  { %11778 = dma.done.wait [#allocation3], 256  }
  0x93   :  { %11779 = vsyncadd [#allocation3], 4294967040 }
  0x94   :  { %11780 = dma.done.wait [#allocation6], 4352  }
  0x95   :  { %11781 = vsyncadd [#allocation6], 4294962944 }
  0x96   :  { %11782 = dma.done.wait [#allocation9], 1040  }
  0x97   :  { %11783 = vsyncadd [#allocation9], 4294966256 }
  0x98   :  { %11784 = dma.done.wait [#allocation12], 147472  }
  0x99   :  { %11785 = vsyncadd [#allocation12], 4294819824 }
  0x9a   :  { %11786 = dma.done.wait [#allocation15], 8320  }
  0x9b   :  { %11787 = vsyncadd [#allocation15], 4294958976 }
  0x9c   :  { %11788 = dma.done.wait [#allocation18], 1040  }
  0x9d   :  { %11789 = vsyncadd [#allocation18], 4294966256 }
  0x9e   :  { %11790 = dma.done.wait [#allocation21], 1040  }
  0x9f   :  { %11791 = vsyncadd [#allocation21], 4294966256  ;;  %v11387_v0 = vld [vmem:[#allocation7 + $0x78] sm:$0xff]   ;;  %v11389_v2 = vld [vmem:[#allocation7 + $0x70] sm:$0xff]   ;;  %vm11812_vm0 = vmmov 0   ;;  %s11813_s10 = smov [#allocation23]  }
  0xa0   :  { %v11388_v1 = vld [vmem:[#allocation7 + $0x38] sm:$0xff]   ;;  %11170 = vmatprep.subr.bf16.mxu0 %v11387_v0  ;;  %v11390_v3 = vld [vmem:[#allocation7 + $0x30] sm:$0xff]   ;;  %v11391_v4 = vld [vmem:[#allocation7 + $0x68] sm:$0xff]   ;;  %s9894_s12 = sshll.u32 %s11813_s10, 4  ;;  %s9895_s12 = int_to_ptr.vmem [resolvable:$true] %s9894_s12 }
  0xa1   :  { %11171 = vmatpush3.bf16.msra.mxu0 %v11388_v1  ;;  %v11392_v5 = vld [vmem:[#allocation7 + $0x28] sm:$0xff]   ;;  %v11393_v6 = vld [vmem:[#allocation7 + $0x60] sm:$0xff]   ;;  %v11395_v8 = vld [vmem:[#allocation7 + $0x58] sm:$0xff]   ;;  %s11758_s20 = scalar_lea.vmem %s9895_s12, 128  ;;  %p11763_p10 = scmp.lt.s32.totalorder %s9895_s12, %s9895_s12 }
  0xa2   :  { %11172 = vmatprep.subr.bf16.mxu0 %v11389_v2  ;;  %v11394_v7 = vld [vmem:[#allocation7 + $0x20] sm:$0xff]   ;;  %v11396_v9 = vld [vmem:[#allocation7 + $0x18] sm:$0xff]   ;;  %v11397_v10 = vld [vmem:[#allocation7 + $0x50] sm:$0xff]   ;;  %p11759_p9 = scmp.ne.s32.totalorder %s9895_s12, %s11758_s20  ;;  %p11764_p11 = scmp.lt.s32.totalorder %s11758_s20, %s11758_s20 }
  0xa3   :  { %v209_v11 = vld [vmem:[#allocation2 + $0x8] sm:$0xff]  ;;  %v11398_v13 = vld [vmem:[#allocation7 + $0x10] sm:$0xff]   ;;  %v11401_v16 = vld [vmem:[#allocation7 + $0x40] sm:$0xff]  }
  0xa4   :  { %v211_v12 = vpack.c.bf16 %v209_v11, %v209_v11  ;;  %v11399_v14 = vld [vmem:[#allocation7 + $0x48] sm:$0xff]   ;;  %v11402_v19 = vld [vmem:[#allocation7] sm:$0xff]   ;;  %v502_v22 = vld [vmem:[#allocation5 + $0x8] sm:$0xff]  ;;  %p11765_p12 = por %p11764_p11, %p11763_p10 }
  0xa5   :  { %11173 = vmatpush3.bf16.msra.mxu0 %v11390_v3  ;;  %v11400_v15 = vld [vmem:[#allocation7 + $0x8] sm:$0xff]   ;;  %v208_v20 = vld [vmem:[#allocation2] sm:$0xff]  ;;  %v11938_v27 = vpack.c.bf16 %v502_v22, %v502_v22 }
  0xa6   :  { %11174 = vmatprep.subr.bf16.mxu0 %v11391_v4  ;;  %379 = vmatprep.mubr.bf16.mxu0 %v211_v12  ;;  %v593_v17 = vld [vmem:[#allocation13 + $0x1c0] sm:$0xff]  ;;  %v210_v25 = vpack.c.bf16 %v208_v20, %v208_v20  ;;  %v11811_v12 = vmov 0.0   ;;  %p11766_p13 = pnand %p11765_p12, %p11759_p9 }
  0xa7   :  { %v597_v18 = vld [vmem:[#allocation13 + $0x1e0] sm:$0xff]  ;;  %11307 = vmatprep.subr.bf16.mxu1 %v11811_v12  ;;  %11323 = vmatprep.mubr.msk.bf16.mxu1 %vm11812_vm0, %v11811_v12 }
  0xa8   :  { %v9992_v21 = vcombine.high %v593_v17, %v597_v18  ;;  %v585_v23 = vld [vmem:[#allocation13 + $0x180] sm:$0xff]  ;;  %v9991_v26 = vcombine.low %v593_v17, %v597_v18 }
  0xa9   :  { %11175 = vmatpush3.bf16.msra.mxu0 %v11392_v5  ;;  %v589_v24 = vld [vmem:[#allocation13 + $0x1a0] sm:$0xff] }
  0xaa   :  { %11176 = vmatprep.subr.bf16.mxu0 %v11393_v6  ;;  %v9984_v28 = vcombine.high %v585_v23, %v589_v24  ;;  %v577_v29 = vld [vmem:[#allocation13 + $0x140] sm:$0xff]  ;;  %v9983_v31 = vcombine.low %v585_v23, %v589_v24 }
  0xab   :  { %v581_v30 = vld [vmem:[#allocation13 + $0x160] sm:$0xff] }
  0xac   :  { %v9976_v32 = vcombine.high %v577_v29, %v581_v30  ;;  %v569_v33 = vld [vmem:[#allocation13 + $0x100] sm:$0xff]  ;;  %v9975_v35 = vcombine.low %v577_v29, %v581_v30  ;;  %v501_v29 = vld [vmem:[#allocation5] sm:$0xff] }
  0xad   :  { %11177 = vmatpush3.bf16.msra.mxu0 %v11394_v7  ;;  %v573_v34 = vld [vmem:[#allocation13 + $0x120] sm:$0xff] }
  0xae   :  { %11178 = vmatprep.subr.bf16.mxu0 %v11395_v8  ;;  %v9968_v36 = vcombine.high %v569_v33, %v573_v34  ;;  %v561_v37 = vld [vmem:[#allocation13 + $0xc0] sm:$0xff]  ;;  %v9967_v39 = vcombine.low %v569_v33, %v573_v34  ;;  %v506_v33 = vld [vmem:[#allocation5 + $0x28] sm:$0xff] }
  0xaf   :  { %v565_v38 = vld [vmem:[#allocation13 + $0xe0] sm:$0xff]  ;;  %v11407_v34 = vld [vmem:[#allocation10 + $0x18] sm:$0xff]  }
  0xb0   :  { %v553_v40 = vld [vmem:[#allocation13 + $0x80] sm:$0xff]  ;;  %v9960_v42 = vcombine.high %v561_v37, %v565_v38  ;;  %v9959_v43 = vcombine.low %v561_v37, %v565_v38  ;;  %v11949_v38 = vpack.c.bf16 %v506_v33, %v506_v33 }
  0xb1   :  { %11179 = vmatpush3.bf16.msra.mxu0 %v11396_v9  ;;  %v557_v41 = vld [vmem:[#allocation13 + $0xa0] sm:$0xff] }
  0xb2   :  { %11180 = vmatprep.subr.bf16.mxu0 %v11397_v10  ;;  %v545_v44 = vld [vmem:[#allocation13 + $0x40] sm:$0xff]  ;;  %v9952_v46 = vcombine.high %v553_v40, %v557_v41  ;;  %v9951_v47 = vcombine.low %v553_v40, %v557_v41  ;;  %v11403_v10 = vld [vmem:[#allocation10 + $0x38] sm:$0xff]  }
  0xb3   :  { %v549_v45 = vld [vmem:[#allocation13 + $0x60] sm:$0xff]  ;;  %11308 = vmatpush3.bf16.msra.mxu1 %v11403_v10 }
  0xb4   :  { %v537_v48 = vld [vmem:[#allocation13] sm:$0xff]  ;;  %v9944_v50 = vcombine.high %v545_v44, %v549_v45  ;;  %v9943_v51 = vcombine.low %v545_v44, %v549_v45  ;;  %11309 = vmatprep.subr.bf16.mxu1 %v11811_v12 }
  0xb5   :  { %11181 = vmatpush3.bf16.msra.mxu0 %v11398_v13  ;;  %v541_v49 = vld [vmem:[#allocation13 + $0x20] sm:$0xff] }
  0xb6   :  { %11182 = vmatprep.subr.bf16.mxu0 %v11399_v14  ;;  %v657_v52 = vld [vmem:[#allocation13 + $0x3c0] sm:$0xff]  ;;  %v9936_v54 = vcombine.high %v537_v48, %v541_v49  ;;  %v9935_v55 = vcombine.low %v537_v48, %v541_v49 }
  0xb7   :  { %v661_v53 = vld [vmem:[#allocation13 + $0x3e0] sm:$0xff] }
  0xb8   :  { %v649_v56 = vld [vmem:[#allocation13 + $0x380] sm:$0xff]  ;;  %v10056_v58 = vcombine.high %v657_v52, %v661_v53  ;;  %v10055_v59 = vcombine.low %v657_v52, %v661_v53 }
  0xb9   :  { %11183 = vmatpush3.bf16.msra.mxu0 %v11400_v15  ;;  %v653_v57 = vld [vmem:[#allocation13 + $0x3a0] sm:$0xff] }
  0xba   :  { %11184 = vmatprep.subr.bf16.mxu0 %v11401_v16  ;;  %v641_v60 = vld [vmem:[#allocation13 + $0x340] sm:$0xff]  ;;  %v10048_v62 = vcombine.high %v649_v56, %v653_v57  ;;  %v10047_v63 = vcombine.low %v649_v56, %v653_v57  ;;  %v11404_v16 = vld [vmem:[#allocation10 + $0x30] sm:$0xff]  }
  0xbb   :  { %v645_v61 = vld [vmem:[#allocation13 + $0x360] sm:$0xff]  ;;  %11310 = vmatpush3.bf16.msra.mxu1 %v11404_v16 }
  0xbc   :  { %v633_v0 = vld [vmem:[#allocation13 + $0x300] sm:$0xff]  ;;  %v10040_v2 = vcombine.high %v641_v60, %v645_v61  ;;  %v10039_v3 = vcombine.low %v641_v60, %v645_v61  ;;  %11311 = vmatprep.subr.bf16.mxu1 %v11811_v12 }
  0xbd   :  { %11185 = vmatpush3.bf16.msra.mxu0 %v11402_v19  ;;  %v637_v1 = vld [vmem:[#allocation13 + $0x320] sm:$0xff] }
  0xbe   :  { %7491 = vmatprep.subr.bf16.mxu0 %v9992_v21  ;;  %v625_v4 = vld [vmem:[#allocation13 + $0x2c0] sm:$0xff]  ;;  %v10032_v6 = vcombine.high %v633_v0, %v637_v1  ;;  %v10031_v7 = vcombine.low %v633_v0, %v637_v1 }
  0xbf   :  { %v629_v5 = vld [vmem:[#allocation13 + $0x2e0] sm:$0xff] }
  0xc0   :  { %380 = vmatmul.mubr.bf16.vlgmr.msra.gmra.mxu0 %v210_v25  ;;  %v617_v8 = vld [vmem:[#allocation13 + $0x280] sm:$0xff]  ;;  %v10024_v11 = vcombine.high %v625_v4, %v629_v5  ;;  %v10023_v13 = vcombine.low %v625_v4, %v629_v5 }
  0xc1   :  { %7492 = vmatpush1.bf16.msra.mxu0 %v9991_v26  ;;  %7523 = vmatprep.mubr.bf16.mxu0 %v11938_v27  ;;  %v621_v9 = vld [vmem:[#allocation13 + $0x2a0] sm:$0xff] }
  0xc2   :  { %7493 = vmatprep.subr.bf16.mxu0 %v9984_v28  ;;  %v609_v14 = vld [vmem:[#allocation13 + $0x240] sm:$0xff]  ;;  %v10016_v17 = vcombine.high %v617_v8, %v621_v9  ;;  %v10015_v18 = vcombine.low %v617_v8, %v621_v9 }
  0xc3   :  { %v613_v15 = vld [vmem:[#allocation13 + $0x260] sm:$0xff] }
  0xc4   :  { %v601_v19 = vld [vmem:[#allocation13 + $0x200] sm:$0xff]  ;;  %v10008_v22 = vcombine.high %v609_v14, %v613_v15  ;;  %v10007_v23 = vcombine.low %v609_v14, %v613_v15 }
  0xc5   :  { %7494 = vmatpush1.bf16.msra.mxu0 %v9983_v31  ;;  %v605_v20 = vld [vmem:[#allocation13 + $0x220] sm:$0xff] }
  0xc6   :  { %7495 = vmatprep.subr.bf16.mxu0 %v9976_v32  ;;  %v11405_v21 = vld [vmem:[#allocation10 + $0x28] sm:$0xff]   ;;  %v11406_v26 = vld [vmem:[#allocation10 + $0x20] sm:$0xff]   ;;  %v10000_v28 = vcombine.high %v601_v19, %v605_v20  ;;  %v9999_v30 = vcombine.low %v601_v19, %v605_v20 }
  0xc7   :  { %11312 = vmatpush3.bf16.msra.mxu1 %v11405_v21  ;;  %v849_v24 = vld [vmem:[#allocation13 + $0x9c0] sm:$0xff] }
  0xc8   :  { %11313 = vmatprep.subr.bf16.mxu1 %v11811_v12  ;;  %v853_v25 = vld [vmem:[#allocation13 + $0x9e0] sm:$0xff] }
  0xc9   :  { %7496 = vmatpush1.bf16.msra.mxu0 %v9975_v35  ;;  %v841_v31 = vld [vmem:[#allocation13 + $0x980] sm:$0xff]  ;;  %v10248_v35 = vcombine.high %v849_v24, %v853_v25  ;;  %v10247_v37 = vcombine.low %v849_v24, %v853_v25 }
  0xca   :  { %7497 = vmatprep.subr.bf16.mxu0 %v9968_v36  ;;  %v845_v32 = vld [vmem:[#allocation13 + $0x9a0] sm:$0xff]  ;;  %v11946_v36 = vpack.c.bf16 %v501_v29, %v501_v29 }
  0xcb   :  { %11314 = vmatpush3.bf16.msra.mxu1 %v11406_v26  ;;  %v10240_v40 = vcombine.high %v841_v31, %v845_v32  ;;  %v833_v41 = vld [vmem:[#allocation13 + $0x940] sm:$0xff] }
  0xcc   :  { %11315 = vmatprep.subr.bf16.mxu1 %v11811_v12  ;;  %v825_v44 = vld [vmem:[#allocation13 + $0x900] sm:$0xff] }
  0xcd   :  { %7498 = vmatpush1.bf16.msra.mxu0 %v9967_v39  ;;  %v11408_v39 = vld [vmem:[#allocation10 + $0x10] sm:$0xff]   ;;  %v11409_v45 = vld [vmem:[#allocation10 + $0x8] sm:$0xff]  }
  0xce   :  { %7499 = vmatprep.subr.bf16.mxu0 %v9960_v42  ;;  %v837_v42 = vld [vmem:[#allocation13 + $0x960] sm:$0xff] }
  0xcf   :  { %11316 = vmatpush3.bf16.msra.mxu1 %v11407_v34  ;;  %v10231_v48 = vcombine.low %v833_v41, %v837_v42  ;;  %v817_v49 = vld [vmem:[#allocation13 + $0x8c0] sm:$0xff] }
  0xd0   :  { %11317 = vmatprep.subr.bf16.mxu1 %v11811_v12  ;;  %v11955_v53 = vld [vmem:[#allocation13 + $0x5c0] sm:$0xff] }
  0xd1   :  { %7500 = vmatpush1.bf16.msra.mxu0 %v9959_v43  ;;  %v10239_v43 = vcombine.low %v841_v31, %v845_v32  ;;  %v813_v60 = vld [vmem:[#allocation13 + $0x8a0] sm:$0xff] }
  0xd2   :  { %7501 = vmatprep.subr.bf16.mxu0 %v9952_v46  ;;  %v10232_v46 = vcombine.high %v833_v41, %v837_v42  ;;  %v805_v0 = vld [vmem:[#allocation13 + $0x860] sm:$0xff] }
  0xd3   :  { %11318 = vmatpush3.bf16.msra.mxu1 %v11408_v39  ;;  %v797_v4 = vld [vmem:[#allocation13 + $0x820] sm:$0xff] }
  0xd4   :  { %11319 = vmatprep.subr.bf16.mxu1 %v11811_v12  ;;  %v917_v8 = vld [vmem:[#allocation13 + $0xbe0] sm:$0xff] }
  0xd5   :  { %7502 = vmatpush1.bf16.msra.mxu0 %v9951_v47  ;;  %v829_v47 = vld [vmem:[#allocation13 + $0x920] sm:$0xff] }
  0xd6   :  { %7503 = vmatprep.subr.bf16.mxu0 %v9944_v50  ;;  %v821_v50 = vld [vmem:[#allocation13 + $0x8e0] sm:$0xff]  ;;  %v10224_v52 = vcombine.high %v825_v44, %v829_v47  ;;  %v10223_v56 = vcombine.low %v825_v44, %v829_v47 }
  0xd7   :  { %11320 = vmatpush3.bf16.msra.mxu1 %v11409_v45  ;;  %v10215_v61 = vcombine.low %v817_v49, %v821_v50  ;;  %v897_v16 = vld [vmem:[#allocation13 + $0xb40] sm:$0xff] }
  0xd8   :  { %11321 = vmatprep.subr.bf16.mxu1 %v11811_v12  ;;  %v889_v20 = vld [vmem:[#allocation13 + $0xb00] sm:$0xff] }
  0xd9   :  { %7504 = vmatpush1.bf16.msra.mxu0 %v9943_v51  ;;  %v11410_v51 = vld [vmem:[#allocation10] sm:$0xff]  }
  0xda   :  { %7505 = vmatprep.subr.bf16.mxu0 %v9936_v54  ;;  %v11957_v54 = vld [vmem:[#allocation13 + $0x5e0] sm:$0xff] }
  0xdb   :  { %11322 = vmatpush3.bf16.msra.mxu1 %v11410_v51  ;;  %v10119_v57 = vcombine.low %v11955_v53, %v11957_v54  ;;  %v893_v21 = vld [vmem:[#allocation13 + $0xb20] sm:$0xff] }
  0xdc   :  { %v881_v24 = vld [vmem:[#allocation13 + $0xac0] sm:$0xff]  ;;  %v10287_v26 = vcombine.low %v889_v20, %v893_v21 }
  0xdd   :  { %7506 = vmatpush1.bf16.msra.mxu0 %v9935_v55  ;;  %v10120_v55 = vcombine.high %v11955_v53, %v11957_v54  ;;  %v885_v25 = vld [vmem:[#allocation13 + $0xae0] sm:$0xff] }
  0xde   :  { %7507 = vmatprep.subr.bf16.mxu0 %v10056_v58  ;;  %v10216_v58 = vcombine.high %v817_v49, %v821_v50  ;;  %v873_v29 = vld [vmem:[#allocation13 + $0xa80] sm:$0xff]  ;;  %v10279_v31 = vcombine.low %v881_v24, %v885_v25 }
  0xdf   :  { %7532 = vmatprep.subr.bf16.mxu1 %v10120_v55  ;;  %v865_v33 = vld [vmem:[#allocation13 + $0xa40] sm:$0xff] }
  0xe0   :  { %v869_v34 = vld [vmem:[#allocation13 + $0xa60] sm:$0xff] }
  0xe1   :  { %7508 = vmatpush2.bf16.msra.mxu0 %v10055_v59  ;;  %v809_v59 = vld [vmem:[#allocation13 + $0x880] sm:$0xff]  ;;  %v10263_v41 = vcombine.low %v865_v33, %v869_v34 }
  0xe2   :  { %7509 = vmatprep.subr.bf16.mxu0 %v10048_v62  ;;  %v10208_v62 = vcombine.high %v809_v59, %v813_v60  ;;  %v10207_v1 = vcombine.low %v809_v59, %v813_v60  ;;  %v857_v39 = vld [vmem:[#allocation13 + $0xa00] sm:$0xff] }
  0xe3   :  { %v1109_v44 = vld [vmem:[#allocation13 + $0x11e0] sm:$0xff] }
  0xe4   :  { %v1097_v49 = vld [vmem:[#allocation13 + $0x1180] sm:$0xff] }
  0xe5   :  { %7510 = vmatpush2.bf16.msra.mxu0 %v10047_v63  ;;  %v801_v63 = vld [vmem:[#allocation13 + $0x840] sm:$0xff] }
  0xe6   :  { %7511 = vmatprep.subr.bf16.mxu0 %v10040_v2  ;;  %v10200_v2 = vcombine.high %v801_v63, %v805_v0  ;;  %v10199_v5 = vcombine.low %v801_v63, %v805_v0  ;;  %v1101_v50 = vld [vmem:[#allocation13 + $0x11a0] sm:$0xff] }
  0xe7   :  { %v1093_v59 = vld [vmem:[#allocation13 + $0x1160] sm:$0xff]  ;;  %v10495_v60 = vcombine.low %v1097_v49, %v1101_v50 }
  0xe8   :  { %v1085_v63 = vld [vmem:[#allocation13 + $0x1120] sm:$0xff] }
  0xe9   :  { %7512 = vmatpush2.bf16.msra.mxu0 %v10039_v3  ;;  %v793_v3 = vld [vmem:[#allocation13 + $0x800] sm:$0xff] }
  0xea   :  { %7513 = vmatprep.subr.bf16.mxu0 %v10032_v6  ;;  %v10192_v6 = vcombine.high %v793_v3, %v797_v4  ;;  %v10191_v9 = vcombine.low %v793_v3, %v797_v4  ;;  %v1077_v3 = vld [vmem:[#allocation13 + $0x10e0] sm:$0xff] }
  0xed   :  { %7514 = vmatpush2.bf16.msra.mxu0 %v10031_v7  ;;  %v913_v7 = vld [vmem:[#allocation13 + $0xbc0] sm:$0xff] }
  0xee   :  { %7515 = vmatprep.subr.bf16.mxu0 %v10024_v11  ;;  %v10312_v10 = vcombine.high %v913_v7, %v917_v8  ;;  %v905_v11 = vld [vmem:[#allocation13 + $0xb80] sm:$0xff]  ;;  %v10311_v14 = vcombine.low %v913_v7, %v917_v8 }
  0xef   :  { %v1069_v7 = vld [vmem:[#allocation13 + $0x10a0] sm:$0xff] }
  0xf1   :  { %7516 = vmatpush2.bf16.msra.mxu0 %v10023_v13  ;;  %v909_v13 = vld [vmem:[#allocation13 + $0xba0] sm:$0xff] }
  0xf2   :  { %7517 = vmatprep.subr.bf16.mxu0 %v10016_v17  ;;  %v10304_v15 = vcombine.high %v905_v11, %v909_v13  ;;  %v901_v17 = vld [vmem:[#allocation13 + $0xb60] sm:$0xff] }
  0xf3   :  { %v10296_v19 = vcombine.high %v897_v16, %v901_v17 }
  0xf5   :  { %7518 = vmatpush2.bf16.msra.mxu0 %v10015_v18  ;;  %v10303_v18 = vcombine.low %v905_v11, %v909_v13  ;;  %v1061_v11 = vld [vmem:[#allocation13 + $0x1060] sm:$0xff] }
  0xf6   :  { %7519 = vmatprep.subr.bf16.mxu0 %v10008_v22  ;;  %v10295_v22 = vcombine.low %v897_v16, %v901_v17  ;;  %v1053_v16 = vld [vmem:[#allocation13 + $0x1020] sm:$0xff] }
  0xf9   :  { %7520 = vmatpush2.bf16.msra.mxu0 %v10007_v23  ;;  %v10288_v23 = vcombine.high %v889_v20, %v893_v21  ;;  %v1173_v20 = vld [vmem:[#allocation13 + $0x13e0] sm:$0xff] }
  0xfa   :  { %7521 = vmatprep.subr.bf16.mxu0 %v10000_v28  ;;  %v10280_v28 = vcombine.high %v881_v24, %v885_v25  ;;  %v1165_v24 = vld [vmem:[#allocation13 + $0x13a0] sm:$0xff] }
  0xfd   :  { %7522 = vmatpush2.bf16.msra.mxu0 %v9999_v30  ;;  %v877_v30 = vld [vmem:[#allocation13 + $0xaa0] sm:$0xff] }
  0xfe   :  { %7573 = vmatprep.subr.bf16.mxu0 %v10248_v35  ;;  %v10272_v32 = vcombine.high %v873_v29, %v877_v30  ;;  %v10271_v35 = vcombine.low %v873_v29, %v877_v30  ;;  %v1157_v29 = vld [vmem:[#allocation13 + $0x1360] sm:$0xff] }
 0x100   :  { %7524 = vmatmul.mubr.bf16.vlgmr.msra.gmra.mxu0 %v11946_v36 }
 0x101   :  { %7574 = vmatpush1.bf16.msra.mxu0 %v10247_v37  ;;  %7605 = vmatprep.mubr.bf16.mxu0 %v11949_v38  ;;  %v10264_v37 = vcombine.high %v865_v33, %v869_v34  ;;  %v1149_v33 = vld [vmem:[#allocation13 + $0x1320] sm:$0xff] }
 0x102   :  { %7575 = vmatprep.subr.bf16.mxu0 %v10240_v40  ;;  %v861_v40 = vld [vmem:[#allocation13 + $0xa20] sm:$0xff] }
 0x103   :  { %v10256_v42 = vcombine.high %v857_v39, %v861_v40  ;;  %v10255_v45 = vcombine.low %v857_v39, %v861_v40  ;;  %v1141_v39 = vld [vmem:[#allocation13 + $0x12e0] sm:$0xff] }
 0x105   :  { %7576 = vmatpush1.bf16.msra.mxu0 %v10239_v43  ;;  %v1105_v43 = vld [vmem:[#allocation13 + $0x11c0] sm:$0xff] }
 0x106   :  { %7577 = vmatprep.subr.bf16.mxu0 %v10232_v46  ;;  %v505_v46 = vld [vmem:[#allocation5 + $0x20] sm:$0xff]  ;;  %v10504_v47 = vcombine.high %v1105_v43, %v1109_v44 }
 0x107   :  { %v11965_v51 = vpack.c.bf16 %v505_v46, %v505_v46  ;;  %v1121_v46 = vld [vmem:[#allocation13 + $0x1240] sm:$0xff] }
 0x109   :  { %7578 = vmatpush1.bf16.msra.mxu0 %v10231_v48  ;;  %v510_v48 = vld [vmem:[#allocation5 + $0x48] sm:$0xff] }
 0x10a   :  { %7579 = vmatprep.subr.bf16.mxu0 %v10224_v52  ;;  %v10503_v52 = vcombine.low %v1105_v43, %v1109_v44  ;;  %v11967_v55 = vpack.c.bf16 %v510_v48, %v510_v48  ;;  %v1133_v43 = vld [vmem:[#allocation13 + $0x12a0] sm:$0xff] }
 0x10d   :  { %7580 = vmatpush1.bf16.msra.mxu0 %v10223_v56  ;;  %v10496_v56 = vcombine.high %v1097_v49, %v1101_v50  ;;  %v1113_v50 = vld [vmem:[#allocation13 + $0x1200] sm:$0xff] }
 0x10e   :  { %7581 = vmatprep.subr.bf16.mxu0 %v10216_v58  ;;  %v1089_v58 = vld [vmem:[#allocation13 + $0x1140] sm:$0xff] }
 0x10f   :  { %v10487_v0 = vcombine.low %v1089_v58, %v1093_v59 }
 0x111   :  { %7582 = vmatpush1.bf16.msra.mxu0 %v10215_v61  ;;  %v10488_v61 = vcombine.high %v1089_v58, %v1093_v59  ;;  %v1361_v59 = vld [vmem:[#allocation13 + $0x19c0] sm:$0xff] }
 0x112   :  { %7583 = vmatprep.subr.bf16.mxu0 %v10208_v62  ;;  %v1081_v62 = vld [vmem:[#allocation13 + $0x1100] sm:$0xff] }
 0x113   :  { %v10479_v4 = vcombine.low %v1081_v62, %v1085_v63 }
 0x115   :  { %7584 = vmatpush1.bf16.msra.mxu0 %v10207_v1  ;;  %v10480_v1 = vcombine.high %v1081_v62, %v1085_v63  ;;  %v509_v62 = vld [vmem:[#allocation5 + $0x40] sm:$0xff] }
 0x116   :  { %7585 = vmatprep.subr.bf16.mxu0 %v10200_v2  ;;  %v1073_v2 = vld [vmem:[#allocation13 + $0x10c0] sm:$0xff] }
 0x117   :  { %v10471_v8 = vcombine.low %v1073_v2, %v1077_v3 }
 0x119   :  { %7586 = vmatpush1.bf16.msra.mxu0 %v10199_v5  ;;  %v10472_v5 = vcombine.high %v1073_v2, %v1077_v3  ;;  %v1357_v2 = vld [vmem:[#allocation13 + $0x19a0] sm:$0xff]  ;;  %v11971_v3 = vpack.c.bf16 %v509_v62, %v509_v62 }
 0x11a   :  { %7587 = vmatprep.subr.bf16.mxu0 %v10192_v6  ;;  %v1065_v6 = vld [vmem:[#allocation13 + $0x1080] sm:$0xff] }
 0x11b   :  { %v10463_v13 = vcombine.low %v1065_v6, %v1069_v7 }
 0x11d   :  { %7588 = vmatpush1.bf16.msra.mxu0 %v10191_v9  ;;  %v10464_v9 = vcombine.high %v1065_v6, %v1069_v7  ;;  %v1345_v7 = vld [vmem:[#allocation13 + $0x1940] sm:$0xff] }
 0x11e   :  { %7589 = vmatprep.subr.bf16.mxu0 %v10312_v10  ;;  %v1057_v10 = vld [vmem:[#allocation13 + $0x1040] sm:$0xff] }
 0x11f   :  { %v10455_v17 = vcombine.low %v1057_v10, %v1061_v11 }
 0x121   :  { %7590 = vmatpush2.bf16.msra.mxu0 %v10311_v14  ;;  %v10456_v14 = vcombine.high %v1057_v10, %v1061_v11  ;;  %v9909_v11 = vld [vmem:[#allocation8] ss:$0 sm:$0xff] }
 0x122   :  { %7591 = vmatprep.subr.bf16.mxu0 %v10304_v15  ;;  %v1049_v15 = vld [vmem:[#allocation13 + $0x1000] sm:$0xff] }
 0x123   :  { %v10447_v21 = vcombine.low %v1049_v15, %v1053_v16 }
 0x125   :  { %7592 = vmatpush2.bf16.msra.mxu0 %v10303_v18  ;;  %v10448_v18 = vcombine.high %v1049_v15, %v1053_v16  ;;  %v1337_v16 = vld [vmem:[#allocation13 + $0x1900] sm:$0xff] }
 0x126   :  { %7593 = vmatprep.subr.bf16.mxu0 %v10296_v19  ;;  %v1169_v19 = vld [vmem:[#allocation13 + $0x13c0] sm:$0xff] }
 0x127   :  { %v10567_v25 = vcombine.low %v1169_v19, %v1173_v20 }
 0x129   :  { %7594 = vmatpush2.bf16.msra.mxu0 %v10295_v22  ;;  %v10568_v22 = vcombine.high %v1169_v19, %v1173_v20 }
 0x12a   :  { %7595 = vmatprep.subr.bf16.mxu0 %v10288_v23  ;;  %v1161_v23 = vld [vmem:[#allocation13 + $0x1380] sm:$0xff] }
 0x12b   :  { %v10559_v30 = vcombine.low %v1161_v23, %v1165_v24 }
 0x12d   :  { %7596 = vmatpush2.bf16.msra.mxu0 %v10287_v26  ;;  %v10560_v26 = vcombine.high %v1161_v23, %v1165_v24  ;;  %v713_v24 = vld [vmem:[#allocation13 + $0x580] sm:$0xff] }
 0x12e   :  { %7597 = vmatprep.subr.bf16.mxu0 %v10280_v28  ;;  %v1153_v28 = vld [vmem:[#allocation13 + $0x1340] sm:$0xff] }
 0x12f   :  { %v10551_v34 = vcombine.low %v1153_v28, %v1157_v29 }
 0x131   :  { %7598 = vmatpush2.bf16.msra.mxu0 %v10279_v31  ;;  %v10552_v31 = vcombine.high %v1153_v28, %v1157_v29  ;;  %v1329_v28 = vld [vmem:[#allocation13 + $0x18c0] sm:$0xff] }
 0x132   :  { %7599 = vmatprep.subr.bf16.mxu0 %v10272_v32  ;;  %v1145_v32 = vld [vmem:[#allocation13 + $0x1300] sm:$0xff] }
 0x133   :  { %v10543_v40 = vcombine.low %v1145_v32, %v1149_v33  ;;  %v1333_v29 = vld [vmem:[#allocation13 + $0x18e0] sm:$0xff] }
 0x135   :  { %7600 = vmatpush2.bf16.msra.mxu0 %v10271_v35  ;;  %v10544_v35 = vcombine.high %v1145_v32, %v1149_v33 }
 0x136   :  { %7601 = vmatprep.subr.bf16.mxu0 %v10264_v37  ;;  %v1137_v37 = vld [vmem:[#allocation13 + $0x12c0] sm:$0xff] }
 0x137   :  { %v10535_v44 = vcombine.low %v1137_v37, %v1141_v39 }
 0x139   :  { %7602 = vmatpush2.bf16.msra.mxu0 %v10263_v41  ;;  %v10536_v41 = vcombine.high %v1137_v37, %v1141_v39  ;;  %v709_v37 = vld [vmem:[#allocation13 + $0x560] sm:$0xff] }
 0x13a   :  { %7603 = vmatprep.subr.bf16.mxu0 %v10256_v42  ;;  %v1129_v42 = vld [vmem:[#allocation13 + $0x1280] sm:$0xff] }
 0x13b   :  { %v10527_v48 = vcombine.low %v1129_v42, %v1133_v43  ;;  %v1321_v39 = vld [vmem:[#allocation13 + $0x1880] sm:$0xff] }
 0x13d   :  { %7604 = vmatpush2.bf16.msra.mxu0 %v10255_v45  ;;  %v10528_v45 = vcombine.high %v1129_v42, %v1133_v43  ;;  %v10727_v42 = vcombine.low %v1329_v28, %v1333_v29 }
 0x13e   :  { %7655 = vmatprep.subr.bf16.mxu0 %v10504_v47  ;;  %v1125_v47 = vld [vmem:[#allocation13 + $0x1260] sm:$0xff] }
 0x13f   :  { %v10520_v49 = vcombine.high %v1121_v46, %v1125_v47 }
 0x140   :  { %7606 = vmatmul.mubr.bf16.vlgmr.msra.gmra.mxu0 %v11965_v51 }
 0x141   :  { %7656 = vmatpush1.bf16.msra.mxu0 %v10503_v52  ;;  %7687 = vmatprep.mubr.bf16.mxu0 %v11967_v55  ;;  %v1117_v52 = vld [vmem:[#allocation13 + $0x1220] sm:$0xff] }
 0x142   :  { %7657 = vmatprep.subr.bf16.mxu0 %v10496_v56  ;;  %v10519_v56 = vcombine.low %v1121_v46, %v1125_v47  ;;  %v10512_v58 = vcombine.high %v1113_v50, %v1117_v52  ;;  %v701_v46 = vld [vmem:[#allocation13 + $0x520] sm:$0xff] }
 0x143   :  { %v1313_v47 = vld [vmem:[#allocation13 + $0x1840] sm:$0xff] }
 0x145   :  { %7658 = vmatpush1.bf16.msra.mxu0 %v10495_v60  ;;  %v1365_v60 = vld [vmem:[#allocation13 + $0x19e0] sm:$0xff] }
 0x146   :  { %7659 = vmatprep.subr.bf16.mxu0 %v10488_v61  ;;  %v10511_v61 = vcombine.low %v1113_v50, %v1117_v52  ;;  %v10760_v63 = vcombine.high %v1361_v59, %v1365_v60  ;;  %v693_v52 = vld [vmem:[#allocation13 + $0x4e0] sm:$0xff] }
 0x149   :  { %7660 = vmatpush1.bf16.msra.mxu0 %v10487_v0  ;;  %v514_v0 = vld [vmem:[#allocation5 + $0x68] sm:$0xff] }
 0x14a   :  { %7661 = vmatprep.subr.bf16.mxu0 %v10480_v1  ;;  %v1353_v1 = vld [vmem:[#allocation13 + $0x1980] sm:$0xff] }
 0x14b   :  { %v10752_v6 = vcombine.high %v1353_v1, %v1357_v2  ;;  %v10751_v10 = vcombine.low %v1353_v1, %v1357_v2  ;;  %v1425_v1 = vld [vmem:[#allocation13 + $0x1bc0] sm:$0xff] }
 0x14c   :  { %v1429_v2 = vld [vmem:[#allocation13 + $0x1be0] sm:$0xff] }
 0x14d   :  { %7662 = vmatpush1.bf16.msra.mxu0 %v10479_v4  ;;  %v10759_v4 = vcombine.low %v1361_v59, %v1365_v60 }
 0x14e   :  { %7663 = vmatprep.subr.bf16.mxu0 %v10472_v5  ;;  %v11973_v5 = vpack.c.bf16 %v514_v0, %v514_v0  ;;  %v685_v0 = vld [vmem:[#allocation13 + $0x4a0] sm:$0xff] }
 0x151   :  { %7664 = vmatpush1.bf16.msra.mxu0 %v10471_v8  ;;  %v1349_v8 = vld [vmem:[#allocation13 + $0x1960] sm:$0xff] }
 0x152   :  { %7665 = vmatprep.subr.bf16.mxu0 %v10464_v9  ;;  %v10743_v20 = vcombine.low %v1345_v7, %v1349_v8 }
 0x155   :  { %7666 = vmatpush1.bf16.msra.mxu0 %v10463_v13 }
 0x156   :  { %7667 = vmatprep.subr.bf16.mxu0 %v10456_v14  ;;  %v10744_v14 = vcombine.high %v1345_v7, %v1349_v8  ;;  %v10824_v8 = vcombine.high %v1425_v1, %v1429_v2 }
 0x159   :  { %7668 = vmatpush1.bf16.msra.mxu0 %v10455_v17  ;;  %v1341_v17 = vld [vmem:[#allocation13 + $0x1920] sm:$0xff] }
 0x15a   :  { %7669 = vmatprep.subr.bf16.mxu0 %v10448_v18  ;;  %v10736_v23 = vcombine.high %v1337_v16, %v1341_v17  ;;  %v10735_v32 = vcombine.low %v1337_v16, %v1341_v17 }
 0x15d   :  { %7670 = vmatpush1.bf16.msra.mxu0 %v10447_v21  ;;  %v504_v21 = vld [vmem:[#allocation5 + $0x18] sm:$0xff] }
 0x15e   :  { %7671 = vmatprep.subr.bf16.mxu0 %v10568_v22 }
 0x161   :  { %7672 = vmatpush2.bf16.msra.mxu0 %v10567_v25  ;;  %v717_v25 = vld [vmem:[#allocation13 + $0x5a0] sm:$0xff] }
 0x162   :  { %7673 = vmatprep.subr.bf16.mxu0 %v10560_v26  ;;  %v10112_v33 = vcombine.high %v713_v24, %v717_v25 }
 0x165   :  { %7674 = vmatpush2.bf16.msra.mxu0 %v10559_v30  ;;  %v11977_v30 = vpack.c.bf16 %v504_v21, %v504_v21  ;;  %v1413_v21 = vld [vmem:[#allocation13 + $0x1b60] sm:$0xff] }
 0x166   :  { %7675 = vmatprep.subr.bf16.mxu0 %v10552_v31 }
 0x169   :  { %7676 = vmatpush2.bf16.msra.mxu0 %v10551_v34  ;;  %v10728_v34 = vcombine.high %v1329_v28, %v1333_v29  ;;  %v789_v28 = vld [vmem:[#allocation13 + $0x7e0] sm:$0xff] }
 0x16a   :  { %7677 = vmatprep.subr.bf16.mxu0 %v10544_v35  ;;  %v705_v35 = vld [vmem:[#allocation13 + $0x540] sm:$0xff] }
 0x16b   :  { %v10104_v43 = vcombine.high %v705_v35, %v709_v37  ;;  %v1401_v29 = vld [vmem:[#allocation13 + $0x1b00] sm:$0xff] }
 0x16d   :  { %7678 = vmatpush2.bf16.msra.mxu0 %v10543_v40  ;;  %v1325_v40 = vld [vmem:[#allocation13 + $0x18a0] sm:$0xff] }
 0x16e   :  { %7679 = vmatprep.subr.bf16.mxu0 %v10536_v41  ;;  %v10111_v41 = vcombine.low %v713_v24, %v717_v25  ;;  %v10719_v50 = vcombine.low %v1321_v39, %v1325_v40 }
 0x171   :  { %7680 = vmatpush2.bf16.msra.mxu0 %v10535_v44  ;;  %v10720_v44 = vcombine.high %v1321_v39, %v1325_v40  ;;  %v781_v39 = vld [vmem:[#allocation13 + $0x7a0] sm:$0xff] }
 0x172   :  { %7681 = vmatprep.subr.bf16.mxu0 %v10528_v45  ;;  %v697_v45 = vld [vmem:[#allocation13 + $0x500] sm:$0xff] }
 0x173   :  { %v10096_v53 = vcombine.high %v697_v45, %v701_v46  ;;  %v10095_v59 = vcombine.low %v697_v45, %v701_v46  ;;  %v1393_v40 = vld [vmem:[#allocation13 + $0x1ac0] sm:$0xff] }
 0x174   :  { %v769_v46 = vld [vmem:[#allocation13 + $0x740] sm:$0xff] }
 0x175   :  { %7682 = vmatpush2.bf16.msra.mxu0 %v10527_v48  ;;  %v1317_v48 = vld [vmem:[#allocation13 + $0x1860] sm:$0xff] }
 0x176   :  { %7683 = vmatprep.subr.bf16.mxu0 %v10520_v49  ;;  %v10103_v49 = vcombine.low %v705_v35, %v709_v37  ;;  %v10712_v54 = vcombine.high %v1313_v47, %v1317_v48  ;;  %v10711_v60 = vcombine.low %v1313_v47, %v1317_v48  ;;  %v777_v37 = vld [vmem:[#allocation13 + $0x780] sm:$0xff] }
 0x177   :  { %v773_v47 = vld [vmem:[#allocation13 + $0x760] sm:$0xff] }
 0x178   :  { %v1385_v48 = vld [vmem:[#allocation13 + $0x1a80] sm:$0xff] }
 0x179   :  { %7684 = vmatpush2.bf16.msra.mxu0 %v10519_v56  ;;  %v1305_v56 = vld [vmem:[#allocation13 + $0x1800] sm:$0xff] }
 0x17a   :  { %7685 = vmatprep.subr.bf16.mxu0 %v10512_v58  ;;  %v1309_v58 = vld [vmem:[#allocation13 + $0x1820] sm:$0xff] }
 0x17b   :  { %v10704_v62 = vcombine.high %v1305_v56, %v1309_v58 }
 0x17d   :  { %7686 = vmatpush2.bf16.msra.mxu0 %v10511_v61 }
 0x17e   :  { %7737 = vmatprep.subr.bf16.mxu0 %v10760_v63  ;;  %v681_v63 = vld [vmem:[#allocation13 + $0x480] sm:$0xff] }
 0x17f   :  { %v10080_v7 = vcombine.high %v681_v63, %v685_v0 }
 0x180   :  { %v11186_v9 = vpop.f32.mrf.mxu0  ;;  %7688 = vmatmul.mubr.bf16.vlgmr.msra.gmra.mxu0 %v11971_v3 }
 0x181   :  { %7738 = vmatpush1.bf16.msra.mxu0 %v10759_v4  ;;  %7769 = vmatprep.mubr.bf16.mxu0 %v11973_v5 }
 0x182   :  { %v11187_v13 = vpop.f32.mrf.mxu0  ;;  %7739 = vmatprep.subr.bf16.mxu0 %v10752_v6  ;;  %v10703_v6 = vcombine.low %v1305_v56, %v1309_v58  ;;  %v765_v56 = vld [vmem:[#allocation13 + $0x720] sm:$0xff] }
 0x183   :  { %v11188_v15 = vadd.f32 %v11187_v13, %v11186_v9  ;;  %v673_v9 = vld [vmem:[#allocation13 + $0x440] sm:$0xff] }
 0x184   :  { %v11189_v18 = vpop.f32.mrf.mxu0  ;;  %v1421_v13 = vld [vmem:[#allocation13 + $0x1ba0] sm:$0xff] }
 0x185   :  { %v382_v19 = vadd.f32 %v11188_v15, %v9909_v11  ;;  %7740 = vmatpush1.bf16.msra.mxu0 %v10751_v10  ;;  %v677_v10 = vld [vmem:[#allocation13 + $0x460] sm:$0xff]  ;;  %v10823_v15 = vcombine.low %v1425_v1, %v1429_v2 }
 0x186   :  { %v11190_v22 = vpop.f32.mrf.mxu0  ;;  %7741 = vmatprep.subr.bf16.mxu0 %v10744_v14  ;;  %v1417_v11 = vld [vmem:[#allocation13 + $0x1b80] sm:$0xff]  ;;  %v10079_v14 = vcombine.low %v681_v63, %v685_v0  ;;  %v10072_v16 = vcombine.high %v673_v9, %v677_v10 }
 0x187   :  { %v387_v26 = vmax.f32 %v382_v19, 0.0  ;;  %v10816_v17 = vcombine.high %v1417_v11, %v1421_v13  ;;  %v665_v18 = vld [vmem:[#allocation13 + $0x400] sm:$0xff]  ;;  %v10071_v22 = vcombine.low %v673_v9, %v677_v10 }
 0x188   :  { %v669_v19 = vld [vmem:[#allocation13 + $0x420] sm:$0xff] }
 0x189   :  { %v388_v31 = vpack.c.bf16 %v387_v26, %v387_v26  ;;  %7742 = vmatpush1.bf16.msra.mxu0 %v10743_v20  ;;  %v1409_v20 = vld [vmem:[#allocation13 + $0x1b40] sm:$0xff]  ;;  %v10064_v24 = vcombine.high %v665_v18, %v669_v19 }
 0x18a   :  { %7743 = vmatprep.subr.bf16.mxu0 %v10736_v23  ;;  %v10815_v23 = vcombine.low %v1417_v11, %v1421_v13  ;;  %v10808_v25 = vcombine.high %v1409_v20, %v1413_v21  ;;  %v785_v26 = vld [vmem:[#allocation13 + $0x7c0] sm:$0xff] }
 0x18b   :  { %11324 = vmatmul.mubr.bf16.vlgmr.msra.gmra.mxu1 %v388_v31  ;;  %v1405_v31 = vld [vmem:[#allocation13 + $0x1b20] sm:$0xff] }
 0x18c   :  { %7533 = vmatpush1.bf16.msra.mxu1 %v10119_v57  ;;  %7564 = vmatprep.mubr.bf16.mxu1 %v11977_v30  ;;  %v689_v57 = vld [vmem:[#allocation13 + $0x4c0] sm:$0xff]  ;;  %v10800_v35 = vcombine.high %v1401_v29, %v1405_v31 }
 0x18d   :  { %7744 = vmatpush1.bf16.msra.mxu0 %v10735_v32  ;;  %7534 = vmatprep.subr.bf16.mxu1 %v10112_v33  ;;  %v10088_v61 = vcombine.high %v689_v57, %v693_v52  ;;  %v10087_v4 = vcombine.low %v689_v57, %v693_v52  ;;  %v10063_v32 = vcombine.low %v665_v18, %v669_v19  ;;  %v761_v52 = vld [vmem:[#allocation13 + $0x700] sm:$0xff]  ;;  %v513_v18 = vld [vmem:[#allocation5 + $0x60] sm:$0xff] }
 0x18e   :  { %7745 = vmatprep.subr.bf16.mxu0 %v10728_v34  ;;  %v10807_v33 = vcombine.low %v1409_v20, %v1413_v21  ;;  %v10184_v34 = vcombine.high %v785_v26, %v789_v28  ;;  %v1377_v58 = vld [vmem:[#allocation13 + $0x1a40] sm:$0xff] }
 0x18f   :  { %v753_v0 = vld [vmem:[#allocation13 + $0x6c0] sm:$0xff] }
 0x190   :  { %7535 = vmatpush1.bf16.msra.mxu1 %v10111_v41  ;;  %v1397_v41 = vld [vmem:[#allocation13 + $0x1ae0] sm:$0xff] }
 0x191   :  { %7746 = vmatpush1.bf16.msra.mxu0 %v10727_v42  ;;  %7536 = vmatprep.subr.bf16.mxu1 %v10104_v43  ;;  %v10183_v42 = vcombine.low %v785_v26, %v789_v28  ;;  %v10799_v43 = vcombine.low %v1401_v29, %v1405_v31  ;;  %v10792_v45 = vcombine.high %v1393_v40, %v1397_v41  ;;  %v757_v1 = vld [vmem:[#allocation13 + $0x6e0] sm:$0xff] }
 0x192   :  { %7747 = vmatprep.subr.bf16.mxu0 %v10720_v44  ;;  %v10176_v44 = vcombine.high %v777_v37, %v781_v39  ;;  %v1369_v2 = vld [vmem:[#allocation13 + $0x1a00] sm:$0xff]  ;;  %v11983_v26 = vpack.c.bf16 %v513_v18, %v513_v18 }
 0x193   :  { %v745_v10 = vld [vmem:[#allocation13 + $0x680] sm:$0xff] }
 0x194   :  { %7537 = vmatpush1.bf16.msra.mxu1 %v10103_v49  ;;  %v1389_v49 = vld [vmem:[#allocation13 + $0x1aa0] sm:$0xff] }
 0x195   :  { %7748 = vmatpush1.bf16.msra.mxu0 %v10719_v50  ;;  %7538 = vmatprep.subr.bf16.mxu1 %v10096_v53  ;;  %v10175_v50 = vcombine.low %v777_v37, %v781_v39  ;;  %v10791_v53 = vcombine.low %v1393_v40, %v1397_v41  ;;  %v10784_v57 = vcombine.high %v1385_v48, %v1389_v49  ;;  %v749_v11 = vld [vmem:[#allocation13 + $0x6a0] sm:$0xff] }
 0x196   :  { %7749 = vmatprep.subr.bf16.mxu0 %v10712_v54  ;;  %v10168_v54 = vcombine.high %v769_v46, %v773_v47  ;;  %v1617_v13 = vld [vmem:[#allocation13 + $0x21c0] sm:$0xff] }
 0x197   :  { %v737_v20 = vld [vmem:[#allocation13 + $0x640] sm:$0xff] }
 0x198   :  { %7539 = vmatpush1.bf16.msra.mxu1 %v10095_v59  ;;  %v1381_v59 = vld [vmem:[#allocation13 + $0x1a60] sm:$0xff] }
 0x199   :  { %7750 = vmatpush1.bf16.msra.mxu0 %v10711_v60  ;;  %7540 = vmatprep.subr.bf16.mxu1 %v10088_v61  ;;  %v10167_v60 = vcombine.low %v769_v46, %v773_v47  ;;  %v10783_v61 = vcombine.low %v1385_v48, %v1389_v49  ;;  %v10776_v63 = vcombine.high %v1377_v58, %v1381_v59  ;;  %v741_v21 = vld [vmem:[#allocation13 + $0x660] sm:$0xff] }
 0x19a   :  { %7751 = vmatprep.subr.bf16.mxu0 %v10704_v62  ;;  %v10160_v62 = vcombine.high %v761_v52, %v765_v56  ;;  %v10136_v29 = vcombine.high %v737_v20, %v741_v21  ;;  %v1605_v37 = vld [vmem:[#allocation13 + $0x2160] sm:$0xff]  ;;  %v10135_v39 = vcombine.low %v737_v20, %v741_v21 }
 0x19b   :  { %v1597_v46 = vld [vmem:[#allocation13 + $0x2120] sm:$0xff] }
 0x19c   :  { %7541 = vmatpush1.bf16.msra.mxu1 %v10087_v4  ;;  %v1373_v4 = vld [vmem:[#allocation13 + $0x1a20] sm:$0xff] }
 0x19d   :  { %7752 = vmatpush1.bf16.msra.mxu0 %v10703_v6  ;;  %7542 = vmatprep.subr.bf16.mxu1 %v10080_v7  ;;  %v10159_v6 = vcombine.low %v761_v52, %v765_v56  ;;  %v10775_v7 = vcombine.low %v1377_v58, %v1381_v59  ;;  %v10768_v9 = vcombine.high %v1369_v2, %v1373_v4  ;;  %v503_v48 = vld [vmem:[#allocation5 + $0x10] sm:$0xff] }
 0x19e   :  { %7753 = vmatprep.subr.bf16.mxu0 %v10824_v8  ;;  %v10152_v8 = vcombine.high %v753_v0, %v757_v1  ;;  %v973_v52 = vld [vmem:[#allocation13 + $0xda0] sm:$0xff]  ;;  %v11989_v56 = vpack.c.bf16 %v503_v48, %v503_v48 }
 0x19f   :  { %v1585_v58 = vld [vmem:[#allocation13 + $0x20c0] sm:$0xff] }
 0x1a0   :  { %7543 = vmatpush1.bf16.msra.mxu1 %v10079_v14  ;;  %v1621_v14 = vld [vmem:[#allocation13 + $0x21e0] sm:$0xff] }
 0x1a1   :  { %7754 = vmatpush2.bf16.msra.mxu0 %v10823_v15  ;;  %7544 = vmatprep.subr.bf16.mxu1 %v10072_v16  ;;  %v10151_v15 = vcombine.low %v753_v0, %v757_v1  ;;  %v10767_v16 = vcombine.low %v1369_v2, %v1373_v4  ;;  %v11016_v19 = vcombine.high %v1617_v13, %v1621_v14  ;;  %v1589_v59 = vld [vmem:[#allocation13 + $0x20e0] sm:$0xff] }
 0x1a2   :  { %7755 = vmatprep.subr.bf16.mxu0 %v10816_v17  ;;  %v10144_v17 = vcombine.high %v745_v10, %v749_v11  ;;  %v11015_v28 = vcombine.low %v1617_v13, %v1621_v14  ;;  %v10984_v0 = vcombine.high %v1585_v58, %v1589_v59  ;;  %v961_v1 = vld [vmem:[#allocation13 + $0xd40] sm:$0xff] }
 0x1a3   :  { %v965_v2 = vld [vmem:[#allocation13 + $0xd60] sm:$0xff] }
 0x1a4   :  { %7545 = vmatpush1.bf16.msra.mxu1 %v10071_v22  ;;  %v1609_v22 = vld [vmem:[#allocation13 + $0x2180] sm:$0xff] }
 0x1a5   :  { %7756 = vmatpush2.bf16.msra.mxu0 %v10815_v23  ;;  %7546 = vmatprep.subr.bf16.mxu1 %v10064_v24  ;;  %v1613_v23 = vld [vmem:[#allocation13 + $0x21a0] sm:$0xff]  ;;  %v518_v24 = vld [vmem:[#allocation5 + $0x88] sm:$0xff] }
 0x1a6   :  { %7757 = vmatprep.subr.bf16.mxu0 %v10808_v25  ;;  %v10143_v25 = vcombine.low %v745_v10, %v749_v11  ;;  %v11008_v31 = vcombine.high %v1609_v22, %v1613_v23  ;;  %v11007_v40 = vcombine.low %v1609_v22, %v1613_v23  ;;  %v1577_v4 = vld [vmem:[#allocation13 + $0x2080] sm:$0xff] }
 0x1a7   :  { %v953_v11 = vld [vmem:[#allocation13 + $0xd00] sm:$0xff] }
 0x1a8   :  { %7547 = vmatpush1.bf16.msra.mxu1 %v10063_v32  ;;  %v729_v32 = vld [vmem:[#allocation13 + $0x600] sm:$0xff] }
 0x1a9   :  { %7758 = vmatpush2.bf16.msra.mxu0 %v10807_v33  ;;  %7548 = vmatprep.subr.bf16.mxu1 %v10184_v34  ;;  %v733_v33 = vld [vmem:[#allocation13 + $0x620] sm:$0xff]  ;;  %v11985_v34 = vpack.c.bf16 %v518_v24, %v518_v24 }
 0x1aa   :  { %7759 = vmatprep.subr.bf16.mxu0 %v10800_v35  ;;  %v1601_v35 = vld [vmem:[#allocation13 + $0x2140] sm:$0xff]  ;;  %v10128_v41 = vcombine.high %v729_v32, %v733_v33  ;;  %v10127_v47 = vcombine.low %v729_v32, %v733_v33 }
 0x1ab   :  { %v10999_v49 = vcombine.low %v1601_v35, %v1605_v37  ;;  %v957_v13 = vld [vmem:[#allocation13 + $0xd20] sm:$0xff] }
 0x1ac   :  { %7549 = vmatpush2.bf16.msra.mxu1 %v10183_v42  ;;  %v11000_v42 = vcombine.high %v1601_v35, %v1605_v37  ;;  %v1569_v14 = vld [vmem:[#allocation13 + $0x2040] sm:$0xff]  ;;  %v10352_v18 = vcombine.high %v953_v11, %v957_v13  ;;  %v10351_v24 = vcombine.low %v953_v11, %v957_v13 }
 0x1ad   :  { %7760 = vmatpush2.bf16.msra.mxu0 %v10799_v43  ;;  %7550 = vmatprep.subr.bf16.mxu1 %v10176_v44  ;;  %v977_v43 = vld [vmem:[#allocation13 + $0xdc0] sm:$0xff] }
 0x1ae   :  { %7761 = vmatprep.subr.bf16.mxu0 %v10792_v45  ;;  %v981_v44 = vld [vmem:[#allocation13 + $0xde0] sm:$0xff] }
 0x1af   :  { %v1593_v45 = vld [vmem:[#allocation13 + $0x2100] sm:$0xff] }
 0x1b0   :  { %7551 = vmatpush2.bf16.msra.mxu1 %v10175_v50  ;;  %v10376_v50 = vcombine.high %v977_v43, %v981_v44  ;;  %v945_v20 = vld [vmem:[#allocation13 + $0xcc0] sm:$0xff] }
 0x1b1   :  { %7762 = vmatpush2.bf16.msra.mxu0 %v10791_v53  ;;  %7552 = vmatprep.subr.bf16.mxu1 %v10168_v54  ;;  %v508_v53 = vld [vmem:[#allocation5 + $0x38] sm:$0xff]  ;;  %v10992_v54 = vcombine.high %v1593_v45, %v1597_v46 }
 0x1b2   :  { %7763 = vmatprep.subr.bf16.mxu0 %v10784_v57  ;;  %v969_v57 = vld [vmem:[#allocation13 + $0xd80] sm:$0xff] }
 0x1b3   :  { %v949_v21 = vld [vmem:[#allocation13 + $0xce0] sm:$0xff] }
 0x1b4   :  { %7553 = vmatpush2.bf16.msra.mxu1 %v10167_v60  ;;  %v10375_v60 = vcombine.low %v977_v43, %v981_v44  ;;  %v1561_v22 = vld [vmem:[#allocation13 + $0x2000] sm:$0xff]  ;;  %v10343_v37 = vcombine.low %v945_v20, %v949_v21 }
 0x1b5   :  { %7764 = vmatpush2.bf16.msra.mxu0 %v10783_v61  ;;  %7554 = vmatprep.subr.bf16.mxu1 %v10160_v62  ;;  %v11991_v61 = vpack.c.bf16 %v508_v53, %v508_v53  ;;  %v10991_v62 = vcombine.low %v1593_v45, %v1597_v46  ;;  %v1565_v23 = vld [vmem:[#allocation13 + $0x2020] sm:$0xff] }
 0x1b6   :  { %7765 = vmatprep.subr.bf16.mxu0 %v10776_v63  ;;  %v10368_v63 = vcombine.high %v969_v57, %v973_v52  ;;  %v941_v32 = vld [vmem:[#allocation13 + $0xca0] sm:$0xff] }
 0x1b7   :  { %v1681_v33 = vld [vmem:[#allocation13 + $0x23c0] sm:$0xff] }
 0x1b8   :  { %7555 = vmatpush2.bf16.msra.mxu1 %v10159_v6  ;;  %v1581_v6 = vld [vmem:[#allocation13 + $0x20a0] sm:$0xff] }
 0x1b9   :  { %7766 = vmatpush2.bf16.msra.mxu0 %v10775_v7  ;;  %7556 = vmatprep.subr.bf16.mxu1 %v10152_v8  ;;  %v10367_v7 = vcombine.low %v969_v57, %v973_v52  ;;  %v10983_v8 = vcombine.low %v1585_v58, %v1589_v59  ;;  %v10976_v10 = vcombine.high %v1577_v4, %v1581_v6  ;;  %v1685_v35 = vld [vmem:[#allocation13 + $0x23e0] sm:$0xff] }
 0x1ba   :  { %7767 = vmatprep.subr.bf16.mxu0 %v10768_v9  ;;  %v10360_v9 = vcombine.high %v961_v1, %v965_v2  ;;  %v933_v43 = vld [vmem:[#allocation13 + $0xc60] sm:$0xff] }
 0x1bb   :  { %v1673_v44 = vld [vmem:[#allocation13 + $0x2380] sm:$0xff] }
 0x1bc   :  { %7557 = vmatpush2.bf16.msra.mxu1 %v10151_v15  ;;  %v1573_v15 = vld [vmem:[#allocation13 + $0x2060] sm:$0xff] }
 0x1bd   :  { %7768 = vmatpush2.bf16.msra.mxu0 %v10767_v16  ;;  %7558 = vmatprep.subr.bf16.mxu1 %v10144_v17  ;;  %v10359_v16 = vcombine.low %v961_v1, %v965_v2  ;;  %v10975_v17 = vcombine.low %v1577_v4, %v1581_v6  ;;  %v1677_v45 = vld [vmem:[#allocation13 + $0x23a0] sm:$0xff] }
 0x1be   :  { %7819 = vmatprep.subr.bf16.mxu0 %v11016_v19  ;;  %v10968_v19 = vcombine.high %v1569_v14, %v1573_v15  ;;  %v925_v53 = vld [vmem:[#allocation13 + $0xc20] sm:$0xff]  ;;  %v11071_v58 = vcombine.low %v1673_v44, %v1677_v45 }
 0x1bf   :  { %v1669_v57 = vld [vmem:[#allocation13 + $0x2360] sm:$0xff] }
 0x1c0   :  { %7559 = vmatpush2.bf16.msra.mxu1 %v10143_v25  ;;  %7770 = vmatmul.mubr.bf16.vlgmr.msra.gmra.mxu0 %v11983_v26  ;;  %v10967_v25 = vcombine.low %v1569_v14, %v1573_v15  ;;  %v1661_v1 = vld [vmem:[#allocation13 + $0x2320] sm:$0xff] }
 0x1c1   :  { %7820 = vmatpush1.bf16.msra.mxu0 %v11015_v28  ;;  %7560 = vmatprep.subr.bf16.mxu1 %v10136_v29  ;;  %v10344_v28 = vcombine.high %v945_v20, %v949_v21  ;;  %v10960_v29 = vcombine.high %v1561_v22, %v1565_v23  ;;  %v1653_v11 = vld [vmem:[#allocation13 + $0x22e0] sm:$0xff] }
 0x1c2   :  { %7821 = vmatprep.subr.bf16.mxu0 %v11008_v31  ;;  %7851 = vmatprep.mubr.bf16.mxu0 %v11985_v34  ;;  %v937_v31 = vld [vmem:[#allocation13 + $0xc80] sm:$0xff] }
 0x1c3   :  { %v10335_v46 = vcombine.low %v937_v31, %v941_v32  ;;  %v1645_v20 = vld [vmem:[#allocation13 + $0x22a0] sm:$0xff] }
 0x1c4   :  { %7561 = vmatpush2.bf16.msra.mxu1 %v10135_v39  ;;  %v10959_v39 = vcombine.low %v1561_v22, %v1565_v23 }
 0x1c5   :  { %7822 = vmatpush1.bf16.msra.mxu0 %v11007_v40  ;;  %7562 = vmatprep.subr.bf16.mxu1 %v10128_v41  ;;  %v10336_v40 = vcombine.high %v937_v31, %v941_v32  ;;  %v11080_v41 = vcombine.high %v1681_v33, %v1685_v35  ;;  %v1637_v31 = vld [vmem:[#allocation13 + $0x2260] sm:$0xff] }
 0x1c6   :  { %7823 = vmatprep.subr.bf16.mxu0 %v11000_v42  ;;  %v929_v42 = vld [vmem:[#allocation13 + $0xc40] sm:$0xff] }
 0x1c7   :  { %v10328_v48 = vcombine.high %v929_v42, %v933_v43  ;;  %v10327_v52 = vcombine.low %v929_v42, %v933_v43  ;;  %v1629_v42 = vld [vmem:[#allocation13 + $0x2220] sm:$0xff] }
 0x1c8   :  { %7563 = vmatpush2.bf16.msra.mxu1 %v10127_v47  ;;  %v11079_v47 = vcombine.low %v1681_v33, %v1685_v35 }
 0x1c9   :  { %7824 = vmatpush1.bf16.msra.mxu0 %v10999_v49  ;;  %7614 = vmatprep.subr.bf16.mxu1 %v10376_v50  ;;  %v11072_v49 = vcombine.high %v1673_v44, %v1677_v45  ;;  %v921_v50 = vld [vmem:[#allocation13 + $0xc00] sm:$0xff] }
 0x1ca   :  { %7825 = vmatprep.subr.bf16.mxu0 %v10992_v54  ;;  %v1665_v54 = vld [vmem:[#allocation13 + $0x2340] sm:$0xff]  ;;  %v10320_v59 = vcombine.high %v921_v50, %v925_v53  ;;  %v10319_v2 = vcombine.low %v921_v50, %v925_v53  ;;  %v726_v50 = vld [vmem:[#allocation13 + $0x5e8] sm:$0xff] }
 0x1cb   :  { %7565 = vmatmul.mubr.bf16.vlgmr.msra.gmra.mxu1 %v11989_v56  ;;  %v11063_v4 = vcombine.low %v1665_v54, %v1669_v57 }
 0x1cc   :  { %7615 = vmatpush1.bf16.msra.mxu1 %v10375_v60  ;;  %7646 = vmatprep.mubr.bf16.mxu1 %v11991_v61  ;;  %v11064_v60 = vcombine.high %v1665_v54, %v1669_v57 }
 0x1cd   :  { %7826 = vmatpush1.bf16.msra.mxu0 %v10991_v62  ;;  %7616 = vmatprep.subr.bf16.mxu1 %v10368_v63  ;;  %v1041_v62 = vld [vmem:[#allocation13 + $0xfc0] sm:$0xff] }
 0x1ce   :  { %7827 = vmatprep.subr.bf16.mxu0 %v10984_v0  ;;  %v1045_v63 = vld [vmem:[#allocation13 + $0xfe0] sm:$0xff] }
 0x1cf   :  { %v1657_v0 = vld [vmem:[#allocation13 + $0x2300] sm:$0xff]  ;;  %v10440_v6 = vcombine.high %v1041_v62, %v1045_v63  ;;  %v10439_v13 = vcombine.low %v1041_v62, %v1045_v63  ;;  %v714_v62 = vld [vmem:[#allocation13 + $0x588] sm:$0xff] }
 0x1d0   :  { %7617 = vmatpush1.bf16.msra.mxu1 %v10367_v7  ;;  %v11056_v7 = vcombine.high %v1657_v0, %v1661_v1  ;;  %v11055_v14 = vcombine.low %v1657_v0, %v1661_v1  ;;  %v718_v63 = vld [vmem:[#allocation13 + $0x5a8] sm:$0xff] }
 0x1d1   :  { %7828 = vmatpush1.bf16.msra.mxu0 %v10983_v8  ;;  %7618 = vmatprep.subr.bf16.mxu1 %v10360_v9  ;;  %v1033_v8 = vld [vmem:[#allocation13 + $0xf80] sm:$0xff] }
 0x1d2   :  { %7829 = vmatprep.subr.bf16.mxu0 %v10976_v10  ;;  %v1037_v9 = vld [vmem:[#allocation13 + $0xfa0] sm:$0xff] }
 0x1d3   :  { %v1649_v10 = vld [vmem:[#allocation13 + $0x22c0] sm:$0xff]  ;;  %v10432_v15 = vcombine.high %v1033_v8, %v1037_v9  ;;  %v10431_v21 = vcombine.low %v1033_v8, %v1037_v9  ;;  %v706_v9 = vld [vmem:[#allocation13 + $0x548] sm:$0xff] }
 0x1d4   :  { %7619 = vmatpush1.bf16.msra.mxu1 %v10359_v16  ;;  %v11048_v16 = vcombine.high %v1649_v10, %v1653_v11  ;;  %v11047_v22 = vcombine.low %v1649_v10, %v1653_v11  ;;  %v989_v8 = vld [vmem:[#allocation13 + $0xe20] sm:$0xff]  ;;  %v710_v10 = vld [vmem:[#allocation13 + $0x568] sm:$0xff] }
 0x1d5   :  { %7830 = vmatpush1.bf16.msra.mxu0 %v10975_v17  ;;  %7620 = vmatprep.subr.bf16.mxu1 %v10352_v18  ;;  %v1025_v17 = vld [vmem:[#allocation13 + $0xf40] sm:$0xff] }
 0x1d6   :  { %7831 = vmatprep.subr.bf16.mxu0 %v10968_v19  ;;  %v1029_v18 = vld [vmem:[#allocation13 + $0xf60] sm:$0xff] }
 0x1d7   :  { %v1641_v19 = vld [vmem:[#allocation13 + $0x2280] sm:$0xff]  ;;  %v10424_v23 = vcombine.high %v1025_v17, %v1029_v18  ;;  %v10423_v32 = vcombine.low %v1025_v17, %v1029_v18 }
 0x1d8   :  { %7621 = vmatpush1.bf16.msra.mxu1 %v10351_v24  ;;  %v11040_v24 = vcombine.high %v1641_v19, %v1645_v20  ;;  %v11039_v33 = vcombine.low %v1641_v19, %v1645_v20  ;;  %v1233_v17 = vld [vmem:[#allocation13 + $0x15c0] sm:$0xff]  ;;  %v698_v19 = vld [vmem:[#allocation13 + $0x508] sm:$0xff] }
 0x1d9   :  { %7832 = vmatpush1.bf16.msra.mxu0 %v10967_v25  ;;  %7622 = vmatprep.subr.bf16.mxu1 %v10344_v28  ;;  %v1017_v25 = vld [vmem:[#allocation13 + $0xf00] sm:$0xff]  ;;  %v702_v20 = vld [vmem:[#allocation13 + $0x528] sm:$0xff] }
 0x1da   :  { %7833 = vmatprep.subr.bf16.mxu0 %v10960_v29  ;;  %v1021_v28 = vld [vmem:[#allocation13 + $0xf20] sm:$0xff] }
 0x1db   :  { %v1633_v29 = vld [vmem:[#allocation13 + $0x2240] sm:$0xff]  ;;  %v10416_v35 = vcombine.high %v1017_v25, %v1021_v28  ;;  %v10415_v43 = vcombine.low %v1017_v25, %v1021_v28 }
 0x1dc   :  { %7623 = vmatpush1.bf16.msra.mxu1 %v10343_v37  ;;  %v11032_v37 = vcombine.high %v1633_v29, %v1637_v31  ;;  %v11031_v44 = vcombine.low %v1633_v29, %v1637_v31  ;;  %v1237_v18 = vld [vmem:[#allocation13 + $0x15e0] sm:$0xff]  ;;  %v10098_v29 = vcombine.high %v698_v19, %v702_v20 }
 0x1dd   :  { %7834 = vmatpush1.bf16.msra.mxu0 %v10959_v39  ;;  %7624 = vmatprep.subr.bf16.mxu1 %v10336_v40  ;;  %v1009_v39 = vld [vmem:[#allocation13 + $0xec0] sm:$0xff]  ;;  %v10632_v25 = vcombine.high %v1233_v17, %v1237_v18 }
 0x1de   :  { %7835 = vmatprep.subr.bf16.mxu0 %v11080_v41  ;;  %v1013_v40 = vld [vmem:[#allocation13 + $0xee0] sm:$0xff] }
 0x1df   :  { %v1625_v41 = vld [vmem:[#allocation13 + $0x2200] sm:$0xff]  ;;  %v10408_v45 = vcombine.high %v1009_v39, %v1013_v40  ;;  %v10407_v53 = vcombine.low %v1009_v39, %v1013_v40  ;;  %v694_v39 = vld [vmem:[#allocation13 + $0x4e8] sm:$0xff]  ;;  %v10631_v40 = vcombine.low %v1233_v17, %v1237_v18 }
 0x1e0   :  { %7625 = vmatpush1.bf16.msra.mxu1 %v10335_v46  ;;  %v11024_v46 = vcombine.high %v1625_v41, %v1629_v42  ;;  %v11023_v54 = vcombine.low %v1625_v41, %v1629_v42  ;;  %v512_v28 = vld [vmem:[#allocation5 + $0x58] sm:$0xff] }
 0x1e1   :  { %7836 = vmatpush2.bf16.msra.mxu0 %v11079_v47  ;;  %7626 = vmatprep.subr.bf16.mxu1 %v10328_v48  ;;  %v1001_v47 = vld [vmem:[#allocation13 + $0xe80] sm:$0xff]  ;;  %v12005_v41 = vpack.c.bf16 %v512_v28, %v512_v28 }
 0x1e2   :  { %7837 = vmatprep.subr.bf16.mxu0 %v11072_v49  ;;  %v1005_v48 = vld [vmem:[#allocation13 + $0xea0] sm:$0xff]  ;;  %v722_v49 = vld [vmem:[#allocation13 + $0x5c8] sm:$0xff] }
 0x1e3   :  { %v10400_v57 = vcombine.high %v1001_v47, %v1005_v48  ;;  %v10399_v0 = vcombine.low %v1001_v47, %v1005_v48  ;;  %v1225_v31 = vld [vmem:[#allocation13 + $0x1580] sm:$0xff]  ;;  %v682_v48 = vld [vmem:[#allocation13 + $0x488] sm:$0xff] }
 0x1e4   :  { %7627 = vmatpush1.bf16.msra.mxu1 %v10327_v52  ;;  %v517_v52 = vld [vmem:[#allocation5 + $0x80] sm:$0xff]  ;;  %v1221_v47 = vld [vmem:[#allocation13 + $0x1560] sm:$0xff] }
 0x1e5   :  { %7838 = vmatpush2.bf16.msra.mxu0 %v11071_v58  ;;  %7628 = vmatprep.subr.bf16.mxu1 %v10320_v59  ;;  %v10122_v58 = vcombine.high %v722_v49, %v726_v50  ;;  %v993_v59 = vld [vmem:[#allocation13 + $0xe40] sm:$0xff]  ;;  %v11995_v1 = vpack.c.bf16 %v517_v52, %v517_v52 }
 0x1e6   :  { %7839 = vmatprep.subr.bf16.mxu0 %v11064_v60  ;;  %v997_v60 = vld [vmem:[#allocation13 + $0xe60] sm:$0xff] }
 0x1e7   :  { %v10391_v11 = vcombine.low %v993_v59, %v997_v60 }
 0x1e8   :  { %7629 = vmatpush1.bf16.msra.mxu1 %v10319_v2  ;;  %v10121_v2 = vcombine.low %v722_v49, %v726_v50  ;;  %v686_v49 = vld [vmem:[#allocation13 + $0x4a8] sm:$0xff] }
 0x1e9   :  { %7840 = vmatpush2.bf16.msra.mxu0 %v11063_v4  ;;  %7630 = vmatprep.subr.bf16.mxu1 %v10440_v6  ;;  %v10392_v4 = vcombine.high %v993_v59, %v997_v60  ;;  %v10114_v6 = vcombine.high %v714_v62, %v718_v63  ;;  %v10082_v52 = vcombine.high %v682_v48, %v686_v49  ;;  %v1213_v59 = vld [vmem:[#allocation13 + $0x1520] sm:$0xff]  ;;  %v674_v60 = vld [vmem:[#allocation13 + $0x448] sm:$0xff] }
 0x1ea   :  { %7841 = vmatprep.subr.bf16.mxu0 %v11056_v7  ;;  %v985_v7 = vld [vmem:[#allocation13 + $0xe00] sm:$0xff] }
 0x1ec   :  { %7631 = vmatpush2.bf16.msra.mxu1 %v10439_v13  ;;  %v10113_v13 = vcombine.low %v714_v62, %v718_v63  ;;  %v678_v62 = vld [vmem:[#allocation13 + $0x468] sm:$0xff] }
 0x1ed   :  { %7842 = vmatpush2.bf16.msra.mxu0 %v11055_v14  ;;  %7632 = vmatprep.subr.bf16.mxu1 %v10432_v15  ;;  %v10384_v14 = vcombine.high %v985_v7, %v989_v8  ;;  %v11998_v15 = vpop.f32.mrf.mxu0 }
 0x1ee   :  { %7843 = vmatprep.subr.bf16.mxu0 %v11048_v16  ;;  %v10106_v16 = vcombine.high %v706_v9, %v710_v10 }
 0x1f0   :  { %7633 = vmatpush2.bf16.msra.mxu1 %v10431_v21  ;;  %v10383_v21 = vcombine.low %v985_v7, %v989_v8  ;;  %v10074_v7 = vcombine.high %v674_v60, %v678_v62  ;;  %v1201_v8 = vld [vmem:[#allocation13 + $0x14c0] sm:$0xff] }
 0x1f1   :  { %7844 = vmatpush2.bf16.msra.mxu0 %v11047_v22  ;;  %7634 = vmatprep.subr.bf16.mxu1 %v10424_v23  ;;  %v507_v22 = vld [vmem:[#allocation5 + $0x30] sm:$0xff]  ;;  %v12001_v23 = vpop.f32.mrf.mxu0 }
 0x1f2   :  { %7845 = vmatprep.subr.bf16.mxu0 %v11040_v24  ;;  %v10105_v24 = vcombine.low %v706_v9, %v710_v10  ;;  %v1205_v9 = vld [vmem:[#allocation13 + $0x14e0] sm:$0xff]  ;;  %v666_v10 = vld [vmem:[#allocation13 + $0x408] sm:$0xff] }
 0x1f3   :  { %v10600_v17 = vcombine.high %v1201_v8, %v1205_v9 }
 0x1f4   :  { %7635 = vmatpush2.bf16.msra.mxu1 %v10423_v32  ;;  %v1229_v32 = vld [vmem:[#allocation13 + $0x15a0] sm:$0xff] }
 0x1f5   :  { %7846 = vmatpush2.bf16.msra.mxu0 %v11039_v33  ;;  %7636 = vmatprep.subr.bf16.mxu1 %v10416_v35  ;;  %v7529_v33 = vpop.f32.mrf.mxu0  ;;  %v12003_v35 = vpack.c.bf16 %v507_v22, %v507_v22  ;;  %v10623_v50 = vcombine.low %v1225_v31, %v1229_v32  ;;  %v790_v22 = vld [vmem:[#allocation13 + $0x7e8] sm:$0xff] }
 0x1f6   :  { %7847 = vmatprep.subr.bf16.mxu0 %v11032_v37  ;;  %v690_v37 = vld [vmem:[#allocation13 + $0x4c8] sm:$0xff] }
 0x1f7   :  { %v7530_v42 = vpop.f32.mrf.mxu0  ;;  %v778_v33 = vld [vmem:[#allocation13 + $0x788] sm:$0xff] }
 0x1f8   :  { %7637 = vmatpush2.bf16.msra.mxu1 %v10415_v43  ;;  %v10097_v43 = vcombine.low %v698_v19, %v702_v20  ;;  %v1193_v19 = vld [vmem:[#allocation13 + $0x1480] sm:$0xff] }
 0x1f9   :  { %7848 = vmatpush2.bf16.msra.mxu0 %v11031_v44  ;;  %7638 = vmatprep.subr.bf16.mxu1 %v10408_v45  ;;  %v10624_v44 = vcombine.high %v1225_v31, %v1229_v32  ;;  %v10090_v45 = vcombine.high %v690_v37, %v694_v39  ;;  %v1197_v20 = vld [vmem:[#allocation13 + $0x14a0] sm:$0xff] }
 0x1fa   :  { %7849 = vmatprep.subr.bf16.mxu0 %v11024_v46  ;;  %v1217_v46 = vld [vmem:[#allocation13 + $0x1540] sm:$0xff]  ;;  %v10592_v28 = vcombine.high %v1193_v19, %v1197_v20 }
 0x1fb   :  { %v1185_v31 = vld [vmem:[#allocation13 + $0x1440] sm:$0xff] }
 0x1fc   :  { %7639 = vmatpush2.bf16.msra.mxu1 %v10407_v53  ;;  %v10089_v53 = vcombine.low %v690_v37, %v694_v39  ;;  %v1189_v32 = vld [vmem:[#allocation13 + $0x1460] sm:$0xff]  ;;  %v782_v37 = vld [vmem:[#allocation13 + $0x7a8] sm:$0xff]  ;;  %v10591_v39 = vcombine.low %v1193_v19, %v1197_v20 }
 0x1fd   :  { %7850 = vmatpush2.bf16.msra.mxu0 %v11023_v54  ;;  %7640 = vmatprep.subr.bf16.mxu1 %v10400_v57  ;;  %v10616_v54 = vcombine.high %v1217_v46, %v1221_v47  ;;  %v10584_v42 = vcombine.high %v1185_v31, %v1189_v32 }
 0x1fe   :  { %7901 = vmatprep.subr.bf16.mxu0 %v10122_v58  ;;  %v1209_v58 = vld [vmem:[#allocation13 + $0x1500] sm:$0xff] }
 0x200   :  { %7641 = vmatpush2.bf16.msra.mxu1 %v10399_v0  ;;  %7852 = vmatmul.mubr.bf16.vlgmr.msra.gmra.mxu0 %v11995_v1  ;;  %v12009_v57 = vpop.f32.mrf.mxu0  ;;  %v10615_v0 = vcombine.low %v1217_v46, %v1221_v47  ;;  %v770_v46 = vld [vmem:[#allocation13 + $0x748] sm:$0xff] }
 0x201   :  { %7902 = vmatpush1.bf16.msra.mxu0 %v10121_v2  ;;  %7642 = vmatprep.subr.bf16.mxu1 %v10392_v4  ;;  %v10081_v2 = vcombine.low %v682_v48, %v686_v49  ;;  %v10608_v4 = vcombine.high %v1209_v58, %v1213_v59  ;;  %v774_v47 = vld [vmem:[#allocation13 + $0x768] sm:$0xff]  ;;  %v10583_v48 = vcombine.low %v1185_v31, %v1189_v32 }
 0x202   :  { %7903 = vmatprep.subr.bf16.mxu0 %v10114_v6  ;;  %7933 = vmatprep.mubr.bf16.mxu0 %v11977_v30  ;;  %v12011_v63 = vpop.f32.mrf.mxu0  ;;  %v10177_v49 = vcombine.low %v778_v33, %v782_v37 }
 0x204   :  { %7643 = vmatpush2.bf16.msra.mxu1 %v10391_v11  ;;  %v7611_v6 = vpop.f32.mrf.mxu0  ;;  %v670_v11 = vld [vmem:[#allocation13 + $0x428] sm:$0xff] }
 0x205   :  { %7904 = vmatpush1.bf16.msra.mxu0 %v10113_v13  ;;  %7644 = vmatprep.subr.bf16.mxu1 %v10384_v14  ;;  %v10607_v14 = vcombine.low %v1209_v58, %v1213_v59  ;;  %v10066_v18 = vcombine.high %v666_v10, %v670_v11  ;;  %v762_v58 = vld [vmem:[#allocation13 + $0x708] sm:$0xff]  ;;  %v1293_v6 = vld [vmem:[#allocation13 + $0x17a0] sm:$0xff] }
 0x206   :  { %7905 = vmatprep.subr.bf16.mxu0 %v10106_v16  ;;  %v7612_v13 = vpop.f32.mrf.mxu0  ;;  %v10073_v16 = vcombine.low %v674_v60, %v678_v62  ;;  %v766_v59 = vld [vmem:[#allocation13 + $0x728] sm:$0xff]  ;;  %v10169_v62 = vcombine.low %v770_v46, %v774_v47 }
 0x208   :  { %7645 = vmatpush2.bf16.msra.mxu1 %v10383_v21  ;;  %v786_v21 = vld [vmem:[#allocation13 + $0x7c8] sm:$0xff] }
 0x209   :  { %7906 = vmatpush1.bf16.msra.mxu0 %v10105_v24  ;;  %7696 = vmatprep.subr.bf16.mxu1 %v10632_v25  ;;  %v10599_v24 = vcombine.low %v1201_v8, %v1205_v9  ;;  %v10065_v25 = vcombine.low %v666_v10, %v670_v11  ;;  %v758_v8 = vld [vmem:[#allocation13 + $0x6e8] sm:$0xff]  ;;  %v10161_v10 = vcombine.low %v762_v58, %v766_v59 }
 0x20a   :  { %7907 = vmatprep.subr.bf16.mxu0 %v10098_v29  ;;  %v10186_v29 = vcombine.high %v786_v21, %v790_v22 }
 0x20b   :  { %7647 = vmatmul.mubr.bf16.vlgmr.msra.gmra.mxu1 %v12003_v35 }
 0x20c   :  { %7697 = vmatpush1.bf16.msra.mxu1 %v10631_v40  ;;  %7728 = vmatprep.mubr.bf16.mxu1 %v12005_v41  ;;  %v10185_v40 = vcombine.low %v786_v21, %v790_v22 }
 0x20d   :  { %7908 = vmatpush1.bf16.msra.mxu0 %v10097_v43  ;;  %7698 = vmatprep.subr.bf16.mxu1 %v10624_v44  ;;  %v10178_v43 = vcombine.high %v778_v33, %v782_v37  ;;  %v1177_v44 = vld [vmem:[#allocation13 + $0x1400] sm:$0xff] }
 0x20e   :  { %7909 = vmatprep.subr.bf16.mxu0 %v10090_v45  ;;  %v1181_v45 = vld [vmem:[#allocation13 + $0x1420] sm:$0xff] }
 0x20f   :  { %v10575_v60 = vcombine.low %v1177_v44, %v1181_v45 }
 0x210   :  { %7699 = vmatpush1.bf16.msra.mxu1 %v10623_v50  ;;  %v10576_v50 = vcombine.high %v1177_v44, %v1181_v45 }
 0x211   :  { %7910 = vmatpush1.bf16.msra.mxu0 %v10089_v53  ;;  %7700 = vmatprep.subr.bf16.mxu1 %v10616_v54  ;;  %v10170_v53 = vcombine.high %v770_v46, %v774_v47  ;;  %v1297_v54 = vld [vmem:[#allocation13 + $0x17c0] sm:$0xff] }
 0x212   :  { %7911 = vmatprep.subr.bf16.mxu0 %v10082_v52  ;;  %v1301_v52 = vld [vmem:[#allocation13 + $0x17e0] sm:$0xff] }
 0x213   :  { %v10695_v9 = vcombine.low %v1297_v54, %v1301_v52 }
 0x214   :  { %7701 = vmatpush1.bf16.msra.mxu1 %v10615_v0  ;;  %v10696_v0 = vcombine.high %v1297_v54, %v1301_v52 }
 0x215   :  { %7912 = vmatpush1.bf16.msra.mxu0 %v10081_v2  ;;  %7702 = vmatprep.subr.bf16.mxu1 %v10608_v4  ;;  %v10162_v2 = vcombine.high %v762_v58, %v766_v59  ;;  %v1289_v4 = vld [vmem:[#allocation13 + $0x1780] sm:$0xff] }
 0x216   :  { %7913 = vmatprep.subr.bf16.mxu0 %v10074_v7  ;;  %v754_v7 = vld [vmem:[#allocation13 + $0x6c8] sm:$0xff]  ;;  %v10688_v11 = vcombine.high %v1289_v4, %v1293_v6  ;;  %v10687_v19 = vcombine.low %v1289_v4, %v1293_v6 }
 0x217   :  { %v10154_v13 = vcombine.high %v754_v7, %v758_v8  ;;  %v10153_v20 = vcombine.low %v754_v7, %v758_v8 }
 0x218   :  { %7703 = vmatpush1.bf16.msra.mxu1 %v10607_v14  ;;  %v1281_v14 = vld [vmem:[#allocation13 + $0x1740] sm:$0xff] }
 0x219   :  { %7914 = vmatpush1.bf16.msra.mxu0 %v10073_v16  ;;  %7704 = vmatprep.subr.bf16.mxu1 %v10600_v17  ;;  %v1285_v16 = vld [vmem:[#allocation13 + $0x1760] sm:$0xff]  ;;  %v746_v17 = vld [vmem:[#allocation13 + $0x688] sm:$0xff] }
 0x21a   :  { %7915 = vmatprep.subr.bf16.mxu0 %v10066_v18  ;;  %v750_v18 = vld [vmem:[#allocation13 + $0x6a8] sm:$0xff]  ;;  %v10680_v21 = vcombine.high %v1281_v14, %v1285_v16  ;;  %v10679_v31 = vcombine.low %v1281_v14, %v1285_v16 }
 0x21b   :  { %v10146_v22 = vcombine.high %v746_v17, %v750_v18  ;;  %v10145_v32 = vcombine.low %v746_v17, %v750_v18 }
 0x21c   :  { %7705 = vmatpush1.bf16.msra.mxu1 %v10599_v24  ;;  %v1273_v24 = vld [vmem:[#allocation13 + $0x1700] sm:$0xff] }
 0x21d   :  { %7916 = vmatpush1.bf16.msra.mxu0 %v10065_v25  ;;  %7706 = vmatprep.subr.bf16.mxu1 %v10592_v28  ;;  %v1277_v25 = vld [vmem:[#allocation13 + $0x1720] sm:$0xff]  ;;  %v738_v28 = vld [vmem:[#allocation13 + $0x648] sm:$0xff] }
 0x21e   :  { %7917 = vmatprep.subr.bf16.mxu0 %v10186_v29  ;;  %v742_v29 = vld [vmem:[#allocation13 + $0x668] sm:$0xff]  ;;  %v10672_v33 = vcombine.high %v1273_v24, %v1277_v25  ;;  %v10671_v44 = vcombine.low %v1273_v24, %v1277_v25  ;;  %v511_v25 = vld [vmem:[#allocation5 + $0x50] sm:$0xff] }
 0x21f   :  { %v10138_v37 = vcombine.high %v738_v28, %v742_v29  ;;  %v10137_v45 = vcombine.low %v738_v28, %v742_v29 }
 0x220   :  { %7707 = vmatpush1.bf16.msra.mxu1 %v10591_v39  ;;  %v1265_v39 = vld [vmem:[#allocation13 + $0x16c0] sm:$0xff] }
 0x221   :  { %7918 = vmatpush2.bf16.msra.mxu0 %v10185_v40  ;;  %7708 = vmatprep.subr.bf16.mxu1 %v10584_v42  ;;  %v1269_v40 = vld [vmem:[#allocation13 + $0x16e0] sm:$0xff]  ;;  %v730_v42 = vld [vmem:[#allocation13 + $0x608] sm:$0xff] }
 0x222   :  { %7919 = vmatprep.subr.bf16.mxu0 %v10178_v43  ;;  %v734_v43 = vld [vmem:[#allocation13 + $0x628] sm:$0xff]  ;;  %v10664_v46 = vcombine.high %v1265_v39, %v1269_v40  ;;  %v10663_v54 = vcombine.low %v1265_v39, %v1269_v40  ;;  %v12015_v39 = vpack.c.bf16 %v511_v25, %v511_v25 }
 0x223   :  { %v10130_v47 = vcombine.high %v730_v42, %v734_v43  ;;  %v10129_v52 = vcombine.low %v730_v42, %v734_v43  ;;  %v946_v40 = vld [vmem:[#allocation13 + $0xcc8] sm:$0xff] }
 0x224   :  { %7709 = vmatpush1.bf16.msra.mxu1 %v10583_v48  ;;  %v1257_v48 = vld [vmem:[#allocation13 + $0x1680] sm:$0xff]  ;;  %v950_v42 = vld [vmem:[#allocation13 + $0xce8] sm:$0xff] }
 0x225   :  { %7920 = vmatpush2.bf16.msra.mxu0 %v10177_v49  ;;  %7710 = vmatprep.subr.bf16.mxu1 %v10576_v50  ;;  %v1261_v49 = vld [vmem:[#allocation13 + $0x16a0] sm:$0xff]  ;;  %v978_v50 = vld [vmem:[#allocation13 + $0xdc8] sm:$0xff] }
 0x226   :  { %7921 = vmatprep.subr.bf16.mxu0 %v10170_v53  ;;  %v982_v53 = vld [vmem:[#allocation13 + $0xde8] sm:$0xff]  ;;  %v10656_v58 = vcombine.high %v1257_v48, %v1261_v49  ;;  %v10655_v4 = vcombine.low %v1257_v48, %v1261_v49  ;;  %v1473_v48 = vld [vmem:[#allocation13 + $0x1d40] sm:$0xff] }
 0x227   :  { %v10378_v59 = vcombine.high %v978_v50, %v982_v53  ;;  %v10377_v6 = vcombine.low %v978_v50, %v982_v53  ;;  %v1477_v49 = vld [vmem:[#allocation13 + $0x1d60] sm:$0xff]  ;;  %v938_v53 = vld [vmem:[#allocation13 + $0xc88] sm:$0xff] }
 0x228   :  { %7711 = vmatpush1.bf16.msra.mxu1 %v10575_v60  ;;  %v1249_v60 = vld [vmem:[#allocation13 + $0x1640] sm:$0xff] }
 0x229   :  { %7922 = vmatpush2.bf16.msra.mxu0 %v10169_v62  ;;  %7712 = vmatprep.subr.bf16.mxu1 %v10696_v0  ;;  %v1253_v62 = vld [vmem:[#allocation13 + $0x1660] sm:$0xff]  ;;  %v970_v0 = vld [vmem:[#allocation13 + $0xd88] sm:$0xff] }
 0x22a   :  { %7923 = vmatprep.subr.bf16.mxu0 %v10162_v2  ;;  %v974_v2 = vld [vmem:[#allocation13 + $0xda8] sm:$0xff]  ;;  %v10648_v7 = vcombine.high %v1249_v60, %v1253_v62  ;;  %v10647_v14 = vcombine.low %v1249_v60, %v1253_v62  ;;  %v10872_v60 = vcombine.high %v1473_v48, %v1477_v49 }
 0x22b   :  { %v10370_v8 = vcombine.high %v970_v0, %v974_v2  ;;  %v10369_v16 = vcombine.low %v970_v0, %v974_v2  ;;  %v1465_v2 = vld [vmem:[#allocation13 + $0x1d00] sm:$0xff] }
 0x22c   :  { %7713 = vmatpush2.bf16.msra.mxu1 %v10695_v9  ;;  %v1241_v9 = vld [vmem:[#allocation13 + $0x1600] sm:$0xff] }
 0x22d   :  { %7924 = vmatpush2.bf16.msra.mxu0 %v10161_v10  ;;  %7714 = vmatprep.subr.bf16.mxu1 %v10688_v11  ;;  %v1245_v10 = vld [vmem:[#allocation13 + $0x1620] sm:$0xff]  ;;  %v962_v11 = vld [vmem:[#allocation13 + $0xd48] sm:$0xff] }
 0x22e   :  { %7925 = vmatprep.subr.bf16.mxu0 %v10154_v13  ;;  %v966_v13 = vld [vmem:[#allocation13 + $0xd68] sm:$0xff]  ;;  %v10640_v17 = vcombine.high %v1241_v9, %v1245_v10  ;;  %v10639_v24 = vcombine.low %v1241_v9, %v1245_v10  ;;  %v10871_v10 = vcombine.low %v1473_v48, %v1477_v49 }
 0x22f   :  { %v10362_v18 = vcombine.high %v962_v11, %v966_v13  ;;  %v10361_v28 = vcombine.low %v962_v11, %v966_v13  ;;  %v1034_v48 = vld [vmem:[#allocation13 + $0xf88] sm:$0xff] }
 0x230   :  { %7715 = vmatpush2.bf16.msra.mxu1 %v10687_v19  ;;  %v1489_v19 = vld [vmem:[#allocation13 + $0x1dc0] sm:$0xff]  ;;  %v1038_v49 = vld [vmem:[#allocation13 + $0xfa8] sm:$0xff] }
 0x231   :  { %7926 = vmatpush2.bf16.msra.mxu0 %v10153_v20  ;;  %7716 = vmatprep.subr.bf16.mxu1 %v10680_v21  ;;  %v1493_v20 = vld [vmem:[#allocation13 + $0x1de0] sm:$0xff]  ;;  %v954_v21 = vld [vmem:[#allocation13 + $0xd08] sm:$0xff] }
 0x232   :  { %7927 = vmatprep.subr.bf16.mxu0 %v10146_v22  ;;  %v958_v22 = vld [vmem:[#allocation13 + $0xd28] sm:$0xff]  ;;  %v10888_v29 = vcombine.high %v1489_v19, %v1493_v20  ;;  %v10887_v43 = vcombine.low %v1489_v19, %v1493_v20  ;;  %v1461_v19 = vld [vmem:[#allocation13 + $0x1ce0] sm:$0xff] }
 0x233   :  { %v922_v20 = vld [vmem:[#allocation13 + $0xc08] sm:$0xff] }
 0x234   :  { %7717 = vmatpush2.bf16.msra.mxu1 %v10679_v31  ;;  %v516_v31 = vld [vmem:[#allocation5 + $0x78] sm:$0xff] }
 0x235   :  { %7928 = vmatpush2.bf16.msra.mxu0 %v10145_v32  ;;  %7718 = vmatprep.subr.bf16.mxu1 %v10672_v33  ;;  %v10354_v32 = vcombine.high %v954_v21, %v958_v22  ;;  %v1481_v33 = vld [vmem:[#allocation13 + $0x1d80] sm:$0xff] }
 0x236   :  { %7929 = vmatprep.subr.bf16.mxu0 %v10138_v37  ;;  %v1485_v37 = vld [vmem:[#allocation13 + $0x1da0] sm:$0xff] }
 0x238   :  { %7719 = vmatpush2.bf16.msra.mxu1 %v10671_v44  ;;  %v12017_v44 = vpack.c.bf16 %v516_v31, %v516_v31  ;;  %v1449_v31 = vld [vmem:[#allocation13 + $0x1c80] sm:$0xff] }
 0x239   :  { %7930 = vmatpush2.bf16.msra.mxu0 %v10137_v45  ;;  %7720 = vmatprep.subr.bf16.mxu1 %v10664_v46  ;;  %v10353_v45 = vcombine.low %v954_v21, %v958_v22  ;;  %v10880_v46 = vcombine.high %v1481_v33, %v1485_v37  ;;  %v926_v21 = vld [vmem:[#allocation13 + $0xc28] sm:$0xff] }
 0x23a   :  { %7931 = vmatprep.subr.bf16.mxu0 %v10130_v47  ;;  %v10346_v47 = vcombine.high %v946_v40, %v950_v42 }
 0x23c   :  { %7721 = vmatpush2.bf16.msra.mxu1 %v10663_v54  ;;  %v942_v54 = vld [vmem:[#allocation13 + $0xca8] sm:$0xff] }
 0x23d   :  { %7932 = vmatpush2.bf16.msra.mxu0 %v10129_v52  ;;  %7722 = vmatprep.subr.bf16.mxu1 %v10656_v58  ;;  %v10879_v52 = vcombine.low %v1481_v33, %v1485_v37  ;;  %v10338_v0 = vcombine.high %v938_v53, %v942_v54  ;;  %v10337_v13 = vcombine.low %v938_v53, %v942_v54  ;;  %v1042_v33 = vld [vmem:[#allocation13 + $0xfc8] sm:$0xff] }
 0x23e   :  { %7983 = vmatprep.subr.bf16.mxu0 %v10378_v59  ;;  %v10345_v59 = vcombine.low %v946_v40, %v950_v42  ;;  %v1046_v37 = vld [vmem:[#allocation13 + $0xfe8] sm:$0xff]  ;;  %v10321_v42 = vcombine.low %v922_v20, %v926_v21 }
 0x23f   :  { %v10441_v54 = vcombine.low %v1042_v33, %v1046_v37 }
 0x240   :  { %7723 = vmatpush2.bf16.msra.mxu1 %v10655_v4  ;;  %7934 = vmatmul.mubr.bf16.vlgmr.msra.gmra.mxu0 %v11989_v56  ;;  %v12023_v62 = vpop.f32.mrf.mxu0  ;;  %v1469_v4 = vld [vmem:[#allocation13 + $0x1d20] sm:$0xff] }
 0x241   :  { %7984 = vmatpush1.bf16.msra.mxu0 %v10377_v6  ;;  %7724 = vmatprep.subr.bf16.mxu1 %v10648_v7  ;;  %v930_v7 = vld [vmem:[#allocation13 + $0xc48] sm:$0xff] }
 0x242   :  { %7985 = vmatprep.subr.bf16.mxu0 %v10370_v8  ;;  %8015 = vmatprep.mubr.bf16.mxu0 %v11991_v61  ;;  %v934_v8 = vld [vmem:[#allocation13 + $0xc68] sm:$0xff]  ;;  %v12025_v9 = vpop.f32.mrf.mxu0 }
 0x243   :  { %v10329_v25 = vcombine.low %v930_v7, %v934_v8 }
 0x244   :  { %7725 = vmatpush2.bf16.msra.mxu1 %v10647_v14  ;;  %v10864_v14 = vcombine.high %v1465_v2, %v1469_v4 }
 0x245   :  { %7986 = vmatpush1.bf16.msra.mxu0 %v10369_v16  ;;  %7726 = vmatprep.subr.bf16.mxu1 %v10640_v17  ;;  %v7693_v16 = vpop.f32.mrf.mxu0  ;;  %v10330_v17 = vcombine.high %v930_v7, %v934_v8 }
 0x246   :  { %7987 = vmatprep.subr.bf16.mxu0 %v10362_v18  ;;  %v1457_v18 = vld [vmem:[#allocation13 + $0x1cc0] sm:$0xff] }
 0x247   :  { %v7694_v22 = vpop.f32.mrf.mxu0  ;;  %v10855_v40 = vcombine.low %v1457_v18, %v1461_v19 }
 0x248   :  { %7727 = vmatpush2.bf16.msra.mxu1 %v10639_v24  ;;  %v10863_v24 = vcombine.low %v1465_v2, %v1469_v4  ;;  %v1030_v2 = vld [vmem:[#allocation13 + $0xf68] sm:$0xff] }
 0x249   :  { %7988 = vmatpush1.bf16.msra.mxu0 %v10361_v28  ;;  %7778 = vmatprep.subr.bf16.mxu1 %v10888_v29  ;;  %v10856_v28 = vcombine.high %v1457_v18, %v1461_v19  ;;  %v10322_v29 = vcombine.high %v922_v20, %v926_v21  ;;  %v1545_v20 = vld [vmem:[#allocation13 + $0x1f80] sm:$0xff]  ;;  %v1010_v22 = vld [vmem:[#allocation13 + $0xec8] sm:$0xff] }
 0x24a   :  { %7989 = vmatprep.subr.bf16.mxu0 %v10354_v32  ;;  %v1453_v32 = vld [vmem:[#allocation13 + $0x1ca0] sm:$0xff] }
 0x24b   :  { %7729 = vmatmul.mubr.bf16.vlgmr.msra.gmra.mxu1 %v12015_v39  ;;  %v12020_v50 = vpop.f32.mrf.mxu1  ;;  %v10847_v53 = vcombine.low %v1449_v31, %v1453_v32  ;;  %v1549_v21 = vld [vmem:[#allocation13 + $0x1fa0] sm:$0xff] }
 0x24c   :  { %7779 = vmatpush1.bf16.msra.mxu1 %v10887_v43  ;;  %7810 = vmatprep.mubr.bf16.mxu1 %v12017_v44  ;;  %v10848_v43 = vcombine.high %v1449_v31, %v1453_v32  ;;  %v1537_v32 = vld [vmem:[#allocation13 + $0x1f40] sm:$0xff] }
 0x24d   :  { %v11325_v58 = vpop.f32.mrf.mxu1  ;;  %7990 = vmatpush1.bf16.msra.mxu0 %v10353_v45  ;;  %7780 = vmatprep.subr.bf16.mxu1 %v10880_v46  ;;  %v10442_v45 = vcombine.high %v1042_v33, %v1046_v37  ;;  %v1441_v46 = vld [vmem:[#allocation13 + $0x1c40] sm:$0xff]  ;;  %v1002_v37 = vld [vmem:[#allocation13 + $0xe88] sm:$0xff] }
 0x24e   :  { %7991 = vmatprep.subr.bf16.mxu0 %v10346_v47  ;;  %v1445_v47 = vld [vmem:[#allocation13 + $0x1c60] sm:$0xff]  ;;  %v10434_v58 = vcombine.high %v1034_v48, %v1038_v49 }
 0x24f   :  { %v497_v6 = vpop.f32.mrf.mxu1  ;;  %v10839_v4 = vcombine.low %v1441_v46, %v1445_v47  ;;  %v1541_v33 = vld [vmem:[#allocation13 + $0x1f60] sm:$0xff] }
 0x250   :  { %7781 = vmatpush1.bf16.msra.mxu1 %v10879_v52  ;;  %v10840_v52 = vcombine.high %v1441_v46, %v1445_v47  ;;  %v10433_v6 = vcombine.low %v1034_v48, %v1038_v49  ;;  %v1529_v47 = vld [vmem:[#allocation13 + $0x1f00] sm:$0xff]  ;;  %v994_v49 = vld [vmem:[#allocation13 + $0xe48] sm:$0xff] }
 0x251   :  { %v11326_v11 = vpop.f32.mrf.mxu1  ;;  %7992 = vmatpush1.bf16.msra.mxu0 %v10345_v59  ;;  %7782 = vmatprep.subr.bf16.mxu1 %v10872_v60  ;;  %v1433_v59 = vld [vmem:[#allocation13 + $0x1c00] sm:$0xff] }
 0x252   :  { %7993 = vmatprep.subr.bf16.mxu0 %v10338_v0  ;;  %v1437_v60 = vld [vmem:[#allocation13 + $0x1c20] sm:$0xff]  ;;  %v1026_v0 = vld [vmem:[#allocation13 + $0xf48] sm:$0xff] }
 0x253   :  { %v10832_v7 = vcombine.high %v1433_v59, %v1437_v60  ;;  %v10426_v8 = vcombine.high %v1026_v0, %v1030_v2  ;;  %v1557_v11 = vld [vmem:[#allocation13 + $0x1fe0] sm:$0xff]  ;;  %v10831_v16 = vcombine.low %v1433_v59, %v1437_v60 }
 0x254   :  { %7783 = vmatpush1.bf16.msra.mxu1 %v10871_v10  ;;  %v1553_v10 = vld [vmem:[#allocation13 + $0x1fc0] sm:$0xff] }
 0x255   :  { %7994 = vmatpush1.bf16.msra.mxu0 %v10337_v13  ;;  %7784 = vmatprep.subr.bf16.mxu1 %v10864_v14  ;;  %v1018_v13 = vld [vmem:[#allocation13 + $0xf08] sm:$0xff]  ;;  %v10952_v18 = vcombine.high %v1553_v10, %v1557_v11  ;;  %v1533_v48 = vld [vmem:[#allocation13 + $0x1f20] sm:$0xff] }
 0x256   :  { %7995 = vmatprep.subr.bf16.mxu0 %v10330_v17  ;;  %v1022_v14 = vld [vmem:[#allocation13 + $0xf28] sm:$0xff]  ;;  %v10425_v17 = vcombine.low %v1026_v0, %v1030_v2  ;;  %v1521_v60 = vld [vmem:[#allocation13 + $0x1ec0] sm:$0xff] }
 0x257   :  { %v10418_v19 = vcombine.high %v1018_v13, %v1022_v14  ;;  %v1525_v0 = vld [vmem:[#allocation13 + $0x1ee0] sm:$0xff]  ;;  %v986_v2 = vld [vmem:[#allocation13 + $0xe08] sm:$0xff] }
 0x258   :  { %7785 = vmatpush1.bf16.msra.mxu1 %v10863_v24  ;;  %v1014_v24 = vld [vmem:[#allocation13 + $0xee8] sm:$0xff] }
 0x259   :  { %7996 = vmatpush1.bf16.msra.mxu0 %v10329_v25  ;;  %7786 = vmatprep.subr.bf16.mxu1 %v10856_v28  ;;  %v10951_v25 = vcombine.low %v1553_v10, %v1557_v11  ;;  %v10417_v28 = vcombine.low %v1018_v13, %v1022_v14  ;;  %v10410_v31 = vcombine.high %v1010_v22, %v1014_v24  ;;  %v1513_v11 = vld [vmem:[#allocation13 + $0x1e80] sm:$0xff]  ;;  %v1234_v14 = vld [vmem:[#allocation13 + $0x15c8] sm:$0xff] }
 0x25a   :  { %7997 = vmatprep.subr.bf16.mxu0 %v10322_v29  ;;  %v10944_v29 = vcombine.high %v1545_v20, %v1549_v21  ;;  %v1517_v13 = vld [vmem:[#allocation13 + $0x1ea0] sm:$0xff] }
 0x25c   :  { %7787 = vmatpush1.bf16.msra.mxu1 %v10855_v40  ;;  %v1006_v40 = vld [vmem:[#allocation13 + $0xea8] sm:$0xff] }
 0x25d   :  { %7998 = vmatpush1.bf16.msra.mxu0 %v10321_v42  ;;  %7788 = vmatprep.subr.bf16.mxu1 %v10848_v43  ;;  %v10943_v42 = vcombine.low %v1545_v20, %v1549_v21  ;;  %v10409_v43 = vcombine.low %v1010_v22, %v1014_v24  ;;  %v10402_v46 = vcombine.high %v1002_v37, %v1006_v40  ;;  %v1505_v22 = vld [vmem:[#allocation13 + $0x1e40] sm:$0xff] }
 0x25e   :  { %7999 = vmatprep.subr.bf16.mxu0 %v10442_v45  ;;  %v10936_v45 = vcombine.high %v1537_v32, %v1541_v33  ;;  %v10912_v20 = vcombine.high %v1513_v11, %v1517_v13  ;;  %v1509_v24 = vld [vmem:[#allocation13 + $0x1e60] sm:$0xff] }
 0x260   :  { %7789 = vmatpush1.bf16.msra.mxu1 %v10847_v53  ;;  %v998_v53 = vld [vmem:[#allocation13 + $0xe68] sm:$0xff] }
 0x261   :  { %8000 = vmatpush2.bf16.msra.mxu0 %v10441_v54  ;;  %7790 = vmatprep.subr.bf16.mxu1 %v10840_v52  ;;  %v10935_v54 = vcombine.low %v1537_v32, %v1541_v33  ;;  %v10401_v52 = vcombine.low %v1002_v37, %v1006_v40  ;;  %v10394_v59 = vcombine.high %v994_v49, %v998_v53  ;;  %v1497_v40 = vld [vmem:[#allocation13 + $0x1e00] sm:$0xff] }
 0x262   :  { %8001 = vmatprep.subr.bf16.mxu0 %v10434_v58  ;;  %v10928_v58 = vcombine.high %v1529_v47, %v1533_v48  ;;  %v10904_v33 = vcombine.high %v1505_v22, %v1509_v24 }
 0x264   :  { %7791 = vmatpush1.bf16.msra.mxu1 %v10839_v4  ;;  %v990_v4 = vld [vmem:[#allocation13 + $0xe28] sm:$0xff] }
 0x265   :  { %8002 = vmatpush2.bf16.msra.mxu0 %v10433_v6  ;;  %7792 = vmatprep.subr.bf16.mxu1 %v10832_v7  ;;  %v10927_v6 = vcombine.low %v1529_v47, %v1533_v48  ;;  %v10393_v7 = vcombine.low %v994_v49, %v998_v53  ;;  %v10386_v10 = vcombine.high %v986_v2, %v990_v4  ;;  %v1689_v48 = vld [vmem:[#allocation14] sm:$0xff] }
 0x266   :  { %8003 = vmatprep.subr.bf16.mxu0 %v10426_v8  ;;  %v10920_v8 = vcombine.high %v1521_v60, %v1525_v0 }
 0x268   :  { %7793 = vmatpush1.bf16.msra.mxu1 %v10831_v16  ;;  %v1238_v16 = vld [vmem:[#allocation13 + $0x15e8] sm:$0xff] }
 0x269   :  { %8004 = vmatpush2.bf16.msra.mxu0 %v10425_v17  ;;  %7794 = vmatprep.subr.bf16.mxu1 %v10952_v18  ;;  %v10919_v17 = vcombine.low %v1521_v60, %v1525_v0  ;;  %v1691_v18 = vlaneseq  ;;  %v10634_v21 = vcombine.high %v1234_v14, %v1238_v16  ;;  %v10633_v32 = vcombine.low %v1234_v14, %v1238_v16  ;;  %v1210_v60 = vld [vmem:[#allocation13 + $0x1508] sm:$0xff] }
 0x26a   :  { %8005 = vmatprep.subr.bf16.mxu0 %v10418_v19  ;;  %v10385_v19 = vcombine.low %v986_v2, %v990_v4  ;;  %v1214_v0 = vld [vmem:[#allocation13 + $0x1528] sm:$0xff] }
 0x26b   :  { %v590_v14 = vld [vmem:[#allocation13 + $0x1a8] sm:$0xff] }
 0x26c   :  { %7795 = vmatpush2.bf16.msra.mxu1 %v10951_v25  ;;  %v1226_v25 = vld [vmem:[#allocation13 + $0x1588] sm:$0xff] }
 0x26d   :  { %8006 = vmatpush2.bf16.msra.mxu0 %v10417_v28  ;;  %7796 = vmatprep.subr.bf16.mxu1 %v10944_v29  ;;  %v1230_v28 = vld [vmem:[#allocation13 + $0x15a8] sm:$0xff]  ;;  %v10911_v29 = vcombine.low %v1513_v11, %v1517_v13  ;;  %v10610_v11 = vcombine.high %v1210_v60, %v1214_v0 }
 0x26e   :  { %8007 = vmatprep.subr.bf16.mxu0 %v10410_v31  ;;  %v12027_v31 = vshrl.u32 %v1691_v18, 7  ;;  %v10626_v37 = vcombine.high %v1226_v25, %v1230_v28  ;;  %v10625_v49 = vcombine.low %v1226_v25, %v1230_v28  ;;  %v586_v13 = vld [vmem:[#allocation13 + $0x188] sm:$0xff] }
 0x26f   :  { %v1206_v18 = vld [vmem:[#allocation13 + $0x14e8] sm:$0xff] }
 0x270   :  { %7797 = vmatpush2.bf16.msra.mxu1 %v10943_v42  ;;  %v1501_v42 = vld [vmem:[#allocation13 + $0x1e20] sm:$0xff]  ;;  %v1693_v47 = vsub.s32 0, %v12027_v31  ;;  %v578_v28 = vld [vmem:[#allocation13 + $0x148] sm:$0xff] }
 0x271   :  { %8008 = vmatpush2.bf16.msra.mxu0 %v10409_v43  ;;  %7798 = vmatprep.subr.bf16.mxu1 %v10936_v45  ;;  %v1218_v43 = vld [vmem:[#allocation13 + $0x1548] sm:$0xff]  ;;  %v10896_v53 = vcombine.high %v1497_v40, %v1501_v42  ;;  %v10895_v4 = vcombine.low %v1497_v40, %v1501_v42 }
 0x272   :  { %8009 = vmatprep.subr.bf16.mxu0 %v10402_v46  ;;  %v1222_v45 = vld [vmem:[#allocation13 + $0x1568] sm:$0xff]  ;;  %v10903_v46 = vcombine.low %v1505_v22, %v1509_v24  ;;  %v1694_v2 = vrot.slane %v1689_v48, %v1693_v47  ;;  %v9986_v22 = vcombine.high %v586_v13, %v590_v14 }
 0x274   :  { %7799 = vmatpush2.bf16.msra.mxu1 %v10935_v54  ;;  %v1697_v54 = vsub.s32 1, %v12027_v31 }
 0x275   :  { %8010 = vmatpush2.bf16.msra.mxu0 %v10401_v52  ;;  %7800 = vmatprep.subr.bf16.mxu1 %v10928_v58  ;;  %v10618_v52 = vcombine.high %v1218_v43, %v1222_v45  ;;  %v594_v58 = vld [vmem:[#allocation13 + $0x1c8] sm:$0xff] }
 0x276   :  { %8011 = vmatprep.subr.bf16.mxu0 %v10394_v59  ;;  %v598_v59 = vld [vmem:[#allocation13 + $0x1e8] sm:$0xff] }
 0x278   :  { %7801 = vmatpush2.bf16.msra.mxu1 %v10927_v6  ;;  %v515_v6 = vld [vmem:[#allocation5 + $0x70] sm:$0xff] }
 0x279   :  { %8012 = vmatpush2.bf16.msra.mxu0 %v10393_v7  ;;  %7802 = vmatprep.subr.bf16.mxu1 %v10920_v8  ;;  %v10617_v7 = vcombine.low %v1218_v43, %v1222_v45  ;;  %v9994_v8 = vcombine.high %v594_v58, %v598_v59  ;;  %v12033_v16 = vpack.c.bf16 %v515_v6, %v515_v6 }
 0x27a   :  { %8013 = vmatprep.subr.bf16.mxu0 %v10386_v10  ;;  %v1698_v10 = vrot.slane %v1689_v48, %v1697_v54  ;;  %v570_v48 = vld [vmem:[#allocation13 + $0x108] sm:$0xff] }
 0x27b   :  { %v1186_v54 = vld [vmem:[#allocation13 + $0x1448] sm:$0xff] }
 0x27c   :  { %7803 = vmatpush2.bf16.msra.mxu1 %v10919_v17  ;;  %v1202_v17 = vld [vmem:[#allocation13 + $0x14c8] sm:$0xff]  ;;  %v7528_v24 = vadd.f32 %v12001_v23, %v1698_v10 }
 0x27d   :  { %8014 = vmatpush2.bf16.msra.mxu0 %v10385_v19  ;;  %7804 = vmatprep.subr.bf16.mxu1 %v10912_v20  ;;  %v7526_v19 = vadd.f32 %v11998_v15, %v1694_v2  ;;  %v9993_v20 = vcombine.low %v594_v58, %v598_v59  ;;  %v10602_v25 = vcombine.high %v1202_v17, %v1206_v18  ;;  %v1178_v10 = vld [vmem:[#allocation13 + $0x1408] sm:$0xff] }
 0x27e   :  { %8065 = vmatprep.subr.bf16.mxu0 %v10634_v21  ;;  %v10609_v21 = vcombine.low %v1210_v60, %v1214_v0  ;;  %v9985_v15 = vcombine.low %v586_v13, %v590_v14  ;;  %v10601_v43 = vcombine.low %v1202_v17, %v1206_v18 }
 0x280   :  { %7805 = vmatpush2.bf16.msra.mxu1 %v10911_v29  ;;  %8016 = vmatmul.mubr.bf16.vlgmr.msra.gmra.mxu0 %v12003_v35  ;;  %v582_v29 = vld [vmem:[#allocation13 + $0x168] sm:$0xff]  ;;  %v12041_v45 = vpop.f32.mrf.mxu0 }
 0x281   :  { %8066 = vmatpush1.bf16.msra.mxu0 %v10633_v32  ;;  %7806 = vmatprep.subr.bf16.mxu1 %v10904_v33  ;;  %v1194_v33 = vld [vmem:[#allocation13 + $0x1488] sm:$0xff]  ;;  %v9978_v23 = vcombine.high %v578_v28, %v582_v29  ;;  %v9977_v59 = vcombine.low %v578_v28, %v582_v29 }
 0x282   :  { %8067 = vmatprep.subr.bf16.mxu0 %v10626_v37  ;;  %8097 = vmatprep.mubr.bf16.mxu0 %v12005_v41  ;;  %v1198_v37 = vld [vmem:[#allocation13 + $0x14a8] sm:$0xff]  ;;  %v12045_v58 = vpop.f32.mrf.mxu0 }
 0x283   :  { %v10594_v47 = vcombine.high %v1194_v33, %v1198_v37  ;;  %v10593_v0 = vcombine.low %v1194_v33, %v1198_v37  ;;  %v546_v33 = vld [vmem:[#allocation13 + $0x48] sm:$0xff] }
 0x284   :  { %7807 = vmatpush2.bf16.msra.mxu1 %v10903_v46  ;;  %v550_v37 = vld [vmem:[#allocation13 + $0x68] sm:$0xff] }
 0x285   :  { %8068 = vmatpush1.bf16.msra.mxu0 %v10625_v49  ;;  %7808 = vmatprep.subr.bf16.mxu1 %v10896_v53  ;;  %v574_v49 = vld [vmem:[#allocation13 + $0x128] sm:$0xff] }
 0x286   :  { %8069 = vmatprep.subr.bf16.mxu0 %v10618_v52  ;;  %v1190_v52 = vld [vmem:[#allocation13 + $0x1468] sm:$0xff]  ;;  %v9970_v2 = vcombine.high %v570_v48, %v574_v49  ;;  %v9969_v14 = vcombine.low %v570_v48, %v574_v49 }
 0x287   :  { %v10586_v6 = vcombine.high %v1186_v54, %v1190_v52  ;;  %v10585_v17 = vcombine.low %v1186_v54, %v1190_v52  ;;  %v538_v49 = vld [vmem:[#allocation13 + $0x8] sm:$0xff] }
 0x288   :  { %7809 = vmatpush2.bf16.msra.mxu1 %v10895_v4  ;;  %v7775_v4 = vpop.f32.mrf.mxu0  ;;  %v1282_v54 = vld [vmem:[#allocation13 + $0x1748] sm:$0xff] }
 0x289   :  { %8070 = vmatpush1.bf16.msra.mxu0 %v10617_v7  ;;  %7860 = vmatprep.subr.bf16.mxu1 %v9994_v8  ;;  %v562_v7 = vld [vmem:[#allocation13 + $0xc8] sm:$0xff] }
 0x28a   :  { %8071 = vmatprep.subr.bf16.mxu0 %v10610_v11  ;;  %v566_v8 = vld [vmem:[#allocation13 + $0xe8] sm:$0xff]  ;;  %v7776_v13 = vpop.f32.mrf.mxu0 }
 0x28b   :  { %v7566_v32 = vpop.f32.mrf.mxu1  ;;  %7811 = vmatmul.mubr.bf16.vlgmr.msra.gmra.mxu1 %v12033_v16  ;;  %v1182_v11 = vld [vmem:[#allocation13 + $0x1428] sm:$0xff]  ;;  %v9962_v18 = vcombine.high %v562_v7, %v566_v8 }
 0x28c   :  { %v12038_v40 = vadd.f32 %v7566_v32, %v7526_v19  ;;  %7861 = vmatpush1.bf16.msra.mxu1 %v9993_v20  ;;  %7892 = vmatprep.mubr.bf16.mxu1 %v11938_v27  ;;  %v10578_v19 = vcombine.high %v1178_v10, %v1182_v11  ;;  %v554_v20 = vld [vmem:[#allocation13 + $0x88] sm:$0xff]  ;;  %v10577_v28 = vcombine.low %v1178_v10, %v1182_v11 }
 0x28d   :  { %v7568_v42 = vpop.f32.mrf.mxu1  ;;  %8072 = vmatpush1.bf16.msra.mxu0 %v10609_v21  ;;  %7862 = vmatprep.subr.bf16.mxu1 %v9986_v22  ;;  %v558_v21 = vld [vmem:[#allocation13 + $0xa8] sm:$0xff] }
 0x28e   :  { %v12043_v46 = vadd.f32 %v7568_v42, %v7528_v24  ;;  %8073 = vmatprep.subr.bf16.mxu0 %v10602_v25  ;;  %v1298_v22 = vld [vmem:[#allocation13 + $0x17c8] sm:$0xff]  ;;  %v9961_v25 = vcombine.low %v562_v7, %v566_v8  ;;  %v9954_v29 = vcombine.high %v554_v20, %v558_v21 }
 0x28f   :  { %v7570_v53 = vpop.f32.mrf.mxu1  ;;  %v1302_v24 = vld [vmem:[#allocation13 + $0x17e8] sm:$0xff] }
 0x290   :  { %7863 = vmatpush1.bf16.msra.mxu1 %v9985_v15  ;;  %v10698_v32 = vcombine.high %v1298_v22, %v1302_v24  ;;  %v1290_v15 = vld [vmem:[#allocation13 + $0x1788] sm:$0xff] }
 0x291   :  { %v7571_v60 = vpop.f32.mrf.mxu1  ;;  %8074 = vmatpush1.bf16.msra.mxu0 %v10601_v43  ;;  %7864 = vmatprep.subr.bf16.mxu1 %v9978_v23  ;;  %v1294_v42 = vld [vmem:[#allocation13 + $0x17a8] sm:$0xff]  ;;  %v9953_v43 = vcombine.low %v554_v20, %v558_v21  ;;  %v10697_v23 = vcombine.low %v1298_v22, %v1302_v24 }
 0x292   :  { %8075 = vmatprep.subr.bf16.mxu0 %v10594_v47  ;;  %v9946_v47 = vcombine.high %v546_v33, %v550_v37  ;;  %v10690_v48 = vcombine.high %v1290_v15, %v1294_v42  ;;  %v542_v53 = vld [vmem:[#allocation13 + $0x28] sm:$0xff]  ;;  %v10689_v60 = vcombine.low %v1290_v15, %v1294_v42 }
 0x293   :  { %v1286_v52 = vld [vmem:[#allocation13 + $0x1768] sm:$0xff]  ;;  %v9937_v10 = vcombine.low %v538_v49, %v542_v53 }
 0x294   :  { %7865 = vmatpush1.bf16.msra.mxu1 %v9977_v59  ;;  %v9945_v59 = vcombine.low %v546_v33, %v550_v37  ;;  %v658_v4 = vld [vmem:[#allocation13 + $0x3c8] sm:$0xff]  ;;  %v10681_v11 = vcombine.low %v1282_v54, %v1286_v52 }
 0x295   :  { %8076 = vmatpush1.bf16.msra.mxu0 %v10593_v0  ;;  %7866 = vmatprep.subr.bf16.mxu1 %v9970_v2  ;;  %v9938_v0 = vcombine.high %v538_v49, %v542_v53  ;;  %v10682_v2 = vcombine.high %v1282_v54, %v1286_v52  ;;  %v1274_v7 = vld [vmem:[#allocation13 + $0x1708] sm:$0xff] }
 0x296   :  { %8077 = vmatprep.subr.bf16.mxu0 %v10586_v6  ;;  %v662_v6 = vld [vmem:[#allocation13 + $0x3e8] sm:$0xff] }
 0x297   :  { %v1278_v8 = vld [vmem:[#allocation13 + $0x1728] sm:$0xff]  ;;  %v10058_v13 = vcombine.high %v658_v4, %v662_v6  ;;  %v10057_v21 = vcombine.low %v658_v4, %v662_v6 }
 0x298   :  { %7867 = vmatpush1.bf16.msra.mxu1 %v9969_v14  ;;  %v10674_v14 = vcombine.high %v1274_v7, %v1278_v8  ;;  %v1270_v20 = vld [vmem:[#allocation13 + $0x16e8] sm:$0xff]  ;;  %v10673_v22 = vcombine.low %v1274_v7, %v1278_v8 }
 0x299   :  { %8078 = vmatpush1.bf16.msra.mxu0 %v10585_v17  ;;  %7868 = vmatprep.subr.bf16.mxu1 %v9962_v18  ;;  %v650_v17 = vld [vmem:[#allocation13 + $0x388] sm:$0xff] }
 0x29a   :  { %8079 = vmatprep.subr.bf16.mxu0 %v10578_v19  ;;  %v654_v18 = vld [vmem:[#allocation13 + $0x3a8] sm:$0xff] }
 0x29b   :  { %v1266_v19 = vld [vmem:[#allocation13 + $0x16c8] sm:$0xff]  ;;  %v10050_v24 = vcombine.high %v650_v17, %v654_v18  ;;  %v10049_v37 = vcombine.low %v650_v17, %v654_v18 }
 0x29c   :  { %7869 = vmatpush1.bf16.msra.mxu1 %v9961_v25  ;;  %v10666_v25 = vcombine.high %v1266_v19, %v1270_v20  ;;  %v1262_v33 = vld [vmem:[#allocation13 + $0x16a8] sm:$0xff]  ;;  %v10665_v15 = vcombine.low %v1266_v19, %v1270_v20 }
 0x29d   :  { %8080 = vmatpush1.bf16.msra.mxu0 %v10577_v28  ;;  %7870 = vmatprep.subr.bf16.mxu1 %v9954_v29  ;;  %v642_v28 = vld [vmem:[#allocation13 + $0x348] sm:$0xff] }
 0x29e   :  { %8081 = vmatprep.subr.bf16.mxu0 %v10698_v32  ;;  %v646_v29 = vld [vmem:[#allocation13 + $0x368] sm:$0xff] }
 0x29f   :  { %v1258_v32 = vld [vmem:[#allocation13 + $0x1688] sm:$0xff]  ;;  %v10042_v42 = vcombine.high %v642_v28, %v646_v29  ;;  %v10041_v53 = vcombine.low %v642_v28, %v646_v29 }
 0x2a0   :  { %7871 = vmatpush1.bf16.msra.mxu1 %v9953_v43  ;;  %v10658_v43 = vcombine.high %v1258_v32, %v1262_v33  ;;  %v1254_v49 = vld [vmem:[#allocation13 + $0x1668] sm:$0xff]  ;;  %v10657_v54 = vcombine.low %v1258_v32, %v1262_v33 }
 0x2a1   :  { %8082 = vmatpush2.bf16.msra.mxu0 %v10697_v23  ;;  %7872 = vmatprep.subr.bf16.mxu1 %v9946_v47  ;;  %v634_v23 = vld [vmem:[#allocation13 + $0x308] sm:$0xff] }
 0x2a2   :  { %8083 = vmatprep.subr.bf16.mxu0 %v10690_v48  ;;  %v638_v47 = vld [vmem:[#allocation13 + $0x328] sm:$0xff] }
 0x2a3   :  { %v1250_v48 = vld [vmem:[#allocation13 + $0x1648] sm:$0xff]  ;;  %v10034_v52 = vcombine.high %v634_v23, %v638_v47  ;;  %v10033_v6 = vcombine.low %v634_v23, %v638_v47 }
 0x2a4   :  { %7873 = vmatpush1.bf16.msra.mxu1 %v9945_v59  ;;  %v10650_v59 = vcombine.high %v1250_v48, %v1254_v49  ;;  %v1246_v4 = vld [vmem:[#allocation13 + $0x1628] sm:$0xff]  ;;  %v10649_v7 = vcombine.low %v1250_v48, %v1254_v49 }
 0x2a5   :  { %8084 = vmatpush2.bf16.msra.mxu0 %v10689_v60  ;;  %7874 = vmatprep.subr.bf16.mxu1 %v9938_v0  ;;  %v626_v60 = vld [vmem:[#allocation13 + $0x2c8] sm:$0xff] }
 0x2a6   :  { %8085 = vmatprep.subr.bf16.mxu0 %v10682_v2  ;;  %v630_v0 = vld [vmem:[#allocation13 + $0x2e8] sm:$0xff] }
 0x2a7   :  { %v1242_v2 = vld [vmem:[#allocation13 + $0x1608] sm:$0xff]  ;;  %v10026_v8 = vcombine.high %v626_v60, %v630_v0  ;;  %v10025_v18 = vcombine.low %v626_v60, %v630_v0 }
 0x2a8   :  { %7875 = vmatpush1.bf16.msra.mxu1 %v9937_v10  ;;  %v10642_v10 = vcombine.high %v1242_v2, %v1246_v4  ;;  %v1494_v17 = vld [vmem:[#allocation13 + $0x1de8] sm:$0xff]  ;;  %v10641_v19 = vcombine.low %v1242_v2, %v1246_v4 }
 0x2a9   :  { %8086 = vmatpush2.bf16.msra.mxu0 %v10681_v11  ;;  %7876 = vmatprep.subr.bf16.mxu1 %v10058_v13  ;;  %v618_v11 = vld [vmem:[#allocation13 + $0x288] sm:$0xff] }
 0x2aa   :  { %8087 = vmatprep.subr.bf16.mxu0 %v10674_v14  ;;  %v622_v13 = vld [vmem:[#allocation13 + $0x2a8] sm:$0xff] }
 0x2ab   :  { %v1490_v14 = vld [vmem:[#allocation13 + $0x1dc8] sm:$0xff]  ;;  %v10018_v20 = vcombine.high %v618_v11, %v622_v13  ;;  %v10017_v29 = vcombine.low %v618_v11, %v622_v13 }
 0x2ac   :  { %7877 = vmatpush2.bf16.msra.mxu1 %v10057_v21  ;;  %v10890_v21 = vcombine.high %v1490_v14, %v1494_v17  ;;  %v1486_v28 = vld [vmem:[#allocation13 + $0x1da8] sm:$0xff]  ;;  %v10889_v32 = vcombine.low %v1490_v14, %v1494_v17 }
 0x2ad   :  { %8088 = vmatpush2.bf16.msra.mxu0 %v10673_v22  ;;  %7878 = vmatprep.subr.bf16.mxu1 %v10050_v24  ;;  %v610_v22 = vld [vmem:[#allocation13 + $0x248] sm:$0xff] }
 0x2ae   :  { %8089 = vmatprep.subr.bf16.mxu0 %v10666_v25  ;;  %v614_v24 = vld [vmem:[#allocation13 + $0x268] sm:$0xff] }
 0x2af   :  { %v1482_v25 = vld [vmem:[#allocation13 + $0x1d88] sm:$0xff]  ;;  %v10010_v33 = vcombine.high %v610_v22, %v614_v24  ;;  %v10009_v47 = vcombine.low %v610_v22, %v614_v24 }
 0x2b0   :  { %7879 = vmatpush2.bf16.msra.mxu1 %v10049_v37  ;;  %v10882_v37 = vcombine.high %v1482_v25, %v1486_v28  ;;  %v1478_v23 = vld [vmem:[#allocation13 + $0x1d68] sm:$0xff]  ;;  %v10881_v48 = vcombine.low %v1482_v25, %v1486_v28  ;;  %v7610_v28 = vadd.f32 %v12011_v63, %v12043_v46 }
 0x2b1   :  { %8090 = vmatpush2.bf16.msra.mxu0 %v10665_v15  ;;  %7880 = vmatprep.subr.bf16.mxu1 %v10042_v42  ;;  %v602_v15 = vld [vmem:[#allocation13 + $0x208] sm:$0xff] }
 0x2b2   :  { %8091 = vmatprep.subr.bf16.mxu0 %v10658_v43  ;;  %v606_v42 = vld [vmem:[#allocation13 + $0x228] sm:$0xff] }
 0x2b3   :  { %v1474_v43 = vld [vmem:[#allocation13 + $0x1d48] sm:$0xff]  ;;  %v10002_v49 = vcombine.high %v602_v15, %v606_v42  ;;  %v10001_v0 = vcombine.low %v602_v15, %v606_v42 }
 0x2b4   :  { %7881 = vmatpush2.bf16.msra.mxu1 %v10041_v53  ;;  %v10874_v53 = vcombine.high %v1474_v43, %v1478_v23  ;;  %v1470_v60 = vld [vmem:[#allocation13 + $0x1d28] sm:$0xff]  ;;  %v10873_v2 = vcombine.low %v1474_v43, %v1478_v23 }
 0x2b5   :  { %8092 = vmatpush2.bf16.msra.mxu0 %v10657_v54  ;;  %7882 = vmatprep.subr.bf16.mxu1 %v10034_v52  ;;  %v850_v54 = vld [vmem:[#allocation13 + $0x9c8] sm:$0xff] }
 0x2b6   :  { %8093 = vmatprep.subr.bf16.mxu0 %v10650_v59  ;;  %v854_v52 = vld [vmem:[#allocation13 + $0x9e8] sm:$0xff] }
 0x2b7   :  { %v1466_v59 = vld [vmem:[#allocation13 + $0x1d08] sm:$0xff]  ;;  %v10250_v4 = vcombine.high %v850_v54, %v854_v52  ;;  %v10249_v13 = vcombine.low %v850_v54, %v854_v52 }
 0x2b8   :  { %7883 = vmatpush2.bf16.msra.mxu1 %v10033_v6  ;;  %v10866_v6 = vcombine.high %v1466_v59, %v1470_v60  ;;  %v1462_v11 = vld [vmem:[#allocation13 + $0x1ce8] sm:$0xff]  ;;  %v10865_v14 = vcombine.low %v1466_v59, %v1470_v60 }
 0x2b9   :  { %8094 = vmatpush2.bf16.msra.mxu0 %v10649_v7  ;;  %7884 = vmatprep.subr.bf16.mxu1 %v10026_v8  ;;  %v842_v7 = vld [vmem:[#allocation13 + $0x988] sm:$0xff] }
 0x2ba   :  { %8095 = vmatprep.subr.bf16.mxu0 %v10642_v10  ;;  %v846_v8 = vld [vmem:[#allocation13 + $0x9a8] sm:$0xff] }
 0x2bb   :  { %v1458_v10 = vld [vmem:[#allocation13 + $0x1cc8] sm:$0xff]  ;;  %v10242_v17 = vcombine.high %v842_v7, %v846_v8 }
 0x2bc   :  { %7885 = vmatpush2.bf16.msra.mxu1 %v10025_v18  ;;  %v7608_v18 = vadd.f32 %v12009_v57, %v12038_v40  ;;  %v1450_v24 = vld [vmem:[#allocation13 + $0x1c88] sm:$0xff]  ;;  %v10857_v57 = vcombine.low %v1458_v10, %v1462_v11 }
 0x2bd   :  { %8096 = vmatpush2.bf16.msra.mxu0 %v10641_v19  ;;  %7886 = vmatprep.subr.bf16.mxu1 %v10018_v20  ;;  %v10858_v19 = vcombine.high %v1458_v10, %v1462_v11  ;;  %v834_v20 = vld [vmem:[#allocation13 + $0x948] sm:$0xff] }
 0x2be   :  { %8147 = vmatprep.subr.bf16.mxu0 %v10890_v21  ;;  %v838_v21 = vld [vmem:[#allocation13 + $0x968] sm:$0xff] }
 0x2bf   :  { %v1454_v25 = vld [vmem:[#allocation13 + $0x1ca8] sm:$0xff]  ;;  %v10234_v40 = vcombine.high %v834_v20, %v838_v21 }
 0x2c0   :  { %7887 = vmatpush2.bf16.msra.mxu1 %v10017_v29  ;;  %8098 = vmatmul.mubr.bf16.vlgmr.msra.gmra.mxu0 %v12015_v39  ;;  %v10850_v42 = vcombine.high %v1450_v24, %v1454_v25  ;;  %v826_v43 = vld [vmem:[#allocation13 + $0x908] sm:$0xff]  ;;  %v10849_v54 = vcombine.low %v1450_v24, %v1454_v25 }
 0x2c1   :  { %8148 = vmatpush1.bf16.msra.mxu0 %v10889_v32  ;;  %7888 = vmatprep.subr.bf16.mxu1 %v10010_v33  ;;  %v10241_v32 = vcombine.low %v842_v7, %v846_v8  ;;  %v830_v23 = vld [vmem:[#allocation13 + $0x928] sm:$0xff] }
 0x2c2   :  { %8149 = vmatprep.subr.bf16.mxu0 %v10882_v37  ;;  %8179 = vmatprep.mubr.bf16.mxu0 %v12017_v44  ;;  %v12057_v37 = vpop.f32.mrf.mxu0  ;;  %v1442_v46 = vld [vmem:[#allocation13 + $0x1c48] sm:$0xff]  ;;  %v10226_v52 = vcombine.high %v826_v43, %v830_v23  ;;  %v10225_v8 = vcombine.low %v826_v43, %v830_v23 }
 0x2c3   :  { %v802_v25 = vld [vmem:[#allocation13 + $0x848] sm:$0xff] }
 0x2c4   :  { %7889 = vmatpush2.bf16.msra.mxu1 %v10009_v47  ;;  %v1446_v47 = vld [vmem:[#allocation13 + $0x1c68] sm:$0xff] }
 0x2c5   :  { %8150 = vmatpush1.bf16.msra.mxu0 %v10881_v48  ;;  %7890 = vmatprep.subr.bf16.mxu1 %v10002_v49  ;;  %v12061_v48 = vpop.f32.mrf.mxu0  ;;  %v10233_v49 = vcombine.low %v834_v20, %v838_v21  ;;  %v10842_v60 = vcombine.high %v1442_v46, %v1446_v47  ;;  %v10841_v10 = vcombine.low %v1442_v46, %v1446_v47  ;;  %v794_v23 = vld [vmem:[#allocation13 + $0x808] sm:$0xff] }
 0x2c6   :  { %8151 = vmatprep.subr.bf16.mxu0 %v10874_v53  ;;  %v1538_v46 = vld [vmem:[#allocation13 + $0x1f48] sm:$0xff] }
 0x2c7   :  { %v7857_v59 = vpop.f32.mrf.mxu0  ;;  %v1542_v47 = vld [vmem:[#allocation13 + $0x1f68] sm:$0xff] }
 0x2c8   :  { %7891 = vmatpush2.bf16.msra.mxu1 %v10001_v0  ;;  %v818_v0 = vld [vmem:[#allocation13 + $0x8c8] sm:$0xff] }
 0x2c9   :  { %8152 = vmatpush1.bf16.msra.mxu0 %v10873_v2  ;;  %7942 = vmatprep.subr.bf16.mxu1 %v10250_v4  ;;  %v822_v2 = vld [vmem:[#allocation13 + $0x8e8] sm:$0xff]  ;;  %v7858_v7 = vpop.f32.mrf.mxu0 }
 0x2ca   :  { %8153 = vmatprep.subr.bf16.mxu0 %v10866_v6  ;;  %v1434_v4 = vld [vmem:[#allocation13 + $0x1c08] sm:$0xff]  ;;  %v10218_v11 = vcombine.high %v818_v0, %v822_v2  ;;  %v10217_v20 = vcombine.low %v818_v0, %v822_v2 }
 0x2cb   :  { %v7648_v22 = vpop.f32.mrf.mxu1  ;;  %7893 = vmatmul.mubr.bf16.vlgmr.msra.gmra.mxu1 %v11946_v36  ;;  %v1438_v6 = vld [vmem:[#allocation13 + $0x1c28] sm:$0xff] }
 0x2cc   :  { %v12054_v29 = vadd.f32 %v7648_v22, %v7608_v18  ;;  %7943 = vmatpush1.bf16.msra.mxu1 %v10249_v13  ;;  %7974 = vmatprep.mubr.bf16.mxu1 %v11949_v38  ;;  %v10834_v13 = vcombine.high %v1434_v4, %v1438_v6  ;;  %v1554_v18 = vld [vmem:[#allocation13 + $0x1fc8] sm:$0xff]  ;;  %v10833_v21 = vcombine.low %v1434_v4, %v1438_v6 }
 0x2cd   :  { %v7650_v33 = vpop.f32.mrf.mxu1  ;;  %8154 = vmatpush1.bf16.msra.mxu0 %v10865_v14  ;;  %7944 = vmatprep.subr.bf16.mxu1 %v10242_v17  ;;  %v810_v14 = vld [vmem:[#allocation13 + $0x888] sm:$0xff]  ;;  %v10937_v6 = vcombine.low %v1538_v46, %v1542_v47 }
 0x2ce   :  { %v12059_v15 = vadd.f32 %v7650_v33, %v7610_v28  ;;  %8155 = vmatprep.subr.bf16.mxu0 %v10858_v19  ;;  %v814_v17 = vld [vmem:[#allocation13 + $0x8a8] sm:$0xff] }
 0x2cf   :  { %v7652_v63 = vpop.f32.mrf.mxu1  ;;  %v1558_v19 = vld [vmem:[#allocation13 + $0x1fe8] sm:$0xff]  ;;  %v10210_v22 = vcombine.high %v810_v14, %v814_v17 }
 0x2d0   :  { %7945 = vmatpush1.bf16.msra.mxu1 %v10241_v32  ;;  %v10954_v24 = vcombine.high %v1554_v18, %v1558_v19  ;;  %v806_v28 = vld [vmem:[#allocation13 + $0x868] sm:$0xff] }
 0x2d1   :  { %v7653_v53 = vpop.f32.mrf.mxu1  ;;  %8156 = vmatpush1.bf16.msra.mxu0 %v10857_v57  ;;  %7946 = vmatprep.subr.bf16.mxu1 %v10234_v40  ;;  %v1546_v32 = vld [vmem:[#allocation13 + $0x1f88] sm:$0xff]  ;;  %v10209_v57 = vcombine.low %v810_v14, %v814_v17  ;;  %v10953_v40 = vcombine.low %v1554_v18, %v1558_v19 }
 0x2d2   :  { %8157 = vmatprep.subr.bf16.mxu0 %v10850_v42  ;;  %v1550_v33 = vld [vmem:[#allocation13 + $0x1fa8] sm:$0xff]  ;;  %v10202_v42 = vcombine.high %v802_v25, %v806_v28 }
 0x2d3   :  { %v10946_v43 = vcombine.high %v1546_v32, %v1550_v33  ;;  %v798_v63 = vld [vmem:[#allocation13 + $0x828] sm:$0xff]  ;;  %v10945_v53 = vcombine.low %v1546_v32, %v1550_v33 }
 0x2d4   :  { %7947 = vmatpush1.bf16.msra.mxu1 %v10233_v49  ;;  %v10201_v49 = vcombine.low %v802_v25, %v806_v28  ;;  %v914_v59 = vld [vmem:[#allocation13 + $0xbc8] sm:$0xff]  ;;  %v10193_v4 = vcombine.low %v794_v23, %v798_v63 }
 0x2d5   :  { %8158 = vmatpush1.bf16.msra.mxu0 %v10849_v54  ;;  %7948 = vmatprep.subr.bf16.mxu1 %v10226_v52  ;;  %v10194_v54 = vcombine.high %v794_v23, %v798_v63  ;;  %v10938_v52 = vcombine.high %v1538_v46, %v1542_v47  ;;  %v1530_v0 = vld [vmem:[#allocation13 + $0x1f08] sm:$0xff] }
 0x2d6   :  { %8159 = vmatprep.subr.bf16.mxu0 %v10842_v60  ;;  %v918_v60 = vld [vmem:[#allocation13 + $0xbe8] sm:$0xff] }
 0x2d7   :  { %v1534_v2 = vld [vmem:[#allocation13 + $0x1f28] sm:$0xff]  ;;  %v10314_v7 = vcombine.high %v914_v59, %v918_v60  ;;  %v10313_v17 = vcombine.low %v914_v59, %v918_v60 }
 0x2d8   :  { %7949 = vmatpush1.bf16.msra.mxu1 %v10225_v8  ;;  %v10930_v8 = vcombine.high %v1530_v0, %v1534_v2  ;;  %v1526_v14 = vld [vmem:[#allocation13 + $0x1ee8] sm:$0xff]  ;;  %v10929_v18 = vcombine.low %v1530_v0, %v1534_v2 }
 0x2d9   :  { %8160 = vmatpush1.bf16.msra.mxu0 %v10841_v10  ;;  %7950 = vmatprep.subr.bf16.mxu1 %v10218_v11  ;;  %v906_v10 = vld [vmem:[#allocation13 + $0xb88] sm:$0xff] }
 0x2da   :  { %8161 = vmatprep.subr.bf16.mxu0 %v10834_v13  ;;  %v910_v11 = vld [vmem:[#allocation13 + $0xba8] sm:$0xff] }
 0x2db   :  { %v1522_v13 = vld [vmem:[#allocation13 + $0x1ec8] sm:$0xff]  ;;  %v10306_v19 = vcombine.high %v906_v10, %v910_v11  ;;  %v10305_v28 = vcombine.low %v906_v10, %v910_v11  ;;  %v599_v10 = vld [vmem:[#allocation13 + $0x1f0] sm:$0xff] }
 0x2dc   :  { %7951 = vmatpush1.bf16.msra.mxu1 %v10217_v20  ;;  %v10922_v20 = vcombine.high %v1522_v13, %v1526_v14  ;;  %v1518_v25 = vld [vmem:[#allocation13 + $0x1ea8] sm:$0xff]  ;;  %v10921_v32 = vcombine.low %v1522_v13, %v1526_v14 }
 0x2dd   :  { %8162 = vmatpush1.bf16.msra.mxu0 %v10833_v21  ;;  %7952 = vmatprep.subr.bf16.mxu1 %v10210_v22  ;;  %v898_v21 = vld [vmem:[#allocation13 + $0xb48] sm:$0xff] }
 0x2de   :  { %8163 = vmatprep.subr.bf16.mxu0 %v10954_v24  ;;  %v902_v22 = vld [vmem:[#allocation13 + $0xb68] sm:$0xff] }
 0x2df   :  { %v1514_v24 = vld [vmem:[#allocation13 + $0x1e88] sm:$0xff]  ;;  %v10298_v33 = vcombine.high %v898_v21, %v902_v22  ;;  %v10297_v63 = vcombine.low %v898_v21, %v902_v22  ;;  %v591_v21 = vld [vmem:[#allocation13 + $0x1b0] sm:$0xff] }
 0x2e0   :  { %7953 = vmatpush1.bf16.msra.mxu1 %v10209_v57  ;;  %v10914_v57 = vcombine.high %v1514_v24, %v1518_v25  ;;  %v1510_v23 = vld [vmem:[#allocation13 + $0x1e68] sm:$0xff]  ;;  %v10913_v46 = vcombine.low %v1514_v24, %v1518_v25 }
 0x2e1   :  { %8164 = vmatpush2.bf16.msra.mxu0 %v10953_v40  ;;  %7954 = vmatprep.subr.bf16.mxu1 %v10202_v42  ;;  %v890_v40 = vld [vmem:[#allocation13 + $0xb08] sm:$0xff] }
 0x2e2   :  { %8165 = vmatprep.subr.bf16.mxu0 %v10946_v43  ;;  %v894_v42 = vld [vmem:[#allocation13 + $0xb28] sm:$0xff] }
 0x2e3   :  { %v1506_v43 = vld [vmem:[#allocation13 + $0x1e48] sm:$0xff]  ;;  %v10290_v47 = vcombine.high %v890_v40, %v894_v42  ;;  %v10289_v60 = vcombine.low %v890_v40, %v894_v42  ;;  %v583_v40 = vld [vmem:[#allocation13 + $0x170] sm:$0xff] }
 0x2e4   :  { %7955 = vmatpush1.bf16.msra.mxu1 %v10201_v49  ;;  %v10906_v49 = vcombine.high %v1506_v43, %v1510_v23  ;;  %v1502_v59 = vld [vmem:[#allocation13 + $0x1e28] sm:$0xff]  ;;  %v10905_v0 = vcombine.low %v1506_v43, %v1510_v23 }
 0x2e5   :  { %8166 = vmatpush2.bf16.msra.mxu0 %v10945_v53  ;;  %7956 = vmatprep.subr.bf16.mxu1 %v10194_v54  ;;  %v882_v53 = vld [vmem:[#allocation13 + $0xac8] sm:$0xff] }
 0x2e6   :  { %8167 = vmatprep.subr.bf16.mxu0 %v10938_v52  ;;  %v886_v54 = vld [vmem:[#allocation13 + $0xae8] sm:$0xff] }
 0x2e7   :  { %v1498_v52 = vld [vmem:[#allocation13 + $0x1e08] sm:$0xff]  ;;  %v10282_v2 = vcombine.high %v882_v53, %v886_v54  ;;  %v10281_v11 = vcombine.low %v882_v53, %v886_v54  ;;  %v575_v53 = vld [vmem:[#allocation13 + $0x130] sm:$0xff] }
 0x2e8   :  { %7957 = vmatpush1.bf16.msra.mxu1 %v10193_v4  ;;  %v10898_v4 = vcombine.high %v1498_v52, %v1502_v59  ;;  %v10897_v13 = vcombine.low %v1498_v52, %v1502_v59 }
 0x2e9   :  { %8168 = vmatpush2.bf16.msra.mxu0 %v10937_v6  ;;  %7958 = vmatprep.subr.bf16.mxu1 %v10314_v7  ;;  %v874_v6 = vld [vmem:[#allocation13 + $0xa88] sm:$0xff] }
 0x2ea   :  { %8169 = vmatprep.subr.bf16.mxu0 %v10930_v8  ;;  %v878_v7 = vld [vmem:[#allocation13 + $0xaa8] sm:$0xff]  ;;  %v595_v8 = vld [vmem:[#allocation13 + $0x1d0] sm:$0xff] }
 0x2eb   :  { %v10274_v14 = vcombine.high %v874_v6, %v878_v7  ;;  %v10273_v22 = vcombine.low %v874_v6, %v878_v7  ;;  %v9995_v24 = vcombine.low %v595_v8, %v599_v10  ;;  %v567_v6 = vld [vmem:[#allocation13 + $0xf0] sm:$0xff] }
 0x2ec   :  { %7959 = vmatpush2.bf16.msra.mxu1 %v10313_v17  ;;  %v9996_v17 = vcombine.high %v595_v8, %v599_v10 }
 0x2ed   :  { %8170 = vmatpush2.bf16.msra.mxu0 %v10929_v18  ;;  %7960 = vmatprep.subr.bf16.mxu1 %v10306_v19  ;;  %v866_v18 = vld [vmem:[#allocation13 + $0xa48] sm:$0xff] }
 0x2ee   :  { %8171 = vmatprep.subr.bf16.mxu0 %v10922_v20  ;;  %v870_v19 = vld [vmem:[#allocation13 + $0xa68] sm:$0xff]  ;;  %v587_v20 = vld [vmem:[#allocation13 + $0x190] sm:$0xff] }
 0x2ef   :  { %v10266_v25 = vcombine.high %v866_v18, %v870_v19  ;;  %v10265_v42 = vcombine.low %v866_v18, %v870_v19  ;;  %v9987_v43 = vcombine.low %v587_v20, %v591_v21  ;;  %v555_v19 = vld [vmem:[#allocation13 + $0x90] sm:$0xff] }
 0x2f0   :  { %7961 = vmatpush2.bf16.msra.mxu1 %v10305_v28  ;;  %v9988_v28 = vcombine.high %v587_v20, %v591_v21  ;;  %v559_v20 = vld [vmem:[#allocation13 + $0xb0] sm:$0xff]  ;;  %v7692_v21 = vadd.f32 %v12025_v9, %v12059_v15 }
 0x2f1   :  { %8172 = vmatpush2.bf16.msra.mxu0 %v10921_v32  ;;  %7962 = vmatprep.subr.bf16.mxu1 %v10298_v33  ;;  %v858_v32 = vld [vmem:[#allocation13 + $0xa08] sm:$0xff]  ;;  %v547_v15 = vld [vmem:[#allocation13 + $0x50] sm:$0xff] }
 0x2f2   :  { %8173 = vmatprep.subr.bf16.mxu0 %v10914_v57  ;;  %v862_v33 = vld [vmem:[#allocation13 + $0xa28] sm:$0xff]  ;;  %v579_v57 = vld [vmem:[#allocation13 + $0x150] sm:$0xff] }
 0x2f3   :  { %v10258_v23 = vcombine.high %v858_v32, %v862_v33  ;;  %v10257_v54 = vcombine.low %v858_v32, %v862_v33  ;;  %v9979_v52 = vcombine.low %v579_v57, %v583_v40  ;;  %v9956_v33 = vcombine.high %v555_v19, %v559_v20 }
 0x2f4   :  { %7963 = vmatpush2.bf16.msra.mxu1 %v10297_v63  ;;  %v9980_v63 = vcombine.high %v579_v57, %v583_v40  ;;  %v1082_v57 = vld [vmem:[#allocation13 + $0x1108] sm:$0xff] }
 0x2f5   :  { %8174 = vmatpush2.bf16.msra.mxu0 %v10913_v46  ;;  %7964 = vmatprep.subr.bf16.mxu1 %v10290_v47  ;;  %v1106_v46 = vld [vmem:[#allocation13 + $0x11c8] sm:$0xff] }
 0x2f6   :  { %8175 = vmatprep.subr.bf16.mxu0 %v10906_v49  ;;  %v1110_v47 = vld [vmem:[#allocation13 + $0x11e8] sm:$0xff]  ;;  %v571_v49 = vld [vmem:[#allocation13 + $0x110] sm:$0xff] }
 0x2f7   :  { %v10506_v59 = vcombine.high %v1106_v46, %v1110_v47  ;;  %v10505_v7 = vcombine.low %v1106_v46, %v1110_v47  ;;  %v9971_v8 = vcombine.low %v571_v49, %v575_v53  ;;  %v1086_v40 = vld [vmem:[#allocation13 + $0x1128] sm:$0xff]  ;;  %v9955_v46 = vcombine.low %v555_v19, %v559_v20 }
 0x2f8   :  { %7965 = vmatpush2.bf16.msra.mxu1 %v10289_v60  ;;  %v9972_v60 = vcombine.high %v571_v49, %v575_v53  ;;  %v10482_v47 = vcombine.high %v1082_v57, %v1086_v40  ;;  %v1058_v20 = vld [vmem:[#allocation13 + $0x1048] sm:$0xff] }
 0x2f9   :  { %8176 = vmatpush2.bf16.msra.mxu0 %v10905_v0  ;;  %7966 = vmatprep.subr.bf16.mxu1 %v10282_v2  ;;  %v1098_v0 = vld [vmem:[#allocation13 + $0x1188] sm:$0xff] }
 0x2fa   :  { %8177 = vmatprep.subr.bf16.mxu0 %v10898_v4  ;;  %v1102_v2 = vld [vmem:[#allocation13 + $0x11a8] sm:$0xff]  ;;  %v563_v4 = vld [vmem:[#allocation13 + $0xd0] sm:$0xff] }
 0x2fb   :  { %v10498_v10 = vcombine.high %v1098_v0, %v1102_v2 }
 0x2fc   :  { %7967 = vmatpush2.bf16.msra.mxu1 %v10281_v11  ;;  %v7690_v11 = vadd.f32 %v12023_v62, %v12054_v29  ;;  %v9963_v62 = vcombine.low %v563_v4, %v567_v6 }
 0x2fd   :  { %8178 = vmatpush2.bf16.msra.mxu0 %v10897_v13  ;;  %7968 = vmatprep.subr.bf16.mxu1 %v10274_v14  ;;  %v9964_v13 = vcombine.high %v563_v4, %v567_v6  ;;  %v1090_v14 = vld [vmem:[#allocation13 + $0x1148] sm:$0xff] }
 0x2fe   :  { %8229 = vmatprep.subr.bf16.mxu0 %v9996_v17  ;;  %v1094_v17 = vld [vmem:[#allocation13 + $0x1168] sm:$0xff] }
 0x2ff   :  { %v10490_v29 = vcombine.high %v1090_v14, %v1094_v17 }
 0x300   :  { %7969 = vmatpush2.bf16.msra.mxu1 %v10273_v22  ;;  %8180 = vmatmul.mubr.bf16.vlgmr.msra.gmra.mxu0 %v12033_v16 }
 0x301   :  { %8230 = vmatpush1.bf16.msra.mxu0 %v9995_v24  ;;  %7970 = vmatprep.subr.bf16.mxu1 %v10266_v25  ;;  %v10497_v24 = vcombine.low %v1098_v0, %v1102_v2  ;;  %v10481_v2 = vcombine.low %v1082_v57, %v1086_v40  ;;  %v1050_v40 = vld [vmem:[#allocation13 + $0x1008] sm:$0xff] }
 0x302   :  { %8231 = vmatprep.subr.bf16.mxu0 %v9988_v28  ;;  %8261 = vmatprep.mubr.bf16.mxu0 %v11938_v27  ;;  %v12073_v28 = vpop.f32.mrf.mxu0 }
 0x304   :  { %7971 = vmatpush2.bf16.msra.mxu1 %v10265_v42  ;;  %v551_v42 = vld [vmem:[#allocation13 + $0x70] sm:$0xff] }
 0x305   :  { %8232 = vmatpush1.bf16.msra.mxu0 %v9987_v43  ;;  %7972 = vmatprep.subr.bf16.mxu1 %v10258_v23  ;;  %v12077_v43 = vpop.f32.mrf.mxu0  ;;  %v10489_v23 = vcombine.low %v1090_v14, %v1094_v17  ;;  %v9948_v53 = vcombine.high %v547_v15, %v551_v42  ;;  %v9947_v4 = vcombine.low %v547_v15, %v551_v42  ;;  %v643_v15 = vld [vmem:[#allocation13 + $0x350] sm:$0xff] }
 0x306   :  { %8233 = vmatprep.subr.bf16.mxu0 %v9980_v63  ;;  %v647_v42 = vld [vmem:[#allocation13 + $0x370] sm:$0xff] }
 0x307   :  { %v7939_v49 = vpop.f32.mrf.mxu0 }
 0x308   :  { %7973 = vmatpush2.bf16.msra.mxu1 %v10257_v54  ;;  %v1074_v54 = vld [vmem:[#allocation13 + $0x10c8] sm:$0xff] }
 0x309   :  { %8234 = vmatpush1.bf16.msra.mxu0 %v9979_v52  ;;  %8024 = vmatprep.subr.bf16.mxu1 %v10506_v59  ;;  %v1078_v52 = vld [vmem:[#allocation13 + $0x10e8] sm:$0xff]  ;;  %v539_v59 = vld [vmem:[#allocation13 + $0x10] sm:$0xff]  ;;  %v7940_v0 = vpop.f32.mrf.mxu0 }
 0x30a   :  { %8235 = vmatprep.subr.bf16.mxu0 %v9972_v60  ;;  %v543_v60 = vld [vmem:[#allocation13 + $0x30] sm:$0xff]  ;;  %v10474_v6 = vcombine.high %v1074_v54, %v1078_v52  ;;  %v10473_v14 = vcombine.low %v1074_v54, %v1078_v52  ;;  %v1170_v49 = vld [vmem:[#allocation13 + $0x13c8] sm:$0xff] }
 0x30b   :  { %v7730_v18 = vpop.f32.mrf.mxu1  ;;  %7975 = vmatmul.mubr.bf16.vlgmr.msra.gmra.mxu1 %v11965_v51  ;;  %v9939_v17 = vcombine.low %v539_v59, %v543_v60  ;;  %v635_v54 = vld [vmem:[#allocation13 + $0x310] sm:$0xff] }
 0x30c   :  { %v12070_v22 = vadd.f32 %v7730_v18, %v7690_v11  ;;  %8025 = vmatpush1.bf16.msra.mxu1 %v10505_v7  ;;  %8056 = vmatprep.mubr.bf16.mxu1 %v11967_v55  ;;  %v9940_v7 = vcombine.high %v539_v59, %v543_v60  ;;  %v659_v11 = vld [vmem:[#allocation13 + $0x3d0] sm:$0xff]  ;;  %v10043_v60 = vcombine.low %v643_v15, %v647_v42 }
 0x30d   :  { %v7732_v25 = vpop.f32.mrf.mxu1  ;;  %8236 = vmatpush1.bf16.msra.mxu0 %v9971_v8  ;;  %8026 = vmatprep.subr.bf16.mxu1 %v10498_v10  ;;  %v1066_v8 = vld [vmem:[#allocation13 + $0x1088] sm:$0xff]  ;;  %v639_v52 = vld [vmem:[#allocation13 + $0x330] sm:$0xff] }
 0x30e   :  { %v12075_v32 = vadd.f32 %v7732_v25, %v7692_v21  ;;  %8237 = vmatprep.subr.bf16.mxu0 %v9964_v13  ;;  %v1070_v10 = vld [vmem:[#allocation13 + $0x10a8] sm:$0xff]  ;;  %v663_v13 = vld [vmem:[#allocation13 + $0x3f0] sm:$0xff] }
 0x30f   :  { %v7734_v9 = vpop.f32.mrf.mxu1  ;;  %v10466_v18 = vcombine.high %v1066_v8, %v1070_v10  ;;  %v10060_v19 = vcombine.high %v659_v11, %v663_v13  ;;  %v1062_v21 = vld [vmem:[#allocation13 + $0x1068] sm:$0xff]  ;;  %v655_v25 = vld [vmem:[#allocation13 + $0x3b0] sm:$0xff] }
 0x310   :  { %8027 = vmatpush1.bf16.msra.mxu1 %v10497_v24  ;;  %v651_v24 = vld [vmem:[#allocation13 + $0x390] sm:$0xff]  ;;  %v1054_v9 = vld [vmem:[#allocation13 + $0x1028] sm:$0xff] }
 0x311   :  { %v7735_v63 = vpop.f32.mrf.mxu1  ;;  %8238 = vmatpush1.bf16.msra.mxu0 %v9963_v62  ;;  %8028 = vmatprep.subr.bf16.mxu1 %v10490_v29  ;;  %v10465_v62 = vcombine.low %v1066_v8, %v1070_v10  ;;  %v10059_v29 = vcombine.low %v659_v11, %v663_v13  ;;  %v10052_v57 = vcombine.high %v651_v24, %v655_v25  ;;  %v631_v8 = vld [vmem:[#allocation13 + $0x2f0] sm:$0xff] }
 0x312   :  { %8239 = vmatprep.subr.bf16.mxu0 %v9956_v33  ;;  %v10458_v33 = vcombine.high %v1058_v20, %v1062_v21  ;;  %v10051_v63 = vcombine.low %v651_v24, %v655_v25  ;;  %v10449_v59 = vcombine.low %v1050_v40, %v1054_v9  ;;  %v10035_v11 = vcombine.low %v635_v54, %v639_v52 }
 0x314   :  { %8029 = vmatpush1.bf16.msra.mxu1 %v10489_v23  ;;  %v10457_v23 = vcombine.low %v1058_v20, %v1062_v21  ;;  %v623_v20 = vld [vmem:[#allocation13 + $0x2b0] sm:$0xff] }
 0x315   :  { %8240 = vmatpush1.bf16.msra.mxu0 %v9955_v46  ;;  %8030 = vmatprep.subr.bf16.mxu1 %v10482_v47  ;;  %v10450_v46 = vcombine.high %v1050_v40, %v1054_v9  ;;  %v10044_v47 = vcombine.high %v643_v15, %v647_v42  ;;  %v615_v40 = vld [vmem:[#allocation13 + $0x270] sm:$0xff] }
 0x316   :  { %8241 = vmatprep.subr.bf16.mxu0 %v9948_v53  ;;  %v1174_v53 = vld [vmem:[#allocation13 + $0x13e8] sm:$0xff] }
 0x317   :  { %v10570_v0 = vcombine.high %v1170_v49, %v1174_v53  ;;  %v10569_v10 = vcombine.low %v1170_v49, %v1174_v53  ;;  %v607_v49 = vld [vmem:[#allocation13 + $0x230] sm:$0xff] }
 0x318   :  { %8031 = vmatpush1.bf16.msra.mxu1 %v10481_v2  ;;  %v10036_v2 = vcombine.high %v635_v54, %v639_v52 }
 0x319   :  { %8242 = vmatpush1.bf16.msra.mxu0 %v9947_v4  ;;  %8032 = vmatprep.subr.bf16.mxu1 %v10474_v6  ;;  %v1162_v4 = vld [vmem:[#allocation13 + $0x1388] sm:$0xff] }
 0x31a   :  { %8243 = vmatprep.subr.bf16.mxu0 %v9940_v7  ;;  %v1166_v6 = vld [vmem:[#allocation13 + $0x13a8] sm:$0xff]  ;;  %v627_v7 = vld [vmem:[#allocation13 + $0x2d0] sm:$0xff] }
 0x31b   :  { %v10562_v13 = vcombine.high %v1162_v4, %v1166_v6  ;;  %v10561_v21 = vcombine.low %v1162_v4, %v1166_v6  ;;  %v10027_v24 = vcombine.low %v627_v7, %v631_v8  ;;  %v855_v4 = vld [vmem:[#allocation13 + $0x9f0] sm:$0xff] }
 0x31c   :  { %8033 = vmatpush1.bf16.msra.mxu1 %v10473_v14  ;;  %v10028_v14 = vcombine.high %v627_v7, %v631_v8 }
 0x31d   :  { %8244 = vmatpush1.bf16.msra.mxu0 %v9939_v17  ;;  %8034 = vmatprep.subr.bf16.mxu1 %v10466_v18  ;;  %v1154_v17 = vld [vmem:[#allocation13 + $0x1348] sm:$0xff] }
 0x31e   :  { %8245 = vmatprep.subr.bf16.mxu0 %v10060_v19  ;;  %v1158_v18 = vld [vmem:[#allocation13 + $0x1368] sm:$0xff]  ;;  %v619_v19 = vld [vmem:[#allocation13 + $0x290] sm:$0xff] }
 0x31f   :  { %v10554_v25 = vcombine.high %v1154_v17, %v1158_v18  ;;  %v10553_v9 = vcombine.low %v1154_v17, %v1158_v18  ;;  %v10019_v15 = vcombine.low %v619_v19, %v623_v20  ;;  %v847_v17 = vld [vmem:[#allocation13 + $0x9b0] sm:$0xff] }
 0x320   :  { %8035 = vmatpush1.bf16.msra.mxu1 %v10465_v62  ;;  %v10020_v62 = vcombine.high %v619_v19, %v623_v20 }
 0x321   :  { %8246 = vmatpush2.bf16.msra.mxu0 %v10059_v29  ;;  %8036 = vmatprep.subr.bf16.mxu1 %v10458_v33  ;;  %v1146_v29 = vld [vmem:[#allocation13 + $0x1308] sm:$0xff] }
 0x322   :  { %8247 = vmatprep.subr.bf16.mxu0 %v10052_v57  ;;  %v1150_v33 = vld [vmem:[#allocation13 + $0x1328] sm:$0xff]  ;;  %v611_v57 = vld [vmem:[#allocation13 + $0x250] sm:$0xff] }
 0x323   :  { %v10546_v42 = vcombine.high %v1146_v29, %v1150_v33  ;;  %v10545_v53 = vcombine.low %v1146_v29, %v1150_v33  ;;  %v10011_v54 = vcombine.low %v611_v57, %v615_v40  ;;  %v839_v29 = vld [vmem:[#allocation13 + $0x970] sm:$0xff] }
 0x324   :  { %8037 = vmatpush1.bf16.msra.mxu1 %v10457_v23  ;;  %v10012_v23 = vcombine.high %v611_v57, %v615_v40 }
 0x325   :  { %8248 = vmatpush2.bf16.msra.mxu0 %v10051_v63  ;;  %8038 = vmatprep.subr.bf16.mxu1 %v10450_v46  ;;  %v1138_v63 = vld [vmem:[#allocation13 + $0x12c8] sm:$0xff] }
 0x326   :  { %8249 = vmatprep.subr.bf16.mxu0 %v10044_v47  ;;  %v1142_v46 = vld [vmem:[#allocation13 + $0x12e8] sm:$0xff]  ;;  %v603_v47 = vld [vmem:[#allocation13 + $0x210] sm:$0xff] }
 0x327   :  { %v10538_v52 = vcombine.high %v1138_v63, %v1142_v46  ;;  %v10537_v6 = vcombine.low %v1138_v63, %v1142_v46  ;;  %v10003_v7 = vcombine.low %v603_v47, %v607_v49  ;;  %v831_v63 = vld [vmem:[#allocation13 + $0x930] sm:$0xff] }
 0x328   :  { %8039 = vmatpush1.bf16.msra.mxu1 %v10449_v59  ;;  %v10004_v59 = vcombine.high %v603_v47, %v607_v49 }
 0x329   :  { %8250 = vmatpush2.bf16.msra.mxu0 %v10043_v60  ;;  %8040 = vmatprep.subr.bf16.mxu1 %v10570_v0  ;;  %v1130_v60 = vld [vmem:[#allocation13 + $0x1288] sm:$0xff] }
 0x32a   :  { %8251 = vmatprep.subr.bf16.mxu0 %v10036_v2  ;;  %v1134_v0 = vld [vmem:[#allocation13 + $0x12a8] sm:$0xff]  ;;  %v851_v2 = vld [vmem:[#allocation13 + $0x9d0] sm:$0xff] }
 0x32b   :  { %v10530_v8 = vcombine.high %v1130_v60, %v1134_v0  ;;  %v10529_v18 = vcombine.low %v1130_v60, %v1134_v0  ;;  %v10251_v19 = vcombine.low %v851_v2, %v855_v4  ;;  %v823_v60 = vld [vmem:[#allocation13 + $0x8f0] sm:$0xff] }
 0x32c   :  { %8041 = vmatpush2.bf16.msra.mxu1 %v10569_v10  ;;  %v10252_v10 = vcombine.high %v851_v2, %v855_v4 }
 0x32d   :  { %8252 = vmatpush2.bf16.msra.mxu0 %v10035_v11  ;;  %8042 = vmatprep.subr.bf16.mxu1 %v10562_v13  ;;  %v1122_v11 = vld [vmem:[#allocation13 + $0x1248] sm:$0xff] }
 0x32e   :  { %8253 = vmatprep.subr.bf16.mxu0 %v10028_v14  ;;  %v1126_v13 = vld [vmem:[#allocation13 + $0x1268] sm:$0xff]  ;;  %v843_v14 = vld [vmem:[#allocation13 + $0x990] sm:$0xff] }
 0x32f   :  { %v10522_v20 = vcombine.high %v1122_v11, %v1126_v13  ;;  %v10521_v33 = vcombine.low %v1122_v11, %v1126_v13  ;;  %v10243_v57 = vcombine.low %v843_v14, %v847_v17  ;;  %v811_v13 = vld [vmem:[#allocation13 + $0x890] sm:$0xff] }
 0x330   :  { %8043 = vmatpush2.bf16.msra.mxu1 %v10561_v21  ;;  %v10244_v21 = vcombine.high %v843_v14, %v847_v17  ;;  %v815_v14 = vld [vmem:[#allocation13 + $0x8b0] sm:$0xff]  ;;  %v7774_v17 = vadd.f32 %v12045_v58, %v12075_v32 }
 0x331   :  { %8254 = vmatpush2.bf16.msra.mxu0 %v10027_v24  ;;  %8044 = vmatprep.subr.bf16.mxu1 %v10554_v25  ;;  %v1114_v24 = vld [vmem:[#allocation13 + $0x1208] sm:$0xff]  ;;  %v803_v32 = vld [vmem:[#allocation13 + $0x850] sm:$0xff] }
 0x332   :  { %8255 = vmatprep.subr.bf16.mxu0 %v10020_v62  ;;  %v1118_v25 = vld [vmem:[#allocation13 + $0x1228] sm:$0xff]  ;;  %v835_v62 = vld [vmem:[#allocation13 + $0x950] sm:$0xff] }
 0x333   :  { %v10514_v40 = vcombine.high %v1114_v24, %v1118_v25  ;;  %v10513_v46 = vcombine.low %v1114_v24, %v1118_v25  ;;  %v10235_v47 = vcombine.low %v835_v62, %v839_v29  ;;  %v10212_v25 = vcombine.high %v811_v13, %v815_v14 }
 0x334   :  { %8045 = vmatpush2.bf16.msra.mxu1 %v10553_v9  ;;  %v10236_v9 = vcombine.high %v835_v62, %v839_v29  ;;  %v1338_v62 = vld [vmem:[#allocation13 + $0x1908] sm:$0xff] }
 0x335   :  { %8256 = vmatpush2.bf16.msra.mxu0 %v10019_v15  ;;  %8046 = vmatprep.subr.bf16.mxu1 %v10546_v42  ;;  %v1362_v15 = vld [vmem:[#allocation13 + $0x19c8] sm:$0xff] }
 0x336   :  { %8257 = vmatprep.subr.bf16.mxu0 %v10012_v23  ;;  %v1366_v42 = vld [vmem:[#allocation13 + $0x19e8] sm:$0xff]  ;;  %v827_v23 = vld [vmem:[#allocation13 + $0x910] sm:$0xff] }
 0x337   :  { %v10762_v49 = vcombine.high %v1362_v15, %v1366_v42  ;;  %v10761_v0 = vcombine.low %v1362_v15, %v1366_v42  ;;  %v10227_v2 = vcombine.low %v827_v23, %v831_v63  ;;  %v1342_v29 = vld [vmem:[#allocation13 + $0x1928] sm:$0xff]  ;;  %v10211_v15 = vcombine.low %v811_v13, %v815_v14 }
 0x338   :  { %8047 = vmatpush2.bf16.msra.mxu1 %v10545_v53  ;;  %v10228_v53 = vcombine.high %v827_v23, %v831_v63  ;;  %v10738_v42 = vcombine.high %v1338_v62, %v1342_v29  ;;  %v1314_v14 = vld [vmem:[#allocation13 + $0x1848] sm:$0xff] }
 0x339   :  { %8258 = vmatpush2.bf16.msra.mxu0 %v10011_v54  ;;  %8048 = vmatprep.subr.bf16.mxu1 %v10538_v52  ;;  %v1354_v54 = vld [vmem:[#allocation13 + $0x1988] sm:$0xff] }
 0x33a   :  { %8259 = vmatprep.subr.bf16.mxu0 %v10004_v59  ;;  %v1358_v52 = vld [vmem:[#allocation13 + $0x19a8] sm:$0xff]  ;;  %v819_v59 = vld [vmem:[#allocation13 + $0x8d0] sm:$0xff] }
 0x33b   :  { %v10754_v4 = vcombine.high %v1354_v54, %v1358_v52 }
 0x33c   :  { %8049 = vmatpush2.bf16.msra.mxu1 %v10537_v6  ;;  %v7772_v6 = vadd.f32 %v12041_v45, %v12070_v22  ;;  %v10219_v45 = vcombine.low %v819_v59, %v823_v60 }
 0x33d   :  { %8260 = vmatpush2.bf16.msra.mxu0 %v10003_v7  ;;  %8050 = vmatprep.subr.bf16.mxu1 %v10530_v8  ;;  %v10220_v7 = vcombine.high %v819_v59, %v823_v60  ;;  %v1346_v8 = vld [vmem:[#allocation13 + $0x1948] sm:$0xff] }
 0x33e   :  { %8311 = vmatprep.subr.bf16.mxu0 %v10252_v10  ;;  %v1350_v10 = vld [vmem:[#allocation13 + $0x1968] sm:$0xff] }
 0x33f   :  { %v10746_v22 = vcombine.high %v1346_v8, %v1350_v10 }
 0x340   :  { %8051 = vmatpush2.bf16.msra.mxu1 %v10529_v18  ;;  %8262 = vmatmul.mubr.bf16.vlgmr.msra.gmra.mxu0 %v11946_v36 }
 0x341   :  { %8312 = vmatpush1.bf16.msra.mxu0 %v10251_v19  ;;  %8052 = vmatprep.subr.bf16.mxu1 %v10522_v20  ;;  %v10753_v19 = vcombine.low %v1354_v54, %v1358_v52  ;;  %v10737_v52 = vcombine.low %v1338_v62, %v1342_v29  ;;  %v1306_v29 = vld [vmem:[#allocation13 + $0x1808] sm:$0xff] }
 0x342   :  { %8313 = vmatprep.subr.bf16.mxu0 %v10244_v21  ;;  %8343 = vmatprep.mubr.bf16.mxu0 %v11949_v38  ;;  %v12089_v21 = vpop.f32.mrf.mxu0 }
 0x344   :  { %8053 = vmatpush2.bf16.msra.mxu1 %v10521_v33  ;;  %v807_v33 = vld [vmem:[#allocation13 + $0x870] sm:$0xff] }
 0x345   :  { %8314 = vmatpush1.bf16.msra.mxu0 %v10243_v57  ;;  %8054 = vmatprep.subr.bf16.mxu1 %v10514_v40  ;;  %v12093_v57 = vpop.f32.mrf.mxu0  ;;  %v10745_v40 = vcombine.low %v1346_v8, %v1350_v10  ;;  %v10204_v63 = vcombine.high %v803_v32, %v807_v33  ;;  %v10203_v59 = vcombine.low %v803_v32, %v807_v33  ;;  %v899_v32 = vld [vmem:[#allocation13 + $0xb50] sm:$0xff] }
 0x346   :  { %8315 = vmatprep.subr.bf16.mxu0 %v10236_v9  ;;  %v903_v33 = vld [vmem:[#allocation13 + $0xb70] sm:$0xff] }
 0x347   :  { %v8021_v23 = vpop.f32.mrf.mxu0 }
 0x348   :  { %8055 = vmatpush2.bf16.msra.mxu1 %v10513_v46  ;;  %v1330_v46 = vld [vmem:[#allocation13 + $0x18c8] sm:$0xff] }
 0x349   :  { %8316 = vmatpush1.bf16.msra.mxu0 %v10235_v47  ;;  %8106 = vmatprep.subr.bf16.mxu1 %v10762_v49  ;;  %v1334_v47 = vld [vmem:[#allocation13 + $0x18e8] sm:$0xff]  ;;  %v795_v49 = vld [vmem:[#allocation13 + $0x810] sm:$0xff]  ;;  %v8022_v54 = vpop.f32.mrf.mxu0 }
 0x34a   :  { %8317 = vmatprep.subr.bf16.mxu0 %v10228_v53  ;;  %v799_v53 = vld [vmem:[#allocation13 + $0x830] sm:$0xff]  ;;  %v10730_v60 = vcombine.high %v1330_v46, %v1334_v47  ;;  %v10729_v8 = vcombine.low %v1330_v46, %v1334_v47  ;;  %v1426_v23 = vld [vmem:[#allocation13 + $0x1bc8] sm:$0xff] }
 0x34b   :  { %v7812_v11 = vpop.f32.mrf.mxu1  ;;  %8057 = vmatmul.mubr.bf16.vlgmr.msra.gmra.mxu1 %v11971_v3  ;;  %v10195_v10 = vcombine.low %v795_v49, %v799_v53  ;;  %v891_v46 = vld [vmem:[#allocation13 + $0xb10] sm:$0xff] }
 0x34c   :  { %v12086_v18 = vadd.f32 %v7812_v11, %v7772_v6  ;;  %8107 = vmatpush1.bf16.msra.mxu1 %v10761_v0  ;;  %8138 = vmatprep.mubr.bf16.mxu1 %v11973_v5  ;;  %v10196_v0 = vcombine.high %v795_v49, %v799_v53  ;;  %v915_v6 = vld [vmem:[#allocation13 + $0xbd0] sm:$0xff]  ;;  %v10299_v53 = vcombine.low %v899_v32, %v903_v33 }
 0x34d   :  { %v7814_v20 = vpop.f32.mrf.mxu1  ;;  %8318 = vmatpush1.bf16.msra.mxu0 %v10227_v2  ;;  %8108 = vmatprep.subr.bf16.mxu1 %v10754_v4  ;;  %v1322_v2 = vld [vmem:[#allocation13 + $0x1888] sm:$0xff]  ;;  %v895_v47 = vld [vmem:[#allocation13 + $0xb30] sm:$0xff] }
 0x34e   :  { %v12091_v24 = vadd.f32 %v7814_v20, %v7774_v17  ;;  %8319 = vmatprep.subr.bf16.mxu0 %v10220_v7  ;;  %v1326_v4 = vld [vmem:[#allocation13 + $0x18a8] sm:$0xff]  ;;  %v919_v7 = vld [vmem:[#allocation13 + $0xbf0] sm:$0xff] }
 0x34f   :  { %v7816_v58 = vpop.f32.mrf.mxu1  ;;  %v10722_v11 = vcombine.high %v1322_v2, %v1326_v4  ;;  %v10316_v13 = vcombine.high %v915_v6, %v919_v7  ;;  %v1318_v17 = vld [vmem:[#allocation13 + $0x1868] sm:$0xff]  ;;  %v911_v20 = vld [vmem:[#allocation13 + $0xbb0] sm:$0xff] }
 0x350   :  { %8109 = vmatpush1.bf16.msra.mxu1 %v10753_v19  ;;  %v907_v19 = vld [vmem:[#allocation13 + $0xb90] sm:$0xff]  ;;  %v1310_v58 = vld [vmem:[#allocation13 + $0x1828] sm:$0xff] }
 0x351   :  { %v7817_v9 = vpop.f32.mrf.mxu1  ;;  %8320 = vmatpush1.bf16.msra.mxu0 %v10219_v45  ;;  %8110 = vmatprep.subr.bf16.mxu1 %v10746_v22  ;;  %v10721_v45 = vcombine.low %v1322_v2, %v1326_v4  ;;  %v10315_v22 = vcombine.low %v915_v6, %v919_v7  ;;  %v10308_v62 = vcombine.high %v907_v19, %v911_v20  ;;  %v887_v2 = vld [vmem:[#allocation13 + $0xaf0] sm:$0xff] }
 0x352   :  { %8321 = vmatprep.subr.bf16.mxu0 %v10212_v25  ;;  %v10714_v25 = vcombine.high %v1314_v14, %v1318_v17  ;;  %v10307_v9 = vcombine.low %v907_v19, %v911_v20  ;;  %v10705_v49 = vcombine.low %v1306_v29, %v1310_v58  ;;  %v10291_v6 = vcombine.low %v891_v46, %v895_v47 }
 0x354   :  { %8111 = vmatpush1.bf16.msra.mxu1 %v10745_v40  ;;  %v10713_v40 = vcombine.low %v1314_v14, %v1318_v17  ;;  %v879_v14 = vld [vmem:[#allocation13 + $0xab0] sm:$0xff] }
 0x355   :  { %8322 = vmatpush1.bf16.msra.mxu0 %v10211_v15  ;;  %8112 = vmatprep.subr.bf16.mxu1 %v10738_v42  ;;  %v10706_v15 = vcombine.high %v1306_v29, %v1310_v58  ;;  %v10300_v42 = vcombine.high %v899_v32, %v903_v33  ;;  %v871_v29 = vld [vmem:[#allocation13 + $0xa70] sm:$0xff] }
 0x356   :  { %8323 = vmatprep.subr.bf16.mxu0 %v10204_v63  ;;  %v1430_v63 = vld [vmem:[#allocation13 + $0x1be8] sm:$0xff] }
 0x357   :  { %v10826_v54 = vcombine.high %v1426_v23, %v1430_v63  ;;  %v10825_v4 = vcombine.low %v1426_v23, %v1430_v63  ;;  %v863_v23 = vld [vmem:[#allocation13 + $0xa30] sm:$0xff] }
 0x358   :  { %8113 = vmatpush1.bf16.msra.mxu1 %v10737_v52  ;;  %v10292_v52 = vcombine.high %v891_v46, %v895_v47 }
 0x359   :  { %8324 = vmatpush1.bf16.msra.mxu0 %v10203_v59  ;;  %8114 = vmatprep.subr.bf16.mxu1 %v10730_v60  ;;  %v1418_v59 = vld [vmem:[#allocation13 + $0x1b88] sm:$0xff] }
 0x35a   :  { %8325 = vmatprep.subr.bf16.mxu0 %v10196_v0  ;;  %v1422_v60 = vld [vmem:[#allocation13 + $0x1ba8] sm:$0xff]  ;;  %v883_v0 = vld [vmem:[#allocation13 + $0xad0] sm:$0xff] }
 0x35b   :  { %v10818_v7 = vcombine.high %v1418_v59, %v1422_v60  ;;  %v10817_v17 = vcombine.low %v1418_v59, %v1422_v60  ;;  %v10283_v19 = vcombine.low %v883_v0, %v887_v2  ;;  %v1111_v59 = vld [vmem:[#allocation13 + $0x11f0] sm:$0xff] }
 0x35c   :  { %8115 = vmatpush1.bf16.msra.mxu1 %v10729_v8  ;;  %v10284_v8 = vcombine.high %v883_v0, %v887_v2 }
 0x35d   :  { %8326 = vmatpush1.bf16.msra.mxu0 %v10195_v10  ;;  %8116 = vmatprep.subr.bf16.mxu1 %v10722_v11  ;;  %v1410_v10 = vld [vmem:[#allocation13 + $0x1b48] sm:$0xff] }
 0x35e   :  { %8327 = vmatprep.subr.bf16.mxu0 %v10316_v13  ;;  %v1414_v11 = vld [vmem:[#allocation13 + $0x1b68] sm:$0xff]  ;;  %v875_v13 = vld [vmem:[#allocation13 + $0xa90] sm:$0xff] }
 0x35f   :  { %v10810_v20 = vcombine.high %v1410_v10, %v1414_v11  ;;  %v10809_v58 = vcombine.low %v1410_v10, %v1414_v11  ;;  %v10275_v32 = vcombine.low %v875_v13, %v879_v14  ;;  %v1103_v10 = vld [vmem:[#allocation13 + $0x11b0] sm:$0xff] }
 0x360   :  { %8117 = vmatpush1.bf16.msra.mxu1 %v10721_v45  ;;  %v10276_v45 = vcombine.high %v875_v13, %v879_v14 }
 0x361   :  { %8328 = vmatpush2.bf16.msra.mxu0 %v10315_v22  ;;  %8118 = vmatprep.subr.bf16.mxu1 %v10714_v25  ;;  %v1402_v22 = vld [vmem:[#allocation13 + $0x1b08] sm:$0xff] }
 0x362   :  { %8329 = vmatprep.subr.bf16.mxu0 %v10308_v62  ;;  %v1406_v25 = vld [vmem:[#allocation13 + $0x1b28] sm:$0xff]  ;;  %v867_v62 = vld [vmem:[#allocation13 + $0xa50] sm:$0xff] }
 0x363   :  { %v10802_v33 = vcombine.high %v1402_v22, %v1406_v25  ;;  %v10801_v63 = vcombine.low %v1402_v22, %v1406_v25  ;;  %v10267_v46 = vcombine.low %v867_v62, %v871_v29  ;;  %v1095_v22 = vld [vmem:[#allocation13 + $0x1170] sm:$0xff] }
 0x364   :  { %8119 = vmatpush1.bf16.msra.mxu1 %v10713_v40  ;;  %v10268_v40 = vcombine.high %v867_v62, %v871_v29 }
 0x365   :  { %8330 = vmatpush2.bf16.msra.mxu0 %v10307_v9  ;;  %8120 = vmatprep.subr.bf16.mxu1 %v10706_v15  ;;  %v1394_v9 = vld [vmem:[#allocation13 + $0x1ac8] sm:$0xff] }
 0x366   :  { %8331 = vmatprep.subr.bf16.mxu0 %v10300_v42  ;;  %v1398_v15 = vld [vmem:[#allocation13 + $0x1ae8] sm:$0xff]  ;;  %v859_v42 = vld [vmem:[#allocation13 + $0xa10] sm:$0xff] }
 0x367   :  { %v10794_v47 = vcombine.high %v1394_v9, %v1398_v15  ;;  %v10793_v60 = vcombine.low %v1394_v9, %v1398_v15  ;;  %v10259_v0 = vcombine.low %v859_v42, %v863_v23  ;;  %v1087_v9 = vld [vmem:[#allocation13 + $0x1130] sm:$0xff] }
 0x368   :  { %8121 = vmatpush1.bf16.msra.mxu1 %v10705_v49  ;;  %v10260_v49 = vcombine.high %v859_v42, %v863_v23 }
 0x369   :  { %8332 = vmatpush2.bf16.msra.mxu0 %v10299_v53  ;;  %8122 = vmatprep.subr.bf16.mxu1 %v10826_v54  ;;  %v1386_v53 = vld [vmem:[#allocation13 + $0x1a88] sm:$0xff] }
 0x36a   :  { %8333 = vmatprep.subr.bf16.mxu0 %v10292_v52  ;;  %v1390_v54 = vld [vmem:[#allocation13 + $0x1aa8] sm:$0xff]  ;;  %v1107_v52 = vld [vmem:[#allocation13 + $0x11d0] sm:$0xff] }
 0x36b   :  { %v10786_v2 = vcombine.high %v1386_v53, %v1390_v54  ;;  %v10785_v11 = vcombine.low %v1386_v53, %v1390_v54  ;;  %v10507_v13 = vcombine.low %v1107_v52, %v1111_v59  ;;  %v1079_v53 = vld [vmem:[#allocation13 + $0x10f0] sm:$0xff] }
 0x36c   :  { %8123 = vmatpush2.bf16.msra.mxu1 %v10825_v4  ;;  %v10508_v4 = vcombine.high %v1107_v52, %v1111_v59 }
 0x36d   :  { %8334 = vmatpush2.bf16.msra.mxu0 %v10291_v6  ;;  %8124 = vmatprep.subr.bf16.mxu1 %v10818_v7  ;;  %v1378_v6 = vld [vmem:[#allocation13 + $0x1a48] sm:$0xff] }
 0x36e   :  { %8335 = vmatprep.subr.bf16.mxu0 %v10284_v8  ;;  %v1382_v7 = vld [vmem:[#allocation13 + $0x1a68] sm:$0xff]  ;;  %v1099_v8 = vld [vmem:[#allocation13 + $0x1190] sm:$0xff] }
 0x36f   :  { %v10778_v14 = vcombine.high %v1378_v6, %v1382_v7  ;;  %v10777_v25 = vcombine.low %v1378_v6, %v1382_v7  ;;  %v10499_v62 = vcombine.low %v1099_v8, %v1103_v10  ;;  %v1067_v6 = vld [vmem:[#allocation13 + $0x1090] sm:$0xff] }
 0x370   :  { %8125 = vmatpush2.bf16.msra.mxu1 %v10817_v17  ;;  %v10500_v17 = vcombine.high %v1099_v8, %v1103_v10  ;;  %v1071_v7 = vld [vmem:[#allocation13 + $0x10b0] sm:$0xff] }
 0x371   :  { %8336 = vmatpush2.bf16.msra.mxu0 %v10283_v19  ;;  %8126 = vmatprep.subr.bf16.mxu1 %v10810_v20  ;;  %v1370_v19 = vld [vmem:[#allocation13 + $0x1a08] sm:$0xff] }
 0x372   :  { %8337 = vmatprep.subr.bf16.mxu0 %v10276_v45  ;;  %v1374_v20 = vld [vmem:[#allocation13 + $0x1a28] sm:$0xff]  ;;  %v1091_v45 = vld [vmem:[#allocation13 + $0x1150] sm:$0xff] }
 0x373   :  { %v10770_v29 = vcombine.high %v1370_v19, %v1374_v20  ;;  %v10769_v15 = vcombine.low %v1370_v19, %v1374_v20  ;;  %v10491_v42 = vcombine.low %v1091_v45, %v1095_v22  ;;  %v1594_v19 = vld [vmem:[#allocation13 + $0x2108] sm:$0xff] }
 0x374   :  { %8127 = vmatpush2.bf16.msra.mxu1 %v10809_v58  ;;  %v10492_v58 = vcombine.high %v1091_v45, %v1095_v22  ;;  %v1598_v20 = vld [vmem:[#allocation13 + $0x2128] sm:$0xff]  ;;  %v1059_v22 = vld [vmem:[#allocation13 + $0x1050] sm:$0xff] }
 0x375   :  { %8338 = vmatpush2.bf16.msra.mxu0 %v10275_v32  ;;  %8128 = vmatprep.subr.bf16.mxu1 %v10802_v33  ;;  %v1618_v32 = vld [vmem:[#allocation13 + $0x21c8] sm:$0xff] }
 0x376   :  { %8339 = vmatprep.subr.bf16.mxu0 %v10268_v40  ;;  %v1622_v33 = vld [vmem:[#allocation13 + $0x21e8] sm:$0xff]  ;;  %v1083_v40 = vld [vmem:[#allocation13 + $0x1110] sm:$0xff] }
 0x377   :  { %v11018_v23 = vcombine.high %v1618_v32, %v1622_v33  ;;  %v11017_v54 = vcombine.low %v1618_v32, %v1622_v33  ;;  %v10483_v52 = vcombine.low %v1083_v40, %v1087_v9  ;;  %v10467_v32 = vcombine.low %v1067_v6, %v1071_v7 }
 0x378   :  { %8129 = vmatpush2.bf16.msra.mxu1 %v10801_v63  ;;  %v10484_v63 = vcombine.high %v1083_v40, %v1087_v9  ;;  %v10994_v33 = vcombine.high %v1594_v19, %v1598_v20 }
 0x379   :  { %8340 = vmatpush2.bf16.msra.mxu0 %v10267_v46  ;;  %8130 = vmatprep.subr.bf16.mxu1 %v10794_v47  ;;  %v1610_v46 = vld [vmem:[#allocation13 + $0x2188] sm:$0xff] }
 0x37a   :  { %8341 = vmatprep.subr.bf16.mxu0 %v10260_v49  ;;  %v1614_v47 = vld [vmem:[#allocation13 + $0x21a8] sm:$0xff]  ;;  %v1075_v49 = vld [vmem:[#allocation13 + $0x10d0] sm:$0xff] }
 0x37b   :  { %v11010_v59 = vcombine.high %v1610_v46, %v1614_v47  ;;  %v11009_v8 = vcombine.low %v1610_v46, %v1614_v47  ;;  %v10993_v47 = vcombine.low %v1594_v19, %v1598_v20  ;;  %v1167_v19 = vld [vmem:[#allocation13 + $0x13b0] sm:$0xff] }
 0x37c   :  { %8131 = vmatpush2.bf16.msra.mxu1 %v10793_v60  ;;  %v10476_v60 = vcombine.high %v1075_v49, %v1079_v53 }
 0x37d   :  { %8342 = vmatpush2.bf16.msra.mxu0 %v10259_v0  ;;  %8132 = vmatprep.subr.bf16.mxu1 %v10786_v2  ;;  %v1602_v0 = vld [vmem:[#allocation13 + $0x2148] sm:$0xff] }
 0x37e   :  { %8393 = vmatprep.subr.bf16.mxu0 %v10508_v4  ;;  %v1606_v2 = vld [vmem:[#allocation13 + $0x2168] sm:$0xff] }
 0x380   :  { %8133 = vmatpush2.bf16.msra.mxu1 %v10785_v11  ;;  %8344 = vmatmul.mubr.bf16.vlgmr.msra.gmra.mxu0 %v11965_v51  ;;  %v10475_v11 = vcombine.low %v1075_v49, %v1079_v53 }
 0x381   :  { %8394 = vmatpush1.bf16.msra.mxu0 %v10507_v13  ;;  %8134 = vmatprep.subr.bf16.mxu1 %v10778_v14  ;;  %v11002_v13 = vcombine.high %v1602_v0, %v1606_v2  ;;  %v12103_v14 = vpop.f32.mrf.mxu0 }
 0x382   :  { %8395 = vmatprep.subr.bf16.mxu0 %v10500_v17  ;;  %8425 = vmatprep.mubr.bf16.mxu0 %v11967_v55  ;;  %v10468_v17 = vcombine.high %v1067_v6, %v1071_v7 }
 0x384   :  { %8135 = vmatpush2.bf16.msra.mxu1 %v10777_v25  ;;  %v1063_v25 = vld [vmem:[#allocation13 + $0x1070] sm:$0xff] }
 0x385   :  { %8396 = vmatpush1.bf16.msra.mxu0 %v10499_v62  ;;  %8136 = vmatprep.subr.bf16.mxu1 %v10770_v29  ;;  %v12105_v62 = vpop.f32.mrf.mxu0  ;;  %v11001_v29 = vcombine.low %v1602_v0, %v1606_v2  ;;  %v10460_v9 = vcombine.high %v1059_v22, %v1063_v25  ;;  %v10459_v49 = vcombine.low %v1059_v22, %v1063_v25  ;;  %v1175_v0 = vld [vmem:[#allocation13 + $0x13f0] sm:$0xff] }
 0x386   :  { %8397 = vmatprep.subr.bf16.mxu0 %v10492_v58 }
 0x387   :  { %v8103_v40 = vpop.f32.mrf.mxu0 }
 0x388   :  { %8137 = vmatpush2.bf16.msra.mxu1 %v10769_v15  ;;  %v1586_v15 = vld [vmem:[#allocation13 + $0x20c8] sm:$0xff] }
 0x389   :  { %8398 = vmatpush1.bf16.msra.mxu0 %v10491_v42  ;;  %8188 = vmatprep.subr.bf16.mxu1 %v11018_v23  ;;  %v1590_v42 = vld [vmem:[#allocation13 + $0x20e8] sm:$0xff]  ;;  %v1051_v23 = vld [vmem:[#allocation13 + $0x1010] sm:$0xff]  ;;  %v8104_v46 = vpop.f32.mrf.mxu0 }
 0x38a   :  { %8399 = vmatprep.subr.bf16.mxu0 %v10484_v63  ;;  %v1055_v63 = vld [vmem:[#allocation13 + $0x1030] sm:$0xff]  ;;  %v10986_v53 = vcombine.high %v1586_v15, %v1590_v42  ;;  %v10985_v2 = vcombine.low %v1586_v15, %v1590_v42 }
 0x38b   :  { %v12097_v4 = vpop.f32.mrf.mxu1  ;;  %8139 = vmatmul.mubr.bf16.vlgmr.msra.gmra.mxu1 %v11983_v26  ;;  %v10451_v6 = vcombine.low %v1051_v23, %v1055_v63  ;;  %v1147_v46 = vld [vmem:[#allocation13 + $0x1310] sm:$0xff] }
 0x38c   :  { %8189 = vmatpush1.bf16.msra.mxu1 %v11017_v54  ;;  %8220 = vmatprep.mubr.bf16.mxu1 %v11985_v34  ;;  %v10452_v54 = vcombine.high %v1051_v23, %v1055_v63  ;;  %v1682_v23 = vld [vmem:[#allocation13 + $0x23c8] sm:$0xff] }
 0x38d   :  { %v12101_v10 = vpop.f32.mrf.mxu1  ;;  %8400 = vmatpush1.bf16.msra.mxu0 %v10483_v52  ;;  %8190 = vmatprep.subr.bf16.mxu1 %v11010_v59  ;;  %v1578_v52 = vld [vmem:[#allocation13 + $0x2088] sm:$0xff] }
 0x38e   :  { %8401 = vmatprep.subr.bf16.mxu0 %v10476_v60  ;;  %v1582_v59 = vld [vmem:[#allocation13 + $0x20a8] sm:$0xff]  ;;  %v1171_v60 = vld [vmem:[#allocation13 + $0x13d0] sm:$0xff] }
 0x38f   :  { %v7898_v45 = vpop.f32.mrf.mxu1  ;;  %v10978_v7 = vcombine.high %v1578_v52, %v1582_v59  ;;  %v10977_v20 = vcombine.low %v1578_v52, %v1582_v59  ;;  %v1686_v63 = vld [vmem:[#allocation13 + $0x23e8] sm:$0xff] }
 0x390   :  { %8191 = vmatpush1.bf16.msra.mxu1 %v11009_v8  ;;  %v10572_v8 = vcombine.high %v1171_v60, %v1175_v0  ;;  %v10571_v45 = vcombine.low %v1171_v60, %v1175_v0  ;;  %v1674_v59 = vld [vmem:[#allocation13 + $0x2388] sm:$0xff]  ;;  %v1139_v0 = vld [vmem:[#allocation13 + $0x12d0] sm:$0xff] }
 0x391   :  { %v7899_v58 = vpop.f32.mrf.mxu1  ;;  %8402 = vmatpush1.bf16.msra.mxu0 %v10475_v11  ;;  %8192 = vmatprep.subr.bf16.mxu1 %v11002_v13  ;;  %v1570_v11 = vld [vmem:[#allocation13 + $0x2048] sm:$0xff] }
 0x392   :  { %8403 = vmatprep.subr.bf16.mxu0 %v10468_v17  ;;  %v1574_v13 = vld [vmem:[#allocation13 + $0x2068] sm:$0xff]  ;;  %v1163_v17 = vld [vmem:[#allocation13 + $0x1390] sm:$0xff] }
 0x393   :  { %v10970_v22 = vcombine.high %v1570_v11, %v1574_v13  ;;  %v10564_v25 = vcombine.high %v1163_v17, %v1167_v19  ;;  %v1566_v58 = vld [vmem:[#allocation13 + $0x2028] sm:$0xff]  ;;  %v10969_v40 = vcombine.low %v1570_v11, %v1574_v13 }
 0x394   :  { %8193 = vmatpush1.bf16.msra.mxu1 %v11001_v29  ;;  %v1562_v29 = vld [vmem:[#allocation13 + $0x2008] sm:$0xff] }
 0x395   :  { %8404 = vmatpush1.bf16.msra.mxu0 %v10467_v32  ;;  %8194 = vmatprep.subr.bf16.mxu1 %v10994_v33  ;;  %v1155_v32 = vld [vmem:[#allocation13 + $0x1350] sm:$0xff]  ;;  %v10962_v15 = vcombine.high %v1562_v29, %v1566_v58  ;;  %v1678_v60 = vld [vmem:[#allocation13 + $0x23a8] sm:$0xff] }
 0x396   :  { %8405 = vmatprep.subr.bf16.mxu0 %v10460_v9  ;;  %v1159_v33 = vld [vmem:[#allocation13 + $0x1370] sm:$0xff]  ;;  %v10563_v9 = vcombine.low %v1163_v17, %v1167_v19  ;;  %v1666_v13 = vld [vmem:[#allocation13 + $0x2348] sm:$0xff] }
 0x397   :  { %v10556_v42 = vcombine.high %v1155_v32, %v1159_v33  ;;  %v1670_v17 = vld [vmem:[#allocation13 + $0x2368] sm:$0xff]  ;;  %v1131_v19 = vld [vmem:[#allocation13 + $0x1290] sm:$0xff] }
 0x398   :  { %8195 = vmatpush1.bf16.msra.mxu1 %v10993_v47  ;;  %v1151_v47 = vld [vmem:[#allocation13 + $0x1330] sm:$0xff] }
 0x399   :  { %8406 = vmatpush1.bf16.msra.mxu0 %v10459_v49  ;;  %8196 = vmatprep.subr.bf16.mxu1 %v10986_v53  ;;  %v10961_v49 = vcombine.low %v1562_v29, %v1566_v58  ;;  %v10555_v53 = vcombine.low %v1155_v32, %v1159_v33  ;;  %v10548_v52 = vcombine.high %v1147_v46, %v1151_v47  ;;  %v1658_v58 = vld [vmem:[#allocation13 + $0x2308] sm:$0xff]  ;;  %v1123_v33 = vld [vmem:[#allocation13 + $0x1250] sm:$0xff] }
 0x39a   :  { %8407 = vmatprep.subr.bf16.mxu0 %v10452_v54  ;;  %v11082_v54 = vcombine.high %v1682_v23, %v1686_v63  ;;  %v1662_v32 = vld [vmem:[#allocation13 + $0x2328] sm:$0xff] }
 0x39c   :  { %8197 = vmatpush1.bf16.msra.mxu1 %v10985_v2  ;;  %v1143_v2 = vld [vmem:[#allocation13 + $0x12f0] sm:$0xff] }
 0x39d   :  { %8408 = vmatpush1.bf16.msra.mxu0 %v10451_v6  ;;  %8198 = vmatprep.subr.bf16.mxu1 %v10978_v7  ;;  %v11081_v6 = vcombine.low %v1682_v23, %v1686_v63  ;;  %v10547_v7 = vcombine.low %v1147_v46, %v1151_v47  ;;  %v10540_v11 = vcombine.high %v1139_v0, %v1143_v2  ;;  %v1650_v63 = vld [vmem:[#allocation13 + $0x22c8] sm:$0xff]  ;;  %v1115_v47 = vld [vmem:[#allocation13 + $0x1210] sm:$0xff] }
 0x39e   :  { %8409 = vmatprep.subr.bf16.mxu0 %v10572_v8  ;;  %v11074_v8 = vcombine.high %v1674_v59, %v1678_v60  ;;  %v1654_v46 = vld [vmem:[#allocation13 + $0x22e8] sm:$0xff] }
 0x3a0   :  { %8199 = vmatpush1.bf16.msra.mxu1 %v10977_v20  ;;  %v1135_v20 = vld [vmem:[#allocation13 + $0x12b0] sm:$0xff] }
 0x3a1   :  { %8410 = vmatpush2.bf16.msra.mxu0 %v10571_v45  ;;  %8200 = vmatprep.subr.bf16.mxu1 %v10970_v22  ;;  %v11073_v45 = vcombine.low %v1674_v59, %v1678_v60  ;;  %v10539_v22 = vcombine.low %v1139_v0, %v1143_v2  ;;  %v10532_v29 = vcombine.high %v1131_v19, %v1135_v20  ;;  %v1642_v60 = vld [vmem:[#allocation13 + $0x2288] sm:$0xff]  ;;  %v1363_v2 = vld [vmem:[#allocation13 + $0x19d0] sm:$0xff] }
 0x3a2   :  { %8411 = vmatprep.subr.bf16.mxu0 %v10564_v25  ;;  %v11066_v25 = vcombine.high %v1666_v13, %v1670_v17  ;;  %v1646_v0 = vld [vmem:[#allocation13 + $0x22a8] sm:$0xff] }
 0x3a4   :  { %8201 = vmatpush1.bf16.msra.mxu1 %v10969_v40  ;;  %v1127_v40 = vld [vmem:[#allocation13 + $0x1270] sm:$0xff] }
 0x3a5   :  { %8412 = vmatpush2.bf16.msra.mxu0 %v10563_v9  ;;  %8202 = vmatprep.subr.bf16.mxu1 %v10962_v15  ;;  %v11065_v9 = vcombine.low %v1666_v13, %v1670_v17  ;;  %v10531_v15 = vcombine.low %v1131_v19, %v1135_v20  ;;  %v10524_v23 = vcombine.high %v1123_v33, %v1127_v40  ;;  %v1634_v17 = vld [vmem:[#allocation13 + $0x2248] sm:$0xff]  ;;  %v1355_v20 = vld [vmem:[#allocation13 + $0x1990] sm:$0xff] }
 0x3a6   :  { %8413 = vmatprep.subr.bf16.mxu0 %v10556_v42  ;;  %v11058_v42 = vcombine.high %v1658_v58, %v1662_v32  ;;  %v1638_v19 = vld [vmem:[#allocation13 + $0x2268] sm:$0xff] }
 0x3a8   :  { %8203 = vmatpush1.bf16.msra.mxu1 %v10961_v49  ;;  %v1119_v49 = vld [vmem:[#allocation13 + $0x1230] sm:$0xff] }
 0x3a9   :  { %8414 = vmatpush2.bf16.msra.mxu0 %v10555_v53  ;;  %8204 = vmatprep.subr.bf16.mxu1 %v11082_v54  ;;  %v11057_v53 = vcombine.low %v1658_v58, %v1662_v32  ;;  %v10523_v54 = vcombine.low %v1123_v33, %v1127_v40  ;;  %v10516_v59 = vcombine.high %v1115_v47, %v1119_v49  ;;  %v1701_v58 = vsub.s32 2, %v12027_v31  ;;  %v1626_v33 = vld [vmem:[#allocation13 + $0x2208] sm:$0xff] }
 0x3aa   :  { %8415 = vmatprep.subr.bf16.mxu0 %v10548_v52  ;;  %v11050_v52 = vcombine.high %v1650_v63, %v1654_v46  ;;  %v1630_v40 = vld [vmem:[#allocation13 + $0x2228] sm:$0xff] }
 0x3ac   :  { %8205 = vmatpush2.bf16.msra.mxu1 %v11081_v6  ;;  %v1367_v6 = vld [vmem:[#allocation13 + $0x19f0] sm:$0xff] }
 0x3ad   :  { %8416 = vmatpush2.bf16.msra.mxu0 %v10547_v7  ;;  %8206 = vmatprep.subr.bf16.mxu1 %v11074_v8  ;;  %v11049_v7 = vcombine.low %v1650_v63, %v1654_v46  ;;  %v10515_v8 = vcombine.low %v1115_v47, %v1119_v49  ;;  %v10764_v13 = vcombine.high %v1363_v2, %v1367_v6  ;;  %v11495_v47 = vld [vmem:[#allocation14] sm:$0xff] }
 0x3ae   :  { %8417 = vmatprep.subr.bf16.mxu0 %v10540_v11  ;;  %v11042_v11 = vcombine.high %v1642_v60, %v1646_v0  ;;  %v11026_v46 = vcombine.high %v1626_v33, %v1630_v40  ;;  %v1702_v49 = vrot.slane %v11495_v47, %v1701_v58 }
 0x3b0   :  { %8207 = vmatpush2.bf16.msra.mxu1 %v11073_v45  ;;  %v1359_v45 = vld [vmem:[#allocation13 + $0x19b0] sm:$0xff] }
 0x3b1   :  { %8418 = vmatpush2.bf16.msra.mxu0 %v10539_v22  ;;  %8208 = vmatprep.subr.bf16.mxu1 %v11066_v25  ;;  %v11041_v22 = vcombine.low %v1642_v60, %v1646_v0  ;;  %v10763_v25 = vcombine.low %v1363_v2, %v1367_v6  ;;  %v10756_v32 = vcombine.high %v1355_v20, %v1359_v45  ;;  %v1343_v60 = vld [vmem:[#allocation13 + $0x1930] sm:$0xff] }
 0x3b2   :  { %8419 = vmatprep.subr.bf16.mxu0 %v10532_v29  ;;  %v11034_v29 = vcombine.high %v1634_v17, %v1638_v19  ;;  %v10755_v63 = vcombine.low %v1355_v20, %v1359_v45  ;;  %v11025_v2 = vcombine.low %v1626_v33, %v1630_v40  ;;  %v1335_v20 = vld [vmem:[#allocation13 + $0x18f0] sm:$0xff] }
 0x3b3   :  { %v707_v33 = vld [vmem:[#allocation13 + $0x550] sm:$0xff] }
 0x3b4   :  { %8209 = vmatpush2.bf16.msra.mxu1 %v11065_v9  ;;  %v1347_v9 = vld [vmem:[#allocation13 + $0x1950] sm:$0xff] }
 0x3b5   :  { %8420 = vmatpush2.bf16.msra.mxu0 %v10531_v15  ;;  %8210 = vmatprep.subr.bf16.mxu1 %v11058_v42  ;;  %v1351_v15 = vld [vmem:[#allocation13 + $0x1970] sm:$0xff]  ;;  %v1705_v42 = vsub.s32 3, %v12027_v31 }
 0x3b6   :  { %8421 = vmatprep.subr.bf16.mxu0 %v10524_v23  ;;  %v11033_v23 = vcombine.low %v1634_v17, %v1638_v19  ;;  %v10747_v6 = vcombine.low %v1347_v9, %v1351_v15  ;;  %v719_v17 = vld [vmem:[#allocation13 + $0x5b0] sm:$0xff] }
 0x3b7   :  { %v1706_v0 = vrot.slane %v11495_v47, %v1705_v42  ;;  %v1331_v19 = vld [vmem:[#allocation13 + $0x18d0] sm:$0xff] }
 0x3b8   :  { %8211 = vmatpush2.bf16.msra.mxu1 %v11057_v53  ;;  %v10748_v53 = vcombine.high %v1347_v9, %v1351_v15  ;;  %v1323_v9 = vld [vmem:[#allocation13 + $0x1890] sm:$0xff] }
 0x3b9   :  { %8422 = vmatpush2.bf16.msra.mxu0 %v10523_v54  ;;  %8212 = vmatprep.subr.bf16.mxu1 %v11050_v52  ;;  %v723_v54 = vld [vmem:[#allocation13 + $0x5d0] sm:$0xff]  ;;  %v7897_v45 = vadd.f32 %v12101_v10, %v1706_v0 }
 0x3ba   :  { %8423 = vmatprep.subr.bf16.mxu0 %v10516_v59  ;;  %v727_v52 = vld [vmem:[#allocation13 + $0x5f0] sm:$0xff] }
 0x3bb   :  { %v1339_v59 = vld [vmem:[#allocation13 + $0x1910] sm:$0xff]  ;;  %v7938_v42 = vadd.f32 %v12077_v43, %v7897_v45 }
 0x3bc   :  { %8213 = vmatpush2.bf16.msra.mxu1 %v11049_v7  ;;  %v10124_v7 = vcombine.high %v723_v54, %v727_v52  ;;  %v1327_v15 = vld [vmem:[#allocation13 + $0x18b0] sm:$0xff] }
 0x3bd   :  { %8424 = vmatpush2.bf16.msra.mxu0 %v10515_v8  ;;  %8214 = vmatprep.subr.bf16.mxu1 %v11042_v11  ;;  %v7895_v8 = vadd.f32 %v12097_v4, %v1702_v49  ;;  %v10740_v11 = vcombine.high %v1339_v59, %v1343_v60  ;;  %v711_v4 = vld [vmem:[#allocation13 + $0x570] sm:$0xff] }
 0x3be   :  { %8475 = vmatprep.subr.bf16.mxu0 %v10764_v13  ;;  %v715_v13 = vld [vmem:[#allocation13 + $0x590] sm:$0xff] }
 0x3bf   :  { %v7936_v58 = vadd.f32 %v12073_v28, %v7895_v8  ;;  %v10731_v28 = vcombine.low %v1331_v19, %v1335_v20  ;;  %v1311_v45 = vld [vmem:[#allocation13 + $0x1830] sm:$0xff] }
 0x3c0   :  { %8215 = vmatpush2.bf16.msra.mxu1 %v11041_v22  ;;  %8426 = vmatmul.mubr.bf16.vlgmr.msra.gmra.mxu0 %v11971_v3  ;;  %v10123_v22 = vcombine.low %v723_v54, %v727_v52  ;;  %v12119_v47 = vpop.f32.mrf.mxu0  ;;  %v699_v54 = vld [vmem:[#allocation13 + $0x510] sm:$0xff] }
 0x3c1   :  { %8476 = vmatpush1.bf16.msra.mxu0 %v10763_v25  ;;  %8216 = vmatprep.subr.bf16.mxu1 %v11034_v29  ;;  %v10739_v25 = vcombine.low %v1339_v59, %v1343_v60  ;;  %v10116_v29 = vcombine.high %v715_v13, %v719_v17  ;;  %v703_v52 = vld [vmem:[#allocation13 + $0x530] sm:$0xff] }
 0x3c2   :  { %8477 = vmatprep.subr.bf16.mxu0 %v10756_v32  ;;  %8507 = vmatprep.mubr.bf16.mxu0 %v11973_v5  ;;  %v10732_v32 = vcombine.high %v1331_v19, %v1335_v20  ;;  %v1315_v59 = vld [vmem:[#allocation13 + $0x1850] sm:$0xff]  ;;  %v12123_v0 = vpop.f32.mrf.mxu0  ;;  %v10100_v8 = vcombine.high %v699_v54, %v703_v52 }
 0x3c3   :  { %v1319_v60 = vld [vmem:[#allocation13 + $0x1870] sm:$0xff] }
 0x3c4   :  { %8217 = vmatpush2.bf16.msra.mxu1 %v11033_v23  ;;  %v10115_v23 = vcombine.low %v715_v13, %v719_v17  ;;  %v10716_v13 = vcombine.high %v1315_v59, %v1319_v60  ;;  %v691_v17 = vld [vmem:[#allocation13 + $0x4d0] sm:$0xff] }
 0x3c5   :  { %8478 = vmatpush1.bf16.msra.mxu0 %v10755_v63  ;;  %8218 = vmatprep.subr.bf16.mxu1 %v11026_v46  ;;  %v10108_v46 = vcombine.high %v707_v33, %v711_v4  ;;  %v695_v19 = vld [vmem:[#allocation13 + $0x4f0] sm:$0xff] }
 0x3c6   :  { %8479 = vmatprep.subr.bf16.mxu0 %v10748_v53  ;;  %v10724_v53 = vcombine.high %v1323_v9, %v1327_v15  ;;  %v1307_v20 = vld [vmem:[#allocation13 + $0x1810] sm:$0xff] }
 0x3c8   :  { %8219 = vmatpush2.bf16.msra.mxu1 %v11025_v2  ;;  %v10107_v2 = vcombine.low %v707_v33, %v711_v4  ;;  %v683_v33 = vld [vmem:[#allocation13 + $0x490] sm:$0xff] }
 0x3c9   :  { %8480 = vmatpush1.bf16.msra.mxu0 %v10747_v6  ;;  %8270 = vmatprep.subr.bf16.mxu1 %v10124_v7  ;;  %v10723_v7 = vcombine.low %v1323_v9, %v1327_v15  ;;  %v687_v4 = vld [vmem:[#allocation13 + $0x4b0] sm:$0xff]  ;;  %v10091_v15 = vcombine.low %v691_v17, %v695_v19 }
 0x3ca   :  { %8481 = vmatprep.subr.bf16.mxu0 %v10740_v11  ;;  %v8185_v11 = vpop.f32.mrf.mxu0  ;;  %v1431_v9 = vld [vmem:[#allocation13 + $0x1bf0] sm:$0xff] }
 0x3cb   :  { %v7976_v40 = vpop.f32.mrf.mxu1  ;;  %8221 = vmatmul.mubr.bf16.vlgmr.msra.gmra.mxu1 %v11995_v1 }
 0x3cc   :  { %v12116_v10 = vadd.f32 %v7976_v40, %v7936_v58  ;;  %8271 = vmatpush1.bf16.msra.mxu1 %v10123_v22  ;;  %8302 = vmatprep.mubr.bf16.mxu1 %v11977_v30  ;;  %v8186_v22 = vpop.f32.mrf.mxu0  ;;  %v10092_v58 = vcombine.high %v691_v17, %v695_v19  ;;  %v1427_v40 = vld [vmem:[#allocation13 + $0x1bd0] sm:$0xff] }
 0x3cd   :  { %v7978_v63 = vpop.f32.mrf.mxu1  ;;  %8482 = vmatpush1.bf16.msra.mxu0 %v10739_v25  ;;  %8272 = vmatprep.subr.bf16.mxu1 %v10116_v29  ;;  %v10099_v25 = vcombine.low %v699_v54, %v703_v52  ;;  %v10715_v29 = vcombine.low %v1315_v59, %v1319_v60  ;;  %v1423_v54 = vld [vmem:[#allocation13 + $0x1bb0] sm:$0xff]  ;;  %v10083_v52 = vcombine.low %v683_v33, %v687_v4 }
 0x3ce   :  { %v12121_v49 = vadd.f32 %v7978_v63, %v7938_v42  ;;  %8483 = vmatprep.subr.bf16.mxu0 %v10732_v32  ;;  %v10708_v32 = vcombine.high %v1307_v20, %v1311_v45  ;;  %v10707_v42 = vcombine.low %v1307_v20, %v1311_v45  ;;  %v10828_v63 = vcombine.high %v1427_v40, %v1431_v9  ;;  %v787_v20 = vld [vmem:[#allocation13 + $0x7d0] sm:$0xff] }
 0x3cf   :  { %v7980_v43 = vpop.f32.mrf.mxu1  ;;  %v791_v45 = vld [vmem:[#allocation13 + $0x7f0] sm:$0xff] }
 0x3d0   :  { %8273 = vmatpush1.bf16.msra.mxu1 %v10115_v23  ;;  %v10084_v23 = vcombine.high %v683_v33, %v687_v4  ;;  %v10827_v43 = vcombine.low %v1427_v40, %v1431_v9  ;;  %v1403_v22 = vld [vmem:[#allocation13 + $0x1b10] sm:$0xff] }
 0x3d1   :  { %v7981_v6 = vpop.f32.mrf.mxu1  ;;  %8484 = vmatpush1.bf16.msra.mxu0 %v10731_v28  ;;  %8274 = vmatprep.subr.bf16.mxu1 %v10108_v46  ;;  %v675_v28 = vld [vmem:[#allocation13 + $0x450] sm:$0xff] }
 0x3d2   :  { %8485 = vmatprep.subr.bf16.mxu0 %v10724_v53  ;;  %v679_v46 = vld [vmem:[#allocation13 + $0x470] sm:$0xff] }
 0x3d3   :  { %v1419_v53 = vld [vmem:[#allocation13 + $0x1b90] sm:$0xff]  ;;  %v10076_v59 = vcombine.high %v675_v28, %v679_v46  ;;  %v10075_v11 = vcombine.low %v675_v28, %v679_v46 }
 0x3d4   :  { %8275 = vmatpush1.bf16.msra.mxu1 %v10107_v2  ;;  %v10820_v60 = vcombine.high %v1419_v53, %v1423_v54  ;;  %v667_v2 = vld [vmem:[#allocation13 + $0x410] sm:$0xff] }
 0x3d5   :  { %8486 = vmatpush1.bf16.msra.mxu0 %v10723_v7  ;;  %8276 = vmatprep.subr.bf16.mxu1 %v10100_v8  ;;  %v671_v6 = vld [vmem:[#allocation13 + $0x430] sm:$0xff] }
 0x3d6   :  { %8487 = vmatprep.subr.bf16.mxu0 %v10716_v13  ;;  %v1411_v7 = vld [vmem:[#allocation13 + $0x1b50] sm:$0xff]  ;;  %v10819_v13 = vcombine.low %v1419_v53, %v1423_v54  ;;  %v10068_v17 = vcombine.high %v667_v2, %v671_v6 }
 0x3d7   :  { %v1415_v8 = vld [vmem:[#allocation13 + $0x1b70] sm:$0xff] }
 0x3d8   :  { %8277 = vmatpush1.bf16.msra.mxu1 %v10099_v25  ;;  %v10812_v19 = vcombine.high %v1411_v7, %v1415_v8  ;;  %v1407_v25 = vld [vmem:[#allocation13 + $0x1b30] sm:$0xff] }
 0x3d9   :  { %8488 = vmatpush1.bf16.msra.mxu0 %v10715_v29  ;;  %8278 = vmatprep.subr.bf16.mxu1 %v10092_v58  ;;  %v10067_v29 = vcombine.low %v667_v2, %v671_v6  ;;  %v10811_v58 = vcombine.low %v1411_v7, %v1415_v8  ;;  %v10804_v33 = vcombine.high %v1403_v22, %v1407_v25  ;;  %v779_v4 = vld [vmem:[#allocation13 + $0x790] sm:$0xff] }
 0x3da   :  { %8489 = vmatprep.subr.bf16.mxu0 %v10708_v32  ;;  %v10188_v32 = vcombine.high %v787_v20, %v791_v45  ;;  %v783_v40 = vld [vmem:[#allocation13 + $0x7b0] sm:$0xff] }
 0x3db   :  { %v1395_v9 = vld [vmem:[#allocation13 + $0x1ad0] sm:$0xff] }
 0x3dc   :  { %8279 = vmatpush1.bf16.msra.mxu1 %v10091_v15  ;;  %v1399_v15 = vld [vmem:[#allocation13 + $0x1af0] sm:$0xff] }
 0x3dd   :  { %8490 = vmatpush1.bf16.msra.mxu0 %v10707_v42  ;;  %8280 = vmatprep.subr.bf16.mxu1 %v10084_v23  ;;  %v10187_v42 = vcombine.low %v787_v20, %v791_v45  ;;  %v10803_v23 = vcombine.low %v1403_v22, %v1407_v25  ;;  %v10796_v28 = vcombine.high %v1395_v9, %v1399_v15  ;;  %v771_v46 = vld [vmem:[#allocation13 + $0x750] sm:$0xff] }
 0x3de   :  { %8491 = vmatprep.subr.bf16.mxu0 %v10828_v63  ;;  %v10180_v63 = vcombine.high %v779_v4, %v783_v40  ;;  %v775_v53 = vld [vmem:[#allocation13 + $0x770] sm:$0xff] }
 0x3df   :  { %v1387_v54 = vld [vmem:[#allocation13 + $0x1a90] sm:$0xff] }
 0x3e0   :  { %8281 = vmatpush1.bf16.msra.mxu1 %v10083_v52  ;;  %v1391_v52 = vld [vmem:[#allocation13 + $0x1ab0] sm:$0xff] }
 0x3e1   :  { %8492 = vmatpush2.bf16.msra.mxu0 %v10827_v43  ;;  %8282 = vmatprep.subr.bf16.mxu1 %v10076_v59  ;;  %v10179_v43 = vcombine.low %v779_v4, %v783_v40  ;;  %v10795_v59 = vcombine.low %v1395_v9, %v1399_v15  ;;  %v10788_v2 = vcombine.high %v1387_v54, %v1391_v52  ;;  %v763_v6 = vld [vmem:[#allocation13 + $0x710] sm:$0xff] }
 0x3e2   :  { %8493 = vmatprep.subr.bf16.mxu0 %v10820_v60  ;;  %v10172_v60 = vcombine.high %v771_v46, %v775_v53  ;;  %v767_v7 = vld [vmem:[#allocation13 + $0x730] sm:$0xff] }
 0x3e3   :  { %v1379_v8 = vld [vmem:[#allocation13 + $0x1a50] sm:$0xff] }
 0x3e4   :  { %8283 = vmatpush1.bf16.msra.mxu1 %v10075_v11  ;;  %v1383_v11 = vld [vmem:[#allocation13 + $0x1a70] sm:$0xff] }
 0x3e5   :  { %8494 = vmatpush2.bf16.msra.mxu0 %v10819_v13  ;;  %8284 = vmatprep.subr.bf16.mxu1 %v10068_v17  ;;  %v10171_v13 = vcombine.low %v771_v46, %v775_v53  ;;  %v10787_v17 = vcombine.low %v1387_v54, %v1391_v52  ;;  %v10780_v20 = vcombine.high %v1379_v8, %v1383_v11  ;;  %v755_v45 = vld [vmem:[#allocation13 + $0x6d0] sm:$0xff] }
 0x3e6   :  { %8495 = vmatprep.subr.bf16.mxu0 %v10812_v19  ;;  %v10164_v19 = vcombine.high %v763_v6, %v767_v7  ;;  %v759_v22 = vld [vmem:[#allocation13 + $0x6f0] sm:$0xff] }
 0x3e7   :  { %v1371_v25 = vld [vmem:[#allocation13 + $0x1a10] sm:$0xff] }
 0x3e8   :  { %8285 = vmatpush1.bf16.msra.mxu1 %v10067_v29  ;;  %v1375_v29 = vld [vmem:[#allocation13 + $0x1a30] sm:$0xff] }
 0x3e9   :  { %8496 = vmatpush2.bf16.msra.mxu0 %v10811_v58  ;;  %8286 = vmatprep.subr.bf16.mxu1 %v10188_v32  ;;  %v10163_v58 = vcombine.low %v763_v6, %v767_v7  ;;  %v10779_v32 = vcombine.low %v1379_v8, %v1383_v11  ;;  %v10772_v4 = vcombine.high %v1371_v25, %v1375_v29  ;;  %v747_v40 = vld [vmem:[#allocation13 + $0x690] sm:$0xff] }
 0x3ea   :  { %8497 = vmatprep.subr.bf16.mxu0 %v10804_v33  ;;  %v10156_v33 = vcombine.high %v755_v45, %v759_v22  ;;  %v751_v9 = vld [vmem:[#allocation13 + $0x6b0] sm:$0xff] }
 0x3eb   :  { %v1619_v15 = vld [vmem:[#allocation13 + $0x21d0] sm:$0xff] }
 0x3ec   :  { %8287 = vmatpush2.bf16.msra.mxu1 %v10187_v42  ;;  %v1623_v42 = vld [vmem:[#allocation13 + $0x21f0] sm:$0xff] }
 0x3ed   :  { %8498 = vmatpush2.bf16.msra.mxu0 %v10803_v23  ;;  %8288 = vmatprep.subr.bf16.mxu1 %v10180_v63  ;;  %v10155_v23 = vcombine.low %v755_v45, %v759_v22  ;;  %v10771_v63 = vcombine.low %v1371_v25, %v1375_v29  ;;  %v11020_v46 = vcombine.high %v1619_v15, %v1623_v42  ;;  %v739_v53 = vld [vmem:[#allocation13 + $0x650] sm:$0xff] }
 0x3ee   :  { %8499 = vmatprep.subr.bf16.mxu0 %v10796_v28  ;;  %v10148_v28 = vcombine.high %v747_v40, %v751_v9  ;;  %v743_v54 = vld [vmem:[#allocation13 + $0x670] sm:$0xff] }
 0x3ef   :  { %v1611_v52 = vld [vmem:[#allocation13 + $0x2190] sm:$0xff] }
 0x3f0   :  { %8289 = vmatpush2.bf16.msra.mxu1 %v10179_v43  ;;  %v1615_v43 = vld [vmem:[#allocation13 + $0x21b0] sm:$0xff] }
 0x3f1   :  { %8500 = vmatpush2.bf16.msra.mxu0 %v10795_v59  ;;  %8290 = vmatprep.subr.bf16.mxu1 %v10172_v60  ;;  %v10147_v59 = vcombine.low %v747_v40, %v751_v9  ;;  %v11019_v60 = vcombine.low %v1619_v15, %v1623_v42  ;;  %v11012_v6 = vcombine.high %v1611_v52, %v1615_v43  ;;  %v731_v7 = vld [vmem:[#allocation13 + $0x610] sm:$0xff] }
 0x3f2   :  { %8501 = vmatprep.subr.bf16.mxu0 %v10788_v2  ;;  %v10140_v2 = vcombine.high %v739_v53, %v743_v54  ;;  %v735_v8 = vld [vmem:[#allocation13 + $0x630] sm:$0xff] }
 0x3f3   :  { %v1603_v11 = vld [vmem:[#allocation13 + $0x2150] sm:$0xff] }
 0x3f4   :  { %8291 = vmatpush2.bf16.msra.mxu1 %v10171_v13  ;;  %v1607_v13 = vld [vmem:[#allocation13 + $0x2170] sm:$0xff] }
 0x3f5   :  { %8502 = vmatpush2.bf16.msra.mxu0 %v10787_v17  ;;  %8292 = vmatprep.subr.bf16.mxu1 %v10164_v19  ;;  %v10139_v17 = vcombine.low %v739_v53, %v743_v54  ;;  %v11011_v19 = vcombine.low %v1611_v52, %v1615_v43  ;;  %v11004_v45 = vcombine.high %v1603_v11, %v1607_v13  ;;  %v979_v22 = vld [vmem:[#allocation13 + $0xdd0] sm:$0xff] }
 0x3f6   :  { %8503 = vmatprep.subr.bf16.mxu0 %v10780_v20  ;;  %v10132_v20 = vcombine.high %v731_v7, %v735_v8  ;;  %v983_v25 = vld [vmem:[#allocation13 + $0xdf0] sm:$0xff]  ;;  %v8018_v53 = vadd.f32 %v12089_v21, %v12116_v10 }
 0x3f7   :  { %v1595_v29 = vld [vmem:[#allocation13 + $0x2110] sm:$0xff] }
 0x3f8   :  { %8293 = vmatpush2.bf16.msra.mxu1 %v10163_v58  ;;  %v1599_v58 = vld [vmem:[#allocation13 + $0x2130] sm:$0xff] }
 0x3f9   :  { %8504 = vmatpush2.bf16.msra.mxu0 %v10779_v32  ;;  %8294 = vmatprep.subr.bf16.mxu1 %v10156_v33  ;;  %v10131_v32 = vcombine.low %v731_v7, %v735_v8  ;;  %v11003_v33 = vcombine.low %v1603_v11, %v1607_v13  ;;  %v10996_v40 = vcombine.high %v1595_v29, %v1599_v58  ;;  %v971_v9 = vld [vmem:[#allocation13 + $0xd90] sm:$0xff] }
 0x3fa   :  { %8505 = vmatprep.subr.bf16.mxu0 %v10772_v4  ;;  %v10380_v4 = vcombine.high %v979_v22, %v983_v25  ;;  %v975_v15 = vld [vmem:[#allocation13 + $0xdb0] sm:$0xff] }
 0x3fb   :  { %v1587_v42 = vld [vmem:[#allocation13 + $0x20d0] sm:$0xff]  ;;  %v10371_v8 = vcombine.low %v971_v9, %v975_v15 }
 0x3fc   :  { %8295 = vmatpush2.bf16.msra.mxu1 %v10155_v23  ;;  %v1591_v23 = vld [vmem:[#allocation13 + $0x20f0] sm:$0xff] }
 0x3fd   :  { %8506 = vmatpush2.bf16.msra.mxu0 %v10771_v63  ;;  %8296 = vmatprep.subr.bf16.mxu1 %v10148_v28  ;;  %v10379_v63 = vcombine.low %v979_v22, %v983_v25  ;;  %v10995_v28 = vcombine.low %v1595_v29, %v1599_v58  ;;  %v10988_v54 = vcombine.high %v1587_v42, %v1591_v23  ;;  %v963_v52 = vld [vmem:[#allocation13 + $0xd50] sm:$0xff] }
 0x3fe   :  { %8557 = vmatprep.subr.bf16.mxu0 %v11020_v46  ;;  %v10372_v46 = vcombine.high %v971_v9, %v975_v15  ;;  %v967_v43 = vld [vmem:[#allocation13 + $0xd70] sm:$0xff]  ;;  %v10987_v21 = vcombine.low %v1587_v42, %v1591_v23 }
 0x3ff   :  { %v10364_v10 = vcombine.high %v963_v52, %v967_v43  ;;  %v1571_v22 = vld [vmem:[#allocation13 + $0x2050] sm:$0xff] }
 0x400   :  { %8297 = vmatpush2.bf16.msra.mxu1 %v10147_v59  ;;  %8508 = vmatmul.mubr.bf16.vlgmr.msra.gmra.mxu0 %v11983_v26  ;;  %v1567_v9 = vld [vmem:[#allocation13 + $0x2030] sm:$0xff] }
 0x401   :  { %8558 = vmatpush1.bf16.msra.mxu0 %v11019_v60  ;;  %8298 = vmatprep.subr.bf16.mxu1 %v10140_v2  ;;  %v1579_v60 = vld [vmem:[#allocation13 + $0x2090] sm:$0xff] }
 0x402   :  { %8559 = vmatprep.subr.bf16.mxu0 %v11012_v6  ;;  %8589 = vmatprep.mubr.bf16.mxu0 %v11985_v34  ;;  %v1583_v2 = vld [vmem:[#allocation13 + $0x20b0] sm:$0xff]  ;;  %v8020_v6 = vadd.f32 %v12093_v57, %v12121_v49  ;;  %v10363_v49 = vcombine.low %v963_v52, %v967_v43 }
 0x403   :  { %v1575_v57 = vld [vmem:[#allocation13 + $0x2070] sm:$0xff]  ;;  %v10979_v29 = vcombine.low %v1579_v60, %v1583_v2 }
 0x404   :  { %8299 = vmatpush2.bf16.msra.mxu1 %v10139_v17  ;;  %v10980_v17 = vcombine.high %v1579_v60, %v1583_v2  ;;  %v10971_v42 = vcombine.low %v1571_v22, %v1575_v57  ;;  %v931_v2 = vld [vmem:[#allocation13 + $0xc50] sm:$0xff] }
 0x405   :  { %8560 = vmatpush1.bf16.msra.mxu0 %v11011_v19  ;;  %8300 = vmatprep.subr.bf16.mxu1 %v10132_v20  ;;  %v955_v19 = vld [vmem:[#allocation13 + $0xd10] sm:$0xff] }
 0x406   :  { %8561 = vmatprep.subr.bf16.mxu0 %v11004_v45  ;;  %v959_v20 = vld [vmem:[#allocation13 + $0xd30] sm:$0xff] }
 0x407   :  { %v10356_v58 = vcombine.high %v955_v19, %v959_v20  ;;  %v10355_v15 = vcombine.low %v955_v19, %v959_v20  ;;  %v923_v20 = vld [vmem:[#allocation13 + $0xc10] sm:$0xff] }
 0x408   :  { %8301 = vmatpush2.bf16.msra.mxu1 %v10131_v32  ;;  %v10972_v32 = vcombine.high %v1571_v22, %v1575_v57  ;;  %v1667_v22 = vld [vmem:[#allocation13 + $0x2350] sm:$0xff] }
 0x409   :  { %8562 = vmatpush1.bf16.msra.mxu0 %v11003_v33  ;;  %8352 = vmatprep.subr.bf16.mxu1 %v10380_v4  ;;  %v947_v33 = vld [vmem:[#allocation13 + $0xcd0] sm:$0xff] }
 0x40a   :  { %8563 = vmatprep.subr.bf16.mxu0 %v10996_v40  ;;  %v951_v4 = vld [vmem:[#allocation13 + $0xcf0] sm:$0xff] }
 0x40b   :  { %v8058_v59 = vpop.f32.mrf.mxu1  ;;  %8303 = vmatmul.mubr.bf16.vlgmr.msra.gmra.mxu1 %v11989_v56  ;;  %v1563_v40 = vld [vmem:[#allocation13 + $0x2010] sm:$0xff]  ;;  %v10348_v23 = vcombine.high %v947_v33, %v951_v4  ;;  %v10347_v52 = vcombine.low %v947_v33, %v951_v4 }
 0x40c   :  { %v12132_v7 = vadd.f32 %v8058_v59, %v8018_v53  ;;  %8353 = vmatpush1.bf16.msra.mxu1 %v10379_v63  ;;  %8384 = vmatprep.mubr.bf16.mxu1 %v11991_v61  ;;  %v10964_v63 = vcombine.high %v1563_v40, %v1567_v9  ;;  %v1683_v53 = vld [vmem:[#allocation13 + $0x23d0] sm:$0xff]  ;;  %v10963_v43 = vcombine.low %v1563_v40, %v1567_v9 }
 0x40d   :  { %v8060_v11 = vpop.f32.mrf.mxu1  ;;  %8564 = vmatpush1.bf16.msra.mxu0 %v10995_v28  ;;  %8354 = vmatprep.subr.bf16.mxu1 %v10372_v46  ;;  %v939_v28 = vld [vmem:[#allocation13 + $0xc90] sm:$0xff] }
 0x40e   :  { %v12135_v13 = vadd.f32 %v8060_v11, %v8020_v6  ;;  %8565 = vmatprep.subr.bf16.mxu0 %v10988_v54  ;;  %v943_v46 = vld [vmem:[#allocation13 + $0xcb0] sm:$0xff] }
 0x40f   :  { %v8062_v45 = vpop.f32.mrf.mxu1  ;;  %v1687_v54 = vld [vmem:[#allocation13 + $0x23f0] sm:$0xff]  ;;  %v10340_v59 = vcombine.high %v939_v28, %v943_v46 }
 0x410   :  { %8355 = vmatpush1.bf16.msra.mxu1 %v10371_v8  ;;  %v11084_v60 = vcombine.high %v1683_v53, %v1687_v54  ;;  %v935_v6 = vld [vmem:[#allocation13 + $0xc70] sm:$0xff] }
 0x411   :  { %v8063_v25 = vpop.f32.mrf.mxu1  ;;  %8566 = vmatpush1.bf16.msra.mxu0 %v10987_v21  ;;  %8356 = vmatprep.subr.bf16.mxu1 %v10364_v10  ;;  %v1675_v8 = vld [vmem:[#allocation13 + $0x2390] sm:$0xff]  ;;  %v10339_v21 = vcombine.low %v939_v28, %v943_v46  ;;  %v11083_v10 = vcombine.low %v1683_v53, %v1687_v54 }
 0x412   :  { %8567 = vmatprep.subr.bf16.mxu0 %v10980_v17  ;;  %v1679_v11 = vld [vmem:[#allocation13 + $0x23b0] sm:$0xff]  ;;  %v10332_v17 = vcombine.high %v931_v2, %v935_v6 }
 0x413   :  { %v11076_v19 = vcombine.high %v1675_v8, %v1679_v11  ;;  %v927_v45 = vld [vmem:[#allocation13 + $0xc30] sm:$0xff]  ;;  %v11075_v25 = vcombine.low %v1675_v8, %v1679_v11 }
 0x414   :  { %8357 = vmatpush1.bf16.msra.mxu1 %v10363_v49  ;;  %v1671_v57 = vld [vmem:[#allocation13 + $0x2370] sm:$0xff]  ;;  %v10331_v49 = vcombine.low %v931_v2, %v935_v6  ;;  %v10323_v9 = vcombine.low %v923_v20, %v927_v45 }
 0x415   :  { %8568 = vmatpush1.bf16.msra.mxu0 %v10979_v29  ;;  %8358 = vmatprep.subr.bf16.mxu1 %v10356_v58  ;;  %v10324_v29 = vcombine.high %v923_v20, %v927_v45  ;;  %v11068_v58 = vcombine.high %v1667_v22, %v1671_v57  ;;  %v1047_v33 = vld [vmem:[#allocation13 + $0xff0] sm:$0xff] }
 0x416   :  { %8569 = vmatprep.subr.bf16.mxu0 %v10972_v32  ;;  %v1043_v32 = vld [vmem:[#allocation13 + $0xfd0] sm:$0xff] }
 0x417   :  { %v1659_v4 = vld [vmem:[#allocation13 + $0x2310] sm:$0xff]  ;;  %v10443_v54 = vcombine.low %v1043_v32, %v1047_v33 }
 0x418   :  { %8359 = vmatpush1.bf16.msra.mxu1 %v10355_v15  ;;  %v1663_v40 = vld [vmem:[#allocation13 + $0x2330] sm:$0xff]  ;;  %v11067_v15 = vcombine.low %v1667_v22, %v1671_v57 }
 0x419   :  { %8570 = vmatpush1.bf16.msra.mxu0 %v10971_v42  ;;  %8360 = vmatprep.subr.bf16.mxu1 %v10348_v23  ;;  %v10444_v42 = vcombine.high %v1043_v32, %v1047_v33  ;;  %v11060_v23 = vcombine.high %v1659_v4, %v1663_v40  ;;  %v1039_v28 = vld [vmem:[#allocation13 + $0xfb0] sm:$0xff] }
 0x41a   :  { %8571 = vmatprep.subr.bf16.mxu0 %v10964_v63  ;;  %v1035_v63 = vld [vmem:[#allocation13 + $0xf90] sm:$0xff] }
 0x41b   :  { %v1651_v46 = vld [vmem:[#allocation13 + $0x22d0] sm:$0xff]  ;;  %v10435_v11 = vcombine.low %v1035_v63, %v1039_v28 }
 0x41c   :  { %8361 = vmatpush1.bf16.msra.mxu1 %v10347_v52  ;;  %v1655_v53 = vld [vmem:[#allocation13 + $0x22f0] sm:$0xff]  ;;  %v11059_v52 = vcombine.low %v1659_v4, %v1663_v40 }
 0x41d   :  { %8572 = vmatpush1.bf16.msra.mxu0 %v10963_v43  ;;  %8362 = vmatprep.subr.bf16.mxu1 %v10340_v59  ;;  %v10436_v43 = vcombine.high %v1035_v63, %v1039_v28  ;;  %v11052_v59 = vcombine.high %v1651_v46, %v1655_v53  ;;  %v1031_v2 = vld [vmem:[#allocation13 + $0xf70] sm:$0xff]  ;;  %v724_v28 = vld [vmem:[#allocation13 + $0x5d8] sm:$0xff] }
 0x41e   :  { %8573 = vmatprep.subr.bf16.mxu0 %v11084_v60  ;;  %v1027_v60 = vld [vmem:[#allocation13 + $0xf50] sm:$0xff] }
 0x41f   :  { %v1643_v6 = vld [vmem:[#allocation13 + $0x2290] sm:$0xff]  ;;  %v10427_v57 = vcombine.low %v1027_v60, %v1031_v2 }
 0x420   :  { %8363 = vmatpush1.bf16.msra.mxu1 %v10339_v21  ;;  %v1647_v8 = vld [vmem:[#allocation13 + $0x22b0] sm:$0xff]  ;;  %v11051_v21 = vcombine.low %v1651_v46, %v1655_v53  ;;  %v728_v46 = vld [vmem:[#allocation13 + $0x5f8] sm:$0xff] }
 0x421   :  { %8574 = vmatpush2.bf16.msra.mxu0 %v11083_v10  ;;  %8364 = vmatprep.subr.bf16.mxu1 %v10332_v17  ;;  %v10428_v10 = vcombine.high %v1027_v60, %v1031_v2  ;;  %v11044_v17 = vcombine.high %v1643_v6, %v1647_v8  ;;  %v1023_v20 = vld [vmem:[#allocation13 + $0xf30] sm:$0xff]  ;;  %v716_v2 = vld [vmem:[#allocation13 + $0x598] sm:$0xff] }
 0x422   :  { %8575 = vmatprep.subr.bf16.mxu0 %v11076_v19  ;;  %v1019_v19 = vld [vmem:[#allocation13 + $0xf10] sm:$0xff] }
 0x423   :  { %v1635_v45 = vld [vmem:[#allocation13 + $0x2250] sm:$0xff]  ;;  %v10419_v40 = vcombine.low %v1019_v19, %v1023_v20 }
 0x424   :  { %8365 = vmatpush1.bf16.msra.mxu1 %v10331_v49  ;;  %v1639_v22 = vld [vmem:[#allocation13 + $0x2270] sm:$0xff]  ;;  %v11043_v49 = vcombine.low %v1643_v6, %v1647_v8  ;;  %v720_v6 = vld [vmem:[#allocation13 + $0x5b8] sm:$0xff] }
 0x425   :  { %8576 = vmatpush2.bf16.msra.mxu0 %v11075_v25  ;;  %8366 = vmatprep.subr.bf16.mxu1 %v10324_v29  ;;  %v10420_v25 = vcombine.high %v1019_v19, %v1023_v20  ;;  %v11036_v29 = vcombine.high %v1635_v45, %v1639_v22  ;;  %v1015_v32 = vld [vmem:[#allocation13 + $0xef0] sm:$0xff]  ;;  %v708_v20 = vld [vmem:[#allocation13 + $0x558] sm:$0xff] }
 0x426   :  { %8577 = vmatprep.subr.bf16.mxu0 %v11068_v58  ;;  %v1011_v58 = vld [vmem:[#allocation13 + $0xed0] sm:$0xff] }
 0x427   :  { %v1627_v33 = vld [vmem:[#allocation13 + $0x2210] sm:$0xff]  ;;  %v10411_v53 = vcombine.low %v1011_v58, %v1015_v32 }
 0x428   :  { %8367 = vmatpush1.bf16.msra.mxu1 %v10323_v9  ;;  %v1631_v4 = vld [vmem:[#allocation13 + $0x2230] sm:$0xff]  ;;  %v11035_v9 = vcombine.low %v1635_v45, %v1639_v22  ;;  %v712_v45 = vld [vmem:[#allocation13 + $0x578] sm:$0xff] }
 0x429   :  { %8578 = vmatpush2.bf16.msra.mxu0 %v11067_v15  ;;  %8368 = vmatprep.subr.bf16.mxu1 %v10444_v42  ;;  %v10412_v15 = vcombine.high %v1011_v58, %v1015_v32  ;;  %v11028_v42 = vcombine.high %v1627_v33, %v1631_v4  ;;  %v1007_v63 = vld [vmem:[#allocation13 + $0xeb0] sm:$0xff] }
 0x42a   :  { %8579 = vmatprep.subr.bf16.mxu0 %v11060_v23  ;;  %v1003_v23 = vld [vmem:[#allocation13 + $0xe90] sm:$0xff] }
 0x42b   :  { %v999_v60 = vld [vmem:[#allocation13 + $0xe70] sm:$0xff]  ;;  %v10403_v8 = vcombine.low %v1003_v23, %v1007_v63 }
 0x42c   :  { %8369 = vmatpush2.bf16.msra.mxu1 %v10443_v54  ;;  %v11027_v54 = vcombine.low %v1627_v33, %v1631_v4  ;;  %v991_v19 = vld [vmem:[#allocation13 + $0xe30] sm:$0xff]  ;;  %v700_v33 = vld [vmem:[#allocation13 + $0x518] sm:$0xff] }
 0x42d   :  { %8580 = vmatpush2.bf16.msra.mxu0 %v11059_v52  ;;  %8370 = vmatprep.subr.bf16.mxu1 %v10436_v43  ;;  %v10404_v52 = vcombine.high %v1003_v23, %v1007_v63  ;;  %v10126_v43 = vcombine.high %v724_v28, %v728_v46  ;;  %v1235_v58 = vld [vmem:[#allocation13 + $0x15d0] sm:$0xff]  ;;  %v704_v4 = vld [vmem:[#allocation13 + $0x538] sm:$0xff] }
 0x42e   :  { %8581 = vmatprep.subr.bf16.mxu0 %v11052_v59  ;;  %v995_v59 = vld [vmem:[#allocation13 + $0xe50] sm:$0xff]  ;;  %v10102_v23 = vcombine.high %v700_v33, %v704_v4 }
 0x42f   :  { %v10395_v22 = vcombine.low %v995_v59, %v999_v60  ;;  %v1239_v32 = vld [vmem:[#allocation13 + $0x15f0] sm:$0xff] }
 0x430   :  { %8371 = vmatpush2.bf16.msra.mxu1 %v10435_v11  ;;  %v10125_v11 = vcombine.low %v724_v28, %v728_v46  ;;  %v1227_v63 = vld [vmem:[#allocation13 + $0x1590] sm:$0xff] }
 0x431   :  { %8582 = vmatpush2.bf16.msra.mxu0 %v11051_v21  ;;  %8372 = vmatprep.subr.bf16.mxu1 %v10428_v10  ;;  %v10396_v21 = vcombine.high %v995_v59, %v999_v60  ;;  %v10118_v10 = vcombine.high %v716_v2, %v720_v6  ;;  %v1231_v28 = vld [vmem:[#allocation13 + $0x15b0] sm:$0xff]  ;;  %v8100_v60 = vadd.f32 %v12103_v14, %v12132_v7 }
 0x432   :  { %8583 = vmatprep.subr.bf16.mxu0 %v11044_v17  ;;  %v987_v17 = vld [vmem:[#allocation13 + $0xe10] sm:$0xff]  ;;  %v10628_v59 = vcombine.high %v1227_v63, %v1231_v28 }
 0x434   :  { %8373 = vmatpush2.bf16.msra.mxu1 %v10427_v57  ;;  %v10117_v57 = vcombine.low %v716_v2, %v720_v6  ;;  %v1219_v6 = vld [vmem:[#allocation13 + $0x1550] sm:$0xff] }
 0x435   :  { %8584 = vmatpush2.bf16.msra.mxu0 %v11043_v49  ;;  %8374 = vmatprep.subr.bf16.mxu1 %v10420_v25  ;;  %v10388_v49 = vcombine.high %v987_v17, %v991_v19  ;;  %v12138_v25 = vpop.f32.mrf.mxu0 }
 0x436   :  { %8585 = vmatprep.subr.bf16.mxu0 %v11036_v29  ;;  %v10110_v29 = vcombine.high %v708_v20, %v712_v45 }
 0x438   :  { %8375 = vmatpush2.bf16.msra.mxu1 %v10419_v40  ;;  %v10387_v40 = vcombine.low %v987_v17, %v991_v19  ;;  %v8102_v17 = vadd.f32 %v12105_v62, %v12135_v13  ;;  %v676_v13 = vld [vmem:[#allocation13 + $0x458] sm:$0xff] }
 0x439   :  { %8586 = vmatpush2.bf16.msra.mxu0 %v11035_v9  ;;  %8376 = vmatprep.subr.bf16.mxu1 %v10412_v15  ;;  %v12141_v9 = vpop.f32.mrf.mxu0  ;;  %v10109_v15 = vcombine.low %v708_v20, %v712_v45  ;;  %v10627_v20 = vcombine.low %v1227_v63, %v1231_v28  ;;  %v1203_v28 = vld [vmem:[#allocation13 + $0x14d0] sm:$0xff] }
 0x43a   :  { %8587 = vmatprep.subr.bf16.mxu0 %v11028_v42  ;;  %v10636_v42 = vcombine.high %v1235_v58, %v1239_v32 }
 0x43b   :  { %v8267_v46 = vpop.f32.mrf.mxu0 }
 0x43c   :  { %8377 = vmatpush2.bf16.msra.mxu1 %v10411_v53  ;;  %v692_v53 = vld [vmem:[#allocation13 + $0x4d8] sm:$0xff]  ;;  %v1207_v46 = vld [vmem:[#allocation13 + $0x14f0] sm:$0xff] }
 0x43d   :  { %8588 = vmatpush2.bf16.msra.mxu0 %v11027_v54  ;;  %8378 = vmatprep.subr.bf16.mxu1 %v10404_v52  ;;  %v696_v54 = vld [vmem:[#allocation13 + $0x4f8] sm:$0xff]  ;;  %v10635_v52 = vcombine.low %v1235_v58, %v1239_v32  ;;  %v1215_v58 = vld [vmem:[#allocation13 + $0x1530] sm:$0xff] }
 0x43e   :  { %8639 = vmatprep.subr.bf16.mxu0 %v10126_v43  ;;  %v10101_v43 = vcombine.low %v700_v33, %v704_v4  ;;  %v10094_v2 = vcombine.high %v692_v53, %v696_v54  ;;  %v10093_v14 = vcombine.low %v692_v53, %v696_v54  ;;  %v680_v32 = vld [vmem:[#allocation13 + $0x478] sm:$0xff] }
 0x43f   :  { %v10078_v63 = vcombine.high %v676_v13, %v680_v32  ;;  %v668_v53 = vld [vmem:[#allocation13 + $0x418] sm:$0xff] }
 0x440   :  { %8379 = vmatpush2.bf16.msra.mxu1 %v10403_v8  ;;  %8590 = vmatmul.mubr.bf16.vlgmr.msra.gmra.mxu0 %v11995_v1  ;;  %v1223_v8 = vld [vmem:[#allocation13 + $0x1570] sm:$0xff]  ;;  %v672_v54 = vld [vmem:[#allocation13 + $0x438] sm:$0xff] }
 0x441   :  { %8640 = vmatpush1.bf16.msra.mxu0 %v10125_v11  ;;  %8380 = vmatprep.subr.bf16.mxu1 %v10396_v21  ;;  %v684_v21 = vld [vmem:[#allocation13 + $0x498] sm:$0xff]  ;;  %v10620_v7 = vcombine.high %v1219_v6, %v1223_v8  ;;  %v10619_v4 = vcombine.low %v1219_v6, %v1223_v8  ;;  %v1199_v6 = vld [vmem:[#allocation13 + $0x14b0] sm:$0xff] }
 0x442   :  { %8641 = vmatprep.subr.bf16.mxu0 %v10118_v10  ;;  %8671 = vmatprep.mubr.bf16.mxu0 %v11977_v30  ;;  %v8268_v30 = vpop.f32.mrf.mxu0  ;;  %v688_v10 = vld [vmem:[#allocation13 + $0x4b8] sm:$0xff] }
 0x443   :  { %v788_v8 = vld [vmem:[#allocation13 + $0x7d8] sm:$0xff] }
 0x444   :  { %8381 = vmatpush2.bf16.msra.mxu1 %v10395_v22  ;;  %v12151_v22 = vpop.f32.mrf.mxu0 }
 0x445   :  { %8642 = vmatpush1.bf16.msra.mxu0 %v10117_v57  ;;  %8382 = vmatprep.subr.bf16.mxu1 %v10388_v49  ;;  %v10086_v49 = vcombine.high %v684_v21, %v688_v10 }
 0x446   :  { %8643 = vmatprep.subr.bf16.mxu0 %v10110_v29  ;;  %v1211_v29 = vld [vmem:[#allocation13 + $0x1510] sm:$0xff]  ;;  %v12155_v33 = vpop.f32.mrf.mxu0 }
 0x447   :  { %v10611_v30 = vcombine.low %v1211_v29, %v1215_v58 }
 0x448   :  { %8383 = vmatpush2.bf16.msra.mxu1 %v10387_v40 }
 0x449   :  { %8644 = vmatpush1.bf16.msra.mxu0 %v10109_v15  ;;  %8434 = vmatprep.subr.bf16.mxu1 %v10636_v42  ;;  %v10085_v15 = vcombine.low %v684_v21, %v688_v10  ;;  %v10612_v42 = vcombine.high %v1211_v29, %v1215_v58  ;;  %v10603_v21 = vcombine.low %v1203_v28, %v1207_v46 }
 0x44a   :  { %8645 = vmatprep.subr.bf16.mxu0 %v10102_v23  ;;  %v8349_v23 = vpop.f32.mrf.mxu0  ;;  %v10069_v10 = vcombine.low %v668_v53, %v672_v54 }
 0x44b   :  { %v8140_v11 = vpop.f32.mrf.mxu1  ;;  %8385 = vmatmul.mubr.bf16.vlgmr.msra.gmra.mxu1 %v12003_v35 }
 0x44c   :  { %v12148_v19 = vadd.f32 %v8140_v11, %v8100_v60  ;;  %8435 = vmatpush1.bf16.msra.mxu1 %v10635_v52  ;;  %8466 = vmatprep.mubr.bf16.mxu1 %v12005_v41  ;;  %v8350_v52 = vpop.f32.mrf.mxu0  ;;  %v10070_v60 = vcombine.high %v668_v53, %v672_v54  ;;  %v792_v11 = vld [vmem:[#allocation13 + $0x7f8] sm:$0xff]  ;;  %v1303_v53 = vld [vmem:[#allocation13 + $0x17f0] sm:$0xff] }
 0x44d   :  { %v8142_v45 = vpop.f32.mrf.mxu1  ;;  %8646 = vmatpush1.bf16.msra.mxu0 %v10101_v43  ;;  %8436 = vmatprep.subr.bf16.mxu1 %v10628_v59  ;;  %v10077_v43 = vcombine.low %v676_v13, %v680_v32  ;;  %v10604_v59 = vcombine.high %v1203_v28, %v1207_v46  ;;  %v10189_v58 = vcombine.low %v788_v8, %v792_v11  ;;  %v1179_v32 = vld [vmem:[#allocation13 + $0x1410] sm:$0xff]  ;;  %v764_v54 = vld [vmem:[#allocation13 + $0x718] sm:$0xff] }
 0x44e   :  { %v12153_v57 = vadd.f32 %v8142_v45, %v8102_v17  ;;  %8647 = vmatprep.subr.bf16.mxu0 %v10094_v2  ;;  %v1195_v2 = vld [vmem:[#allocation13 + $0x1490] sm:$0xff]  ;;  %v768_v52 = vld [vmem:[#allocation13 + $0x738] sm:$0xff] }
 0x44f   :  { %v8144_v62 = vpop.f32.mrf.mxu1  ;;  %v10596_v17 = vcombine.high %v1195_v2, %v1199_v6  ;;  %v1187_v45 = vld [vmem:[#allocation13 + $0x1450] sm:$0xff]  ;;  %v10595_v29 = vcombine.low %v1195_v2, %v1199_v6 }
 0x450   :  { %8437 = vmatpush1.bf16.msra.mxu1 %v10627_v20  ;;  %v10190_v20 = vcombine.high %v788_v8, %v792_v11  ;;  %v1299_v46 = vld [vmem:[#allocation13 + $0x17d0] sm:$0xff]  ;;  %v756_v8 = vld [vmem:[#allocation13 + $0x6d8] sm:$0xff] }
 0x451   :  { %v8145_v40 = vpop.f32.mrf.mxu1  ;;  %8648 = vmatpush1.bf16.msra.mxu0 %v10093_v14  ;;  %8438 = vmatprep.subr.bf16.mxu1 %v10620_v7  ;;  %v1191_v14 = vld [vmem:[#allocation13 + $0x1470] sm:$0xff]  ;;  %v780_v7 = vld [vmem:[#allocation13 + $0x798] sm:$0xff] }
 0x452   :  { %8649 = vmatprep.subr.bf16.mxu0 %v10086_v49  ;;  %v784_v49 = vld [vmem:[#allocation13 + $0x7b8] sm:$0xff]  ;;  %v10588_v62 = vcombine.high %v1187_v45, %v1191_v14  ;;  %v1291_v2 = vld [vmem:[#allocation13 + $0x1790] sm:$0xff] }
 0x453   :  { %v10182_v13 = vcombine.high %v780_v7, %v784_v49  ;;  %v772_v40 = vld [vmem:[#allocation13 + $0x758] sm:$0xff]  ;;  %v10181_v23 = vcombine.low %v780_v7, %v784_v49  ;;  %v1295_v6 = vld [vmem:[#allocation13 + $0x17b0] sm:$0xff] }
 0x454   :  { %8439 = vmatpush1.bf16.msra.mxu1 %v10619_v4  ;;  %v1183_v4 = vld [vmem:[#allocation13 + $0x1430] sm:$0xff]  ;;  %v760_v11 = vld [vmem:[#allocation13 + $0x6f8] sm:$0xff] }
 0x455   :  { %8650 = vmatpush1.bf16.msra.mxu0 %v10085_v15  ;;  %8440 = vmatprep.subr.bf16.mxu1 %v10612_v42  ;;  %v776_v15 = vld [vmem:[#allocation13 + $0x778] sm:$0xff]  ;;  %v10587_v42 = vcombine.low %v1187_v45, %v1191_v14  ;;  %v1283_v45 = vld [vmem:[#allocation13 + $0x1750] sm:$0xff] }
 0x456   :  { %8651 = vmatprep.subr.bf16.mxu0 %v10078_v63  ;;  %v10580_v63 = vcombine.high %v1179_v32, %v1183_v4  ;;  %v10174_v28 = vcombine.high %v772_v40, %v776_v15  ;;  %v1287_v14 = vld [vmem:[#allocation13 + $0x1770] sm:$0xff]  ;;  %v748_v7 = vld [vmem:[#allocation13 + $0x698] sm:$0xff] }
 0x457   :  { %v752_v49 = vld [vmem:[#allocation13 + $0x6b8] sm:$0xff] }
 0x458   :  { %8441 = vmatpush1.bf16.msra.mxu1 %v10611_v30  ;;  %v10579_v30 = vcombine.low %v1179_v32, %v1183_v4  ;;  %v1275_v32 = vld [vmem:[#allocation13 + $0x1710] sm:$0xff] }
 0x459   :  { %8652 = vmatpush1.bf16.msra.mxu0 %v10077_v43  ;;  %8442 = vmatprep.subr.bf16.mxu1 %v10604_v59  ;;  %v10173_v43 = vcombine.low %v772_v40, %v776_v15  ;;  %v10700_v59 = vcombine.high %v1299_v46, %v1303_v53  ;;  %v1279_v4 = vld [vmem:[#allocation13 + $0x1730] sm:$0xff]  ;;  %v740_v40 = vld [vmem:[#allocation13 + $0x658] sm:$0xff] }
 0x45a   :  { %8653 = vmatprep.subr.bf16.mxu0 %v10070_v60  ;;  %v10166_v60 = vcombine.high %v764_v54, %v768_v52  ;;  %v744_v15 = vld [vmem:[#allocation13 + $0x678] sm:$0xff] }
 0x45c   :  { %8443 = vmatpush1.bf16.msra.mxu1 %v10603_v21  ;;  %v10699_v21 = vcombine.low %v1299_v46, %v1303_v53  ;;  %v1267_v46 = vld [vmem:[#allocation13 + $0x16d0] sm:$0xff] }
 0x45d   :  { %8654 = vmatpush1.bf16.msra.mxu0 %v10069_v10  ;;  %8444 = vmatprep.subr.bf16.mxu1 %v10596_v17  ;;  %v10165_v10 = vcombine.low %v764_v54, %v768_v52  ;;  %v10692_v17 = vcombine.high %v1291_v2, %v1295_v6  ;;  %v1271_v53 = vld [vmem:[#allocation13 + $0x16f0] sm:$0xff]  ;;  %v732_v54 = vld [vmem:[#allocation13 + $0x618] sm:$0xff] }
 0x45e   :  { %8655 = vmatprep.subr.bf16.mxu0 %v10190_v20  ;;  %v10158_v20 = vcombine.high %v756_v8, %v760_v11  ;;  %v736_v52 = vld [vmem:[#allocation13 + $0x638] sm:$0xff] }
 0x460   :  { %8445 = vmatpush1.bf16.msra.mxu1 %v10595_v29  ;;  %v10691_v29 = vcombine.low %v1291_v2, %v1295_v6  ;;  %v1259_v2 = vld [vmem:[#allocation13 + $0x1690] sm:$0xff] }
 0x461   :  { %8656 = vmatpush2.bf16.msra.mxu0 %v10189_v58  ;;  %8446 = vmatprep.subr.bf16.mxu1 %v10588_v62  ;;  %v10157_v58 = vcombine.low %v756_v8, %v760_v11  ;;  %v10684_v62 = vcombine.high %v1283_v45, %v1287_v14  ;;  %v1263_v6 = vld [vmem:[#allocation13 + $0x16b0] sm:$0xff]  ;;  %v980_v8 = vld [vmem:[#allocation13 + $0xdd8] sm:$0xff] }
 0x462   :  { %8657 = vmatprep.subr.bf16.mxu0 %v10182_v13  ;;  %v10150_v13 = vcombine.high %v748_v7, %v752_v49  ;;  %v984_v11 = vld [vmem:[#allocation13 + $0xdf8] sm:$0xff] }
 0x464   :  { %8447 = vmatpush1.bf16.msra.mxu1 %v10587_v42  ;;  %v10683_v42 = vcombine.low %v1283_v45, %v1287_v14  ;;  %v1251_v45 = vld [vmem:[#allocation13 + $0x1650] sm:$0xff] }
 0x465   :  { %8658 = vmatpush2.bf16.msra.mxu0 %v10181_v23  ;;  %8448 = vmatprep.subr.bf16.mxu1 %v10580_v63  ;;  %v10149_v23 = vcombine.low %v748_v7, %v752_v49  ;;  %v10676_v63 = vcombine.high %v1275_v32, %v1279_v4  ;;  %v1255_v14 = vld [vmem:[#allocation13 + $0x1670] sm:$0xff]  ;;  %v972_v7 = vld [vmem:[#allocation13 + $0xd98] sm:$0xff] }
 0x466   :  { %8659 = vmatprep.subr.bf16.mxu0 %v10174_v28  ;;  %v10142_v28 = vcombine.high %v740_v40, %v744_v15  ;;  %v976_v49 = vld [vmem:[#allocation13 + $0xdb8] sm:$0xff] }
 0x468   :  { %8449 = vmatpush1.bf16.msra.mxu1 %v10579_v30  ;;  %v10675_v30 = vcombine.low %v1275_v32, %v1279_v4  ;;  %v1243_v32 = vld [vmem:[#allocation13 + $0x1610] sm:$0xff] }
 0x469   :  { %8660 = vmatpush2.bf16.msra.mxu0 %v10173_v43  ;;  %8450 = vmatprep.subr.bf16.mxu1 %v10700_v59  ;;  %v10141_v43 = vcombine.low %v740_v40, %v744_v15  ;;  %v10668_v59 = vcombine.high %v1267_v46, %v1271_v53  ;;  %v1247_v4 = vld [vmem:[#allocation13 + $0x1630] sm:$0xff]  ;;  %v964_v40 = vld [vmem:[#allocation13 + $0xd58] sm:$0xff] }
 0x46a   :  { %8661 = vmatprep.subr.bf16.mxu0 %v10166_v60  ;;  %v10134_v60 = vcombine.high %v732_v54, %v736_v52  ;;  %v968_v15 = vld [vmem:[#allocation13 + $0xd78] sm:$0xff] }
 0x46c   :  { %8451 = vmatpush2.bf16.msra.mxu1 %v10699_v21  ;;  %v10667_v21 = vcombine.low %v1267_v46, %v1271_v53  ;;  %v1491_v46 = vld [vmem:[#allocation13 + $0x1dd0] sm:$0xff] }
 0x46d   :  { %8662 = vmatpush2.bf16.msra.mxu0 %v10165_v10  ;;  %8452 = vmatprep.subr.bf16.mxu1 %v10692_v17  ;;  %v10133_v10 = vcombine.low %v732_v54, %v736_v52  ;;  %v10660_v17 = vcombine.high %v1259_v2, %v1263_v6  ;;  %v1495_v53 = vld [vmem:[#allocation13 + $0x1df0] sm:$0xff]  ;;  %v956_v54 = vld [vmem:[#allocation13 + $0xd18] sm:$0xff] }
 0x46e   :  { %8663 = vmatprep.subr.bf16.mxu0 %v10158_v20  ;;  %v10382_v20 = vcombine.high %v980_v8, %v984_v11  ;;  %v960_v52 = vld [vmem:[#allocation13 + $0xd38] sm:$0xff] }
 0x470   :  { %8453 = vmatpush2.bf16.msra.mxu1 %v10691_v29  ;;  %v10659_v29 = vcombine.low %v1259_v2, %v1263_v6  ;;  %v1487_v2 = vld [vmem:[#allocation13 + $0x1db0] sm:$0xff]  ;;  %v948_v6 = vld [vmem:[#allocation13 + $0xcd8] sm:$0xff] }
 0x471   :  { %8664 = vmatpush2.bf16.msra.mxu0 %v10157_v58  ;;  %8454 = vmatprep.subr.bf16.mxu1 %v10684_v62  ;;  %v10381_v58 = vcombine.low %v980_v8, %v984_v11  ;;  %v10652_v62 = vcombine.high %v1251_v45, %v1255_v14  ;;  %v952_v8 = vld [vmem:[#allocation13 + $0xcf8] sm:$0xff]  ;;  %v10891_v11 = vcombine.low %v1491_v46, %v1495_v53 }
 0x472   :  { %8665 = vmatprep.subr.bf16.mxu0 %v10150_v13  ;;  %v10374_v13 = vcombine.high %v972_v7, %v976_v49 }
 0x474   :  { %8455 = vmatpush2.bf16.msra.mxu1 %v10683_v42  ;;  %v10651_v42 = vcombine.low %v1251_v45, %v1255_v14  ;;  %v1479_v45 = vld [vmem:[#allocation13 + $0x1d70] sm:$0xff] }
 0x475   :  { %8666 = vmatpush2.bf16.msra.mxu0 %v10149_v23  ;;  %8456 = vmatprep.subr.bf16.mxu1 %v10676_v63  ;;  %v10373_v23 = vcombine.low %v972_v7, %v976_v49  ;;  %v10644_v63 = vcombine.high %v1243_v32, %v1247_v4  ;;  %v940_v7 = vld [vmem:[#allocation13 + $0xc98] sm:$0xff] }
 0x476   :  { %8667 = vmatprep.subr.bf16.mxu0 %v10142_v28  ;;  %v10366_v28 = vcombine.high %v964_v40, %v968_v15  ;;  %v944_v49 = vld [vmem:[#allocation13 + $0xcb8] sm:$0xff] }
 0x478   :  { %8457 = vmatpush2.bf16.msra.mxu1 %v10675_v30  ;;  %v10643_v30 = vcombine.low %v1243_v32, %v1247_v4 }
 0x479   :  { %8668 = vmatpush2.bf16.msra.mxu0 %v10141_v43  ;;  %8458 = vmatprep.subr.bf16.mxu1 %v10668_v59  ;;  %v10365_v43 = vcombine.low %v964_v40, %v968_v15  ;;  %v10892_v59 = vcombine.high %v1491_v46, %v1495_v53  ;;  %v10342_v40 = vcombine.high %v940_v7, %v944_v49  ;;  %v1467_v15 = vld [vmem:[#allocation13 + $0x1d10] sm:$0xff] }
 0x47a   :  { %8669 = vmatprep.subr.bf16.mxu0 %v10134_v60  ;;  %v1483_v60 = vld [vmem:[#allocation13 + $0x1d90] sm:$0xff]  ;;  %v10341_v53 = vcombine.low %v940_v7, %v944_v49 }
 0x47c   :  { %8459 = vmatpush2.bf16.msra.mxu1 %v10667_v21  ;;  %v10357_v21 = vcombine.low %v956_v54, %v960_v52 }
 0x47d   :  { %8670 = vmatpush2.bf16.msra.mxu0 %v10133_v10  ;;  %8460 = vmatprep.subr.bf16.mxu1 %v10660_v17  ;;  %v8182_v10 = vadd.f32 %v12119_v47, %v12148_v19  ;;  %v10350_v17 = vcombine.high %v948_v6, %v952_v8  ;;  %v10349_v47 = vcombine.low %v948_v6, %v952_v8 }
 0x47e   :  { %8721 = vmatprep.subr.bf16.mxu0 %v10382_v20  ;;  %v1475_v20 = vld [vmem:[#allocation13 + $0x1d50] sm:$0xff] }
 0x47f   :  { %v10876_v19 = vcombine.high %v1475_v20, %v1479_v45 }
 0x480   :  { %8461 = vmatpush2.bf16.msra.mxu1 %v10659_v29  ;;  %8672 = vmatmul.mubr.bf16.vlgmr.msra.gmra.mxu0 %v11989_v56  ;;  %v10358_v56 = vcombine.high %v956_v54, %v960_v52  ;;  %v8184_v29 = vadd.f32 %v12123_v0, %v12153_v57  ;;  %v12167_v32 = vpop.f32.mrf.mxu0  ;;  %v932_v57 = vld [vmem:[#allocation13 + $0xc58] sm:$0xff] }
 0x481   :  { %8722 = vmatpush1.bf16.msra.mxu0 %v10381_v58  ;;  %8462 = vmatprep.subr.bf16.mxu1 %v10652_v62  ;;  %v10883_v62 = vcombine.low %v1483_v60, %v1487_v2 }
 0x482   :  { %8723 = vmatprep.subr.bf16.mxu0 %v10374_v13  ;;  %8753 = vmatprep.mubr.bf16.mxu0 %v11991_v61  ;;  %v10884_v61 = vcombine.high %v1483_v60, %v1487_v2  ;;  %v928_v60 = vld [vmem:[#allocation13 + $0xc38] sm:$0xff] }
 0x484   :  { %8463 = vmatpush2.bf16.msra.mxu1 %v10651_v42  ;;  %v1471_v42 = vld [vmem:[#allocation13 + $0x1d30] sm:$0xff] }
 0x485   :  { %8724 = vmatpush1.bf16.msra.mxu0 %v10373_v23  ;;  %8464 = vmatprep.subr.bf16.mxu1 %v10644_v63  ;;  %v936_v23 = vld [vmem:[#allocation13 + $0xc78] sm:$0xff]  ;;  %v12171_v63 = vpop.f32.mrf.mxu0  ;;  %v10868_v54 = vcombine.high %v1467_v15, %v1471_v42  ;;  %v10867_v6 = vcombine.low %v1467_v15, %v1471_v42 }
 0x486   :  { %8725 = vmatprep.subr.bf16.mxu0 %v10366_v28  ;;  %v10875_v28 = vcombine.low %v1475_v20, %v1479_v45  ;;  %v10333_v8 = vcombine.low %v932_v57, %v936_v23  ;;  %v1048_v20 = vld [vmem:[#allocation13 + $0xff8] sm:$0xff] }
 0x487   :  { %v8431_v52 = vpop.f32.mrf.mxu0 }
 0x488   :  { %8465 = vmatpush2.bf16.msra.mxu1 %v10643_v30  ;;  %v10334_v30 = vcombine.high %v932_v57, %v936_v23  ;;  %v1439_v57 = vld [vmem:[#allocation13 + $0x1c30] sm:$0xff]  ;;  %v1028_v23 = vld [vmem:[#allocation13 + $0xf58] sm:$0xff] }
 0x489   :  { %8726 = vmatpush1.bf16.msra.mxu0 %v10365_v43  ;;  %8516 = vmatprep.subr.bf16.mxu1 %v10892_v59  ;;  %v1459_v43 = vld [vmem:[#allocation13 + $0x1cd0] sm:$0xff]  ;;  %v8432_v2 = vpop.f32.mrf.mxu0 }
 0x48a   :  { %8727 = vmatprep.subr.bf16.mxu0 %v10358_v56  ;;  %v1463_v59 = vld [vmem:[#allocation13 + $0x1cf0] sm:$0xff]  ;;  %v924_v56 = vld [vmem:[#allocation13 + $0xc18] sm:$0xff] }
 0x48b   :  { %v8222_v14 = vpop.f32.mrf.mxu1  ;;  %8467 = vmatmul.mubr.bf16.vlgmr.msra.gmra.mxu1 %v12015_v39  ;;  %v10859_v45 = vcombine.low %v1459_v43, %v1463_v59 }
 0x48c   :  { %v12164_v58 = vadd.f32 %v8222_v14, %v8182_v10  ;;  %8517 = vmatpush1.bf16.msra.mxu1 %v10891_v11  ;;  %8548 = vmatprep.mubr.bf16.mxu1 %v12017_v44  ;;  %v10860_v11 = vcombine.high %v1459_v43, %v1463_v59  ;;  %v1455_v10 = vld [vmem:[#allocation13 + $0x1cb0] sm:$0xff]  ;;  %v10325_v14 = vcombine.low %v924_v56, %v928_v60  ;;  %v1020_v59 = vld [vmem:[#allocation13 + $0xf18] sm:$0xff] }
 0x48d   :  { %v8224_v13 = vpop.f32.mrf.mxu1  ;;  %8728 = vmatpush1.bf16.msra.mxu0 %v10357_v21  ;;  %8518 = vmatprep.subr.bf16.mxu1 %v10884_v61  ;;  %v10326_v21 = vcombine.high %v924_v56, %v928_v60  ;;  %v1451_v61 = vld [vmem:[#allocation13 + $0x1c90] sm:$0xff]  ;;  %v1024_v56 = vld [vmem:[#allocation13 + $0xf38] sm:$0xff] }
 0x48e   :  { %v12169_v4 = vadd.f32 %v8224_v13, %v8184_v29  ;;  %8729 = vmatprep.subr.bf16.mxu0 %v10350_v17  ;;  %v1044_v17 = vld [vmem:[#allocation13 + $0xfd8] sm:$0xff]  ;;  %v10852_v7 = vcombine.high %v1451_v61, %v1455_v10  ;;  %v1443_v29 = vld [vmem:[#allocation13 + $0x1c50] sm:$0xff] }
 0x48f   :  { %v8226_v0 = vpop.f32.mrf.mxu1  ;;  %v10446_v49 = vcombine.high %v1044_v17, %v1048_v20  ;;  %v1036_v13 = vld [vmem:[#allocation13 + $0xf98] sm:$0xff]  ;;  %v1559_v43 = vld [vmem:[#allocation13 + $0x1ff0] sm:$0xff] }
 0x490   :  { %8519 = vmatpush1.bf16.msra.mxu1 %v10883_v62  ;;  %v1447_v62 = vld [vmem:[#allocation13 + $0x1c70] sm:$0xff] }
 0x491   :  { %v8227_v46 = vpop.f32.mrf.mxu1  ;;  %8730 = vmatpush1.bf16.msra.mxu0 %v10349_v47  ;;  %8520 = vmatprep.subr.bf16.mxu1 %v10876_v19  ;;  %v1040_v47 = vld [vmem:[#allocation13 + $0xfb8] sm:$0xff]  ;;  %v10851_v19 = vcombine.low %v1451_v61, %v1455_v10  ;;  %v10844_v15 = vcombine.high %v1443_v29, %v1447_v62  ;;  %v1435_v0 = vld [vmem:[#allocation13 + $0x1c10] sm:$0xff] }
 0x492   :  { %8731 = vmatprep.subr.bf16.mxu0 %v10342_v40  ;;  %v10445_v40 = vcombine.low %v1044_v17, %v1048_v20  ;;  %v10438_v42 = vcombine.high %v1036_v13, %v1040_v47  ;;  %v10843_v46 = vcombine.low %v1443_v29, %v1447_v62  ;;  %v10835_v60 = vcombine.low %v1435_v0, %v1439_v57  ;;  %v1012_v61 = vld [vmem:[#allocation13 + $0xed8] sm:$0xff] }
 0x493   :  { %v1016_v10 = vld [vmem:[#allocation13 + $0xef8] sm:$0xff]  ;;  %v10421_v20 = vcombine.low %v1020_v59, %v1024_v56 }
 0x494   :  { %8521 = vmatpush1.bf16.msra.mxu1 %v10875_v28  ;;  %v1032_v28 = vld [vmem:[#allocation13 + $0xf78] sm:$0xff] }
 0x495   :  { %8732 = vmatpush1.bf16.msra.mxu0 %v10341_v53  ;;  %8522 = vmatprep.subr.bf16.mxu1 %v10868_v54  ;;  %v10437_v53 = vcombine.low %v1036_v13, %v1040_v47  ;;  %v10836_v54 = vcombine.high %v1435_v0, %v1439_v57  ;;  %v10430_v52 = vcombine.high %v1028_v23, %v1032_v28  ;;  %v1004_v29 = vld [vmem:[#allocation13 + $0xe98] sm:$0xff] }
 0x496   :  { %8733 = vmatprep.subr.bf16.mxu0 %v10334_v30  ;;  %v1555_v30 = vld [vmem:[#allocation13 + $0x1fd0] sm:$0xff]  ;;  %v10429_v2 = vcombine.low %v1028_v23, %v1032_v28  ;;  %v1008_v62 = vld [vmem:[#allocation13 + $0xeb8] sm:$0xff]  ;;  %v10413_v47 = vcombine.low %v1012_v61, %v1016_v10 }
 0x497   :  { %v10955_v17 = vcombine.low %v1555_v30, %v1559_v43  ;;  %v996_v0 = vld [vmem:[#allocation13 + $0xe58] sm:$0xff]  ;;  %v10405_v28 = vcombine.low %v1004_v29, %v1008_v62 }
 0x498   :  { %8523 = vmatpush1.bf16.msra.mxu1 %v10867_v6  ;;  %v10956_v6 = vcombine.high %v1555_v30, %v1559_v43  ;;  %v1000_v57 = vld [vmem:[#allocation13 + $0xe78] sm:$0xff] }
 0x499   :  { %8734 = vmatpush1.bf16.msra.mxu0 %v10333_v8  ;;  %8524 = vmatprep.subr.bf16.mxu1 %v10860_v11  ;;  %v10422_v8 = vcombine.high %v1020_v59, %v1024_v56  ;;  %v1547_v11 = vld [vmem:[#allocation13 + $0x1f90] sm:$0xff]  ;;  %v988_v30 = vld [vmem:[#allocation13 + $0xe18] sm:$0xff]  ;;  %v10397_v56 = vcombine.low %v996_v0, %v1000_v57 }
 0x49a   :  { %8735 = vmatprep.subr.bf16.mxu0 %v10326_v21  ;;  %v1551_v21 = vld [vmem:[#allocation13 + $0x1fb0] sm:$0xff]  ;;  %v992_v43 = vld [vmem:[#allocation13 + $0xe38] sm:$0xff] }
 0x49b   :  { %v10947_v13 = vcombine.low %v1547_v11, %v1551_v21 }
 0x49c   :  { %8525 = vmatpush1.bf16.msra.mxu1 %v10859_v45  ;;  %v10948_v45 = vcombine.high %v1547_v11, %v1551_v21  ;;  %v1236_v11 = vld [vmem:[#allocation13 + $0x15d8] sm:$0xff] }
 0x49d   :  { %8736 = vmatpush1.bf16.msra.mxu0 %v10325_v14  ;;  %8526 = vmatprep.subr.bf16.mxu1 %v10852_v7  ;;  %v10414_v14 = vcombine.high %v1012_v61, %v1016_v10  ;;  %v1539_v7 = vld [vmem:[#allocation13 + $0x1f50] sm:$0xff]  ;;  %v1240_v21 = vld [vmem:[#allocation13 + $0x15f8] sm:$0xff]  ;;  %v10389_v10 = vcombine.low %v988_v30, %v992_v43 }
 0x49e   :  { %8737 = vmatprep.subr.bf16.mxu0 %v10446_v49  ;;  %v1543_v49 = vld [vmem:[#allocation13 + $0x1f70] sm:$0xff] }
 0x49f   :  { %v10939_v23 = vcombine.low %v1539_v7, %v1543_v49 }
 0x4a0   :  { %8527 = vmatpush1.bf16.msra.mxu1 %v10851_v19  ;;  %v10940_v19 = vcombine.high %v1539_v7, %v1543_v49  ;;  %v1228_v7 = vld [vmem:[#allocation13 + $0x1598] sm:$0xff] }
 0x4a1   :  { %8738 = vmatpush2.bf16.msra.mxu0 %v10445_v40  ;;  %8528 = vmatprep.subr.bf16.mxu1 %v10844_v15  ;;  %v10406_v40 = vcombine.high %v1004_v29, %v1008_v62  ;;  %v1531_v15 = vld [vmem:[#allocation13 + $0x1f10] sm:$0xff]  ;;  %v1232_v49 = vld [vmem:[#allocation13 + $0x15b8] sm:$0xff]  ;;  %v10637_v62 = vcombine.low %v1236_v11, %v1240_v21 }
 0x4a2   :  { %8739 = vmatprep.subr.bf16.mxu0 %v10438_v42  ;;  %v1535_v42 = vld [vmem:[#allocation13 + $0x1f30] sm:$0xff] }
 0x4a3   :  { %v10931_v59 = vcombine.low %v1531_v15, %v1535_v42 }
 0x4a4   :  { %8529 = vmatpush1.bf16.msra.mxu1 %v10843_v46  ;;  %v10932_v46 = vcombine.high %v1531_v15, %v1535_v42  ;;  %v1220_v15 = vld [vmem:[#allocation13 + $0x1558] sm:$0xff] }
 0x4a5   :  { %8740 = vmatpush2.bf16.msra.mxu0 %v10437_v53  ;;  %8530 = vmatprep.subr.bf16.mxu1 %v10836_v54  ;;  %v10398_v53 = vcombine.high %v996_v0, %v1000_v57  ;;  %v1523_v54 = vld [vmem:[#allocation13 + $0x1ed0] sm:$0xff]  ;;  %v1224_v42 = vld [vmem:[#allocation13 + $0x1578] sm:$0xff]  ;;  %v1709_v57 = vsub.s32 4, %v12027_v31 }
 0x4a6   :  { %8741 = vmatprep.subr.bf16.mxu0 %v10430_v52  ;;  %v1527_v52 = vld [vmem:[#allocation13 + $0x1ef0] sm:$0xff] }
 0x4a7   :  { %v10923_v61 = vcombine.low %v1523_v54, %v1527_v52 }
 0x4a8   :  { %8531 = vmatpush1.bf16.msra.mxu1 %v10835_v60  ;;  %v10924_v60 = vcombine.high %v1523_v54, %v1527_v52  ;;  %v596_v54 = vld [vmem:[#allocation13 + $0x1d8] sm:$0xff] }
 0x4a9   :  { %8742 = vmatpush2.bf16.msra.mxu0 %v10429_v2  ;;  %8532 = vmatprep.subr.bf16.mxu1 %v10956_v6  ;;  %v10390_v2 = vcombine.high %v988_v30, %v992_v43  ;;  %v1515_v6 = vld [vmem:[#allocation13 + $0x1e90] sm:$0xff]  ;;  %v600_v52 = vld [vmem:[#allocation13 + $0x1f8] sm:$0xff] }
 0x4aa   :  { %8743 = vmatprep.subr.bf16.mxu0 %v10422_v8  ;;  %v1519_v8 = vld [vmem:[#allocation13 + $0x1eb0] sm:$0xff]  ;;  %v1212_v30 = vld [vmem:[#allocation13 + $0x1518] sm:$0xff] }
 0x4ab   :  { %v10915_v29 = vcombine.low %v1515_v6, %v1519_v8  ;;  %v1216_v43 = vld [vmem:[#allocation13 + $0x1538] sm:$0xff] }
 0x4ac   :  { %8533 = vmatpush2.bf16.msra.mxu1 %v10955_v17  ;;  %v10916_v17 = vcombine.high %v1515_v6, %v1519_v8  ;;  %v10614_v8 = vcombine.high %v1212_v30, %v1216_v43 }
 0x4ad   :  { %8744 = vmatpush2.bf16.msra.mxu0 %v10421_v20  ;;  %8534 = vmatprep.subr.bf16.mxu1 %v10948_v45  ;;  %v10638_v20 = vcombine.high %v1236_v11, %v1240_v21  ;;  %v1507_v45 = vld [vmem:[#allocation13 + $0x1e50] sm:$0xff]  ;;  %v588_v11 = vld [vmem:[#allocation13 + $0x198] sm:$0xff] }
 0x4ae   :  { %8745 = vmatprep.subr.bf16.mxu0 %v10414_v14  ;;  %v1511_v14 = vld [vmem:[#allocation13 + $0x1e70] sm:$0xff]  ;;  %v592_v21 = vld [vmem:[#allocation13 + $0x1b8] sm:$0xff] }
 0x4af   :  { %v10907_v0 = vcombine.low %v1507_v45, %v1511_v14 }
 0x4b0   :  { %8535 = vmatpush2.bf16.msra.mxu1 %v10947_v13  ;;  %v10908_v13 = vcombine.high %v1507_v45, %v1511_v14  ;;  %v9990_v45 = vcombine.high %v588_v11, %v592_v21 }
 0x4b1   :  { %8746 = vmatpush2.bf16.msra.mxu0 %v10413_v47  ;;  %8536 = vmatprep.subr.bf16.mxu1 %v10940_v19  ;;  %v10630_v47 = vcombine.high %v1228_v7, %v1232_v49  ;;  %v1499_v19 = vld [vmem:[#allocation13 + $0x1e10] sm:$0xff] }
 0x4b2   :  { %8747 = vmatprep.subr.bf16.mxu0 %v10406_v40  ;;  %v1503_v40 = vld [vmem:[#allocation13 + $0x1e30] sm:$0xff] }
 0x4b4   :  { %8537 = vmatpush2.bf16.msra.mxu1 %v10939_v23  ;;  %v10629_v23 = vcombine.low %v1228_v7, %v1232_v49  ;;  %v580_v49 = vld [vmem:[#allocation13 + $0x158] sm:$0xff] }
 0x4b5   :  { %8748 = vmatpush2.bf16.msra.mxu0 %v10405_v28  ;;  %8538 = vmatprep.subr.bf16.mxu1 %v10932_v46  ;;  %v10900_v28 = vcombine.high %v1499_v19, %v1503_v40  ;;  %v1713_v46 = vsub.s32 5, %v12027_v31 }
 0x4b6   :  { %8749 = vmatprep.subr.bf16.mxu0 %v10398_v53  ;;  %v10622_v53 = vcombine.high %v1220_v15, %v1224_v42 }
 0x4b8   :  { %8539 = vmatpush2.bf16.msra.mxu1 %v10931_v59  ;;  %v11496_v59 = vld [vmem:[#allocation14] sm:$0xff] }
 0x4b9   :  { %8750 = vmatpush2.bf16.msra.mxu0 %v10397_v56  ;;  %8540 = vmatprep.subr.bf16.mxu1 %v10924_v60  ;;  %v1710_v56 = vrot.slane %v11496_v59, %v1709_v57  ;;  %v10621_v60 = vcombine.low %v1220_v15, %v1224_v42  ;;  %v1714_v6 = vrot.slane %v11496_v59, %v1713_v46 }
 0x4ba   :  { %8751 = vmatprep.subr.bf16.mxu0 %v10390_v2  ;;  %v9998_v2 = vcombine.high %v596_v54, %v600_v52 }
 0x4bb   :  { %v8266_v14 = vadd.f32 %v12141_v9, %v1714_v6  ;;  %v1180_v6 = vld [vmem:[#allocation13 + $0x1418] sm:$0xff] }
 0x4bc   :  { %8541 = vmatpush2.bf16.msra.mxu1 %v10923_v61  ;;  %v1204_v61 = vld [vmem:[#allocation13 + $0x14d8] sm:$0xff] }
 0x4bd   :  { %8752 = vmatpush2.bf16.msra.mxu0 %v10389_v10  ;;  %8542 = vmatprep.subr.bf16.mxu1 %v10916_v17  ;;  %v1208_v10 = vld [vmem:[#allocation13 + $0x14f8] sm:$0xff]  ;;  %v8264_v17 = vadd.f32 %v12138_v25, %v1710_v56  ;;  %v9989_v25 = vcombine.low %v588_v11, %v592_v21 }
 0x4be   :  { %8803 = vmatprep.subr.bf16.mxu0 %v10638_v20  ;;  %v10613_v20 = vcombine.low %v1212_v30, %v1216_v43  ;;  %v10606_v7 = vcombine.high %v1204_v61, %v1208_v10  ;;  %v10605_v15 = vcombine.low %v1204_v61, %v1208_v10 }
 0x4c0   :  { %8543 = vmatpush2.bf16.msra.mxu1 %v10915_v29  ;;  %8754 = vmatmul.mubr.bf16.vlgmr.msra.gmra.mxu0 %v12003_v35  ;;  %v10899_v35 = vcombine.low %v1499_v19, %v1503_v40  ;;  %v584_v29 = vld [vmem:[#allocation13 + $0x178] sm:$0xff]  ;;  %v12183_v42 = vpop.f32.mrf.mxu0 }
 0x4c1   :  { %8804 = vmatpush1.bf16.msra.mxu0 %v10637_v62  ;;  %8544 = vmatprep.subr.bf16.mxu1 %v10908_v13  ;;  %v1196_v13 = vld [vmem:[#allocation13 + $0x1498] sm:$0xff]  ;;  %v9982_v9 = vcombine.high %v580_v49, %v584_v29 }
 0x4c2   :  { %8805 = vmatprep.subr.bf16.mxu0 %v10630_v47  ;;  %8835 = vmatprep.mubr.bf16.mxu0 %v12005_v41  ;;  %v9997_v41 = vcombine.low %v596_v54, %v600_v52  ;;  %v1200_v47 = vld [vmem:[#allocation13 + $0x14b8] sm:$0xff]  ;;  %v12187_v52 = vpop.f32.mrf.mxu0 }
 0x4c3   :  { %v10598_v57 = vcombine.high %v1196_v13, %v1200_v47  ;;  %v1192_v54 = vld [vmem:[#allocation13 + $0x1478] sm:$0xff]  ;;  %v10597_v43 = vcombine.low %v1196_v13, %v1200_v47 }
 0x4c4   :  { %8545 = vmatpush2.bf16.msra.mxu1 %v10907_v0  ;;  %v8513_v56 = vpop.f32.mrf.mxu0  ;;  %v548_v13 = vld [vmem:[#allocation13 + $0x58] sm:$0xff] }
 0x4c5   :  { %8806 = vmatpush1.bf16.msra.mxu0 %v10629_v23  ;;  %8546 = vmatprep.subr.bf16.mxu1 %v10900_v28  ;;  %v572_v23 = vld [vmem:[#allocation13 + $0x118] sm:$0xff] }
 0x4c6   :  { %8807 = vmatprep.subr.bf16.mxu0 %v10622_v53  ;;  %v576_v28 = vld [vmem:[#allocation13 + $0x138] sm:$0xff]  ;;  %v8514_v11 = vpop.f32.mrf.mxu0 }
 0x4c7   :  { %v1188_v53 = vld [vmem:[#allocation13 + $0x1458] sm:$0xff]  ;;  %v9974_v59 = vcombine.high %v572_v23, %v576_v28  ;;  %v9973_v21 = vcombine.low %v572_v23, %v576_v28 }
 0x4c8   :  { %8547 = vmatpush2.bf16.msra.mxu1 %v10899_v35  ;;  %v10590_v35 = vcombine.high %v1188_v53, %v1192_v54  ;;  %v10589_v61 = vcombine.low %v1188_v53, %v1192_v54  ;;  %v552_v47 = vld [vmem:[#allocation13 + $0x78] sm:$0xff] }
 0x4c9   :  { %8808 = vmatpush1.bf16.msra.mxu0 %v10621_v60  ;;  %8598 = vmatprep.subr.bf16.mxu1 %v9998_v2  ;;  %v564_v60 = vld [vmem:[#allocation13 + $0xd8] sm:$0xff] }
 0x4ca   :  { %8809 = vmatprep.subr.bf16.mxu0 %v10614_v8  ;;  %v568_v2 = vld [vmem:[#allocation13 + $0xf8] sm:$0xff] }
 0x4cb   :  { %v8304_v62 = vpop.f32.mrf.mxu1  ;;  %8549 = vmatmul.mubr.bf16.vlgmr.msra.gmra.mxu1 %v12033_v16  ;;  %v1184_v8 = vld [vmem:[#allocation13 + $0x1438] sm:$0xff]  ;;  %v9966_v10 = vcombine.high %v564_v60, %v568_v2 }
 0x4cc   :  { %v12180_v19 = vadd.f32 %v8304_v62, %v8264_v17  ;;  %8599 = vmatpush1.bf16.msra.mxu1 %v9997_v41  ;;  %8630 = vmatprep.mubr.bf16.mxu1 %v11938_v27  ;;  %v9981_v27 = vcombine.low %v580_v49, %v584_v29  ;;  %v10582_v17 = vcombine.high %v1180_v6, %v1184_v8  ;;  %v556_v41 = vld [vmem:[#allocation13 + $0x98] sm:$0xff] }
 0x4cd   :  { %v8306_v40 = vpop.f32.mrf.mxu1  ;;  %8810 = vmatpush1.bf16.msra.mxu0 %v10613_v20  ;;  %8600 = vmatprep.subr.bf16.mxu1 %v9990_v45  ;;  %v560_v20 = vld [vmem:[#allocation13 + $0xb8] sm:$0xff]  ;;  %v10581_v49 = vcombine.low %v1180_v6, %v1184_v8 }
 0x4ce   :  { %v12185_v0 = vadd.f32 %v8306_v40, %v8266_v14  ;;  %8811 = vmatprep.subr.bf16.mxu0 %v10606_v7  ;;  %v1300_v45 = vld [vmem:[#allocation13 + $0x17d8] sm:$0xff]  ;;  %v9965_v7 = vcombine.low %v564_v60, %v568_v2  ;;  %v9958_v29 = vcombine.high %v556_v41, %v560_v20 }
 0x4cf   :  { %v8308_v46 = vpop.f32.mrf.mxu1  ;;  %v1304_v14 = vld [vmem:[#allocation13 + $0x17f8] sm:$0xff] }
 0x4d0   :  { %8601 = vmatpush1.bf16.msra.mxu1 %v9989_v25  ;;  %v10702_v62 = vcombine.high %v1300_v45, %v1304_v14  ;;  %v1292_v25 = vld [vmem:[#allocation13 + $0x1798] sm:$0xff] }
 0x4d1   :  { %v8309_v30 = vpop.f32.mrf.mxu1  ;;  %8812 = vmatpush1.bf16.msra.mxu0 %v10605_v15  ;;  %8602 = vmatprep.subr.bf16.mxu1 %v9982_v9  ;;  %v1296_v40 = vld [vmem:[#allocation13 + $0x17b8] sm:$0xff]  ;;  %v9957_v15 = vcombine.low %v556_v41, %v560_v20  ;;  %v10701_v9 = vcombine.low %v1300_v45, %v1304_v14 }
 0x4d2   :  { %8813 = vmatprep.subr.bf16.mxu0 %v10598_v57  ;;  %v9950_v57 = vcombine.high %v548_v13, %v552_v47  ;;  %v10694_v23 = vcombine.high %v1292_v25, %v1296_v40  ;;  %v540_v28 = vld [vmem:[#allocation13 + $0x18] sm:$0xff]  ;;  %v10693_v30 = vcombine.low %v1292_v25, %v1296_v40 }
 0x4d3   :  { %v544_v46 = vld [vmem:[#allocation13 + $0x38] sm:$0xff] }
 0x4d4   :  { %8603 = vmatpush1.bf16.msra.mxu1 %v9981_v27  ;;  %v1284_v53 = vld [vmem:[#allocation13 + $0x1758] sm:$0xff]  ;;  %v9949_v27 = vcombine.low %v548_v13, %v552_v47  ;;  %v9941_v6 = vcombine.low %v540_v28, %v544_v46 }
 0x4d5   :  { %8814 = vmatpush1.bf16.msra.mxu0 %v10597_v43  ;;  %8604 = vmatprep.subr.bf16.mxu1 %v9974_v59  ;;  %v1288_v54 = vld [vmem:[#allocation13 + $0x1778] sm:$0xff]  ;;  %v9942_v43 = vcombine.high %v540_v28, %v544_v46 }
 0x4d6   :  { %8815 = vmatprep.subr.bf16.mxu0 %v10590_v35  ;;  %v10686_v59 = vcombine.high %v1284_v53, %v1288_v54  ;;  %v660_v56 = vld [vmem:[#allocation13 + $0x3d8] sm:$0xff]  ;;  %v10685_v8 = vcombine.low %v1284_v53, %v1288_v54 }
 0x4d7   :  { %v664_v35 = vld [vmem:[#allocation13 + $0x3f8] sm:$0xff] }
 0x4d8   :  { %8605 = vmatpush1.bf16.msra.mxu1 %v9973_v21  ;;  %v1276_v60 = vld [vmem:[#allocation13 + $0x1718] sm:$0xff]  ;;  %v10062_v11 = vcombine.high %v660_v56, %v664_v35  ;;  %v10061_v20 = vcombine.low %v660_v56, %v664_v35 }
 0x4d9   :  { %8816 = vmatpush1.bf16.msra.mxu0 %v10589_v61  ;;  %8606 = vmatprep.subr.bf16.mxu1 %v9966_v10  ;;  %v1280_v2 = vld [vmem:[#allocation13 + $0x1738] sm:$0xff] }
 0x4da   :  { %8817 = vmatprep.subr.bf16.mxu0 %v10582_v17  ;;  %v10678_v21 = vcombine.high %v1276_v60, %v1280_v2  ;;  %v652_v61 = vld [vmem:[#allocation13 + $0x398] sm:$0xff]  ;;  %v10677_v45 = vcombine.low %v1276_v60, %v1280_v2 }
 0x4db   :  { %v656_v10 = vld [vmem:[#allocation13 + $0x3b8] sm:$0xff] }
 0x4dc   :  { %8607 = vmatpush1.bf16.msra.mxu1 %v9965_v7  ;;  %v1268_v17 = vld [vmem:[#allocation13 + $0x16d8] sm:$0xff]  ;;  %v10054_v14 = vcombine.high %v652_v61, %v656_v10  ;;  %v10053_v47 = vcombine.low %v652_v61, %v656_v10 }
 0x4dd   :  { %8818 = vmatpush1.bf16.msra.mxu0 %v10581_v49  ;;  %8608 = vmatprep.subr.bf16.mxu1 %v9958_v29  ;;  %v1272_v41 = vld [vmem:[#allocation13 + $0x16f8] sm:$0xff] }
 0x4de   :  { %8819 = vmatprep.subr.bf16.mxu0 %v10702_v62  ;;  %v10670_v7 = vcombine.high %v1268_v17, %v1272_v41  ;;  %v644_v49 = vld [vmem:[#allocation13 + $0x358] sm:$0xff]  ;;  %v10669_v25 = vcombine.low %v1268_v17, %v1272_v41 }
 0x4df   :  { %v648_v29 = vld [vmem:[#allocation13 + $0x378] sm:$0xff] }
 0x4e0   :  { %8609 = vmatpush1.bf16.msra.mxu1 %v9957_v15  ;;  %v1260_v62 = vld [vmem:[#allocation13 + $0x1698] sm:$0xff]  ;;  %v10046_v40 = vcombine.high %v644_v49, %v648_v29  ;;  %v10045_v46 = vcombine.low %v644_v49, %v648_v29 }
 0x4e1   :  { %8820 = vmatpush2.bf16.msra.mxu0 %v10701_v9  ;;  %8610 = vmatprep.subr.bf16.mxu1 %v9950_v57  ;;  %v1264_v13 = vld [vmem:[#allocation13 + $0x16b8] sm:$0xff] }
 0x4e2   :  { %8821 = vmatprep.subr.bf16.mxu0 %v10694_v23  ;;  %v10662_v15 = vcombine.high %v1260_v62, %v1264_v13  ;;  %v636_v9 = vld [vmem:[#allocation13 + $0x318] sm:$0xff]  ;;  %v10661_v53 = vcombine.low %v1260_v62, %v1264_v13 }
 0x4e3   :  { %v640_v57 = vld [vmem:[#allocation13 + $0x338] sm:$0xff] }
 0x4e4   :  { %8611 = vmatpush1.bf16.msra.mxu1 %v9949_v27  ;;  %v1252_v23 = vld [vmem:[#allocation13 + $0x1658] sm:$0xff]  ;;  %v10038_v54 = vcombine.high %v636_v9, %v640_v57  ;;  %v10037_v35 = vcombine.low %v636_v9, %v640_v57 }
 0x4e5   :  { %8822 = vmatpush2.bf16.msra.mxu0 %v10693_v30  ;;  %8612 = vmatprep.subr.bf16.mxu1 %v9942_v43  ;;  %v1256_v28 = vld [vmem:[#allocation13 + $0x1678] sm:$0xff] }
 0x4e6   :  { %8823 = vmatprep.subr.bf16.mxu0 %v10686_v59  ;;  %v10654_v27 = vcombine.high %v1252_v23, %v1256_v28  ;;  %v628_v30 = vld [vmem:[#allocation13 + $0x2d8] sm:$0xff]  ;;  %v10653_v60 = vcombine.low %v1252_v23, %v1256_v28 }
 0x4e7   :  { %v632_v43 = vld [vmem:[#allocation13 + $0x2f8] sm:$0xff] }
 0x4e8   :  { %8613 = vmatpush1.bf16.msra.mxu1 %v9941_v6  ;;  %v1244_v59 = vld [vmem:[#allocation13 + $0x1618] sm:$0xff]  ;;  %v10030_v2 = vcombine.high %v628_v30, %v632_v43  ;;  %v10029_v10 = vcombine.low %v628_v30, %v632_v43 }
 0x4e9   :  { %8824 = vmatpush2.bf16.msra.mxu0 %v10685_v8  ;;  %8614 = vmatprep.subr.bf16.mxu1 %v10062_v11  ;;  %v1248_v56 = vld [vmem:[#allocation13 + $0x1638] sm:$0xff] }
 0x4ea   :  { %8825 = vmatprep.subr.bf16.mxu0 %v10678_v21  ;;  %v10646_v6 = vcombine.high %v1244_v59, %v1248_v56  ;;  %v620_v8 = vld [vmem:[#allocation13 + $0x298] sm:$0xff]  ;;  %v10645_v17 = vcombine.low %v1244_v59, %v1248_v56 }
 0x4eb   :  { %v624_v11 = vld [vmem:[#allocation13 + $0x2b8] sm:$0xff] }
 0x4ec   :  { %8615 = vmatpush2.bf16.msra.mxu1 %v10061_v20  ;;  %v1492_v21 = vld [vmem:[#allocation13 + $0x1dd8] sm:$0xff]  ;;  %v10022_v41 = vcombine.high %v620_v8, %v624_v11  ;;  %v10021_v29 = vcombine.low %v620_v8, %v624_v11 }
 0x4ed   :  { %8826 = vmatpush2.bf16.msra.mxu0 %v10677_v45  ;;  %8616 = vmatprep.subr.bf16.mxu1 %v10054_v14  ;;  %v1496_v61 = vld [vmem:[#allocation13 + $0x1df8] sm:$0xff] }
 0x4ee   :  { %8827 = vmatprep.subr.bf16.mxu0 %v10670_v7  ;;  %v10894_v20 = vcombine.high %v1492_v21, %v1496_v61  ;;  %v612_v45 = vld [vmem:[#allocation13 + $0x258] sm:$0xff]  ;;  %v10893_v62 = vcombine.low %v1492_v21, %v1496_v61  ;;  %v8346_v21 = vadd.f32 %v12151_v22, %v12180_v19 }
 0x4ef   :  { %v616_v14 = vld [vmem:[#allocation13 + $0x278] sm:$0xff] }
 0x4f0   :  { %8617 = vmatpush2.bf16.msra.mxu1 %v10053_v47  ;;  %v1484_v7 = vld [vmem:[#allocation13 + $0x1d98] sm:$0xff]  ;;  %v10014_v13 = vcombine.high %v612_v45, %v616_v14  ;;  %v10013_v57 = vcombine.low %v612_v45, %v616_v14  ;;  %v8348_v14 = vadd.f32 %v12155_v33, %v12185_v0 }
 0x4f1   :  { %8828 = vmatpush2.bf16.msra.mxu0 %v10669_v25  ;;  %8618 = vmatprep.subr.bf16.mxu1 %v10046_v40  ;;  %v1488_v49 = vld [vmem:[#allocation13 + $0x1db8] sm:$0xff] }
 0x4f2   :  { %8829 = vmatprep.subr.bf16.mxu0 %v10662_v15  ;;  %v10886_v47 = vcombine.high %v1484_v7, %v1488_v49  ;;  %v604_v25 = vld [vmem:[#allocation13 + $0x218] sm:$0xff]  ;;  %v10885_v23 = vcombine.low %v1484_v7, %v1488_v49 }
 0x4f3   :  { %v608_v40 = vld [vmem:[#allocation13 + $0x238] sm:$0xff] }
 0x4f4   :  { %8619 = vmatpush2.bf16.msra.mxu1 %v10045_v46  ;;  %v1476_v15 = vld [vmem:[#allocation13 + $0x1d58] sm:$0xff]  ;;  %v10006_v28 = vcombine.high %v604_v25, %v608_v40  ;;  %v10005_v43 = vcombine.low %v604_v25, %v608_v40 }
 0x4f5   :  { %8830 = vmatpush2.bf16.msra.mxu0 %v10661_v53  ;;  %8620 = vmatprep.subr.bf16.mxu1 %v10038_v54  ;;  %v1480_v9 = vld [vmem:[#allocation13 + $0x1d78] sm:$0xff] }
 0x4f6   :  { %8831 = vmatprep.subr.bf16.mxu0 %v10654_v27  ;;  %v10878_v46 = vcombine.high %v1476_v15, %v1480_v9  ;;  %v852_v53 = vld [vmem:[#allocation13 + $0x9d8] sm:$0xff]  ;;  %v10877_v59 = vcombine.low %v1476_v15, %v1480_v9 }
 0x4f7   :  { %v856_v54 = vld [vmem:[#allocation13 + $0x9f8] sm:$0xff] }
 0x4f8   :  { %8621 = vmatpush2.bf16.msra.mxu1 %v10037_v35  ;;  %v1468_v27 = vld [vmem:[#allocation13 + $0x1d18] sm:$0xff]  ;;  %v10254_v56 = vcombine.high %v852_v53, %v856_v54  ;;  %v10253_v8 = vcombine.low %v852_v53, %v856_v54 }
 0x4f9   :  { %8832 = vmatpush2.bf16.msra.mxu0 %v10653_v60  ;;  %8622 = vmatprep.subr.bf16.mxu1 %v10030_v2  ;;  %v1472_v30 = vld [vmem:[#allocation13 + $0x1d38] sm:$0xff] }
 0x4fa   :  { %8833 = vmatprep.subr.bf16.mxu0 %v10646_v6  ;;  %v844_v35 = vld [vmem:[#allocation13 + $0x998] sm:$0xff]  ;;  %v10869_v11 = vcombine.low %v1468_v27, %v1472_v30 }
 0x4fb   :  { %v848_v60 = vld [vmem:[#allocation13 + $0x9b8] sm:$0xff] }
 0x4fc   :  { %8623 = vmatpush2.bf16.msra.mxu1 %v10029_v10  ;;  %v1460_v2 = vld [vmem:[#allocation13 + $0x1cd8] sm:$0xff]  ;;  %v10245_v49 = vcombine.low %v844_v35, %v848_v60 }
 0x4fd   :  { %8834 = vmatpush2.bf16.msra.mxu0 %v10645_v17  ;;  %8624 = vmatprep.subr.bf16.mxu1 %v10022_v41  ;;  %v1464_v6 = vld [vmem:[#allocation13 + $0x1cf8] sm:$0xff] }
 0x4fe   :  { %8885 = vmatprep.subr.bf16.mxu0 %v10894_v20  ;;  %v10862_v61 = vcombine.high %v1460_v2, %v1464_v6  ;;  %v836_v10 = vld [vmem:[#allocation13 + $0x958] sm:$0xff]  ;;  %v10861_v22 = vcombine.low %v1460_v2, %v1464_v6 }
 0x4ff   :  { %v840_v17 = vld [vmem:[#allocation13 + $0x978] sm:$0xff] }
 0x500   :  { %8625 = vmatpush2.bf16.msra.mxu1 %v10021_v29  ;;  %8836 = vmatmul.mubr.bf16.vlgmr.msra.gmra.mxu0 %v12015_v39  ;;  %v10870_v39 = vcombine.high %v1468_v27, %v1472_v30  ;;  %v1452_v20 = vld [vmem:[#allocation13 + $0x1c98] sm:$0xff]  ;;  %v10238_v19 = vcombine.high %v836_v10, %v840_v17 }
 0x501   :  { %8886 = vmatpush1.bf16.msra.mxu0 %v10893_v62  ;;  %8626 = vmatprep.subr.bf16.mxu1 %v10014_v13  ;;  %v1456_v45 = vld [vmem:[#allocation13 + $0x1cb8] sm:$0xff]  ;;  %v12199_v62 = vpop.f32.mrf.mxu0 }
 0x502   :  { %8887 = vmatprep.subr.bf16.mxu0 %v10886_v47  ;;  %8917 = vmatprep.mubr.bf16.mxu0 %v12017_v44  ;;  %v10246_v44 = vcombine.high %v844_v35, %v848_v60  ;;  %v828_v47 = vld [vmem:[#allocation13 + $0x918] sm:$0xff] }
 0x503   :  { %v832_v25 = vld [vmem:[#allocation13 + $0x938] sm:$0xff]  ;;  %v12203_v15 = vpop.f32.mrf.mxu0 }
 0x504   :  { %8627 = vmatpush2.bf16.msra.mxu1 %v10013_v57  ;;  %v1444_v0 = vld [vmem:[#allocation13 + $0x1c58] sm:$0xff]  ;;  %v10853_v57 = vcombine.low %v1452_v20, %v1456_v45 }
 0x505   :  { %8888 = vmatpush1.bf16.msra.mxu0 %v10885_v23  ;;  %8628 = vmatprep.subr.bf16.mxu1 %v10006_v28  ;;  %v1448_v40 = vld [vmem:[#allocation13 + $0x1c78] sm:$0xff]  ;;  %v10230_v23 = vcombine.high %v828_v47, %v832_v25  ;;  %v8595_v28 = vpop.f32.mrf.mxu0 }
 0x506   :  { %8889 = vmatprep.subr.bf16.mxu0 %v10878_v46  ;;  %v10846_v46 = vcombine.high %v1444_v0, %v1448_v40  ;;  %v820_v53 = vld [vmem:[#allocation13 + $0x8d8] sm:$0xff] }
 0x507   :  { %v824_v54 = vld [vmem:[#allocation13 + $0x8f8] sm:$0xff] }
 0x508   :  { %8629 = vmatpush2.bf16.msra.mxu1 %v10005_v43  ;;  %v1436_v27 = vld [vmem:[#allocation13 + $0x1c18] sm:$0xff]  ;;  %v8596_v43 = vpop.f32.mrf.mxu0 }
 0x509   :  { %8890 = vmatpush1.bf16.msra.mxu0 %v10877_v59  ;;  %8680 = vmatprep.subr.bf16.mxu1 %v10254_v56  ;;  %v1440_v30 = vld [vmem:[#allocation13 + $0x1c38] sm:$0xff]  ;;  %v10229_v59 = vcombine.low %v828_v47, %v832_v25  ;;  %v10845_v56 = vcombine.low %v1444_v0, %v1448_v40 }
 0x50a   :  { %8891 = vmatprep.subr.bf16.mxu0 %v10870_v39  ;;  %v10222_v39 = vcombine.high %v820_v53, %v824_v54  ;;  %v10838_v35 = vcombine.high %v1436_v27, %v1440_v30  ;;  %v812_v60 = vld [vmem:[#allocation13 + $0x898] sm:$0xff] }
 0x50b   :  { %v8386_v41 = vpop.f32.mrf.mxu1  ;;  %8631 = vmatmul.mubr.bf16.vlgmr.msra.gmra.mxu1 %v11946_v36  ;;  %v10854_v36 = vcombine.high %v1452_v20, %v1456_v45  ;;  %v816_v2 = vld [vmem:[#allocation13 + $0x8b8] sm:$0xff] }
 0x50c   :  { %v12196_v7 = vadd.f32 %v8386_v41, %v8346_v21  ;;  %8681 = vmatpush1.bf16.msra.mxu1 %v10253_v8  ;;  %8712 = vmatprep.mubr.bf16.mxu1 %v11949_v38  ;;  %v10237_v38 = vcombine.low %v836_v10, %v840_v17  ;;  %v1556_v6 = vld [vmem:[#allocation13 + $0x1fd8] sm:$0xff]  ;;  %v10214_v21 = vcombine.high %v812_v60, %v816_v2 }
 0x50d   :  { %v8388_v29 = vpop.f32.mrf.mxu1  ;;  %8892 = vmatpush1.bf16.msra.mxu0 %v10869_v11  ;;  %8682 = vmatprep.subr.bf16.mxu1 %v10246_v44  ;;  %v1560_v8 = vld [vmem:[#allocation13 + $0x1ff8] sm:$0xff]  ;;  %v10221_v11 = vcombine.low %v820_v53, %v824_v54  ;;  %v10837_v44 = vcombine.low %v1436_v27, %v1440_v30  ;;  %v10213_v45 = vcombine.low %v812_v60, %v816_v2 }
 0x50e   :  { %v12201_v13 = vadd.f32 %v8388_v29, %v8348_v14  ;;  %8893 = vmatprep.subr.bf16.mxu0 %v10862_v61  ;;  %v10958_v61 = vcombine.high %v1556_v6, %v1560_v8  ;;  %v804_v10 = vld [vmem:[#allocation13 + $0x858] sm:$0xff]  ;;  %v10957_v14 = vcombine.low %v1556_v6, %v1560_v8 }
 0x50f   :  { %v8390_v33 = vpop.f32.mrf.mxu1  ;;  %v808_v17 = vld [vmem:[#allocation13 + $0x878] sm:$0xff] }
 0x510   :  { %8683 = vmatpush1.bf16.msra.mxu1 %v10245_v49  ;;  %v1548_v41 = vld [vmem:[#allocation13 + $0x1f98] sm:$0xff]  ;;  %v10206_v49 = vcombine.high %v804_v10, %v808_v17  ;;  %v10205_v25 = vcombine.low %v804_v10, %v808_v17 }
 0x511   :  { %v8391_v9 = vpop.f32.mrf.mxu1  ;;  %8894 = vmatpush1.bf16.msra.mxu0 %v10861_v22  ;;  %8684 = vmatprep.subr.bf16.mxu1 %v10238_v19  ;;  %v1552_v20 = vld [vmem:[#allocation13 + $0x1fb8] sm:$0xff] }
 0x512   :  { %8895 = vmatprep.subr.bf16.mxu0 %v10854_v36  ;;  %v10950_v29 = vcombine.high %v1548_v41, %v1552_v20  ;;  %v796_v22 = vld [vmem:[#allocation13 + $0x818] sm:$0xff]  ;;  %v10949_v33 = vcombine.low %v1548_v41, %v1552_v20 }
 0x513   :  { %v800_v19 = vld [vmem:[#allocation13 + $0x838] sm:$0xff] }
 0x514   :  { %8685 = vmatpush1.bf16.msra.mxu1 %v10237_v38  ;;  %v1540_v36 = vld [vmem:[#allocation13 + $0x1f58] sm:$0xff]  ;;  %v10198_v0 = vcombine.high %v796_v22, %v800_v19  ;;  %v10197_v28 = vcombine.low %v796_v22, %v800_v19 }
 0x515   :  { %8896 = vmatpush1.bf16.msra.mxu0 %v10853_v57  ;;  %8686 = vmatprep.subr.bf16.mxu1 %v10230_v23  ;;  %v1544_v47 = vld [vmem:[#allocation13 + $0x1f78] sm:$0xff] }
 0x516   :  { %8897 = vmatprep.subr.bf16.mxu0 %v10846_v46  ;;  %v10942_v40 = vcombine.high %v1540_v36, %v1544_v47  ;;  %v916_v38 = vld [vmem:[#allocation13 + $0xbd8] sm:$0xff]  ;;  %v10941_v46 = vcombine.low %v1540_v36, %v1544_v47 }
 0x517   :  { %v920_v9 = vld [vmem:[#allocation13 + $0xbf8] sm:$0xff] }
 0x518   :  { %8687 = vmatpush1.bf16.msra.mxu1 %v10229_v59  ;;  %v1532_v57 = vld [vmem:[#allocation13 + $0x1f18] sm:$0xff]  ;;  %v10318_v53 = vcombine.high %v916_v38, %v920_v9 }
 0x519   :  { %8898 = vmatpush1.bf16.msra.mxu0 %v10845_v56  ;;  %8688 = vmatprep.subr.bf16.mxu1 %v10222_v39  ;;  %v1536_v23 = vld [vmem:[#allocation13 + $0x1f38] sm:$0xff]  ;;  %v10317_v56 = vcombine.low %v916_v38, %v920_v9 }
 0x51a   :  { %8899 = vmatprep.subr.bf16.mxu0 %v10838_v35  ;;  %v10934_v54 = vcombine.high %v1532_v57, %v1536_v23  ;;  %v908_v27 = vld [vmem:[#allocation13 + $0xb98] sm:$0xff]  ;;  %v10933_v39 = vcombine.low %v1532_v57, %v1536_v23  ;;  %v7856_v23 = vadd.f32 %v12061_v48, %v12091_v24 }
 0x51b   :  { %v912_v30 = vld [vmem:[#allocation13 + $0xbb8] sm:$0xff] }
 0x51c   :  { %8689 = vmatpush1.bf16.msra.mxu1 %v10221_v11  ;;  %v1524_v43 = vld [vmem:[#allocation13 + $0x1ed8] sm:$0xff]  ;;  %v10310_v35 = vcombine.high %v908_v27, %v912_v30 }
 0x51d   :  { %8900 = vmatpush1.bf16.msra.mxu0 %v10837_v44  ;;  %8690 = vmatprep.subr.bf16.mxu1 %v10214_v21  ;;  %v1528_v59 = vld [vmem:[#allocation13 + $0x1ef8] sm:$0xff]  ;;  %v10309_v44 = vcombine.low %v908_v27, %v912_v30  ;;  %v8968_v27 = vmax.f32 %v7856_v23, 0.0 }
 0x51e   :  { %8901 = vmatprep.subr.bf16.mxu0 %v10958_v61  ;;  %v10926_v60 = vcombine.high %v1524_v43, %v1528_v59  ;;  %v900_v2 = vld [vmem:[#allocation13 + $0xb58] sm:$0xff]  ;;  %v10925_v21 = vcombine.low %v1524_v43, %v1528_v59 }
 0x51f   :  { %v904_v6 = vld [vmem:[#allocation13 + $0xb78] sm:$0xff] }
 0x520   :  { %8691 = vmatpush1.bf16.msra.mxu1 %v10213_v45  ;;  %v1516_v8 = vld [vmem:[#allocation13 + $0x1e98] sm:$0xff]  ;;  %v10302_v61 = vcombine.high %v900_v2, %v904_v6 }
 0x521   :  { %8902 = vmatpush2.bf16.msra.mxu0 %v10957_v14  ;;  %8692 = vmatprep.subr.bf16.mxu1 %v10206_v49  ;;  %v1520_v11 = vld [vmem:[#allocation13 + $0x1eb8] sm:$0xff]  ;;  %v10301_v14 = vcombine.low %v900_v2, %v904_v6 }
 0x522   :  { %8903 = vmatprep.subr.bf16.mxu0 %v10950_v29  ;;  %v10918_v10 = vcombine.high %v1516_v8, %v1520_v11  ;;  %v892_v17 = vld [vmem:[#allocation13 + $0xb18] sm:$0xff]  ;;  %v10917_v49 = vcombine.low %v1516_v8, %v1520_v11  ;;  %v11415_v11 = vld [vmem:[#allocation16 + $0x68] sm:$0xff]  }
 0x523   :  { %v896_v41 = vld [vmem:[#allocation13 + $0xb38] sm:$0xff] }
 0x524   :  { %8693 = vmatpush1.bf16.msra.mxu1 %v10205_v25  ;;  %v1508_v20 = vld [vmem:[#allocation13 + $0x1e58] sm:$0xff]  ;;  %v10294_v29 = vcombine.high %v892_v17, %v896_v41 }
 0x525   :  { %8904 = vmatpush2.bf16.msra.mxu0 %v10949_v33  ;;  %8694 = vmatprep.subr.bf16.mxu1 %v10198_v0  ;;  %v1512_v45 = vld [vmem:[#allocation13 + $0x1e78] sm:$0xff]  ;;  %v10293_v33 = vcombine.low %v892_v17, %v896_v41  ;;  %v11417_v41 = vld [vmem:[#allocation16 + $0x60] sm:$0xff]  }
 0x526   :  { %8905 = vmatprep.subr.bf16.mxu0 %v10942_v40  ;;  %v10910_v22 = vcombine.high %v1508_v20, %v1512_v45  ;;  %v884_v19 = vld [vmem:[#allocation13 + $0xad8] sm:$0xff]  ;;  %v10909_v0 = vcombine.low %v1508_v20, %v1512_v45 }
 0x527   :  { %v888_v36 = vld [vmem:[#allocation13 + $0xaf8] sm:$0xff] }
 0x528   :  { %8695 = vmatpush1.bf16.msra.mxu1 %v10197_v28  ;;  %v1500_v47 = vld [vmem:[#allocation13 + $0x1e18] sm:$0xff]  ;;  %v10286_v40 = vcombine.high %v884_v19, %v888_v36  ;;  %v10285_v28 = vcombine.low %v884_v19, %v888_v36 }
 0x529   :  { %8906 = vmatpush2.bf16.msra.mxu0 %v10941_v46  ;;  %8696 = vmatprep.subr.bf16.mxu1 %v10318_v53  ;;  %v1504_v25 = vld [vmem:[#allocation13 + $0x1e38] sm:$0xff] }
 0x52a   :  { %8907 = vmatprep.subr.bf16.mxu0 %v10934_v54  ;;  %v10902_v38 = vcombine.high %v1500_v47, %v1504_v25  ;;  %v876_v9 = vld [vmem:[#allocation13 + $0xa98] sm:$0xff]  ;;  %v10901_v46 = vcombine.low %v1500_v47, %v1504_v25  ;;  %v11411_v54 = vld [vmem:[#allocation16 + $0x78] sm:$0xff]  }
 0x52b   :  { %v880_v57 = vld [vmem:[#allocation13 + $0xab8] sm:$0xff] }
 0x52c   :  { %8697 = vmatpush2.bf16.msra.mxu1 %v10317_v56  ;;  %v10278_v53 = vcombine.high %v876_v9, %v880_v57  ;;  %v868_v30 = vld [vmem:[#allocation13 + $0xa58] sm:$0xff]  ;;  %v10277_v59 = vcombine.low %v876_v9, %v880_v57  ;;  %v11412_v56 = vld [vmem:[#allocation16 + $0x38] sm:$0xff]  }
 0x52d   :  { %8908 = vmatpush2.bf16.msra.mxu0 %v10933_v39  ;;  %8698 = vmatprep.subr.bf16.mxu1 %v10310_v35  ;;  %v872_v43 = vld [vmem:[#allocation13 + $0xa78] sm:$0xff] }
 0x52e   :  { %8909 = vmatprep.subr.bf16.mxu0 %v10926_v60  ;;  %v10270_v39 = vcombine.high %v868_v30, %v872_v43  ;;  %v11413_v35 = vld [vmem:[#allocation16 + $0x70] sm:$0xff]   ;;  %v8976_v60 = vpack.c.bf16 %v8968_v27, %v8968_v27  ;;  %v10269_v2 = vcombine.low %v868_v30, %v872_v43  ;;  %v11423_v27 = vld [vmem:[#allocation16 + $0x48] sm:$0xff]  }
 0x52f   :  { %v860_v48 = vld [vmem:[#allocation13 + $0xa18] sm:$0xff] }
 0x530   :  { %8699 = vmatpush2.bf16.msra.mxu1 %v10309_v44  ;;  %v864_v24 = vld [vmem:[#allocation13 + $0xa38] sm:$0xff] }
 0x531   :  { %8910 = vmatpush2.bf16.msra.mxu0 %v10925_v21  ;;  %8700 = vmatprep.subr.bf16.mxu1 %v10302_v61  ;;  %v11414_v6 = vld [vmem:[#allocation16 + $0x30] sm:$0xff]   ;;  %v10262_v8 = vcombine.high %v860_v48, %v864_v24  ;;  %v10261_v61 = vcombine.low %v860_v48, %v864_v24  ;;  %v7854_v48 = vadd.f32 %v12057_v37, %v12086_v18  ;;  %v11425_v24 = vld [vmem:[#allocation16 + $0x40] sm:$0xff]   ;;  %v11428_v18 = vld [vmem:[#allocation16 + $0x138] sm:$0xff]  }
 0x532   :  { %8911 = vmatprep.subr.bf16.mxu0 %v10918_v10  ;;  %v1108_v44 = vld [vmem:[#allocation13 + $0x11d8] sm:$0xff]  ;;  %v11416_v10 = vld [vmem:[#allocation16 + $0x28] sm:$0xff]  }
 0x533   :  { %v1112_v21 = vld [vmem:[#allocation13 + $0x11f8] sm:$0xff] }
 0x534   :  { %8701 = vmatpush2.bf16.msra.mxu1 %v10301_v14  ;;  %v10510_v17 = vcombine.high %v1108_v44, %v1112_v21  ;;  %v1100_v20 = vld [vmem:[#allocation13 + $0x1198] sm:$0xff]  ;;  %v10509_v45 = vcombine.low %v1108_v44, %v1112_v21  ;;  %v11418_v14 = vld [vmem:[#allocation16 + $0x20] sm:$0xff]   ;;  %v8967_v44 = vmax.f32 %v7854_v48, 0.0 }
 0x535   :  { %8912 = vmatpush2.bf16.msra.mxu0 %v10917_v49  ;;  %8702 = vmatprep.subr.bf16.mxu1 %v10294_v29  ;;  %v11419_v29 = vld [vmem:[#allocation16 + $0x58] sm:$0xff]   ;;  %v1096_v19 = vld [vmem:[#allocation13 + $0x1178] sm:$0xff] }
 0x536   :  { %8913 = vmatprep.subr.bf16.mxu0 %v10910_v22  ;;  %v1092_v22 = vld [vmem:[#allocation13 + $0x1158] sm:$0xff] }
 0x537   :  { %v1084_v9 = vld [vmem:[#allocation13 + $0x1118] sm:$0xff] }
 0x538   :  { %8703 = vmatpush2.bf16.msra.mxu1 %v10293_v33  ;;  %v11420_v33 = vld [vmem:[#allocation16 + $0x18] sm:$0xff]   ;;  %v1088_v57 = vld [vmem:[#allocation13 + $0x1138] sm:$0xff] }
 0x539   :  { %8914 = vmatpush2.bf16.msra.mxu0 %v10909_v0  ;;  %8704 = vmatprep.subr.bf16.mxu1 %v10286_v40  ;;  %v10494_v0 = vcombine.high %v1092_v22, %v1096_v19  ;;  %v1076_v30 = vld [vmem:[#allocation13 + $0x10d8] sm:$0xff] }
 0x53a   :  { %8915 = vmatprep.subr.bf16.mxu0 %v10902_v38  ;;  %v11421_v38 = vld [vmem:[#allocation16 + $0x50] sm:$0xff]  }
 0x53b   :  { %v1080_v43 = vld [vmem:[#allocation13 + $0x10f8] sm:$0xff] }
 0x53c   :  { %8705 = vmatpush2.bf16.msra.mxu1 %v10285_v28  ;;  %v1060_v21 = vld [vmem:[#allocation13 + $0x1058] sm:$0xff] }
 0x53d   :  { %8916 = vmatpush2.bf16.msra.mxu0 %v10901_v46  ;;  %8706 = vmatprep.subr.bf16.mxu1 %v10278_v53  ;;  %v10486_v53 = vcombine.high %v1084_v9, %v1088_v57 }
 0x53e   :  { %11201 = vmatprep.subr.bf16.mxu0 %v11411_v54 }
 0x540   :  { %8707 = vmatpush2.bf16.msra.mxu1 %v10277_v59  ;;  %8918 = vmatmul.mubr.bf16.vlgmr.msra.gmra.mxu0 %v12033_v16  ;;  %v1104_v16 = vld [vmem:[#allocation13 + $0x11b8] sm:$0xff]  ;;  %v12214_v40 = vpop.f32.mrf.mxu0 }
 0x541   :  { %11202 = vmatpush3.bf16.msra.mxu0 %v11412_v56  ;;  %9534 = vmatprep.mubr.bf16.mxu0 %v8976_v60  ;;  %v10502_v49 = vcombine.high %v1100_v20, %v1104_v16  ;;  %v10501_v47 = vcombine.low %v1100_v20, %v1104_v16  ;;  %v10485_v56 = vcombine.low %v1084_v9, %v1088_v57  ;;  %v1068_v60 = vld [vmem:[#allocation13 + $0x1098] sm:$0xff] }
 0x542   :  { %8708 = vmatprep.subr.bf16.mxu1 %v10270_v39  ;;  %11203 = vmatprep.subr.bf16.mxu0 %v11413_v35  ;;  %v12216_v28 = vpop.f32.mrf.mxu0  ;;  %v11424_v39 = vld [vmem:[#allocation16 + $0x8] sm:$0xff]   ;;  %v10478_v35 = vcombine.high %v1076_v30, %v1080_v43  ;;  %v1052_v20 = vld [vmem:[#allocation13 + $0x1018] sm:$0xff] }
 0x543   :  { %v1056_v16 = vld [vmem:[#allocation13 + $0x1038] sm:$0xff] }
 0x544   :  { %8709 = vmatpush2.bf16.msra.mxu1 %v10269_v2  ;;  %v8677_v54 = vpop.f32.mrf.mxu0  ;;  %v1072_v2 = vld [vmem:[#allocation13 + $0x10b8] sm:$0xff] }
 0x545   :  { %11204 = vmatpush3.bf16.msra.mxu0 %v11414_v6  ;;  %8710 = vmatprep.subr.bf16.mxu1 %v10262_v8  ;;  %v10477_v6 = vcombine.low %v1076_v30, %v1080_v43  ;;  %v11426_v8 = vld [vmem:[#allocation16] sm:$0xff]   ;;  %v1164_v9 = vld [vmem:[#allocation13 + $0x1398] sm:$0xff] }
 0x546   :  { %11205 = vmatprep.subr.bf16.mxu0 %v11415_v11  ;;  %v8678_v59 = vpop.f32.mrf.mxu0  ;;  %v10470_v11 = vcombine.high %v1068_v60, %v1072_v2  ;;  %v1168_v57 = vld [vmem:[#allocation13 + $0x13b8] sm:$0xff] }
 0x547   :  { %v1160_v54 = vld [vmem:[#allocation13 + $0x1378] sm:$0xff]  ;;  %v10565_v30 = vcombine.low %v1164_v9, %v1168_v57  ;;  %v11436_v59 = vld [vmem:[#allocation16 + $0x118] sm:$0xff]  }
 0x548   :  { %8711 = vmatpush2.bf16.msra.mxu1 %v10261_v61  ;;  %v1064_v61 = vld [vmem:[#allocation13 + $0x1078] sm:$0xff] }
 0x549   :  { %11206 = vmatpush3.bf16.msra.mxu0 %v11416_v10  ;;  %8762 = vmatprep.subr.bf16.mxu1 %v10510_v17  ;;  %v11427_v10 = vld [vmem:[#allocation16 + $0x178] sm:$0xff]   ;;  %v10469_v17 = vcombine.low %v1068_v60, %v1072_v2  ;;  %v10462_v37 = vcombine.high %v1060_v21, %v1064_v61  ;;  %v11438_v60 = vld [vmem:[#allocation16 + $0x110] sm:$0xff]  }
 0x54a   :  { %11207 = vmatprep.subr.bf16.mxu0 %v11417_v41  ;;  %v8975_v41 = vpack.c.bf16 %v8967_v44, %v8967_v44  ;;  %v1140_v2 = vld [vmem:[#allocation13 + $0x12d8] sm:$0xff] }
 0x54b   :  { %v12208_v36 = vpop.f32.mrf.mxu1  ;;  %8713 = vmatmul.mubr.bf16.vlgmr.msra.gmra.mxu1 %v11965_v51  ;;  %v10493_v51 = vcombine.low %v1092_v22, %v1096_v19  ;;  %v1172_v22 = vld [vmem:[#allocation13 + $0x13d8] sm:$0xff] }
 0x54c   :  { %8763 = vmatpush1.bf16.msra.mxu1 %v10509_v45  ;;  %8794 = vmatprep.mubr.bf16.mxu1 %v11967_v55  ;;  %v11422_v55 = vld [vmem:[#allocation16 + $0x10] sm:$0xff]  }
 0x54d   :  { %v12212_v25 = vpop.f32.mrf.mxu1  ;;  %11208 = vmatpush3.bf16.msra.mxu0 %v11418_v14  ;;  %8764 = vmatprep.subr.bf16.mxu1 %v10502_v49  ;;  %v11429_v45 = vld [vmem:[#allocation16 + $0x170] sm:$0xff]   ;;  %v10461_v14 = vcombine.low %v1060_v21, %v1064_v61  ;;  %v10454_v49 = vcombine.high %v1052_v20, %v1056_v16  ;;  %v11440_v21 = vld [vmem:[#allocation16 + $0x108] sm:$0xff]  }
 0x54e   :  { %11209 = vmatprep.subr.bf16.mxu0 %v11419_v29  ;;  %v11430_v29 = vld [vmem:[#allocation16 + $0x130] sm:$0xff]  }
 0x54f   :  { %v8472_v23 = vpop.f32.mrf.mxu1  ;;  %v1176_v19 = vld [vmem:[#allocation13 + $0x13f8] sm:$0xff] }
 0x550   :  { %8765 = vmatpush1.bf16.msra.mxu1 %v10501_v47  ;;  %v11431_v47 = vld [vmem:[#allocation16 + $0x168] sm:$0xff]   ;;  %v11433_v23 = vld [vmem:[#allocation16 + $0x160] sm:$0xff]   ;;  %v1132_v61 = vld [vmem:[#allocation13 + $0x1298] sm:$0xff] }
 0x551   :  { %v8473_v46 = vpop.f32.mrf.mxu1  ;;  %11210 = vmatpush3.bf16.msra.mxu0 %v11420_v33  ;;  %8766 = vmatprep.subr.bf16.mxu1 %v10494_v0  ;;  %v10453_v33 = vcombine.low %v1052_v20, %v1056_v16  ;;  %v10574_v0 = vcombine.high %v1172_v22, %v1176_v19  ;;  %v1124_v20 = vld [vmem:[#allocation13 + $0x1258] sm:$0xff] }
 0x552   :  { %11211 = vmatprep.subr.bf16.mxu0 %v11421_v38  ;;  %v11432_v38 = vld [vmem:[#allocation16 + $0x128] sm:$0xff]   ;;  %v10566_v46 = vcombine.high %v1164_v9, %v1168_v57  ;;  %v1128_v16 = vld [vmem:[#allocation13 + $0x1278] sm:$0xff]  ;;  %v8430_v57 = vadd.f32 %v12171_v63, %v12201_v13 }
 0x554   :  { %8767 = vmatpush1.bf16.msra.mxu1 %v10493_v51  ;;  %v10573_v51 = vcombine.low %v1172_v22, %v1176_v19  ;;  %v10525_v22 = vcombine.low %v1124_v20, %v1128_v16 }
 0x555   :  { %11212 = vmatpush3.bf16.msra.mxu0 %v11422_v55  ;;  %8768 = vmatprep.subr.bf16.mxu1 %v10486_v53  ;;  %v11434_v55 = vld [vmem:[#allocation16 + $0x120] sm:$0xff]   ;;  %v1156_v53 = vld [vmem:[#allocation13 + $0x1358] sm:$0xff] }
 0x556   :  { %11213 = vmatprep.subr.bf16.mxu0 %v11423_v27  ;;  %v11435_v27 = vld [vmem:[#allocation16 + $0x158] sm:$0xff]   ;;  %v10558_v43 = vcombine.high %v1156_v53, %v1160_v54  ;;  %v10557_v48 = vcombine.low %v1156_v53, %v1160_v54 }
 0x558   :  { %8769 = vmatpush1.bf16.msra.mxu1 %v10485_v56  ;;  %v1148_v56 = vld [vmem:[#allocation13 + $0x1318] sm:$0xff] }
 0x559   :  { %11214 = vmatpush3.bf16.msra.mxu0 %v11424_v39  ;;  %8770 = vmatprep.subr.bf16.mxu1 %v10478_v35  ;;  %v1152_v39 = vld [vmem:[#allocation13 + $0x1338] sm:$0xff] }
 0x55a   :  { %11215 = vmatprep.subr.bf16.mxu0 %v11425_v24  ;;  %v11437_v35 = vld [vmem:[#allocation16 + $0x150] sm:$0xff]   ;;  %v10550_v24 = vcombine.high %v1148_v56, %v1152_v39 }
 0x55c   :  { %8771 = vmatpush1.bf16.msra.mxu1 %v10477_v6  ;;  %v1144_v6 = vld [vmem:[#allocation13 + $0x12f8] sm:$0xff] }
 0x55d   :  { %11216 = vmatpush3.bf16.msra.mxu0 %v11426_v8  ;;  %8772 = vmatprep.subr.bf16.mxu1 %v10470_v11  ;;  %v11439_v8 = vld [vmem:[#allocation16 + $0x148] sm:$0xff]   ;;  %v10549_v11 = vcombine.low %v1148_v56, %v1152_v39  ;;  %v10542_v44 = vcombine.high %v1140_v2, %v1144_v6 }
 0x55e   :  { %11245 = vmatprep.subr.bf16.mxu0 %v11427_v10  ;;  %v1136_v10 = vld [vmem:[#allocation13 + $0x12b8] sm:$0xff] }
 0x560   :  { %8773 = vmatpush1.bf16.msra.mxu1 %v10469_v17  ;;  %9535 = vmatmul.mubr.bf16.vlgmr.msra.gmra.mxu0 %v8975_v41  ;;  %v11441_v17 = vld [vmem:[#allocation16 + $0x140] sm:$0xff]  }
 0x561   :  { %8774 = vmatprep.subr.bf16.mxu1 %v10462_v37  ;;  %11246 = vmatpush3.bf16.msra.mxu0 %v11428_v18  ;;  %v10541_v37 = vcombine.low %v1140_v2, %v1144_v6  ;;  %v10534_v18 = vcombine.high %v1132_v61, %v1136_v10  ;;  %v11442_v41 = vld [vmem:[#allocation16 + $0x100] sm:$0xff]  }
 0x562   :  { %11247 = vmatprep.subr.bf16.mxu0 %v11429_v45  ;;  %v10533_v45 = vcombine.low %v1132_v61, %v1136_v10 }
 0x564   :  { %8775 = vmatpush1.bf16.msra.mxu1 %v10461_v14  ;;  %v10526_v14 = vcombine.high %v1124_v20, %v1128_v16  ;;  %v1316_v20 = vld [vmem:[#allocation13 + $0x1858] sm:$0xff] }
 0x565   :  { %8776 = vmatprep.subr.bf16.mxu1 %v10454_v49  ;;  %11248 = vmatpush3.bf16.msra.mxu0 %v11430_v29  ;;  %v1116_v49 = vld [vmem:[#allocation13 + $0x1218] sm:$0xff] }
 0x566   :  { %11249 = vmatprep.subr.bf16.mxu0 %v11431_v47  ;;  %v1120_v29 = vld [vmem:[#allocation13 + $0x1238] sm:$0xff] }
 0x567   :  { %v10518_v19 = vcombine.high %v1116_v49, %v1120_v29  ;;  %v1364_v47 = vld [vmem:[#allocation13 + $0x19d8] sm:$0xff] }
 0x568   :  { %8777 = vmatpush1.bf16.msra.mxu1 %v10453_v33  ;;  %v1368_v33 = vld [vmem:[#allocation13 + $0x19f8] sm:$0xff] }
 0x569   :  { %8778 = vmatprep.subr.bf16.mxu1 %v10574_v0  ;;  %11250 = vmatpush3.bf16.msra.mxu0 %v11432_v38  ;;  %v8428_v0 = vadd.f32 %v12167_v32, %v12196_v7  ;;  %v10517_v38 = vcombine.low %v1116_v49, %v1120_v29  ;;  %v10766_v9 = vcombine.high %v1364_v47, %v1368_v33  ;;  %v1348_v7 = vld [vmem:[#allocation13 + $0x1958] sm:$0xff] }
 0x56a   :  { %11251 = vmatprep.subr.bf16.mxu0 %v11433_v23  ;;  %v10765_v53 = vcombine.low %v1364_v47, %v1368_v33  ;;  %v1320_v16 = vld [vmem:[#allocation13 + $0x1878] sm:$0xff] }
 0x56b   :  { %v8469_v23 = vadd.f32 %v12208_v36, %v8428_v0  ;;  %v1308_v49 = vld [vmem:[#allocation13 + $0x1818] sm:$0xff] }
 0x56c   :  { %8779 = vmatpush2.bf16.msra.mxu1 %v10573_v51  ;;  %v1356_v51 = vld [vmem:[#allocation13 + $0x1998] sm:$0xff] }
 0x56d   :  { %8780 = vmatprep.subr.bf16.mxu1 %v10566_v46  ;;  %11252 = vmatpush3.bf16.msra.mxu0 %v11434_v55  ;;  %v1360_v46 = vld [vmem:[#allocation13 + $0x19b8] sm:$0xff]  ;;  %v8471_v55 = vadd.f32 %v12212_v25, %v8430_v57  ;;  %v8510_v32 = vadd.f32 %v12183_v42, %v8469_v23 }
 0x56e   :  { %11253 = vmatprep.subr.bf16.mxu0 %v11435_v27  ;;  %v10758_v27 = vcombine.high %v1356_v51, %v1360_v46  ;;  %v10757_v25 = vcombine.low %v1356_v51, %v1360_v46  ;;  %v1312_v29 = vld [vmem:[#allocation13 + $0x1838] sm:$0xff] }
 0x56f   :  { %v8512_v13 = vadd.f32 %v12187_v52, %v8471_v55  ;;  %v1428_v47 = vld [vmem:[#allocation13 + $0x1bd8] sm:$0xff]  ;;  %v10709_v0 = vcombine.low %v1308_v49, %v1312_v29 }
 0x570   :  { %8781 = vmatpush2.bf16.msra.mxu1 %v10565_v30  ;;  %v1352_v30 = vld [vmem:[#allocation13 + $0x1978] sm:$0xff] }
 0x571   :  { %8782 = vmatprep.subr.bf16.mxu1 %v10558_v43  ;;  %11254 = vmatpush3.bf16.msra.mxu0 %v11436_v59  ;;  %v10750_v56 = vcombine.high %v1348_v7, %v1352_v30  ;;  %v10749_v52 = vcombine.low %v1348_v7, %v1352_v30  ;;  %v1432_v33 = vld [vmem:[#allocation13 + $0x1bf8] sm:$0xff] }
 0x572   :  { %11255 = vmatprep.subr.bf16.mxu0 %v11437_v35  ;;  %v1424_v57 = vld [vmem:[#allocation13 + $0x1bb8] sm:$0xff]  ;;  %v10829_v23 = vcombine.low %v1428_v47, %v1432_v33 }
 0x573   :  { %v1412_v46 = vld [vmem:[#allocation13 + $0x1b58] sm:$0xff] }
 0x574   :  { %8783 = vmatpush2.bf16.msra.mxu1 %v10557_v48  ;;  %v1340_v48 = vld [vmem:[#allocation13 + $0x1918] sm:$0xff] }
 0x575   :  { %8784 = vmatprep.subr.bf16.mxu1 %v10550_v24  ;;  %11256 = vmatpush3.bf16.msra.mxu0 %v11438_v60  ;;  %v1344_v24 = vld [vmem:[#allocation13 + $0x1938] sm:$0xff] }
 0x576   :  { %11257 = vmatprep.subr.bf16.mxu0 %v11439_v8  ;;  %v10741_v10 = vcombine.low %v1340_v48, %v1344_v24  ;;  %v1416_v55 = vld [vmem:[#allocation13 + $0x1b78] sm:$0xff] }
 0x577   :  { %v1408_v7 = vld [vmem:[#allocation13 + $0x1b38] sm:$0xff]  ;;  %v10813_v30 = vcombine.low %v1412_v46, %v1416_v55 }
 0x578   :  { %8785 = vmatpush2.bf16.msra.mxu1 %v10549_v11  ;;  %v10742_v11 = vcombine.high %v1340_v48, %v1344_v24  ;;  %v1380_v48 = vld [vmem:[#allocation13 + $0x1a58] sm:$0xff] }
 0x579   :  { %8786 = vmatprep.subr.bf16.mxu1 %v10542_v44  ;;  %11258 = vmatpush3.bf16.msra.mxu0 %v11440_v21  ;;  %v1332_v44 = vld [vmem:[#allocation13 + $0x18d8] sm:$0xff] }
 0x57a   :  { %11259 = vmatprep.subr.bf16.mxu0 %v11441_v17  ;;  %v1336_v21 = vld [vmem:[#allocation13 + $0x18f8] sm:$0xff] }
 0x57b   :  { %v1384_v24 = vld [vmem:[#allocation13 + $0x1a78] sm:$0xff] }
 0x57c   :  { %8787 = vmatpush2.bf16.msra.mxu1 %v10541_v37  ;;  %v1324_v37 = vld [vmem:[#allocation13 + $0x1898] sm:$0xff] }
 0x57d   :  { %8788 = vmatprep.subr.bf16.mxu1 %v10534_v18  ;;  %11260 = vmatpush3.bf16.msra.mxu0 %v11442_v41  ;;  %v1328_v18 = vld [vmem:[#allocation13 + $0x18b8] sm:$0xff] }
 0x57e   :  { %11327 = vmatprep.subr.bf16.mxu0 %v11811_v12  ;;  %v10726_v41 = vcombine.high %v1324_v37, %v1328_v18 }
 0x580   :  { %8789 = vmatpush2.bf16.msra.mxu1 %v10533_v45  ;;  %v12227_v54 = vpop.f32.mrf.mxu0  ;;  %v10725_v45 = vcombine.low %v1324_v37, %v1328_v18  ;;  %v1616_v37 = vld [vmem:[#allocation13 + $0x21b8] sm:$0xff] }
 0x581   :  { %8790 = vmatprep.subr.bf16.mxu1 %v10526_v14  ;;  %v10718_v14 = vcombine.high %v1316_v20, %v1320_v16 }
 0x582   :  { %v12231_v63 = vpop.f32.mrf.mxu0 }
 0x584   :  { %8791 = vmatpush2.bf16.msra.mxu1 %v10525_v22  ;;  %v8759_v39 = vpop.f32.mrf.mxu0  ;;  %v10717_v22 = vcombine.low %v1316_v20, %v1320_v16  ;;  %v1604_v20 = vld [vmem:[#allocation13 + $0x2158] sm:$0xff] }
 0x585   :  { %8792 = vmatprep.subr.bf16.mxu1 %v10518_v19  ;;  %v10710_v19 = vcombine.high %v1308_v49, %v1312_v29  ;;  %v1392_v39 = vld [vmem:[#allocation13 + $0x1ab8] sm:$0xff] }
 0x586   :  { %v1608_v16 = vld [vmem:[#allocation13 + $0x2178] sm:$0xff] }
 0x587   :  { %v11006_v29 = vcombine.high %v1604_v20, %v1608_v16 }
 0x588   :  { %8793 = vmatpush2.bf16.msra.mxu1 %v10517_v38  ;;  %v10830_v38 = vcombine.high %v1428_v47, %v1432_v33  ;;  %v11005_v33 = vcombine.low %v1604_v20, %v1608_v16  ;;  %v1636_v20 = vld [vmem:[#allocation13 + $0x2258] sm:$0xff] }
 0x589   :  { %8844 = vmatprep.subr.bf16.mxu1 %v10766_v9  ;;  %v1420_v9 = vld [vmem:[#allocation13 + $0x1b98] sm:$0xff] }
 0x58a   :  { %v10822_v51 = vcombine.high %v1420_v9, %v1424_v57  ;;  %v1640_v16 = vld [vmem:[#allocation13 + $0x2278] sm:$0xff] }
 0x58b   :  { %v8550_v43 = vpop.f32.mrf.mxu1  ;;  %8795 = vmatmul.mubr.bf16.vlgmr.msra.gmra.mxu1 %v11971_v3  ;;  %v8760_v3 = vpop.f32.mrf.mxu0 }
 0x58c   :  { %v8551_v36 = vadd.f32 %v8550_v43, %v8510_v32  ;;  %8845 = vmatpush1.bf16.msra.mxu1 %v10765_v53  ;;  %8876 = vmatprep.mubr.bf16.mxu1 %v11973_v5  ;;  %v10821_v53 = vcombine.low %v1420_v9, %v1424_v57  ;;  %v1404_v32 = vld [vmem:[#allocation13 + $0x1b18] sm:$0xff]  ;;  %v10782_v3 = vcombine.high %v1380_v48, %v1384_v24 }
 0x58d   :  { %v8552_v59 = vpop.f32.mrf.mxu1  ;;  %8846 = vmatprep.subr.bf16.mxu1 %v10758_v27  ;;  %v10814_v27 = vcombine.high %v1412_v46, %v1416_v55  ;;  %v10806_v43 = vcombine.high %v1404_v32, %v1408_v7  ;;  %v1588_v9 = vld [vmem:[#allocation13 + $0x20d8] sm:$0xff] }
 0x58e   :  { %v8553_v35 = vadd.f32 %v8552_v59, %v8512_v13  ;;  %v8592_v42 = vadd.f32 %v12199_v62, %v8551_v36  ;;  %v10734_v62 = vcombine.high %v1332_v44, %v1336_v21  ;;  %v1396_v13 = vld [vmem:[#allocation13 + $0x1ad8] sm:$0xff] }
 0x58f   :  { %v8554_v60 = vpop.f32.mrf.mxu1  ;;  %v1400_v36 = vld [vmem:[#allocation13 + $0x1af8] sm:$0xff] }
 0x590   :  { %v8594_v2 = vadd.f32 %v12203_v15, %v8553_v35  ;;  %8847 = vmatpush1.bf16.msra.mxu1 %v10757_v25  ;;  %v8971_v6 = vmax.f32 %v8592_v42, 0.0  ;;  %v10733_v15 = vcombine.low %v1332_v44, %v1336_v21  ;;  %v10805_v25 = vcombine.low %v1404_v32, %v1408_v7  ;;  %v1624_v44 = vld [vmem:[#allocation13 + $0x21f8] sm:$0xff] }
 0x591   :  { %v8555_v8 = vpop.f32.mrf.mxu1  ;;  %8848 = vmatprep.subr.bf16.mxu1 %v10750_v56  ;;  %v10798_v59 = vcombine.high %v1396_v13, %v1400_v36  ;;  %v1388_v56 = vld [vmem:[#allocation13 + $0x1a98] sm:$0xff]  ;;  %v10797_v35 = vcombine.low %v1396_v13, %v1400_v36 }
 0x592   :  { %v8972_v5 = vmax.f32 %v8594_v2, 0.0  ;;  %v8979_v17 = vpack.c.bf16 %v8971_v6, %v8971_v6  ;;  %v10790_v42 = vcombine.high %v1388_v56, %v1392_v39  ;;  %v10789_v60 = vcombine.low %v1388_v56, %v1392_v39  ;;  %v1372_v2 = vld [vmem:[#allocation13 + $0x1a18] sm:$0xff] }
 0x593   :  { %v10781_v6 = vcombine.low %v1380_v48, %v1384_v24  ;;  %v1592_v57 = vld [vmem:[#allocation13 + $0x20f8] sm:$0xff] }
 0x594   :  { %v8980_v61 = vpack.c.bf16 %v8972_v5, %v8972_v5  ;;  %8849 = vmatpush1.bf16.msra.mxu1 %v10749_v52  ;;  %v1376_v52 = vld [vmem:[#allocation13 + $0x1a38] sm:$0xff]  ;;  %v10989_v46 = vcombine.low %v1588_v9, %v1592_v57 }
 0x595   :  { %8850 = vmatprep.subr.bf16.mxu1 %v10742_v11  ;;  %v10774_v11 = vcombine.high %v1372_v2, %v1376_v52  ;;  %v1620_v5 = vld [vmem:[#allocation13 + $0x21d8] sm:$0xff] }
 0x596   :  { %9614 = vmatprep.mubr.bf16.mxu0 %v8980_v61  ;;  %v10773_v61 = vcombine.low %v1372_v2, %v1376_v52 }
 0x597   :  { %9615 = vmatmul.mubr.bf16.vlgmr.msra.gmra.mxu0 %v8979_v17  ;;  %v11022_v17 = vcombine.high %v1620_v5, %v1624_v44 }
 0x598   :  { %8851 = vmatpush1.bf16.msra.mxu1 %v10741_v10  ;;  %11343 = vmatprep.mubr.msk.bf16.mxu0 %vm11812_vm0, %v11811_v12 }
 0x599   :  { %8852 = vmatprep.subr.bf16.mxu1 %v10734_v62  ;;  %v1612_v62 = vld [vmem:[#allocation13 + $0x2198] sm:$0xff] }
 0x59c   :  { %8853 = vmatpush1.bf16.msra.mxu1 %v10733_v15  ;;  %v11021_v15 = vcombine.low %v1620_v5, %v1624_v44 }
 0x59d   :  { %8854 = vmatprep.subr.bf16.mxu1 %v10726_v41  ;;  %v11014_v41 = vcombine.high %v1612_v62, %v1616_v37 }
 0x5a0   :  { %8855 = vmatpush1.bf16.msra.mxu1 %v10725_v45 }
 0x5a1   :  { %8856 = vmatprep.subr.bf16.mxu1 %v10718_v14  ;;  %v11013_v14 = vcombine.low %v1612_v62, %v1616_v37  ;;  %v1644_v37 = vld [vmem:[#allocation13 + $0x2298] sm:$0xff] }
 0x5a4   :  { %8857 = vmatpush1.bf16.msra.mxu1 %v10717_v22  ;;  %v1596_v22 = vld [vmem:[#allocation13 + $0x2118] sm:$0xff] }
 0x5a5   :  { %8858 = vmatprep.subr.bf16.mxu1 %v10710_v19  ;;  %v1600_v19 = vld [vmem:[#allocation13 + $0x2138] sm:$0xff] }
 0x5a8   :  { %8859 = vmatpush1.bf16.msra.mxu1 %v10709_v0 }
 0x5a9   :  { %8860 = vmatprep.subr.bf16.mxu1 %v10830_v38  ;;  %v10998_v38 = vcombine.high %v1596_v22, %v1600_v19 }
 0x5ac   :  { %8861 = vmatpush2.bf16.msra.mxu1 %v10829_v23  ;;  %v10990_v23 = vcombine.high %v1588_v9, %v1592_v57  ;;  %v11497_v57 = vld [vmem:[#allocation14] sm:$0xff] }
 0x5ad   :  { %8862 = vmatprep.subr.bf16.mxu1 %v10822_v51  ;;  %v1580_v51 = vld [vmem:[#allocation13 + $0x2098] sm:$0xff] }
 0x5b0   :  { %8863 = vmatpush2.bf16.msra.mxu1 %v10821_v53  ;;  %v1572_v53 = vld [vmem:[#allocation13 + $0x2058] sm:$0xff] }
 0x5b1   :  { %8864 = vmatprep.subr.bf16.mxu1 %v10814_v27  ;;  %v1576_v27 = vld [vmem:[#allocation13 + $0x2078] sm:$0xff] }
 0x5b2   :  { %v10974_v7 = vcombine.high %v1572_v53, %v1576_v27  ;;  %v10973_v13 = vcombine.low %v1572_v53, %v1576_v27  ;;  %v8970_v53 = vmax.f32 %v12169_v4, 0.0  ;;  %v11446_v4 = vld [vmem:[#allocation16 + $0xb0] sm:$0xff]  }
 0x5b4   :  { %8865 = vmatpush2.bf16.msra.mxu1 %v10813_v30  ;;  %v1564_v30 = vld [vmem:[#allocation13 + $0x2018] sm:$0xff] }
 0x5b5   :  { %8866 = vmatprep.subr.bf16.mxu1 %v10806_v43  ;;  %v1568_v43 = vld [vmem:[#allocation13 + $0x2038] sm:$0xff] }
 0x5b6   :  { %v10966_v36 = vcombine.high %v1564_v30, %v1568_v43  ;;  %v10965_v56 = vcombine.low %v1564_v30, %v1568_v43  ;;  %v11445_v30 = vld [vmem:[#allocation16 + $0xf0] sm:$0xff]   ;;  %v8978_v43 = vpack.c.bf16 %v8970_v53, %v8970_v53 }
 0x5b8   :  { %8867 = vmatpush2.bf16.msra.mxu1 %v10805_v25  ;;  %v1684_v25 = vld [vmem:[#allocation13 + $0x23d8] sm:$0xff] }
 0x5b9   :  { %8868 = vmatprep.subr.bf16.mxu1 %v10798_v59  ;;  %v1688_v59 = vld [vmem:[#allocation13 + $0x23f8] sm:$0xff] }
 0x5ba   :  { %v11086_v39 = vcombine.high %v1684_v25, %v1688_v59  ;;  %v11085_v48 = vcombine.low %v1684_v25, %v1688_v59 }
 0x5bc   :  { %8869 = vmatpush2.bf16.msra.mxu1 %v10797_v35  ;;  %v1676_v35 = vld [vmem:[#allocation13 + $0x2398] sm:$0xff] }
 0x5bd   :  { %8870 = vmatprep.subr.bf16.mxu1 %v10790_v42  ;;  %v1680_v42 = vld [vmem:[#allocation13 + $0x23b8] sm:$0xff] }
 0x5be   :  { %v11078_v24 = vcombine.high %v1676_v35, %v1680_v42  ;;  %v11077_v2 = vcombine.low %v1676_v35, %v1680_v42  ;;  %v11448_v35 = vld [vmem:[#allocation16 + $0xa8] sm:$0xff]  }
 0x5c0   :  { %8871 = vmatpush2.bf16.msra.mxu1 %v10789_v60  ;;  %v12239_v8 = vpop.f32.mrf.mxu0  ;;  %v1668_v60 = vld [vmem:[#allocation13 + $0x2358] sm:$0xff] }
 0x5c1   :  { %8872 = vmatprep.subr.bf16.mxu1 %v10782_v3  ;;  %v1672_v3 = vld [vmem:[#allocation13 + $0x2378] sm:$0xff] }
 0x5c2   :  { %v12241_v21 = vpop.f32.mrf.mxu0  ;;  %v11070_v52 = vcombine.high %v1668_v60, %v1672_v3  ;;  %v11069_v5 = vcombine.low %v1668_v60, %v1672_v3  ;;  %v11454_v60 = vld [vmem:[#allocation16 + $0x90] sm:$0xff]   ;;  %v11455_v3 = vld [vmem:[#allocation16 + $0xc8] sm:$0xff]  }
 0x5c4   :  { %8873 = vmatpush2.bf16.msra.mxu1 %v10781_v6  ;;  %v8841_v10 = vpop.f32.mrf.mxu0  ;;  %v1660_v6 = vld [vmem:[#allocation13 + $0x2318] sm:$0xff] }
 0x5c5   :  { %8874 = vmatprep.subr.bf16.mxu1 %v10774_v11  ;;  %v1664_v11 = vld [vmem:[#allocation13 + $0x2338] sm:$0xff] }
 0x5c6   :  { %v8842_v18 = vpop.f32.mrf.mxu0  ;;  %v11062_v44 = vcombine.high %v1660_v6, %v1664_v11  ;;  %v1656_v10 = vld [vmem:[#allocation13 + $0x22f8] sm:$0xff] }
 0x5c7   :  { %v1648_v18 = vld [vmem:[#allocation13 + $0x22b8] sm:$0xff] }
 0x5c8   :  { %8875 = vmatpush2.bf16.msra.mxu1 %v10773_v61  ;;  %v1652_v61 = vld [vmem:[#allocation13 + $0x22d8] sm:$0xff] }
 0x5c9   :  { %8926 = vmatprep.subr.bf16.mxu1 %v11022_v17  ;;  %v11061_v17 = vcombine.low %v1660_v6, %v1664_v11  ;;  %v11054_v62 = vcombine.high %v1652_v61, %v1656_v10  ;;  %v11457_v6 = vld [vmem:[#allocation16 + $0xc0] sm:$0xff]  }
 0x5cb   :  { %v12243_v45 = vpop.f32.mrf.mxu1  ;;  %8877 = vmatmul.mubr.bf16.vlgmr.msra.gmra.mxu1 %v11983_v26  ;;  %v10997_v26 = vcombine.low %v1596_v22, %v1600_v19  ;;  %v1717_v22 = vsub.s32 6, %v12027_v31  ;;  %v1628_v19 = vld [vmem:[#allocation13 + $0x2218] sm:$0xff] }
 0x5cc   :  { %8927 = vmatpush1.bf16.msra.mxu1 %v11021_v15  ;;  %8958 = vmatprep.mubr.bf16.mxu1 %v11985_v34  ;;  %v1584_v34 = vld [vmem:[#allocation13 + $0x20b8] sm:$0xff]  ;;  %v11053_v15 = vcombine.low %v1652_v61, %v1656_v10  ;;  %v11458_v61 = vld [vmem:[#allocation16 + $0x80] sm:$0xff]   ;;  %v8969_v10 = vmax.f32 %v12164_v58, 0.0  ;;  %v11467_v58 = vld [vmem:[#allocation16 + $0x1d8] sm:$0xff]  }
 0x5cd   :  { %v12247_v49 = vpop.f32.mrf.mxu1  ;;  %8928 = vmatprep.subr.bf16.mxu1 %v11014_v41  ;;  %v10982_v55 = vcombine.high %v1580_v51, %v1584_v34  ;;  %v10981_v32 = vcombine.low %v1580_v51, %v1584_v34  ;;  %v11046_v41 = vcombine.high %v1644_v37, %v1648_v18 }
 0x5cf   :  { %v8636_v47 = vpop.f32.mrf.mxu1 }
 0x5d0   :  { %8929 = vmatpush1.bf16.msra.mxu1 %v11013_v14  ;;  %v11045_v14 = vcombine.low %v1644_v37, %v1648_v18  ;;  %v1632_v47 = vld [vmem:[#allocation13 + $0x2238] sm:$0xff]  ;;  %v11460_v37 = vld [vmem:[#allocation16 + $0x1b8] sm:$0xff]   ;;  %v8977_v18 = vpack.c.bf16 %v8969_v10, %v8969_v10 }
 0x5d1   :  { %v8637_v0 = vpop.f32.mrf.mxu1  ;;  %8930 = vmatprep.subr.bf16.mxu1 %v11006_v29  ;;  %v11038_v29 = vcombine.high %v1636_v20, %v1640_v16  ;;  %v11030_v9 = vcombine.high %v1628_v19, %v1632_v47  ;;  %v11029_v34 = vcombine.low %v1628_v19, %v1632_v47  ;;  %v11469_v19 = vld [vmem:[#allocation16 + $0x1d0] sm:$0xff]  }
 0x5d2   :  { %v11037_v0 = vcombine.low %v1636_v20, %v1640_v16  ;;  %v11463_v20 = vld [vmem:[#allocation16 + $0x1e8] sm:$0xff]   ;;  %v11470_v47 = vld [vmem:[#allocation16 + $0x190] sm:$0xff]  }
 0x5d3   :  { %v11464_v16 = vld [vmem:[#allocation16 + $0x1a8] sm:$0xff]  }
 0x5d4   :  { %8931 = vmatpush1.bf16.msra.mxu1 %v11005_v33  ;;  %v1721_v33 = vsub.s32 7, %v12027_v31 }
 0x5d5   :  { %8932 = vmatprep.subr.bf16.mxu1 %v10998_v38 }
 0x5d6   :  { %v1722_v51 = vrot.slane %v11497_v57, %v1721_v33 }
 0x5d8   :  { %8933 = vmatpush1.bf16.msra.mxu1 %v10997_v26  ;;  %v1718_v26 = vrot.slane %v11497_v57, %v1717_v22  ;;  %v11468_v22 = vld [vmem:[#allocation16 + $0x198] sm:$0xff]   ;;  %v11472_v57 = vld [vmem:[#allocation16 + $0x188] sm:$0xff]  }
 0x5d9   :  { %8934 = vmatprep.subr.bf16.mxu1 %v10990_v23 }
 0x5da   :  { %v8633_v31 = vadd.f32 %v12243_v45, %v1718_v26 }
 0x5dc   :  { %8935 = vmatpush1.bf16.msra.mxu1 %v10989_v46 }
 0x5dd   :  { %8936 = vmatprep.subr.bf16.mxu1 %v10982_v55  ;;  %v11443_v55 = vld [vmem:[#allocation16 + $0xf8] sm:$0xff]  }
 0x5e0   :  { %8937 = vmatpush1.bf16.msra.mxu1 %v10981_v32  ;;  %v8635_v32 = vadd.f32 %v12247_v49, %v1722_v51  ;;  %v11447_v49 = vld [vmem:[#allocation16 + $0xe8] sm:$0xff]  }
 0x5e1   :  { %8938 = vmatprep.subr.bf16.mxu1 %v10974_v7  ;;  %v11444_v7 = vld [vmem:[#allocation16 + $0xb8] sm:$0xff]  }
 0x5e2   :  { %v8676_v25 = vadd.f32 %v12216_v28, %v8635_v32  ;;  %v11451_v28 = vld [vmem:[#allocation16 + $0xd8] sm:$0xff]  }
 0x5e4   :  { %8939 = vmatpush1.bf16.msra.mxu1 %v10973_v13  ;;  %v8674_v13 = vadd.f32 %v12214_v40, %v8633_v31  ;;  %v11449_v40 = vld [vmem:[#allocation16 + $0xe0] sm:$0xff]  }
 0x5e5   :  { %8940 = vmatprep.subr.bf16.mxu1 %v10966_v36  ;;  %v11474_v31 = vld [vmem:[#allocation16 + $0x180] sm:$0xff]  }
 0x5e8   :  { %8941 = vmatpush1.bf16.msra.mxu1 %v10965_v56 }
 0x5e9   :  { %8942 = vmatprep.subr.bf16.mxu1 %v11086_v39 }
 0x5ec   :  { %8943 = vmatpush2.bf16.msra.mxu1 %v11085_v48  ;;  %v11452_v48 = vld [vmem:[#allocation16 + $0x98] sm:$0xff]  }
 0x5ed   :  { %8944 = vmatprep.subr.bf16.mxu1 %v11078_v24  ;;  %v11453_v24 = vld [vmem:[#allocation16 + $0xd0] sm:$0xff]  }
 0x5f0   :  { %8945 = vmatpush2.bf16.msra.mxu1 %v11077_v2 }
 0x5f1   :  { %8946 = vmatprep.subr.bf16.mxu1 %v11070_v52  ;;  %v11456_v52 = vld [vmem:[#allocation16 + $0x88] sm:$0xff]  }
 0x5f4   :  { %8947 = vmatpush2.bf16.msra.mxu1 %v11069_v5 }
 0x5f5   :  { %8948 = vmatprep.subr.bf16.mxu1 %v11062_v44 }
 0x5f8   :  { %8949 = vmatpush2.bf16.msra.mxu1 %v11061_v17  ;;  %v11459_v17 = vld [vmem:[#allocation16 + $0x1f8] sm:$0xff]  }
 0x5f9   :  { %8950 = vmatprep.subr.bf16.mxu1 %v11054_v62 }
 0x5fc   :  { %8951 = vmatpush2.bf16.msra.mxu1 %v11053_v15  ;;  %v11461_v15 = vld [vmem:[#allocation16 + $0x1f0] sm:$0xff]  }
 0x5fd   :  { %8952 = vmatprep.subr.bf16.mxu1 %v11046_v41  ;;  %v11462_v41 = vld [vmem:[#allocation16 + $0x1b0] sm:$0xff]  }
 0x600   :  { %8953 = vmatpush2.bf16.msra.mxu1 %v11045_v14  ;;  %v12251_v38 = vpop.f32.mrf.mxu0  ;;  %v11465_v14 = vld [vmem:[#allocation16 + $0x1e0] sm:$0xff]  }
 0x601   :  { %8954 = vmatprep.subr.bf16.mxu1 %v11038_v29  ;;  %v11466_v29 = vld [vmem:[#allocation16 + $0x1a0] sm:$0xff]  }
 0x602   :  { %v12253_v23 = vpop.f32.mrf.mxu0 }
 0x604   :  { %8955 = vmatpush2.bf16.msra.mxu1 %v11037_v0  ;;  %v8923_v46 = vpop.f32.mrf.mxu0  ;;  %v11471_v0 = vld [vmem:[#allocation16 + $0x1c8] sm:$0xff]  }
 0x605   :  { %8956 = vmatprep.subr.bf16.mxu1 %v11030_v9 }
 0x606   :  { %v8924_v27 = vpop.f32.mrf.mxu0 }
 0x608   :  { %8957 = vmatpush2.bf16.msra.mxu1 %v11029_v34 }
 0x609   :  { %11223 = vmatprep.subr.bf16.mxu1 %v11443_v55  ;;  %v11473_v55 = vld [vmem:[#allocation16 + $0x1c0] sm:$0xff]  }
 0x60b   :  { %v8714_v36 = vpop.f32.mrf.mxu1  ;;  %8959 = vmatmul.mubr.bf16.vlgmr.msra.gmra.mxu1 %v11995_v1  ;;  %v11450_v1 = vld [vmem:[#allocation16 + $0xa0] sm:$0xff]  }
 0x60c   :  { %v12261_v59 = vadd.f32 %v8714_v36, %v8674_v13  ;;  %11224 = vmatpush3.bf16.msra.mxu1 %v11444_v7  ;;  %9574 = vmatprep.mubr.bf16.mxu1 %v8978_v43  ;;  %v11483_v13 = vld [vmem:[#allocation20 + $0x38] sm:$0xff]   ;;  %v11485_v36 = vld [vmem:[#allocation20 + $0x28] sm:$0xff]  }
 0x60d   :  { %v8716_v45 = vpop.f32.mrf.mxu1  ;;  %11225 = vmatprep.subr.bf16.mxu1 %v11445_v30  ;;  %11328 = vmatpush3.bf16.msra.mxu0 %v11483_v13 }
 0x60e   :  { %v12263_v56 = vadd.f32 %v8716_v45, %v8676_v25  ;;  %v8756_v33 = vadd.f32 %v12227_v54, %v12261_v59  ;;  %11329 = vmatprep.subr.bf16.mxu0 %v11811_v12  ;;  %v11486_v25 = vld [vmem:[#allocation20 + $0x20] sm:$0xff]   ;;  %v11487_v59 = vld [vmem:[#allocation20 + $0x18] sm:$0xff]  }
 0x60f   :  { %v8718_v39 = vpop.f32.mrf.mxu1 }
 0x610   :  { %11226 = vmatpush3.bf16.msra.mxu1 %v11446_v4  ;;  %v8758_v51 = vadd.f32 %v12231_v63, %v12263_v56  ;;  %v11484_v63 = vld [vmem:[#allocation20 + $0x30] sm:$0xff]  }
 0x611   :  { %v8719_v42 = vpop.f32.mrf.mxu1  ;;  %11227 = vmatprep.subr.bf16.mxu1 %v11447_v49  ;;  %11330 = vmatpush3.bf16.msra.mxu0 %v11484_v63 }
 0x612   :  { %11331 = vmatprep.subr.bf16.mxu0 %v11811_v12 }
 0x614   :  { %11228 = vmatpush3.bf16.msra.mxu1 %v11448_v35 }
 0x615   :  { %11229 = vmatprep.subr.bf16.mxu1 %v11449_v40  ;;  %11332 = vmatpush3.bf16.msra.mxu0 %v11485_v36 }
 0x616   :  { %11333 = vmatprep.subr.bf16.mxu0 %v11811_v12 }
 0x618   :  { %11230 = vmatpush3.bf16.msra.mxu1 %v11450_v1 }
 0x619   :  { %11231 = vmatprep.subr.bf16.mxu1 %v11451_v28  ;;  %11334 = vmatpush3.bf16.msra.mxu0 %v11486_v25 }
 0x61a   :  { %11335 = vmatprep.subr.bf16.mxu0 %v11811_v12 }
 0x61c   :  { %11232 = vmatpush3.bf16.msra.mxu1 %v11452_v48 }
 0x61d   :  { %11233 = vmatprep.subr.bf16.mxu1 %v11453_v24  ;;  %11336 = vmatpush3.bf16.msra.mxu0 %v11487_v59 }
 0x61e   :  { %11337 = vmatprep.subr.bf16.mxu0 %v11811_v12 }
 0x620   :  { %11234 = vmatpush3.bf16.msra.mxu1 %v11454_v60  ;;  %v11217_v2 = vpop.f32.mrf.mxu0 }
 0x621   :  { %11235 = vmatprep.subr.bf16.mxu1 %v11455_v3 }
 0x622   :  { %v11218_v11 = vpop.f32.mrf.mxu0 }
 0x623   :  { %v12265_v5 = vadd.f32 %v11218_v11, %v11217_v2 }
 0x624   :  { %11236 = vmatpush3.bf16.msra.mxu1 %v11456_v52  ;;  %v11220_v44 = vpop.f32.mrf.mxu0 }
 0x625   :  { %11237 = vmatprep.subr.bf16.mxu1 %v11457_v6 }
 0x626   :  { %v11221_v62 = vpop.f32.mrf.mxu0 }
 0x627   :  { %v9926_v62 = vld [vmem:[#allocation11] ss:$0 sm:$0xff] }
 0x628   :  { %11238 = vmatpush3.bf16.msra.mxu1 %v11458_v61  ;;  %v11475_v61 = vld [vmem:[#allocation19 + $0x38] sm:$0xff]  }
 0x629   :  { %11267 = vmatprep.subr.bf16.mxu1 %v11459_v17  ;;  %v11480_v17 = vld [vmem:[#allocation19 + $0x10] sm:$0xff]  }
 0x62b   :  { %9575 = vmatmul.mubr.bf16.vlgmr.msra.gmra.mxu1 %v8977_v18  ;;  %v495_v18 = vadd.f32 %v9926_v62, %v12020_v50 }
 0x62c   :  { %11268 = vmatpush3.bf16.msra.mxu1 %v11460_v37  ;;  %v11481_v37 = vld [vmem:[#allocation19 + $0x8] sm:$0xff]  }
 0x62d   :  { %11269 = vmatprep.subr.bf16.mxu1 %v11461_v15  ;;  %v11087_v15 = vld [vmem:[#allocation17] ss:$0 sm:$0xff] }
 0x630   :  { %11270 = vmatpush3.bf16.msra.mxu1 %v11462_v41 }
 0x631   :  { %11271 = vmatprep.subr.bf16.mxu1 %v11463_v20 }
 0x634   :  { %11272 = vmatpush3.bf16.msra.mxu1 %v11464_v16  ;;  %v9537_v16 = vadd.f32 %v12265_v5, %v11087_v15  ;;  %v11490_v5 = vld [vmem:[#allocation20] sm:$0xff]  }
 0x635   :  { %11273 = vmatprep.subr.bf16.mxu1 %v11465_v14 }
 0x638   :  { %11274 = vmatpush3.bf16.msra.mxu1 %v11466_v29  ;;  %v11482_v29 = vld [vmem:[#allocation19] sm:$0xff]  }
 0x639   :  { %11275 = vmatprep.subr.bf16.mxu1 %v11467_v58  ;;  %v500_v58 = vmax.f32 %v495_v18, 0.0 }
 0x63b   :  { %v9663_v50 = vpack.c.bf16 %v500_v58, %v500_v58 }
 0x63c   :  { %11276 = vmatpush3.bf16.msra.mxu1 %v11468_v22 }
 0x63d   :  { %11277 = vmatprep.subr.bf16.mxu1 %v11469_v19 }
 0x640   :  { %11278 = vmatpush3.bf16.msra.mxu1 %v11470_v47 }
 0x641   :  { %11279 = vmatprep.subr.bf16.mxu1 %v11471_v0  ;;  %v11488_v0 = vld [vmem:[#allocation20 + $0x10] sm:$0xff]  }
 0x642   :  { %11338 = vmatpush3.bf16.msra.mxu0 %v11488_v0 }
 0x643   :  { %11339 = vmatprep.subr.bf16.mxu0 %v11811_v12 }
 0x644   :  { %11280 = vmatpush3.bf16.msra.mxu1 %v11472_v57 }
 0x645   :  { %11281 = vmatprep.subr.bf16.mxu1 %v11473_v55 }
 0x648   :  { %11282 = vmatpush3.bf16.msra.mxu1 %v11474_v31 }
 0x649   :  { %11347 = vmatprep.subr.bf16.mxu1 %v11811_v12 }
 0x64b   :  { %v8796_v9 = vpop.f32.mrf.mxu1 }
 0x64c   :  { %v8797_v26 = vadd.f32 %v8796_v9, %v8756_v33  ;;  %v11489_v9 = vld [vmem:[#allocation20 + $0x8] sm:$0xff]  }
 0x64d   :  { %v8798_v34 = vpop.f32.mrf.mxu1  ;;  %11340 = vmatpush3.bf16.msra.mxu0 %v11489_v9 }
 0x64e   :  { %v8799_v46 = vadd.f32 %v8798_v34, %v8758_v51  ;;  %v8838_v39 = vadd.f32 %v12239_v8, %v8797_v26  ;;  %v11476_v8 = vld [vmem:[#allocation19 + $0x30] sm:$0xff]   ;;  %11341 = vmatprep.subr.bf16.mxu0 %v11811_v12 }
 0x64f   :  { %v8800_v53 = vpop.f32.mrf.mxu1 }
 0x650   :  { %v8840_v42 = vadd.f32 %v12241_v21, %v8799_v46  ;;  %v11477_v21 = vld [vmem:[#allocation19 + $0x28] sm:$0xff]  }
 0x651   :  { %v8801_v27 = vpop.f32.mrf.mxu1  ;;  %11342 = vmatpush3.bf16.msra.mxu0 %v11490_v5 }
 0x657   :  { %v11261_v54 = vpop.f32.mrf.mxu0 }
 0x659   :  { %v11262_v32 = vpop.f32.mrf.mxu0 }
 0x65a   :  { %v12273_v7 = vadd.f32 %v11262_v32, %v11261_v54 }
 0x65b   :  { %v11264_v30 = vpop.f32.mrf.mxu0 }
 0x65d   :  { %v11265_v43 = vpop.f32.mrf.mxu0 }
 0x65e   :  { %v11168_v43 = vld [vmem:[#allocation22] ss:$0 sm:$0xff] }
 0x68b   :  { %v8878_v4 = vpop.f32.mrf.mxu1 }
 0x68c   :  { %v8879_v35 = vadd.f32 %v8878_v4, %v8838_v39 }
 0x68d   :  { %v8880_v45 = vpop.f32.mrf.mxu1 }
 0x68e   :  { %v8881_v40 = vadd.f32 %v8880_v45, %v8840_v42  ;;  %v8920_v1 = vadd.f32 %v12251_v38, %v8879_v35  ;;  %v11478_v38 = vld [vmem:[#allocation19 + $0x20] sm:$0xff]  }
 0x68f   :  { %v8882_v49 = vpop.f32.mrf.mxu1 }
 0x690   :  { %v8922_v24 = vadd.f32 %v12253_v23, %v8881_v40  ;;  %v11479_v23 = vld [vmem:[#allocation19 + $0x18] sm:$0xff]  }
 0x691   :  { %v8883_v56 = vpop.f32.mrf.mxu1 }
 0x6cb   :  { %v8960_v28 = vpop.f32.mrf.mxu1 }
 0x6cc   :  { %v8961_v48 = vadd.f32 %v8960_v28, %v8920_v1 }
 0x6cd   :  { %v8962_v60 = vpop.f32.mrf.mxu1 }
 0x6ce   :  { %v8963_v3 = vadd.f32 %v8962_v60, %v8922_v24  ;;  %v8973_v2 = vmax.f32 %v8961_v48, 0.0 }
 0x6cf   :  { %v8964_v52 = vpop.f32.mrf.mxu1 }
 0x6d0   :  { %v8974_v6 = vmax.f32 %v8963_v3, 0.0  ;;  %v8981_v10 = vpack.c.bf16 %v8973_v2, %v8973_v2 }
 0x6d1   :  { %v8965_v11 = vpop.f32.mrf.mxu1 }
 0x6d2   :  { %v8982_v44 = vpack.c.bf16 %v8974_v6, %v8974_v6 }
 0x6d4   :  { %9654 = vmatprep.mubr.bf16.mxu1 %v8982_v44 }
 0x6d5   :  { %9655 = vmatmul.mubr.bf16.vlgmr.msra.gmra.mxu1 %v8981_v10 }
 0x6d6   :  { %11348 = vmatpush3.bf16.msra.mxu1 %v11475_v61  ;;  %11363 = vmatprep.mubr.msk.bf16.mxu1 %vm11812_vm0, %v11811_v12 }
 0x6d7   :  { %11349 = vmatprep.subr.bf16.mxu1 %v11811_v12 }
 0x6da   :  { %11350 = vmatpush3.bf16.msra.mxu1 %v11476_v8 }
 0x6db   :  { %11351 = vmatprep.subr.bf16.mxu1 %v11811_v12 }
 0x6de   :  { %11352 = vmatpush3.bf16.msra.mxu1 %v11477_v21 }
 0x6df   :  { %11353 = vmatprep.subr.bf16.mxu1 %v11811_v12 }
 0x6e2   :  { %11354 = vmatpush3.bf16.msra.mxu1 %v11478_v38 }
 0x6e3   :  { %11355 = vmatprep.subr.bf16.mxu1 %v11811_v12 }
 0x6e6   :  { %11356 = vmatpush3.bf16.msra.mxu1 %v11479_v23 }
 0x6e7   :  { %11357 = vmatprep.subr.bf16.mxu1 %v11811_v12 }
 0x6ea   :  { %11358 = vmatpush3.bf16.msra.mxu1 %v11480_v17 }
 0x6eb   :  { %v11239_v41 = vpop.f32.mrf.mxu1  ;;  %11359 = vmatprep.subr.bf16.mxu1 %v11811_v12 }
 0x6ed   :  { %v11240_v20 = vpop.f32.mrf.mxu1 }
 0x6ee   :  { %v11241_v14 = vadd.f32 %v11240_v20, %v11239_v41  ;;  %11360 = vmatpush3.bf16.msra.mxu1 %v11481_v37 }
 0x6ef   :  { %v11242_v22 = vpop.f32.mrf.mxu1  ;;  %11361 = vmatprep.subr.bf16.mxu1 %v11811_v12 }
 0x6f0   :  { %v9577_v19 = vadd.f32 %v11241_v14, %v9537_v16 }
 0x6f1   :  { %v11243_v47 = vpop.f32.mrf.mxu1 }
 0x6f2   :  { %11362 = vmatpush3.bf16.msra.mxu1 %v11482_v29  ;;  %v9617_v33 = vadd.f32 %v12273_v7, %v9577_v19 }
 0x6f5   :  { %11364 = vmatmul.mubr.bf16.vlgmr.msra.gmra.mxu1 %v9663_v50 }
 0x795   :  { %v11283_v57 = vpop.f32.mrf.mxu1 }
 0x797   :  { %v11284_v26 = vpop.f32.mrf.mxu1 }
 0x798   :  { %v11285_v51 = vadd.f32 %v11284_v26, %v11283_v57 }
 0x799   :  { %v11286_v34 = vpop.f32.mrf.mxu1 }
 0x79a   :  { %v9657_v46 = vadd.f32 %v11285_v51, %v9617_v33 }
 0x79b   :  { %v11287_v55 = vpop.f32.mrf.mxu1 }
 0x79c   :  { %v9662_v53 = vmax.f32 %v9657_v46, 0.0 }
 0x79e   :  { %v9680_v31 = vpack.c.bf16 %v9662_v53, %v9662_v53 }
 0x7a0   :  { %11344 = vmatmul.mubr.bf16.vlgmr.msra.gmra.mxu0 %v9680_v31 }
 0x7b5   :  { %v9867_v27 = vpop.f32.mrf.mxu1 }
 0x7b7   :  { %v11365_v54 = vpop.f32.mrf.mxu1 }
 0x7b9   :  { %v9870_v32 = vpop.f32.mrf.mxu1 }
 0x7bb   :  { %v11366_v7 = vpop.f32.mrf.mxu1 }
 0x860   :  { %v9779_v30 = vpop.f32.mrf.mxu0 }
 0x861   :  { %v9868_v13 = vadd.f32 %v9867_v27, %v9779_v30 }
 0x862   :  { %v11345_v63 = vpop.f32.mrf.mxu0 }
 0x863   :  { %v9880_v12 = vadd.f32 %v11168_v43, %v9868_v13 }
 0x864   :  { %v9782_v36 = vpop.f32.mrf.mxu0 }
 0x865   :  { %v11169_v25 = vmul.f32 -1.442695, %v9880_v12 }
 0x866   :  { %v11346_v59 = vpop.f32.mrf.mxu0 }
 0x867   :  { %11491 = vpow2.f32 %v11169_v25 }
 0x874   :  { %v11492_v4 = vpop.eup %11491 }
 0x875   :  { %v9884_v45 = vadd.f32 1.0, %v11492_v4 }
 0x877   :  { %11493 = vrcp.f32 %v9884_v45 }
 0x884   :  { %v11494_v49 = vpop.eup %11493 }
 0x885   :  { %9887 = vst [vmem:[#allocation23] sm:$0xff] %v11494_v49 }
 0x886   :  { %11769 = shalt.err (!%p11766_p13)
}
 0x887   :  { %9897 = dma.vmem_to_hbm [thread:$0]  %s9895_s12, 128, %s12314_s13, [#allocation4]  }
 0x888   :  { %11792 = dma.done.wait [#allocation4], 128  }
 0x889   :  { %11793 = vsyncadd [#allocation4], 4294967168 }
 0x88a   :  { %9901 = vsyncpa [#allocation3], 1 }
 0x88b   :  { %9902 = vsyncpa [#allocation6], 1 }
 0x88c   :  { %9903 = vsyncpa [#allocation9], 1 }
 0x88d   :  { %9904 = vsyncpa [#allocation12], 1 }
 0x88e   :  { %9905 = vsyncpa [#allocation15], 1 }
 0x88f   :  { %9906 = vsyncpa [#allocation18], 1 }
 0x890   :  { %9907 = vsyncpa [#allocation21], 1 }
 0x891   :  { %9908 = vsyncpa [#allocation4], 1 }

</bundles_post_ra>
